<compile_context>
chip_gen: v7x
topology: tpu7x:2x2x1
jax: 0.10.0
libtpu: 0.0.40
codegen_flags: <defaults>
</compile_context>

<pallas_src>
import functools

import jax
import jax.numpy as jnp
from jax import lax
from jax.experimental import pallas as pl
from jax.experimental.pallas import tpu as pltpu

BN_EPS = 1e-5
LANES = 128      # pad Cout up to a multiple of this so every store is lane-dense
SUBLANES = 8     # pad the pooled-row axis up to a multiple of this


def _round_up(x, m):
    return -(-x // m) * m


# ------------------------------------ kernel -----------------------------------------
def _fused_layer_kernel(p_ref, w_ref, g_ref, b_ref, o_ref, y_ref, *, inv_count, act):
    """Fused Conv2d(3x3,pad=1) + BatchNorm2d(training stats) + activation + MaxPool2x2.

    p_ref: (4, Rp, K)  bf16 im2col patches; leading axis = 2x2 pool-window slot q.
                       Rows beyond the real Rq are zero padding (stats unaffected).
    w_ref: (K, Cp)     bf16 conv taps, output channels zero-padded to a lane multiple.
    g_ref, b_ref: (1, Cp) f32 BN gamma / beta (zero padded).
    o_ref: (Rp, Cp)    f32 pooled output (lane dense).
    y_ref: (4, Rp, Cp) f32 VMEM scratch holding the conv output of all 4 pool slots.
    """
    w = w_ref[...]

    # ---- phase 1: conv matmuls (MXU) + per-channel sum / sum-of-squares -------------
    ssum = None
    ssq = None
    for q in range(4):                                    # statically unrolled
        yq = jnp.dot(p_ref[q], w, preferred_element_type=jnp.float32)
        y_ref[q] = yq
        s1 = jnp.sum(yq, axis=0, keepdims=True)           # (1, Cp)
        s2 = jnp.sum(yq * yq, axis=0, keepdims=True)      # (1, Cp)
        ssum = s1 if ssum is None else ssum + s1
        ssq = s2 if ssq is None else ssq + s2

    # ---- training-mode BatchNorm scale/shift from the global batch stats ------------
    mean = ssum * inv_count
    var = ssq * inv_count - mean * mean                   # biased var, as torch BN
    scale = g_ref[...] * lax.rsqrt(var + BN_EPS)
    shift = b_ref[...] - mean * scale

    # ---- phase 2: normalize + activation + max over the 4 pool-window slots ---------
    res = None
    for q in range(4):
        z = y_ref[q] * scale + shift
        if act == "relu":
            z = jnp.maximum(z, 0.0)
        else:                                             # sigmoid via exp + EUP recip
            z = pl.reciprocal(1.0 + jnp.exp(-z), approx=True)
        res = z if res is None else jnp.maximum(res, z)
    o_ref[...] = res


# ------------- fused Conv2d(3x3, p=1) + BatchNorm2d + act + MaxPool2d(2,2) ------------
def conv_bn_act_pool(x_nhwc, w, gamma, beta, *, stride, act):
    """NHWC in -> NHWC out.  `w` is the PyTorch (Cout, Cin, 3, 3) conv weight."""
    N, H, W, Cin = x_nhwc.shape
    Cout = w.shape[0]
    Hout = (H - 1) // stride + 1                          # k=3, pad=1
    Wout = (W - 1) // stride + 1
    H2, W2 = Hout // 2, Wout // 2
    if H2 == 0 or W2 == 0:
        raise ValueError("MaxPool2d output size would be 0 (PyTorch raises here)")
    # NOTE: BN stats are taken over the 2*H2 x 2*W2 conv rows feeding the pool; this
    # equals PyTorch's full-conv-output stats whenever Hout/Wout are even, which holds
    # for every layer reachable in this forward.

    Rq = N * H2 * W2                                      # pooled rows, ordered (n,i,j)
    M = 4 * Rq                                            # conv rows feeding the stats
    K = 9 * Cin
    Rp = _round_up(Rq, SUBLANES)                          # sublane-aligned row count
    Cp = _round_up(Cout, LANES)                           # lane-dense channel count

    # Host-side im2col: 9 strided taps over the full conv-output grid, then fold the
    # 2x2 pool window into a leading axis of size 4 (rows ordered (q, n, i, j)).
    xp = jnp.pad(x_nhwc, ((0, 0), (1, 1), (1, 1), (0, 0))).astype(jnp.bfloat16)
    taps = []
    for dy in range(3):
        for dx in range(3):
            taps.append(lax.slice(
                xp, (0, dy, dx, 0),
                (N, dy + stride * (Hout - 1) + 1, dx + stride * (Wout - 1) + 1, Cin),
                (1, stride, stride, 1)))                  # (N, Hout, Wout, Cin)
    pat = jnp.concatenate(taps, axis=-1)                  # (N, Hout, Wout, 9*Cin)
    pat = pat.reshape(N, H2, 2, W2, 2, K)
    pat = jnp.transpose(pat, (2, 4, 0, 1, 3, 5)).reshape(4, Rq, K)
    if Rp != Rq:                                          # zero rows -> stats unchanged
        pat = jnp.pad(pat, ((0, 0), (0, Rp - Rq), (0, 0)))

    w_fused = jnp.transpose(w, (2, 3, 1, 0)).reshape(K, Cout).astype(jnp.bfloat16)
    if Cp != Cout:                                        # lane-dense zero padding
        w_fused = jnp.pad(w_fused, ((0, 0), (0, Cp - Cout)))
        gamma = jnp.pad(gamma, (0, Cp - Cout))
        beta = jnp.pad(beta, (0, Cp - Cout))
    g2 = gamma.reshape(1, Cp).astype(jnp.float32)
    b2 = beta.reshape(1, Cp).astype(jnp.float32)

    # Single fused invocation: all operands + the conv-output scratch total < 3 MB,
    # far under every generation's VMEM (16 MiB default scope on v5e), so no tiling.
    pooled = pl.pallas_call(
        functools.partial(_fused_layer_kernel, inv_count=1.0 / M, act=act),
        grid=(1,),
        in_specs=[pl.BlockSpec((4, Rp, K), lambda i: (0, 0, 0)),
                  pl.BlockSpec((K, Cp), lambda i: (0, 0)),
                  pl.BlockSpec((1, Cp), lambda i: (0, 0)),
                  pl.BlockSpec((1, Cp), lambda i: (0, 0))],
        out_specs=pl.BlockSpec((Rp, Cp), lambda i: (0, 0)),
        out_shape=jax.ShapeDtypeStruct((Rp, Cp), jnp.float32),
        scratch_shapes=[pltpu.VMEM((4, Rp, Cp), jnp.float32)],
        compiler_params=pltpu.CompilerParams(dimension_semantics=("arbitrary",)),
    )(pat, w_fused, g2, b2)

    # Drop the lane/sublane padding before it can reach the next layer's im2col.
    return pooled[:Rq, :Cout].reshape(N, H2, W2, Cout)    # stay channels-last (NHWC)


# ----------------------------- layer0: expandGamma -----------------------------------
def expand_gamma_nhwc(x, eg_w, eg_b):
    """Linear(1,32) on the last axis of NCHW (N,3,H,1); emit NHWC (N, H, 32, 3).

    ~2 flops/element -> plain JAX (a dedicated Pallas launch is pure overhead).
    The '(x - mean)/std' line in the PyTorch layer0 is dead code and is skipped.
    """
    xs = jnp.transpose(x[..., 0], (0, 2, 1))                      # (N, H, C=3)
    return (xs[:, :, None, :] * eg_w.reshape(1, 1, -1, 1)
            + eg_b.reshape(1, 1, -1, 1)).astype(jnp.float32)      # (N, H, 32, C)


# --------------------------------- parameters ----------------------------------------
def init_params(key):
    ks = jax.random.split(key, 4)
    p = {"eg_w": jnp.full((32, 1), 1.3, jnp.float32),   # nn.init.constant_(w, 1.3)
         "eg_b": jnp.zeros((32,), jnp.float32)}

    def kaiming(k, cout, cin):
        std = (2.0 / (cout * 9)) ** 0.5                 # mode='fan_out', relu
        return std * jax.random.normal(k, (cout, cin, 3, 3), jnp.float32)

    for i, (cin, cout) in enumerate([(3, 32), (32, 64), (64, 128)], start=1):
        p[f"w{i}"] = kaiming(ks[i], cout, cin)
        p[f"g{i}"] = jnp.ones((cout,), jnp.float32)     # BatchNorm weight = 1
        p[f"be{i}"] = jnp.zeros((cout,), jnp.float32)   # BatchNorm bias = 0
        # Conv bias intentionally omitted: training-mode BatchNorm subtracts the batch
        # mean, which absorbs a per-channel conv bias exactly (it is dead work).
    return p


# ----------------------------------- forward -----------------------------------------
def nirvana_forward(x, p, trainmode=True):
    if trainmode:
        out = expand_gamma_nhwc(x, p["eg_w"], p["eg_b"])                    # layer0
        out = conv_bn_act_pool(out, p["w1"], p["g1"], p["be1"],
                               stride=1, act="relu")                        # layer1
        out = conv_bn_act_pool(out, p["w2"], p["g2"], p["be2"],
                               stride=2, act="sigmoid")                     # layer2
    else:
        out = jnp.transpose(x, (0, 2, 3, 1))                                # NCHW->NHWC
    out = conv_bn_act_pool(out, p["w3"], p["g3"], p["be3"],
                           stride=2, act="relu")                            # layer3
    # TODO(synk): layer4..layer8 of the PyTorch forward cannot execute for any input
    # that passed through expandGamma (layer4's MaxPool2d output size is 0 -> torch
    # raises; layer6 applies Linear(256,128)+BatchNorm1d to a 4-D tensor -> raises).
    # We stop exactly where PyTorch stops.
    return jnp.transpose(out, (0, 3, 1, 2))            # single final NHWC->NCHW


if __name__ == "__main__":
    key = jax.random.PRNGKey(0)
    kx, kp = jax.random.split(key)
    # (N=2, C=3, H=32, W=1): the trailing dim of size 1 feeds expandGamma = Linear(1, 32).
    x = jax.random.normal(kx, (2, 3, 32, 1), jnp.float32)
    params = init_params(kp)
    fwd = jax.jit(functools.partial(nirvana_forward, trainmode=True))
    out = jax.block_until_ready(fwd(x, params))
    assert out.shape == (2, 128, 1, 1), out.shape
    print("KERNEL_OK")
</pallas_src>

<mosaic_0001>
module attributes {stable_mosaic.version = 11 : i64} {
  func.func @_fused_layer_kernel(%arg0: i32, %arg1: memref<4x512x27xbf16, #tpu.memory_space<vmem>>, %arg2: memref<27x128xbf16, #tpu.memory_space<vmem>>, %arg3: memref<1x128xf32, #tpu.memory_space<vmem>>, %arg4: memref<1x128xf32, #tpu.memory_space<vmem>>, %arg5: memref<512x128xf32, #tpu.memory_space<vmem>>, %arg6: memref<4x512x128xf32, #tpu.memory_space<vmem>>) attributes {dimension_semantics = [#tpu.dimension_semantics<arbitrary>], iteration_bounds = array<i64: 1>, scalar_prefetch = 0 : i64, scratch_operands = 1 : i64, tpu.core_type = #tpu.core_type<tc>, window_params = [{pipeline_mode = #tpu.pipeline_mode<synchronous>, transform_indices = @transform_0, window_bounds = array<i64: 4, 512, 27>}, {pipeline_mode = #tpu.pipeline_mode<synchronous>, transform_indices = @transform_1, window_bounds = array<i64: 27, 128>}, {pipeline_mode = #tpu.pipeline_mode<synchronous>, transform_indices = @transform_2, window_bounds = array<i64: 1, 128>}, {pipeline_mode = #tpu.pipeline_mode<synchronous>, transform_indices = @transform_3, window_bounds = array<i64: 1, 128>}, {pipeline_mode = #tpu.pipeline_mode<synchronous>, transform_indices = @transform_4, window_bounds = array<i64: 512, 128>}]} {
    %c0 = arith.constant 0 : index
    %c0_0 = arith.constant 0 : index
    %0 = vector.load %arg2[%c0, %c0_0] : memref<27x128xbf16, #tpu.memory_space<vmem>>, vector<27x128xbf16>
    %c0_1 = arith.constant 0 : index
    %c0_2 = arith.constant 0 : index
    %c0_3 = arith.constant 0 : index
    %1 = vector.load %arg1[%c0_1, %c0_2, %c0_3] : memref<4x512x27xbf16, #tpu.memory_space<vmem>>, vector<1x512x27xbf16>
    %2 = vector.shape_cast %1 : vector<1x512x27xbf16> to vector<512x27xbf16>
    %cst = arith.constant dense<0.000000e+00> : vector<512x128xf32>
    %3 = tpu.matmul %2, %0, %cst {dimension_numbers = #tpu.dot_dimension_numbers<[1], [0], [0], [1], [0, 0, 1, 1], [], []>} : vector<512x27xbf16>, vector<27x128xbf16>, vector<512x128xf32> -> vector<512x128xf32>
    %c0_4 = arith.constant 0 : index
    %c0_5 = arith.constant 0 : index
    %c0_6 = arith.constant 0 : index
    %4 = vector.load %arg6[%c0_4, %c0_5, %c0_6] : memref<4x512x128xf32, #tpu.memory_space<vmem>>, vector<1x512x128xf32>
    %5 = vector.shape_cast %4 : vector<1x512x128xf32> to vector<512x128xf32>
    %6 = vector.shape_cast %3 : vector<512x128xf32> to vector<1x512x128xf32>
    tpu.vector_store %arg6[%c0_4, %c0_5, %c0_6], %6 {strides = array<i32>} : memref<4x512x128xf32, #tpu.memory_space<vmem>>, vector<1x512x128xf32>,
    %cst_7 = arith.constant dense<0.000000e+00> : vector<128xf32>
    %7 = vector.multi_reduction <add>, %3, %cst_7 [0] : vector<512x128xf32> to vector<128xf32>
    %8 = vector.shape_cast %7 : vector<128xf32> to vector<1x128xf32>
    %9 = arith.mulf %3, %3 : vector<512x128xf32>
    %cst_8 = arith.constant dense<0.000000e+00> : vector<128xf32>
    %10 = vector.multi_reduction <add>, %9, %cst_8 [0] : vector<512x128xf32> to vector<128xf32>
    %11 = vector.shape_cast %10 : vector<128xf32> to vector<1x128xf32>
    %c1 = arith.constant 1 : index
    %c0_9 = arith.constant 0 : index
    %c0_10 = arith.constant 0 : index
    %12 = vector.load %arg1[%c1, %c0_9, %c0_10] : memref<4x512x27xbf16, #tpu.memory_space<vmem>>, vector<1x512x27xbf16>
    %13 = vector.shape_cast %12 : vector<1x512x27xbf16> to vector<512x27xbf16>
    %cst_11 = arith.constant dense<0.000000e+00> : vector<512x128xf32>
    %14 = tpu.matmul %13, %0, %cst_11 {dimension_numbers = #tpu.dot_dimension_numbers<[1], [0], [0], [1], [0, 0, 1, 1], [], []>} : vector<512x27xbf16>, vector<27x128xbf16>, vector<512x128xf32> -> vector<512x128xf32>
    %c1_12 = arith.constant 1 : index
    %c0_13 = arith.constant 0 : index
    %c0_14 = arith.constant 0 : index
    %15 = vector.load %arg6[%c1_12, %c0_13, %c0_14] : memref<4x512x128xf32, #tpu.memory_space<vmem>>, vector<1x512x128xf32>
    %16 = vector.shape_cast %15 : vector<1x512x128xf32> to vector<512x128xf32>
    %17 = vector.shape_cast %14 : vector<512x128xf32> to vector<1x512x128xf32>
    tpu.vector_store %arg6[%c1_12, %c0_13, %c0_14], %17 {strides = array<i32>} : memref<4x512x128xf32, #tpu.memory_space<vmem>>, vector<1x512x128xf32>,
    %cst_15 = arith.constant dense<0.000000e+00> : vector<128xf32>
    %18 = vector.multi_reduction <add>, %14, %cst_15 [0] : vector<512x128xf32> to vector<128xf32>
    %19 = vector.shape_cast %18 : vector<128xf32> to vector<1x128xf32>
    %20 = arith.mulf %14, %14 : vector<512x128xf32>
    %cst_16 = arith.constant dense<0.000000e+00> : vector<128xf32>
    %21 = vector.multi_reduction <add>, %20, %cst_16 [0] : vector<512x128xf32> to vector<128xf32>
    %22 = vector.shape_cast %21 : vector<128xf32> to vector<1x128xf32>
    %23 = arith.addf %8, %19 : vector<1x128xf32>
    %24 = arith.addf %11, %22 : vector<1x128xf32>
    %c2 = arith.constant 2 : index
    %c0_17 = arith.constant 0 : index
    %c0_18 = arith.constant 0 : index
    %25 = vector.load %arg1[%c2, %c0_17, %c0_18] : memref<4x512x27xbf16, #tpu.memory_space<vmem>>, vector<1x512x27xbf16>
    %26 = vector.shape_cast %25 : vector<1x512x27xbf16> to vector<512x27xbf16>
    %cst_19 = arith.constant dense<0.000000e+00> : vector<512x128xf32>
    %27 = tpu.matmul %26, %0, %cst_19 {dimension_numbers = #tpu.dot_dimension_numbers<[1], [0], [0], [1], [0, 0, 1, 1], [], []>} : vector<512x27xbf16>, vector<27x128xbf16>, vector<512x128xf32> -> vector<512x128xf32>
    %c2_20 = arith.constant 2 : index
    %c0_21 = arith.constant 0 : index
    %c0_22 = arith.constant 0 : index
    %28 = vector.load %arg6[%c2_20, %c0_21, %c0_22] : memref<4x512x128xf32, #tpu.memory_space<vmem>>, vector<1x512x128xf32>
    %29 = vector.shape_cast %28 : vector<1x512x128xf32> to vector<512x128xf32>
    %30 = vector.shape_cast %27 : vector<512x128xf32> to vector<1x512x128xf32>
    tpu.vector_store %arg6[%c2_20, %c0_21, %c0_22], %30 {strides = array<i32>} : memref<4x512x128xf32, #tpu.memory_space<vmem>>, vector<1x512x128xf32>,
    %cst_23 = arith.constant dense<0.000000e+00> : vector<128xf32>
    %31 = vector.multi_reduction <add>, %27, %cst_23 [0] : vector<512x128xf32> to vector<128xf32>
    %32 = vector.shape_cast %31 : vector<128xf32> to vector<1x128xf32>
    %33 = arith.mulf %27, %27 : vector<512x128xf32>
    %cst_24 = arith.constant dense<0.000000e+00> : vector<128xf32>
    %34 = vector.multi_reduction <add>, %33, %cst_24 [0] : vector<512x128xf32> to vector<128xf32>
    %35 = vector.shape_cast %34 : vector<128xf32> to vector<1x128xf32>
    %36 = arith.addf %23, %32 : vector<1x128xf32>
    %37 = arith.addf %24, %35 : vector<1x128xf32>
    %c3 = arith.constant 3 : index
    %c0_25 = arith.constant 0 : index
    %c0_26 = arith.constant 0 : index
    %38 = vector.load %arg1[%c3, %c0_25, %c0_26] : memref<4x512x27xbf16, #tpu.memory_space<vmem>>, vector<1x512x27xbf16>
    %39 = vector.shape_cast %38 : vector<1x512x27xbf16> to vector<512x27xbf16>
    %cst_27 = arith.constant dense<0.000000e+00> : vector<512x128xf32>
    %40 = tpu.matmul %39, %0, %cst_27 {dimension_numbers = #tpu.dot_dimension_numbers<[1], [0], [0], [1], [0, 0, 1, 1], [], []>} : vector<512x27xbf16>, vector<27x128xbf16>, vector<512x128xf32> -> vector<512x128xf32>
    %c3_28 = arith.constant 3 : index
    %c0_29 = arith.constant 0 : index
    %c0_30 = arith.constant 0 : index
    %41 = vector.load %arg6[%c3_28, %c0_29, %c0_30] : memref<4x512x128xf32, #tpu.memory_space<vmem>>, vector<1x512x128xf32>
    %42 = vector.shape_cast %41 : vector<1x512x128xf32> to vector<512x128xf32>
    %43 = vector.shape_cast %40 : vector<512x128xf32> to vector<1x512x128xf32>
    tpu.vector_store %arg6[%c3_28, %c0_29, %c0_30], %43 {strides = array<i32>} : memref<4x512x128xf32, #tpu.memory_space<vmem>>, vector<1x512x128xf32>,
    %cst_31 = arith.constant dense<0.000000e+00> : vector<128xf32>
    %44 = vector.multi_reduction <add>, %40, %cst_31 [0] : vector<512x128xf32> to vector<128xf32>
    %45 = vector.shape_cast %44 : vector<128xf32> to vector<1x128xf32>
    %46 = arith.mulf %40, %40 : vector<512x128xf32>
    %cst_32 = arith.constant dense<0.000000e+00> : vector<128xf32>
    %47 = vector.multi_reduction <add>, %46, %cst_32 [0] : vector<512x128xf32> to vector<128xf32>
    %48 = vector.shape_cast %47 : vector<128xf32> to vector<1x128xf32>
    %49 = arith.addf %36, %45 : vector<1x128xf32>
    %50 = arith.addf %37, %48 : vector<1x128xf32>
    %cst_33 = arith.constant 4.8828125E-4 : f32
    %51 = vector.broadcast %cst_33 : f32 to vector<1x128xf32>
    %52 = arith.mulf %49, %51 : vector<1x128xf32>
    %cst_34 = arith.constant 4.8828125E-4 : f32
    %53 = vector.broadcast %cst_34 : f32 to vector<1x128xf32>
    %54 = arith.mulf %50, %53 : vector<1x128xf32>
    %55 = arith.mulf %52, %52 : vector<1x128xf32>
    %56 = arith.subf %54, %55 : vector<1x128xf32>
    %c0_35 = arith.constant 0 : index
    %c0_36 = arith.constant 0 : index
    %57 = vector.load %arg3[%c0_35, %c0_36] : memref<1x128xf32, #tpu.memory_space<vmem>>, vector<1x128xf32>
    %cst_37 = arith.constant 9.99999974E-6 : f32
    %58 = vector.broadcast %cst_37 : f32 to vector<1x128xf32>
    %59 = arith.addf %56, %58 : vector<1x128xf32>
    %60 = math.rsqrt %59 : vector<1x128xf32>
    %61 = arith.mulf %57, %60 : vector<1x128xf32>
    %c0_38 = arith.constant 0 : index
    %c0_39 = arith.constant 0 : index
    %62 = vector.load %arg4[%c0_38, %c0_39] : memref<1x128xf32, #tpu.memory_space<vmem>>, vector<1x128xf32>
    %63 = arith.mulf %52, %61 : vector<1x128xf32>
    %64 = arith.subf %62, %63 : vector<1x128xf32>
    %c0_40 = arith.constant 0 : index
    %c0_41 = arith.constant 0 : index
    %c0_42 = arith.constant 0 : index
    %65 = vector.load %arg6[%c0_40, %c0_41, %c0_42] : memref<4x512x128xf32, #tpu.memory_space<vmem>>, vector<1x512x128xf32>
    %66 = vector.shape_cast %65 : vector<1x512x128xf32> to vector<512x128xf32>
    %67 = vector.broadcast %61 : vector<1x128xf32> to vector<512x128xf32>
    %68 = arith.mulf %66, %67 : vector<512x128xf32>
    %69 = vector.broadcast %64 : vector<1x128xf32> to vector<512x128xf32>
    %70 = arith.addf %68, %69 : vector<512x128xf32>
    %cst_43 = arith.constant 0.000000e+00 : f32
    %71 = vector.broadcast %cst_43 : f32 to vector<512x128xf32>
    %72 = arith.maximumf %70, %71 : vector<512x128xf32>
    %c1_44 = arith.constant 1 : index
    %c0_45 = arith.constant 0 : index
    %c0_46 = arith.constant 0 : index
    %73 = vector.load %arg6[%c1_44, %c0_45, %c0_46] : memref<4x512x128xf32, #tpu.memory_space<vmem>>, vector<1x512x128xf32>
    %74 = vector.shape_cast %73 : vector<1x512x128xf32> to vector<512x128xf32>
    %75 = vector.broadcast %61 : vector<1x128xf32> to vector<512x128xf32>
    %76 = arith.mulf %74, %75 : vector<512x128xf32>
    %77 = vector.broadcast %64 : vector<1x128xf32> to vector<512x128xf32>
    %78 = arith.addf %76, %77 : vector<512x128xf32>
    %cst_47 = arith.constant 0.000000e+00 : f32
    %79 = vector.broadcast %cst_47 : f32 to vector<512x128xf32>
    %80 = arith.maximumf %78, %79 : vector<512x128xf32>
    %81 = arith.maximumf %72, %80 : vector<512x128xf32>
    %c2_48 = arith.constant 2 : index
    %c0_49 = arith.constant 0 : index
    %c0_50 = arith.constant 0 : index
    %82 = vector.load %arg6[%c2_48, %c0_49, %c0_50] : memref<4x512x128xf32, #tpu.memory_space<vmem>>, vector<1x512x128xf32>
    %83 = vector.shape_cast %82 : vector<1x512x128xf32> to vector<512x128xf32>
    %84 = vector.broadcast %61 : vector<1x128xf32> to vector<512x128xf32>
    %85 = arith.mulf %83, %84 : vector<512x128xf32>
    %86 = vector.broadcast %64 : vector<1x128xf32> to vector<512x128xf32>
    %87 = arith.addf %85, %86 : vector<512x128xf32>
    %cst_51 = arith.constant 0.000000e+00 : f32
    %88 = vector.broadcast %cst_51 : f32 to vector<512x128xf32>
    %89 = arith.maximumf %87, %88 : vector<512x128xf32>
    %90 = arith.maximumf %81, %89 : vector<512x128xf32>
    %c3_52 = arith.constant 3 : index
    %c0_53 = arith.constant 0 : index
    %c0_54 = arith.constant 0 : index
    %91 = vector.load %arg6[%c3_52, %c0_53, %c0_54] : memref<4x512x128xf32, #tpu.memory_space<vmem>>, vector<1x512x128xf32>
    %92 = vector.shape_cast %91 : vector<1x512x128xf32> to vector<512x128xf32>
    %93 = vector.broadcast %61 : vector<1x128xf32> to vector<512x128xf32>
    %94 = arith.mulf %92, %93 : vector<512x128xf32>
    %95 = vector.broadcast %64 : vector<1x128xf32> to vector<512x128xf32>
    %96 = arith.addf %94, %95 : vector<512x128xf32>
    %cst_55 = arith.constant 0.000000e+00 : f32
    %97 = vector.broadcast %cst_55 : f32 to vector<512x128xf32>
    %98 = arith.maximumf %96, %97 : vector<512x128xf32>
    %99 = arith.maximumf %90, %98 : vector<512x128xf32>
    %c0_56 = arith.constant 0 : index
    %c0_57 = arith.constant 0 : index
    %100 = vector.load %arg5[%c0_56, %c0_57] : memref<512x128xf32, #tpu.memory_space<vmem>>, vector<512x128xf32>
    tpu.vector_store %arg5[%c0_56, %c0_57], %99 {strides = array<i32>} : memref<512x128xf32, #tpu.memory_space<vmem>>, vector<512x128xf32>,
    return
  }
  func.func @transform_0(%arg0: i32) -> (i32, i32, i32) {
    %c0_i32 = arith.constant 0 : i32
    %c0_i32_0 = arith.constant 0 : i32
    %c0_i32_1 = arith.constant 0 : i32
    %c0_i32_2 = arith.constant 0 : i32
    return %c0_i32, %c0_i32_0, %c0_i32_1 : i32, i32, i32
  }
  func.func @transform_1(%arg0: i32) -> (i32, i32) {
    %c0_i32 = arith.constant 0 : i32
    %c0_i32_0 = arith.constant 0 : i32
    %c0_i32_1 = arith.constant 0 : i32
    return %c0_i32, %c0_i32_0 : i32, i32
  }
  func.func @transform_2(%arg0: i32) -> (i32, i32) {
    %c0_i32 = arith.constant 0 : i32
    %c0_i32_0 = arith.constant 0 : i32
    %c0_i32_1 = arith.constant 0 : i32
    return %c0_i32, %c0_i32_0 : i32, i32
  }
  func.func @transform_3(%arg0: i32) -> (i32, i32) {
    %c0_i32 = arith.constant 0 : i32
    %c0_i32_0 = arith.constant 0 : i32
    %c0_i32_1 = arith.constant 0 : i32
    return %c0_i32, %c0_i32_0 : i32, i32
  }
  func.func @transform_4(%arg0: i32) -> (i32, i32) {
    %c0_i32 = arith.constant 0 : i32
    %c0_i32_0 = arith.constant 0 : i32
    %c0_i32_1 = arith.constant 0 : i32
    return %c0_i32, %c0_i32_0 : i32, i32
  }
}

module attributes {stable_mosaic.version = 11 : i64} {
  func.func @_fused_layer_kernel(%arg0: i32, %arg1: memref<4x32x288xbf16, #tpu.memory_space<vmem>>, %arg2: memref<288x128xbf16, #tpu.memory_space<vmem>>, %arg3: memref<1x128xf32, #tpu.memory_space<vmem>>, %arg4: memref<1x128xf32, #tpu.memory_space<vmem>>, %arg5: memref<32x128xf32, #tpu.memory_space<vmem>>, %arg6: memref<4x32x128xf32, #tpu.memory_space<vmem>>) attributes {dimension_semantics = [#tpu.dimension_semantics<arbitrary>], iteration_bounds = array<i64: 1>, scalar_prefetch = 0 : i64, scratch_operands = 1 : i64, tpu.core_type = #tpu.core_type<tc>, window_params = [{pipeline_mode = #tpu.pipeline_mode<synchronous>, transform_indices = @transform_0, window_bounds = array<i64: 4, 32, 288>}, {pipeline_mode = #tpu.pipeline_mode<synchronous>, transform_indices = @transform_1, window_bounds = array<i64: 288, 128>}, {pipeline_mode = #tpu.pipeline_mode<synchronous>, transform_indices = @transform_2, window_bounds = array<i64: 1, 128>}, {pipeline_mode = #tpu.pipeline_mode<synchronous>, transform_indices = @transform_3, window_bounds = array<i64: 1, 128>}, {pipeline_mode = #tpu.pipeline_mode<synchronous>, transform_indices = @transform_4, window_bounds = array<i64: 32, 128>}]} {
    %c0 = arith.constant 0 : index
    %c0_0 = arith.constant 0 : index
    %0 = vector.load %arg2[%c0, %c0_0] : memref<288x128xbf16, #tpu.memory_space<vmem>>, vector<288x128xbf16>
    %c0_1 = arith.constant 0 : index
    %c0_2 = arith.constant 0 : index
    %c0_3 = arith.constant 0 : index
    %1 = vector.load %arg1[%c0_1, %c0_2, %c0_3] : memref<4x32x288xbf16, #tpu.memory_space<vmem>>, vector<1x32x288xbf16>
    %2 = vector.shape_cast %1 : vector<1x32x288xbf16> to vector<32x288xbf16>
    %cst = arith.constant dense<0.000000e+00> : vector<32x128xf32>
    %3 = tpu.matmul %2, %0, %cst {dimension_numbers = #tpu.dot_dimension_numbers<[1], [0], [0], [1], [0, 0, 1, 1], [], []>} : vector<32x288xbf16>, vector<288x128xbf16>, vector<32x128xf32> -> vector<32x128xf32>
    %c0_4 = arith.constant 0 : index
    %c0_5 = arith.constant 0 : index
    %c0_6 = arith.constant 0 : index
    %4 = vector.load %arg6[%c0_4, %c0_5, %c0_6] : memref<4x32x128xf32, #tpu.memory_space<vmem>>, vector<1x32x128xf32>
    %5 = vector.shape_cast %4 : vector<1x32x128xf32> to vector<32x128xf32>
    %6 = vector.shape_cast %3 : vector<32x128xf32> to vector<1x32x128xf32>
    tpu.vector_store %arg6[%c0_4, %c0_5, %c0_6], %6 {strides = array<i32>} : memref<4x32x128xf32, #tpu.memory_space<vmem>>, vector<1x32x128xf32>,
    %cst_7 = arith.constant dense<0.000000e+00> : vector<128xf32>
    %7 = vector.multi_reduction <add>, %3, %cst_7 [0] : vector<32x128xf32> to vector<128xf32>
    %8 = vector.shape_cast %7 : vector<128xf32> to vector<1x128xf32>
    %9 = arith.mulf %3, %3 : vector<32x128xf32>
    %cst_8 = arith.constant dense<0.000000e+00> : vector<128xf32>
    %10 = vector.multi_reduction <add>, %9, %cst_8 [0] : vector<32x128xf32> to vector<128xf32>
    %11 = vector.shape_cast %10 : vector<128xf32> to vector<1x128xf32>
    %c1 = arith.constant 1 : index
    %c0_9 = arith.constant 0 : index
    %c0_10 = arith.constant 0 : index
    %12 = vector.load %arg1[%c1, %c0_9, %c0_10] : memref<4x32x288xbf16, #tpu.memory_space<vmem>>, vector<1x32x288xbf16>
    %13 = vector.shape_cast %12 : vector<1x32x288xbf16> to vector<32x288xbf16>
    %cst_11 = arith.constant dense<0.000000e+00> : vector<32x128xf32>
    %14 = tpu.matmul %13, %0, %cst_11 {dimension_numbers = #tpu.dot_dimension_numbers<[1], [0], [0], [1], [0, 0, 1, 1], [], []>} : vector<32x288xbf16>, vector<288x128xbf16>, vector<32x128xf32> -> vector<32x128xf32>
    %c1_12 = arith.constant 1 : index
    %c0_13 = arith.constant 0 : index
    %c0_14 = arith.constant 0 : index
    %15 = vector.load %arg6[%c1_12, %c0_13, %c0_14] : memref<4x32x128xf32, #tpu.memory_space<vmem>>, vector<1x32x128xf32>
    %16 = vector.shape_cast %15 : vector<1x32x128xf32> to vector<32x128xf32>
    %17 = vector.shape_cast %14 : vector<32x128xf32> to vector<1x32x128xf32>
    tpu.vector_store %arg6[%c1_12, %c0_13, %c0_14], %17 {strides = array<i32>} : memref<4x32x128xf32, #tpu.memory_space<vmem>>, vector<1x32x128xf32>,
    %cst_15 = arith.constant dense<0.000000e+00> : vector<128xf32>
    %18 = vector.multi_reduction <add>, %14, %cst_15 [0] : vector<32x128xf32> to vector<128xf32>
    %19 = vector.shape_cast %18 : vector<128xf32> to vector<1x128xf32>
    %20 = arith.mulf %14, %14 : vector<32x128xf32>
    %cst_16 = arith.constant dense<0.000000e+00> : vector<128xf32>
    %21 = vector.multi_reduction <add>, %20, %cst_16 [0] : vector<32x128xf32> to vector<128xf32>
    %22 = vector.shape_cast %21 : vector<128xf32> to vector<1x128xf32>
    %23 = arith.addf %8, %19 : vector<1x128xf32>
    %24 = arith.addf %11, %22 : vector<1x128xf32>
    %c2 = arith.constant 2 : index
    %c0_17 = arith.constant 0 : index
    %c0_18 = arith.constant 0 : index
    %25 = vector.load %arg1[%c2, %c0_17, %c0_18] : memref<4x32x288xbf16, #tpu.memory_space<vmem>>, vector<1x32x288xbf16>
    %26 = vector.shape_cast %25 : vector<1x32x288xbf16> to vector<32x288xbf16>
    %cst_19 = arith.constant dense<0.000000e+00> : vector<32x128xf32>
    %27 = tpu.matmul %26, %0, %cst_19 {dimension_numbers = #tpu.dot_dimension_numbers<[1], [0], [0], [1], [0, 0, 1, 1], [], []>} : vector<32x288xbf16>, vector<288x128xbf16>, vector<32x128xf32> -> vector<32x128xf32>
    %c2_20 = arith.constant 2 : index
    %c0_21 = arith.constant 0 : index
    %c0_22 = arith.constant 0 : index
    %28 = vector.load %arg6[%c2_20, %c0_21, %c0_22] : memref<4x32x128xf32, #tpu.memory_space<vmem>>, vector<1x32x128xf32>
    %29 = vector.shape_cast %28 : vector<1x32x128xf32> to vector<32x128xf32>
    %30 = vector.shape_cast %27 : vector<32x128xf32> to vector<1x32x128xf32>
    tpu.vector_store %arg6[%c2_20, %c0_21, %c0_22], %30 {strides = array<i32>} : memref<4x32x128xf32, #tpu.memory_space<vmem>>, vector<1x32x128xf32>,
    %cst_23 = arith.constant dense<0.000000e+00> : vector<128xf32>
    %31 = vector.multi_reduction <add>, %27, %cst_23 [0] : vector<32x128xf32> to vector<128xf32>
    %32 = vector.shape_cast %31 : vector<128xf32> to vector<1x128xf32>
    %33 = arith.mulf %27, %27 : vector<32x128xf32>
    %cst_24 = arith.constant dense<0.000000e+00> : vector<128xf32>
    %34 = vector.multi_reduction <add>, %33, %cst_24 [0] : vector<32x128xf32> to vector<128xf32>
    %35 = vector.shape_cast %34 : vector<128xf32> to vector<1x128xf32>
    %36 = arith.addf %23, %32 : vector<1x128xf32>
    %37 = arith.addf %24, %35 : vector<1x128xf32>
    %c3 = arith.constant 3 : index
    %c0_25 = arith.constant 0 : index
    %c0_26 = arith.constant 0 : index
    %38 = vector.load %arg1[%c3, %c0_25, %c0_26] : memref<4x32x288xbf16, #tpu.memory_space<vmem>>, vector<1x32x288xbf16>
    %39 = vector.shape_cast %38 : vector<1x32x288xbf16> to vector<32x288xbf16>
    %cst_27 = arith.constant dense<0.000000e+00> : vector<32x128xf32>
    %40 = tpu.matmul %39, %0, %cst_27 {dimension_numbers = #tpu.dot_dimension_numbers<[1], [0], [0], [1], [0, 0, 1, 1], [], []>} : vector<32x288xbf16>, vector<288x128xbf16>, vector<32x128xf32> -> vector<32x128xf32>
    %c3_28 = arith.constant 3 : index
    %c0_29 = arith.constant 0 : index
    %c0_30 = arith.constant 0 : index
    %41 = vector.load %arg6[%c3_28, %c0_29, %c0_30] : memref<4x32x128xf32, #tpu.memory_space<vmem>>, vector<1x32x128xf32>
    %42 = vector.shape_cast %41 : vector<1x32x128xf32> to vector<32x128xf32>
    %43 = vector.shape_cast %40 : vector<32x128xf32> to vector<1x32x128xf32>
    tpu.vector_store %arg6[%c3_28, %c0_29, %c0_30], %43 {strides = array<i32>} : memref<4x32x128xf32, #tpu.memory_space<vmem>>, vector<1x32x128xf32>,
    %cst_31 = arith.constant dense<0.000000e+00> : vector<128xf32>
    %44 = vector.multi_reduction <add>, %40, %cst_31 [0] : vector<32x128xf32> to vector<128xf32>
    %45 = vector.shape_cast %44 : vector<128xf32> to vector<1x128xf32>
    %46 = arith.mulf %40, %40 : vector<32x128xf32>
    %cst_32 = arith.constant dense<0.000000e+00> : vector<128xf32>
    %47 = vector.multi_reduction <add>, %46, %cst_32 [0] : vector<32x128xf32> to vector<128xf32>
    %48 = vector.shape_cast %47 : vector<128xf32> to vector<1x128xf32>
    %49 = arith.addf %36, %45 : vector<1x128xf32>
    %50 = arith.addf %37, %48 : vector<1x128xf32>
    %cst_33 = arith.constant 7.812500e-03 : f32
    %51 = vector.broadcast %cst_33 : f32 to vector<1x128xf32>
    %52 = arith.mulf %49, %51 : vector<1x128xf32>
    %cst_34 = arith.constant 7.812500e-03 : f32
    %53 = vector.broadcast %cst_34 : f32 to vector<1x128xf32>
    %54 = arith.mulf %50, %53 : vector<1x128xf32>
    %55 = arith.mulf %52, %52 : vector<1x128xf32>
    %56 = arith.subf %54, %55 : vector<1x128xf32>
    %c0_35 = arith.constant 0 : index
    %c0_36 = arith.constant 0 : index
    %57 = vector.load %arg3[%c0_35, %c0_36] : memref<1x128xf32, #tpu.memory_space<vmem>>, vector<1x128xf32>
    %cst_37 = arith.constant 9.99999974E-6 : f32
    %58 = vector.broadcast %cst_37 : f32 to vector<1x128xf32>
    %59 = arith.addf %56, %58 : vector<1x128xf32>
    %60 = math.rsqrt %59 : vector<1x128xf32>
    %61 = arith.mulf %57, %60 : vector<1x128xf32>
    %c0_38 = arith.constant 0 : index
    %c0_39 = arith.constant 0 : index
    %62 = vector.load %arg4[%c0_38, %c0_39] : memref<1x128xf32, #tpu.memory_space<vmem>>, vector<1x128xf32>
    %63 = arith.mulf %52, %61 : vector<1x128xf32>
    %64 = arith.subf %62, %63 : vector<1x128xf32>
    %c0_40 = arith.constant 0 : index
    %c0_41 = arith.constant 0 : index
    %c0_42 = arith.constant 0 : index
    %65 = vector.load %arg6[%c0_40, %c0_41, %c0_42] : memref<4x32x128xf32, #tpu.memory_space<vmem>>, vector<1x32x128xf32>
    %66 = vector.shape_cast %65 : vector<1x32x128xf32> to vector<32x128xf32>
    %67 = vector.broadcast %61 : vector<1x128xf32> to vector<32x128xf32>
    %68 = arith.mulf %66, %67 : vector<32x128xf32>
    %69 = vector.broadcast %64 : vector<1x128xf32> to vector<32x128xf32>
    %70 = arith.addf %68, %69 : vector<32x128xf32>
    %cst_43 = arith.constant 0.000000e+00 : f32
    %71 = vector.broadcast %cst_43 : f32 to vector<32x128xf32>
    %72 = arith.subf %71, %70 : vector<32x128xf32>
    %73 = math.exp %72 : vector<32x128xf32>
    %cst_44 = arith.constant 1.000000e+00 : f32
    %74 = vector.broadcast %cst_44 : f32 to vector<32x128xf32>
    %75 = arith.addf %74, %73 : vector<32x128xf32>
    %76 = tpu.reciprocal %75 {approx = true} : vector<32x128xf32> -> vector<32x128xf32>
    %c1_45 = arith.constant 1 : index
    %c0_46 = arith.constant 0 : index
    %c0_47 = arith.constant 0 : index
    %77 = vector.load %arg6[%c1_45, %c0_46, %c0_47] : memref<4x32x128xf32, #tpu.memory_space<vmem>>, vector<1x32x128xf32>
    %78 = vector.shape_cast %77 : vector<1x32x128xf32> to vector<32x128xf32>
    %79 = vector.broadcast %61 : vector<1x128xf32> to vector<32x128xf32>
    %80 = arith.mulf %78, %79 : vector<32x128xf32>
    %81 = vector.broadcast %64 : vector<1x128xf32> to vector<32x128xf32>
    %82 = arith.addf %80, %81 : vector<32x128xf32>
    %cst_48 = arith.constant 0.000000e+00 : f32
    %83 = vector.broadcast %cst_48 : f32 to vector<32x128xf32>
    %84 = arith.subf %83, %82 : vector<32x128xf32>
    %85 = math.exp %84 : vector<32x128xf32>
    %cst_49 = arith.constant 1.000000e+00 : f32
    %86 = vector.broadcast %cst_49 : f32 to vector<32x128xf32>
    %87 = arith.addf %86, %85 : vector<32x128xf32>
    %88 = tpu.reciprocal %87 {approx = true} : vector<32x128xf32> -> vector<32x128xf32>
    %89 = arith.maximumf %76, %88 : vector<32x128xf32>
    %c2_50 = arith.constant 2 : index
    %c0_51 = arith.constant 0 : index
    %c0_52 = arith.constant 0 : index
    %90 = vector.load %arg6[%c2_50, %c0_51, %c0_52] : memref<4x32x128xf32, #tpu.memory_space<vmem>>, vector<1x32x128xf32>
    %91 = vector.shape_cast %90 : vector<1x32x128xf32> to vector<32x128xf32>
    %92 = vector.broadcast %61 : vector<1x128xf32> to vector<32x128xf32>
    %93 = arith.mulf %91, %92 : vector<32x128xf32>
    %94 = vector.broadcast %64 : vector<1x128xf32> to vector<32x128xf32>
    %95 = arith.addf %93, %94 : vector<32x128xf32>
    %cst_53 = arith.constant 0.000000e+00 : f32
    %96 = vector.broadcast %cst_53 : f32 to vector<32x128xf32>
    %97 = arith.subf %96, %95 : vector<32x128xf32>
    %98 = math.exp %97 : vector<32x128xf32>
    %cst_54 = arith.constant 1.000000e+00 : f32
    %99 = vector.broadcast %cst_54 : f32 to vector<32x128xf32>
    %100 = arith.addf %99, %98 : vector<32x128xf32>
    %101 = tpu.reciprocal %100 {approx = true} : vector<32x128xf32> -> vector<32x128xf32>
    %102 = arith.maximumf %89, %101 : vector<32x128xf32>
    %c3_55 = arith.constant 3 : index
    %c0_56 = arith.constant 0 : index
    %c0_57 = arith.constant 0 : index
    %103 = vector.load %arg6[%c3_55, %c0_56, %c0_57] : memref<4x32x128xf32, #tpu.memory_space<vmem>>, vector<1x32x128xf32>
    %104 = vector.shape_cast %103 : vector<1x32x128xf32> to vector<32x128xf32>
    %105 = vector.broadcast %61 : vector<1x128xf32> to vector<32x128xf32>
    %106 = arith.mulf %104, %105 : vector<32x128xf32>
    %107 = vector.broadcast %64 : vector<1x128xf32> to vector<32x128xf32>
    %108 = arith.addf %106, %107 : vector<32x128xf32>
    %cst_58 = arith.constant 0.000000e+00 : f32
    %109 = vector.broadcast %cst_58 : f32 to vector<32x128xf32>
    %110 = arith.subf %109, %108 : vector<32x128xf32>
    %111 = math.exp %110 : vector<32x128xf32>
    %cst_59 = arith.constant 1.000000e+00 : f32
    %112 = vector.broadcast %cst_59 : f32 to vector<32x128xf32>
    %113 = arith.addf %112, %111 : vector<32x128xf32>
    %114 = tpu.reciprocal %113 {approx = true} : vector<32x128xf32> -> vector<32x128xf32>
    %115 = arith.maximumf %102, %114 : vector<32x128xf32>
    %c0_60 = arith.constant 0 : index
    %c0_61 = arith.constant 0 : index
    %116 = vector.load %arg5[%c0_60, %c0_61] : memref<32x128xf32, #tpu.memory_space<vmem>>, vector<32x128xf32>
    tpu.vector_store %arg5[%c0_60, %c0_61], %115 {strides = array<i32>} : memref<32x128xf32, #tpu.memory_space<vmem>>, vector<32x128xf32>,
    return
  }
  func.func @transform_0(%arg0: i32) -> (i32, i32, i32) {
    %c0_i32 = arith.constant 0 : i32
    %c0_i32_0 = arith.constant 0 : i32
    %c0_i32_1 = arith.constant 0 : i32
    %c0_i32_2 = arith.constant 0 : i32
    return %c0_i32, %c0_i32_0, %c0_i32_1 : i32, i32, i32
  }
  func.func @transform_1(%arg0: i32) -> (i32, i32) {
    %c0_i32 = arith.constant 0 : i32
    %c0_i32_0 = arith.constant 0 : i32
    %c0_i32_1 = arith.constant 0 : i32
    return %c0_i32, %c0_i32_0 : i32, i32
  }
  func.func @transform_2(%arg0: i32) -> (i32, i32) {
    %c0_i32 = arith.constant 0 : i32
    %c0_i32_0 = arith.constant 0 : i32
    %c0_i32_1 = arith.constant 0 : i32
    return %c0_i32, %c0_i32_0 : i32, i32
  }
  func.func @transform_3(%arg0: i32) -> (i32, i32) {
    %c0_i32 = arith.constant 0 : i32
    %c0_i32_0 = arith.constant 0 : i32
    %c0_i32_1 = arith.constant 0 : i32
    return %c0_i32, %c0_i32_0 : i32, i32
  }
  func.func @transform_4(%arg0: i32) -> (i32, i32) {
    %c0_i32 = arith.constant 0 : i32
    %c0_i32_0 = arith.constant 0 : i32
    %c0_i32_1 = arith.constant 0 : i32
    return %c0_i32, %c0_i32_0 : i32, i32
  }
}

module attributes {stable_mosaic.version = 11 : i64} {
  func.func @_fused_layer_kernel(%arg0: i32, %arg1: memref<4x8x576xbf16, #tpu.memory_space<vmem>>, %arg2: memref<576x128xbf16, #tpu.memory_space<vmem>>, %arg3: memref<1x128xf32, #tpu.memory_space<vmem>>, %arg4: memref<1x128xf32, #tpu.memory_space<vmem>>, %arg5: memref<8x128xf32, #tpu.memory_space<vmem>>, %arg6: memref<4x8x128xf32, #tpu.memory_space<vmem>>) attributes {dimension_semantics = [#tpu.dimension_semantics<arbitrary>], iteration_bounds = array<i64: 1>, scalar_prefetch = 0 : i64, scratch_operands = 1 : i64, tpu.core_type = #tpu.core_type<tc>, window_params = [{pipeline_mode = #tpu.pipeline_mode<synchronous>, transform_indices = @transform_0, window_bounds = array<i64: 4, 8, 576>}, {pipeline_mode = #tpu.pipeline_mode<synchronous>, transform_indices = @transform_1, window_bounds = array<i64: 576, 128>}, {pipeline_mode = #tpu.pipeline_mode<synchronous>, transform_indices = @transform_2, window_bounds = array<i64: 1, 128>}, {pipeline_mode = #tpu.pipeline_mode<synchronous>, transform_indices = @transform_3, window_bounds = array<i64: 1, 128>}, {pipeline_mode = #tpu.pipeline_mode<synchronous>, transform_indices = @transform_4, window_bounds = array<i64: 8, 128>}]} {
    %c0 = arith.constant 0 : index
    %c0_0 = arith.constant 0 : index
    %0 = vector.load %arg2[%c0, %c0_0] : memref<576x128xbf16, #tpu.memory_space<vmem>>, vector<576x128xbf16>
    %c0_1 = arith.constant 0 : index
    %c0_2 = arith.constant 0 : index
    %c0_3 = arith.constant 0 : index
    %1 = vector.load %arg1[%c0_1, %c0_2, %c0_3] : memref<4x8x576xbf16, #tpu.memory_space<vmem>>, vector<1x8x576xbf16>
    %2 = vector.shape_cast %1 : vector<1x8x576xbf16> to vector<8x576xbf16>
    %cst = arith.constant dense<0.000000e+00> : vector<8x128xf32>
    %3 = tpu.matmul %2, %0, %cst {dimension_numbers = #tpu.dot_dimension_numbers<[1], [0], [0], [1], [0, 0, 1, 1], [], []>} : vector<8x576xbf16>, vector<576x128xbf16>, vector<8x128xf32> -> vector<8x128xf32>
    %c0_4 = arith.constant 0 : index
    %c0_5 = arith.constant 0 : index
    %c0_6 = arith.constant 0 : index
    %4 = vector.load %arg6[%c0_4, %c0_5, %c0_6] : memref<4x8x128xf32, #tpu.memory_space<vmem>>, vector<1x8x128xf32>
    %5 = vector.shape_cast %4 : vector<1x8x128xf32> to vector<8x128xf32>
    %6 = vector.shape_cast %3 : vector<8x128xf32> to vector<1x8x128xf32>
    tpu.vector_store %arg6[%c0_4, %c0_5, %c0_6], %6 {strides = array<i32>} : memref<4x8x128xf32, #tpu.memory_space<vmem>>, vector<1x8x128xf32>,
    %cst_7 = arith.constant dense<0.000000e+00> : vector<128xf32>
    %7 = vector.multi_reduction <add>, %3, %cst_7 [0] : vector<8x128xf32> to vector<128xf32>
    %8 = vector.shape_cast %7 : vector<128xf32> to vector<1x128xf32>
    %9 = arith.mulf %3, %3 : vector<8x128xf32>
    %cst_8 = arith.constant dense<0.000000e+00> : vector<128xf32>
    %10 = vector.multi_reduction <add>, %9, %cst_8 [0] : vector<8x128xf32> to vector<128xf32>
    %11 = vector.shape_cast %10 : vector<128xf32> to vector<1x128xf32>
    %c1 = arith.constant 1 : index
    %c0_9 = arith.constant 0 : index
    %c0_10 = arith.constant 0 : index
    %12 = vector.load %arg1[%c1, %c0_9, %c0_10] : memref<4x8x576xbf16, #tpu.memory_space<vmem>>, vector<1x8x576xbf16>
    %13 = vector.shape_cast %12 : vector<1x8x576xbf16> to vector<8x576xbf16>
    %cst_11 = arith.constant dense<0.000000e+00> : vector<8x128xf32>
    %14 = tpu.matmul %13, %0, %cst_11 {dimension_numbers = #tpu.dot_dimension_numbers<[1], [0], [0], [1], [0, 0, 1, 1], [], []>} : vector<8x576xbf16>, vector<576x128xbf16>, vector<8x128xf32> -> vector<8x128xf32>
    %c1_12 = arith.constant 1 : index
    %c0_13 = arith.constant 0 : index
    %c0_14 = arith.constant 0 : index
    %15 = vector.load %arg6[%c1_12, %c0_13, %c0_14] : memref<4x8x128xf32, #tpu.memory_space<vmem>>, vector<1x8x128xf32>
    %16 = vector.shape_cast %15 : vector<1x8x128xf32> to vector<8x128xf32>
    %17 = vector.shape_cast %14 : vector<8x128xf32> to vector<1x8x128xf32>
    tpu.vector_store %arg6[%c1_12, %c0_13, %c0_14], %17 {strides = array<i32>} : memref<4x8x128xf32, #tpu.memory_space<vmem>>, vector<1x8x128xf32>,
    %cst_15 = arith.constant dense<0.000000e+00> : vector<128xf32>
    %18 = vector.multi_reduction <add>, %14, %cst_15 [0] : vector<8x128xf32> to vector<128xf32>
    %19 = vector.shape_cast %18 : vector<128xf32> to vector<1x128xf32>
    %20 = arith.mulf %14, %14 : vector<8x128xf32>
    %cst_16 = arith.constant dense<0.000000e+00> : vector<128xf32>
    %21 = vector.multi_reduction <add>, %20, %cst_16 [0] : vector<8x128xf32> to vector<128xf32>
    %22 = vector.shape_cast %21 : vector<128xf32> to vector<1x128xf32>
    %23 = arith.addf %8, %19 : vector<1x128xf32>
    %24 = arith.addf %11, %22 : vector<1x128xf32>
    %c2 = arith.constant 2 : index
    %c0_17 = arith.constant 0 : index
    %c0_18 = arith.constant 0 : index
    %25 = vector.load %arg1[%c2, %c0_17, %c0_18] : memref<4x8x576xbf16, #tpu.memory_space<vmem>>, vector<1x8x576xbf16>
    %26 = vector.shape_cast %25 : vector<1x8x576xbf16> to vector<8x576xbf16>
    %cst_19 = arith.constant dense<0.000000e+00> : vector<8x128xf32>
    %27 = tpu.matmul %26, %0, %cst_19 {dimension_numbers = #tpu.dot_dimension_numbers<[1], [0], [0], [1], [0, 0, 1, 1], [], []>} : vector<8x576xbf16>, vector<576x128xbf16>, vector<8x128xf32> -> vector<8x128xf32>
    %c2_20 = arith.constant 2 : index
    %c0_21 = arith.constant 0 : index
    %c0_22 = arith.constant 0 : index
    %28 = vector.load %arg6[%c2_20, %c0_21, %c0_22] : memref<4x8x128xf32, #tpu.memory_space<vmem>>, vector<1x8x128xf32>
    %29 = vector.shape_cast %28 : vector<1x8x128xf32> to vector<8x128xf32>
    %30 = vector.shape_cast %27 : vector<8x128xf32> to vector<1x8x128xf32>
    tpu.vector_store %arg6[%c2_20, %c0_21, %c0_22], %30 {strides = array<i32>} : memref<4x8x128xf32, #tpu.memory_space<vmem>>, vector<1x8x128xf32>,
    %cst_23 = arith.constant dense<0.000000e+00> : vector<128xf32>
    %31 = vector.multi_reduction <add>, %27, %cst_23 [0] : vector<8x128xf32> to vector<128xf32>
    %32 = vector.shape_cast %31 : vector<128xf32> to vector<1x128xf32>
    %33 = arith.mulf %27, %27 : vector<8x128xf32>
    %cst_24 = arith.constant dense<0.000000e+00> : vector<128xf32>
    %34 = vector.multi_reduction <add>, %33, %cst_24 [0] : vector<8x128xf32> to vector<128xf32>
    %35 = vector.shape_cast %34 : vector<128xf32> to vector<1x128xf32>
    %36 = arith.addf %23, %32 : vector<1x128xf32>
    %37 = arith.addf %24, %35 : vector<1x128xf32>
    %c3 = arith.constant 3 : index
    %c0_25 = arith.constant 0 : index
    %c0_26 = arith.constant 0 : index
    %38 = vector.load %arg1[%c3, %c0_25, %c0_26] : memref<4x8x576xbf16, #tpu.memory_space<vmem>>, vector<1x8x576xbf16>
    %39 = vector.shape_cast %38 : vector<1x8x576xbf16> to vector<8x576xbf16>
    %cst_27 = arith.constant dense<0.000000e+00> : vector<8x128xf32>
    %40 = tpu.matmul %39, %0, %cst_27 {dimension_numbers = #tpu.dot_dimension_numbers<[1], [0], [0], [1], [0, 0, 1, 1], [], []>} : vector<8x576xbf16>, vector<576x128xbf16>, vector<8x128xf32> -> vector<8x128xf32>
    %c3_28 = arith.constant 3 : index
    %c0_29 = arith.constant 0 : index
    %c0_30 = arith.constant 0 : index
    %41 = vector.load %arg6[%c3_28, %c0_29, %c0_30] : memref<4x8x128xf32, #tpu.memory_space<vmem>>, vector<1x8x128xf32>
    %42 = vector.shape_cast %41 : vector<1x8x128xf32> to vector<8x128xf32>
    %43 = vector.shape_cast %40 : vector<8x128xf32> to vector<1x8x128xf32>
    tpu.vector_store %arg6[%c3_28, %c0_29, %c0_30], %43 {strides = array<i32>} : memref<4x8x128xf32, #tpu.memory_space<vmem>>, vector<1x8x128xf32>,
    %cst_31 = arith.constant dense<0.000000e+00> : vector<128xf32>
    %44 = vector.multi_reduction <add>, %40, %cst_31 [0] : vector<8x128xf32> to vector<128xf32>
    %45 = vector.shape_cast %44 : vector<128xf32> to vector<1x128xf32>
    %46 = arith.mulf %40, %40 : vector<8x128xf32>
    %cst_32 = arith.constant dense<0.000000e+00> : vector<128xf32>
    %47 = vector.multi_reduction <add>, %46, %cst_32 [0] : vector<8x128xf32> to vector<128xf32>
    %48 = vector.shape_cast %47 : vector<128xf32> to vector<1x128xf32>
    %49 = arith.addf %36, %45 : vector<1x128xf32>
    %50 = arith.addf %37, %48 : vector<1x128xf32>
    %cst_33 = arith.constant 1.250000e-01 : f32
    %51 = vector.broadcast %cst_33 : f32 to vector<1x128xf32>
    %52 = arith.mulf %49, %51 : vector<1x128xf32>
    %cst_34 = arith.constant 1.250000e-01 : f32
    %53 = vector.broadcast %cst_34 : f32 to vector<1x128xf32>
    %54 = arith.mulf %50, %53 : vector<1x128xf32>
    %55 = arith.mulf %52, %52 : vector<1x128xf32>
    %56 = arith.subf %54, %55 : vector<1x128xf32>
    %c0_35 = arith.constant 0 : index
    %c0_36 = arith.constant 0 : index
    %57 = vector.load %arg3[%c0_35, %c0_36] : memref<1x128xf32, #tpu.memory_space<vmem>>, vector<1x128xf32>
    %cst_37 = arith.constant 9.99999974E-6 : f32
    %58 = vector.broadcast %cst_37 : f32 to vector<1x128xf32>
    %59 = arith.addf %56, %58 : vector<1x128xf32>
    %60 = math.rsqrt %59 : vector<1x128xf32>
    %61 = arith.mulf %57, %60 : vector<1x128xf32>
    %c0_38 = arith.constant 0 : index
    %c0_39 = arith.constant 0 : index
    %62 = vector.load %arg4[%c0_38, %c0_39] : memref<1x128xf32, #tpu.memory_space<vmem>>, vector<1x128xf32>
    %63 = arith.mulf %52, %61 : vector<1x128xf32>
    %64 = arith.subf %62, %63 : vector<1x128xf32>
    %c0_40 = arith.constant 0 : index
    %c0_41 = arith.constant 0 : index
    %c0_42 = arith.constant 0 : index
    %65 = vector.load %arg6[%c0_40, %c0_41, %c0_42] : memref<4x8x128xf32, #tpu.memory_space<vmem>>, vector<1x8x128xf32>
    %66 = vector.shape_cast %65 : vector<1x8x128xf32> to vector<8x128xf32>
    %67 = vector.broadcast %61 : vector<1x128xf32> to vector<8x128xf32>
    %68 = arith.mulf %66, %67 : vector<8x128xf32>
    %69 = vector.broadcast %64 : vector<1x128xf32> to vector<8x128xf32>
    %70 = arith.addf %68, %69 : vector<8x128xf32>
    %cst_43 = arith.constant 0.000000e+00 : f32
    %71 = vector.broadcast %cst_43 : f32 to vector<8x128xf32>
    %72 = arith.maximumf %70, %71 : vector<8x128xf32>
    %c1_44 = arith.constant 1 : index
    %c0_45 = arith.constant 0 : index
    %c0_46 = arith.constant 0 : index
    %73 = vector.load %arg6[%c1_44, %c0_45, %c0_46] : memref<4x8x128xf32, #tpu.memory_space<vmem>>, vector<1x8x128xf32>
    %74 = vector.shape_cast %73 : vector<1x8x128xf32> to vector<8x128xf32>
    %75 = vector.broadcast %61 : vector<1x128xf32> to vector<8x128xf32>
    %76 = arith.mulf %74, %75 : vector<8x128xf32>
    %77 = vector.broadcast %64 : vector<1x128xf32> to vector<8x128xf32>
    %78 = arith.addf %76, %77 : vector<8x128xf32>
    %cst_47 = arith.constant 0.000000e+00 : f32
    %79 = vector.broadcast %cst_47 : f32 to vector<8x128xf32>
    %80 = arith.maximumf %78, %79 : vector<8x128xf32>
    %81 = arith.maximumf %72, %80 : vector<8x128xf32>
    %c2_48 = arith.constant 2 : index
    %c0_49 = arith.constant 0 : index
    %c0_50 = arith.constant 0 : index
    %82 = vector.load %arg6[%c2_48, %c0_49, %c0_50] : memref<4x8x128xf32, #tpu.memory_space<vmem>>, vector<1x8x128xf32>
    %83 = vector.shape_cast %82 : vector<1x8x128xf32> to vector<8x128xf32>
    %84 = vector.broadcast %61 : vector<1x128xf32> to vector<8x128xf32>
    %85 = arith.mulf %83, %84 : vector<8x128xf32>
    %86 = vector.broadcast %64 : vector<1x128xf32> to vector<8x128xf32>
    %87 = arith.addf %85, %86 : vector<8x128xf32>
    %cst_51 = arith.constant 0.000000e+00 : f32
    %88 = vector.broadcast %cst_51 : f32 to vector<8x128xf32>
    %89 = arith.maximumf %87, %88 : vector<8x128xf32>
    %90 = arith.maximumf %81, %89 : vector<8x128xf32>
    %c3_52 = arith.constant 3 : index
    %c0_53 = arith.constant 0 : index
    %c0_54 = arith.constant 0 : index
    %91 = vector.load %arg6[%c3_52, %c0_53, %c0_54] : memref<4x8x128xf32, #tpu.memory_space<vmem>>, vector<1x8x128xf32>
    %92 = vector.shape_cast %91 : vector<1x8x128xf32> to vector<8x128xf32>
    %93 = vector.broadcast %61 : vector<1x128xf32> to vector<8x128xf32>
    %94 = arith.mulf %92, %93 : vector<8x128xf32>
    %95 = vector.broadcast %64 : vector<1x128xf32> to vector<8x128xf32>
    %96 = arith.addf %94, %95 : vector<8x128xf32>
    %cst_55 = arith.constant 0.000000e+00 : f32
    %97 = vector.broadcast %cst_55 : f32 to vector<8x128xf32>
    %98 = arith.maximumf %96, %97 : vector<8x128xf32>
    %99 = arith.maximumf %90, %98 : vector<8x128xf32>
    %c0_56 = arith.constant 0 : index
    %c0_57 = arith.constant 0 : index
    %100 = vector.load %arg5[%c0_56, %c0_57] : memref<8x128xf32, #tpu.memory_space<vmem>>, vector<8x128xf32>
    tpu.vector_store %arg5[%c0_56, %c0_57], %99 {strides = array<i32>} : memref<8x128xf32, #tpu.memory_space<vmem>>, vector<8x128xf32>,
    return
  }
  func.func @transform_0(%arg0: i32) -> (i32, i32, i32) {
    %c0_i32 = arith.constant 0 : i32
    %c0_i32_0 = arith.constant 0 : i32
    %c0_i32_1 = arith.constant 0 : i32
    %c0_i32_2 = arith.constant 0 : i32
    return %c0_i32, %c0_i32_0, %c0_i32_1 : i32, i32, i32
  }
  func.func @transform_1(%arg0: i32) -> (i32, i32) {
    %c0_i32 = arith.constant 0 : i32
    %c0_i32_0 = arith.constant 0 : i32
    %c0_i32_1 = arith.constant 0 : i32
    return %c0_i32, %c0_i32_0 : i32, i32
  }
  func.func @transform_2(%arg0: i32) -> (i32, i32) {
    %c0_i32 = arith.constant 0 : i32
    %c0_i32_0 = arith.constant 0 : i32
    %c0_i32_1 = arith.constant 0 : i32
    return %c0_i32, %c0_i32_0 : i32, i32
  }
  func.func @transform_3(%arg0: i32) -> (i32, i32) {
    %c0_i32 = arith.constant 0 : i32
    %c0_i32_0 = arith.constant 0 : i32
    %c0_i32_1 = arith.constant 0 : i32
    return %c0_i32, %c0_i32_0 : i32, i32
  }
  func.func @transform_4(%arg0: i32) -> (i32, i32) {
    %c0_i32 = arith.constant 0 : i32
    %c0_i32_0 = arith.constant 0 : i32
    %c0_i32_1 = arith.constant 0 : i32
    return %c0_i32, %c0_i32_0 : i32, i32
  }
}

</mosaic_0001>

<bundles_post_ra>
// kernel: nirvana_forward.3
= control target key start
LH: loop header
LB: loop body
LE: loop exit
PB: predicated region body
PF: predicated region fallthrough
CT: control target
= control target key end

     0   :  { %vm354_vm0 = vcmask 1044480   ;;  %vm355_vm1 = vcmask 1045504   ;;  %vm257_vm2 = vcmask 220160   ;;  %v5851_v1 = vmov 65535   ;;  %s11099_s1 = inlined_call_operand.vmem [shape: bf16[27,128], index: 1, kind: input, shape index: {}]   ;;  %s11100_s0 = inlined_call_operand.vmem [shape: bf16[4,512,27], index: 0, kind: input, shape index: {}]   ;;  %s11101_s2 = inlined_call_operand.vmem [shape: f32[1,128], index: 2, kind: input, shape index: {}]   ;;  %s11102_s3 = inlined_call_operand.vmem [shape: f32[1,128], index: 3, kind: input, shape index: {}]   ;;  %s11103_s4 = inlined_call_operand.vmem [shape: f32[512,128], index: 4, kind: output, shape index: {}]  }
   0x1   :  { %v5719_v0 = vld [vmem:[%s11099_s1] sm:$0xff]   ;;  %v356_v2 = vsel %vm354_vm0, 4294967295, %v5851_v1  ;;  %v5720_v3 = vld [vmem:[%s11099_s1 + $0x8] sm:$0x3f]   ;;  %v5725_v10 = vld [vmem:[%s11100_s0 + $0x10] sm:$0xff]  }
   0x2   :  { %5446 = vmatprep.subr.bf16.mxu0 %v5719_v0  ;;  %5514 = vmatprep.subr.bf16.mxu1 %v5719_v0  ;;  %v357_v4 = vsel %vm355_vm1, %v356_v2, 0  ;;  %v5721_v5 = vld [vmem:[%s11100_s0] sm:$0xff]   ;;  %v5723_v8 = vld [vmem:[%s11100_s0 + $0x8] sm:$0xff]   ;;  %v5726_v11 = vld [vmem:[%s11100_s0 + $0x110] sm:$0xff]  }
   0x3   :  { %5447 = vmatpush3.bf16.msra.mxu0 %v5719_v0  ;;  %5515 = vmatpush3.bf16.msra.mxu1 %v5719_v0  ;;  %v359_v6 = vand.u32 %v5720_v3, %v357_v4  ;;  %v5722_v7 = vld [vmem:[%s11100_s0 + $0x100] sm:$0xff]   ;;  %v5724_v9 = vld [vmem:[%s11100_s0 + $0x108] sm:$0xff]   ;;  %v5727_v12 = vld [vmem:[%s11100_s0 + $0x18] sm:$0xff]  }
   0x4   :  { %5450 = vmatprep.mubr.msk.bf16.mxu0 %vm257_vm2, %v5721_v5  ;;  %5518 = vmatprep.mubr.msk.bf16.mxu1 %vm257_vm2, %v5722_v7  ;;  %v5728_v13 = vld [vmem:[%s11100_s0 + $0x118] sm:$0xff]   ;;  %v5729_v14 = vld [vmem:[%s11100_s0 + $0x20] sm:$0xff]   ;;  %v5731_v16 = vld [vmem:[%s11100_s0 + $0x28] sm:$0xff]  }
   0x5   :  { %5448 = vmatprep.subr.bf16.mxu0 %v359_v6  ;;  %5516 = vmatprep.subr.bf16.mxu1 %v359_v6  ;;  %v5730_v15 = vld [vmem:[%s11100_s0 + $0x120] sm:$0xff]   ;;  %v5732_v17 = vld [vmem:[%s11100_s0 + $0x128] sm:$0xff]   ;;  %v5733_v18 = vld [vmem:[%s11100_s0 + $0x30] sm:$0xff]  }
   0x6   :  { %v5734_v19 = vld [vmem:[%s11100_s0 + $0x130] sm:$0xff]   ;;  %v5735_v20 = vld [vmem:[%s11100_s0 + $0x38] sm:$0xff]   ;;  %v5737_v22 = vld [vmem:[%s11100_s0 + $0x40] sm:$0xff]  }
   0x7   :  { %5449 = vmatpush3.bf16.msra.mxu0 %v359_v6  ;;  %5517 = vmatpush3.bf16.msra.mxu1 %v359_v6  ;;  %v5736_v21 = vld [vmem:[%s11100_s0 + $0x138] sm:$0xff]   ;;  %v5738_v23 = vld [vmem:[%s11100_s0 + $0x140] sm:$0xff]   ;;  %v5739_v24 = vld [vmem:[%s11100_s0 + $0x48] sm:$0xff]  }
   0x8   :  { %5582 = vmatprep.subr.bf16.mxu0 %v5719_v0  ;;  %5650 = vmatprep.subr.bf16.mxu1 %v5719_v0  ;;  %v5740_v25 = vld [vmem:[%s11100_s0 + $0x148] sm:$0xff]   ;;  %v5741_v26 = vld [vmem:[%s11100_s0 + $0x50] sm:$0xff]   ;;  %v5743_v28 = vld [vmem:[%s11100_s0 + $0x58] sm:$0xff]  }
   0x9   :  { %v5742_v27 = vld [vmem:[%s11100_s0 + $0x150] sm:$0xff]   ;;  %v5744_v29 = vld [vmem:[%s11100_s0 + $0x158] sm:$0xff]   ;;  %v5745_v30 = vld [vmem:[%s11100_s0 + $0x60] sm:$0xff]  }
   0xa   :  { %5451 = vmatmul.mubr.msk.bf16.vlgmr.msra.gmra.mrb[0].mxu0 %vm257_vm2, %v5723_v8  ;;  %5519 = vmatmul.mubr.msk.bf16.vlgmr.msra.gmra.mrb[0].mxu1 %vm257_vm2, %v5724_v9  ;;  %v5746_v31 = vld [vmem:[%s11100_s0 + $0x160] sm:$0xff]   ;;  %v5747_v32 = vld [vmem:[%s11100_s0 + $0x68] sm:$0xff]   ;;  %v5749_v34 = vld [vmem:[%s11100_s0 + $0x70] sm:$0xff]  }
   0xb   :  { %5583 = vmatpush3.bf16.msra.mxu0 %v5719_v0  ;;  %5651 = vmatpush3.bf16.msra.mxu1 %v5719_v0  ;;  %v5748_v33 = vld [vmem:[%s11100_s0 + $0x168] sm:$0xff]   ;;  %v5750_v35 = vld [vmem:[%s11100_s0 + $0x170] sm:$0xff]   ;;  %v5751_v36 = vld [vmem:[%s11100_s0 + $0x78] sm:$0xff]  }
   0xc   :  { %5454 = vmatprep.mubr.msk.bf16.mxu0 %vm257_vm2, %v5725_v10  ;;  %5522 = vmatprep.mubr.msk.bf16.mxu1 %vm257_vm2, %v5726_v11  ;;  %v5752_v37 = vld [vmem:[%s11100_s0 + $0x178] sm:$0xff]   ;;  %v5753_v38 = vld [vmem:[%s11100_s0 + $0x80] sm:$0xff]   ;;  %v5755_v40 = vld [vmem:[%s11100_s0 + $0x88] sm:$0xff]  }
   0xd   :  { %5584 = vmatprep.subr.bf16.mxu0 %v359_v6  ;;  %5652 = vmatprep.subr.bf16.mxu1 %v359_v6  ;;  %v5754_v39 = vld [vmem:[%s11100_s0 + $0x180] sm:$0xff]   ;;  %v5756_v41 = vld [vmem:[%s11100_s0 + $0x188] sm:$0xff]   ;;  %v5757_v42 = vld [vmem:[%s11100_s0 + $0x90] sm:$0xff]  }
   0xe   :  { %v5758_v43 = vld [vmem:[%s11100_s0 + $0x190] sm:$0xff]   ;;  %v5759_v44 = vld [vmem:[%s11100_s0 + $0x98] sm:$0xff]   ;;  %v5761_v46 = vld [vmem:[%s11100_s0 + $0xa0] sm:$0xff]  }
   0xf   :  { %5585 = vmatpush3.bf16.msra.mxu0 %v359_v6  ;;  %5653 = vmatpush3.bf16.msra.mxu1 %v359_v6  ;;  %v5760_v45 = vld [vmem:[%s11100_s0 + $0x198] sm:$0xff]   ;;  %v5762_v47 = vld [vmem:[%s11100_s0 + $0x1a0] sm:$0xff]   ;;  %v5763_v48 = vld [vmem:[%s11100_s0 + $0xa8] sm:$0xff]  }
  0x10   :  { %v5764_v49 = vld [vmem:[%s11100_s0 + $0x1a8] sm:$0xff]   ;;  %v5765_v50 = vld [vmem:[%s11100_s0 + $0xb0] sm:$0xff]   ;;  %v5767_v52 = vld [vmem:[%s11100_s0 + $0xb8] sm:$0xff]  }
  0x11   :  { %v5766_v51 = vld [vmem:[%s11100_s0 + $0x1b0] sm:$0xff]   ;;  %v5768_v53 = vld [vmem:[%s11100_s0 + $0x1b8] sm:$0xff]   ;;  %v5769_v54 = vld [vmem:[%s11100_s0 + $0xc0] sm:$0xff]  }
  0x12   :  { %5455 = vmatmul.mubr.msk.bf16.gmra.mrb[4].mxu0 %vm257_vm2, %v5727_v12  ;;  %5523 = vmatmul.mubr.msk.bf16.gmra.mrb[4].mxu1 %vm257_vm2, %v5728_v13  ;;  %v5770_v55 = vld [vmem:[%s11100_s0 + $0x1c0] sm:$0xff]   ;;  %v5771_v56 = vld [vmem:[%s11100_s0 + $0xc8] sm:$0xff]   ;;  %v5773_v58 = vld [vmem:[%s11100_s0 + $0xd0] sm:$0xff]  }
  0x13   :  { %5458 = vmatprep.mubr.msk.bf16.mxu0 %vm257_vm2, %v5729_v14  ;;  %5526 = vmatprep.mubr.msk.bf16.mxu1 %vm257_vm2, %v5730_v15  ;;  %v5772_v57 = vld [vmem:[%s11100_s0 + $0x1c8] sm:$0xff]   ;;  %v5774_v59 = vld [vmem:[%s11100_s0 + $0x1d0] sm:$0xff]   ;;  %v5775_v60 = vld [vmem:[%s11100_s0 + $0xd8] sm:$0xff]  }
  0x14   :  { %v5776_v61 = vld [vmem:[%s11100_s0 + $0x1d8] sm:$0xff]   ;;  %v5777_v62 = vld [vmem:[%s11100_s0 + $0xe0] sm:$0xff]   ;;  %v5779_v0 = vld [vmem:[%s11100_s0 + $0xe8] sm:$0xff]  }
  0x15   :  { %v5778_v63 = vld [vmem:[%s11100_s0 + $0x1e0] sm:$0xff]   ;;  %v5780_v1 = vld [vmem:[%s11100_s0 + $0x1e8] sm:$0xff]   ;;  %v5781_v2 = vld [vmem:[%s11100_s0 + $0xf0] sm:$0xff]  }
  0x16   :  { %v5782_v3 = vld [vmem:[%s11100_s0 + $0x1f0] sm:$0xff]   ;;  %v5783_v4 = vld [vmem:[%s11100_s0 + $0xf8] sm:$0xff]   ;;  %v5785_v6 = vld [vmem:[%s11100_s0 + $0x200] sm:$0xff]  }
  0x17   :  { %v5784_v5 = vld [vmem:[%s11100_s0 + $0x1f8] sm:$0xff]   ;;  %v5786_v7 = vld [vmem:[%s11100_s0 + $0x300] sm:$0xff]   ;;  %v5787_v8 = vld [vmem:[%s11100_s0 + $0x208] sm:$0xff]  }
  0x18   :  { %v5788_v9 = vld [vmem:[%s11100_s0 + $0x308] sm:$0xff]   ;;  %v5789_v10 = vld [vmem:[%s11100_s0 + $0x210] sm:$0xff]   ;;  %v5791_v12 = vld [vmem:[%s11100_s0 + $0x218] sm:$0xff]  }
  0x19   :  { %v5790_v11 = vld [vmem:[%s11100_s0 + $0x310] sm:$0xff]   ;;  %v5792_v13 = vld [vmem:[%s11100_s0 + $0x318] sm:$0xff]   ;;  %v5793_v14 = vld [vmem:[%s11100_s0 + $0x220] sm:$0xff]  }
  0x1a   :  { %5459 = vmatmul.mubr.msk.bf16.gmra.mrb[8].mxu0 %vm257_vm2, %v5731_v16  ;;  %5527 = vmatmul.mubr.msk.bf16.gmra.mrb[8].mxu1 %vm257_vm2, %v5732_v17  ;;  %v5794_v15 = vld [vmem:[%s11100_s0 + $0x320] sm:$0xff]   ;;  %v5795_v16 = vld [vmem:[%s11100_s0 + $0x228] sm:$0xff]  }
  0x1b   :  { %5462 = vmatprep.mubr.msk.bf16.mxu0 %vm257_vm2, %v5733_v18  ;;  %5530 = vmatprep.mubr.msk.bf16.mxu1 %vm257_vm2, %v5734_v19  ;;  %v5796_v17 = vld [vmem:[%s11100_s0 + $0x328] sm:$0xff]   ;;  %v5797_v18 = vld [vmem:[%s11100_s0 + $0x230] sm:$0xff]  }
  0x1c   :  { %v5798_v19 = vld [vmem:[%s11100_s0 + $0x330] sm:$0xff]  }
  0x22   :  { %5463 = vmatmul.mubr.msk.bf16.gmra.mrb[12].mxu0 %vm257_vm2, %v5735_v20  ;;  %5531 = vmatmul.mubr.msk.bf16.gmra.mrb[12].mxu1 %vm257_vm2, %v5736_v21  ;;  %v5799_v20 = vld [vmem:[%s11100_s0 + $0x238] sm:$0xff]  }
  0x23   :  { %5466 = vmatprep.mubr.msk.bf16.mxu0 %vm257_vm2, %v5737_v22  ;;  %5534 = vmatprep.mubr.msk.bf16.mxu1 %vm257_vm2, %v5738_v23  ;;  %v5800_v21 = vld [vmem:[%s11100_s0 + $0x338] sm:$0xff]   ;;  %v5801_v22 = vld [vmem:[%s11100_s0 + $0x240] sm:$0xff]  }
  0x24   :  { %v5802_v23 = vld [vmem:[%s11100_s0 + $0x340] sm:$0xff]  }
  0x2a   :  { %5467 = vmatmul.mubr.msk.bf16.gmra.mrb[16].mxu0 %vm257_vm2, %v5739_v24  ;;  %5535 = vmatmul.mubr.msk.bf16.gmra.mrb[16].mxu1 %vm257_vm2, %v5740_v25  ;;  %v5803_v24 = vld [vmem:[%s11100_s0 + $0x248] sm:$0xff]  }
  0x2b   :  { %5470 = vmatprep.mubr.msk.bf16.mxu0 %vm257_vm2, %v5741_v26  ;;  %5538 = vmatprep.mubr.msk.bf16.mxu1 %vm257_vm2, %v5742_v27  ;;  %v5804_v25 = vld [vmem:[%s11100_s0 + $0x348] sm:$0xff]   ;;  %v5805_v26 = vld [vmem:[%s11100_s0 + $0x250] sm:$0xff]  }
  0x2c   :  { %v5806_v27 = vld [vmem:[%s11100_s0 + $0x350] sm:$0xff]  }
  0x32   :  { %5471 = vmatmul.mubr.msk.bf16.gmra.mrb[20].mxu0 %vm257_vm2, %v5743_v28  ;;  %5539 = vmatmul.mubr.msk.bf16.gmra.mrb[20].mxu1 %vm257_vm2, %v5744_v29  ;;  %v5807_v28 = vld [vmem:[%s11100_s0 + $0x258] sm:$0xff]  }
  0x33   :  { %5474 = vmatprep.mubr.msk.bf16.mxu0 %vm257_vm2, %v5745_v30  ;;  %5542 = vmatprep.mubr.msk.bf16.mxu1 %vm257_vm2, %v5746_v31  ;;  %v5808_v29 = vld [vmem:[%s11100_s0 + $0x358] sm:$0xff]   ;;  %v5809_v30 = vld [vmem:[%s11100_s0 + $0x260] sm:$0xff]  }
  0x34   :  { %v5810_v31 = vld [vmem:[%s11100_s0 + $0x360] sm:$0xff]  }
  0x3a   :  { %5475 = vmatmul.mubr.msk.bf16.gmra.mrb[24].mxu0 %vm257_vm2, %v5747_v32  ;;  %5543 = vmatmul.mubr.msk.bf16.gmra.mrb[24].mxu1 %vm257_vm2, %v5748_v33  ;;  %v5811_v32 = vld [vmem:[%s11100_s0 + $0x268] sm:$0xff]  }
  0x3b   :  { %5478 = vmatprep.mubr.msk.bf16.mxu0 %vm257_vm2, %v5749_v34  ;;  %5546 = vmatprep.mubr.msk.bf16.mxu1 %vm257_vm2, %v5750_v35  ;;  %v5812_v33 = vld [vmem:[%s11100_s0 + $0x368] sm:$0xff]   ;;  %v5813_v34 = vld [vmem:[%s11100_s0 + $0x270] sm:$0xff]  }
  0x3c   :  { %v5814_v35 = vld [vmem:[%s11100_s0 + $0x370] sm:$0xff]  }
  0x42   :  { %5479 = vmatmul.mubr.msk.bf16.gmra.mrb[28].mxu0 %vm257_vm2, %v5751_v36  ;;  %5547 = vmatmul.mubr.msk.bf16.gmra.mrb[28].mxu1 %vm257_vm2, %v5752_v37  ;;  %v5815_v36 = vld [vmem:[%s11100_s0 + $0x278] sm:$0xff]  }
  0x43   :  { %5482 = vmatprep.mubr.msk.bf16.mxu0 %vm257_vm2, %v5753_v38  ;;  %5550 = vmatprep.mubr.msk.bf16.mxu1 %vm257_vm2, %v5754_v39  ;;  %v5816_v37 = vld [vmem:[%s11100_s0 + $0x378] sm:$0xff]   ;;  %v5817_v38 = vld [vmem:[%s11100_s0 + $0x280] sm:$0xff]  }
  0x44   :  { %v5818_v39 = vld [vmem:[%s11100_s0 + $0x380] sm:$0xff]  }
  0x4a   :  { %5483 = vmatmul.mubr.msk.bf16.gmra.mrb[32].mxu0 %vm257_vm2, %v5755_v40  ;;  %5551 = vmatmul.mubr.msk.bf16.gmra.mrb[32].mxu1 %vm257_vm2, %v5756_v41  ;;  %v5819_v40 = vld [vmem:[%s11100_s0 + $0x288] sm:$0xff]  }
  0x4b   :  { %5486 = vmatprep.mubr.msk.bf16.mxu0 %vm257_vm2, %v5757_v42  ;;  %5554 = vmatprep.mubr.msk.bf16.mxu1 %vm257_vm2, %v5758_v43  ;;  %v5820_v41 = vld [vmem:[%s11100_s0 + $0x388] sm:$0xff]   ;;  %v5821_v42 = vld [vmem:[%s11100_s0 + $0x290] sm:$0xff]  }
  0x4c   :  { %v5822_v43 = vld [vmem:[%s11100_s0 + $0x390] sm:$0xff]  }
  0x52   :  { %5487 = vmatmul.mubr.msk.bf16.gmra.mrb[36].mxu0 %vm257_vm2, %v5759_v44  ;;  %5555 = vmatmul.mubr.msk.bf16.gmra.mrb[36].mxu1 %vm257_vm2, %v5760_v45  ;;  %v5823_v44 = vld [vmem:[%s11100_s0 + $0x298] sm:$0xff]  }
  0x53   :  { %5490 = vmatprep.mubr.msk.bf16.mxu0 %vm257_vm2, %v5761_v46  ;;  %5558 = vmatprep.mubr.msk.bf16.mxu1 %vm257_vm2, %v5762_v47  ;;  %v5824_v45 = vld [vmem:[%s11100_s0 + $0x398] sm:$0xff]   ;;  %v5825_v46 = vld [vmem:[%s11100_s0 + $0x2a0] sm:$0xff]  }
  0x54   :  { %v5826_v47 = vld [vmem:[%s11100_s0 + $0x3a0] sm:$0xff]  }
  0x5a   :  { %5491 = vmatmul.mubr.msk.bf16.gmra.mrb[40].mxu0 %vm257_vm2, %v5763_v48  ;;  %5559 = vmatmul.mubr.msk.bf16.gmra.mrb[40].mxu1 %vm257_vm2, %v5764_v49  ;;  %v5827_v48 = vld [vmem:[%s11100_s0 + $0x2a8] sm:$0xff]  }
  0x5b   :  { %5494 = vmatprep.mubr.msk.bf16.mxu0 %vm257_vm2, %v5765_v50  ;;  %5562 = vmatprep.mubr.msk.bf16.mxu1 %vm257_vm2, %v5766_v51  ;;  %v5828_v49 = vld [vmem:[%s11100_s0 + $0x3a8] sm:$0xff]   ;;  %v5829_v50 = vld [vmem:[%s11100_s0 + $0x2b0] sm:$0xff]  }
  0x5c   :  { %v5830_v51 = vld [vmem:[%s11100_s0 + $0x3b0] sm:$0xff]  }
  0x62   :  { %5495 = vmatmul.mubr.msk.bf16.gmra.mrb[44].mxu0 %vm257_vm2, %v5767_v52  ;;  %5563 = vmatmul.mubr.msk.bf16.gmra.mrb[44].mxu1 %vm257_vm2, %v5768_v53 }
  0x63   :  { %5498 = vmatprep.mubr.msk.bf16.mxu0 %vm257_vm2, %v5769_v54  ;;  %5566 = vmatprep.mubr.msk.bf16.mxu1 %vm257_vm2, %v5770_v55 }
  0x6a   :  { %5499 = vmatmul.mubr.msk.bf16.gmra.mrb[48].mxu0 %vm257_vm2, %v5771_v56  ;;  %5567 = vmatmul.mubr.msk.bf16.gmra.mrb[48].mxu1 %vm257_vm2, %v5772_v57  ;;  %v5831_v56 = vld [vmem:[%s11100_s0 + $0x2b8] sm:$0xff]  }
  0x6b   :  { %5502 = vmatprep.mubr.msk.bf16.mxu0 %vm257_vm2, %v5773_v58  ;;  %5570 = vmatprep.mubr.msk.bf16.mxu1 %vm257_vm2, %v5774_v59  ;;  %v5832_v57 = vld [vmem:[%s11100_s0 + $0x3b8] sm:$0xff]  }
  0x72   :  { %5503 = vmatmul.mubr.msk.bf16.gmra.mrb[52].mxu0 %vm257_vm2, %v5775_v60  ;;  %5571 = vmatmul.mubr.msk.bf16.gmra.mrb[52].mxu1 %vm257_vm2, %v5776_v61  ;;  %v5833_v61 = vld [vmem:[%s11100_s0 + $0x2c0] sm:$0xff]  }
  0x73   :  { %5506 = vmatprep.mubr.msk.bf16.mxu0 %vm257_vm2, %v5777_v62  ;;  %5574 = vmatprep.mubr.msk.bf16.mxu1 %vm257_vm2, %v5778_v63 }
  0x7a   :  { %5507 = vmatmul.mubr.msk.bf16.gmra.mrb[56].mxu0 %vm257_vm2, %v5779_v0  ;;  %5575 = vmatmul.mubr.msk.bf16.gmra.mrb[56].mxu1 %vm257_vm2, %v5780_v1  ;;  %v5834_v1 = vld [vmem:[%s11100_s0 + $0x3c0] sm:$0xff]  }
  0x7b   :  { %5510 = vmatprep.mubr.msk.bf16.mxu0 %vm257_vm2, %v5781_v2  ;;  %5578 = vmatprep.mubr.msk.bf16.mxu1 %vm257_vm2, %v5782_v3 }
  0x82   :  { %5511 = vmatmul.mubr.msk.bf16.gmra.mrb[60].mxu0 %vm257_vm2, %v5783_v4  ;;  %5579 = vmatmul.mubr.msk.bf16.gmra.mrb[60].mxu1 %vm257_vm2, %v5784_v5 }
  0x83   :  { %5586 = vmatprep.mubr.msk.bf16.mxu0 %vm257_vm2, %v5785_v6  ;;  %5654 = vmatprep.mubr.msk.bf16.mxu1 %vm257_vm2, %v5786_v7 }
  0x8a   :  { %5587 = vmatmul.mubr.msk.bf16.vlgmr.msra.gmra.mrb[64].mxu0 %vm257_vm2, %v5787_v8  ;;  %5655 = vmatmul.mubr.msk.bf16.vlgmr.msra.gmra.mrb[64].mxu1 %vm257_vm2, %v5788_v9 }
  0x8b   :  { %5590 = vmatprep.mubr.msk.bf16.mxu0 %vm257_vm2, %v5789_v10  ;;  %5658 = vmatprep.mubr.msk.bf16.mxu1 %vm257_vm2, %v5790_v11 }
  0x92   :  { %5591 = vmatmul.mubr.msk.bf16.gmra.mrb[68].mxu0 %vm257_vm2, %v5791_v12  ;;  %5659 = vmatmul.mubr.msk.bf16.gmra.mrb[68].mxu1 %vm257_vm2, %v5792_v13 }
  0x93   :  { %5594 = vmatprep.mubr.msk.bf16.mxu0 %vm257_vm2, %v5793_v14  ;;  %5662 = vmatprep.mubr.msk.bf16.mxu1 %vm257_vm2, %v5794_v15 }
  0x9a   :  { %5595 = vmatmul.mubr.msk.bf16.gmra.mrb[72].mxu0 %vm257_vm2, %v5795_v16  ;;  %5663 = vmatmul.mubr.msk.bf16.gmra.mrb[72].mxu1 %vm257_vm2, %v5796_v17 }
  0x9b   :  { %5598 = vmatprep.mubr.msk.bf16.mxu0 %vm257_vm2, %v5797_v18  ;;  %5666 = vmatprep.mubr.msk.bf16.mxu1 %vm257_vm2, %v5798_v19 }
  0xa2   :  { %5599 = vmatmul.mubr.msk.bf16.gmra.mrb[76].mxu0 %vm257_vm2, %v5799_v20  ;;  %5667 = vmatmul.mubr.msk.bf16.gmra.mrb[76].mxu1 %vm257_vm2, %v5800_v21 }
  0xa3   :  { %5602 = vmatprep.mubr.msk.bf16.mxu0 %vm257_vm2, %v5801_v22  ;;  %5670 = vmatprep.mubr.msk.bf16.mxu1 %vm257_vm2, %v5802_v23  ;;  %v5835_v22 = vld [vmem:[%s11100_s0 + $0x2c8] sm:$0xff]  }
  0xa4   :  { %v5836_v23 = vld [vmem:[%s11100_s0 + $0x3c8] sm:$0xff]  }
  0xaa   :  { %5603 = vmatmul.mubr.msk.bf16.gmra.mrb[80].mxu0 %vm257_vm2, %v5803_v24  ;;  %5671 = vmatmul.mubr.msk.bf16.gmra.mrb[80].mxu1 %vm257_vm2, %v5804_v25 }
  0xab   :  { %5606 = vmatprep.mubr.msk.bf16.mxu0 %vm257_vm2, %v5805_v26  ;;  %5674 = vmatprep.mubr.msk.bf16.mxu1 %vm257_vm2, %v5806_v27 }
  0xb2   :  { %5607 = vmatmul.mubr.msk.bf16.gmra.mrb[84].mxu0 %vm257_vm2, %v5807_v28  ;;  %5675 = vmatmul.mubr.msk.bf16.gmra.mrb[84].mxu1 %vm257_vm2, %v5808_v29 }
  0xb3   :  { %5610 = vmatprep.mubr.msk.bf16.mxu0 %vm257_vm2, %v5809_v30  ;;  %5678 = vmatprep.mubr.msk.bf16.mxu1 %vm257_vm2, %v5810_v31  ;;  %v5837_v30 = vld [vmem:[%s11100_s0 + $0x2d0] sm:$0xff]  }
  0xb4   :  { %v5838_v31 = vld [vmem:[%s11100_s0 + $0x3d0] sm:$0xff]  }
  0xba   :  { %5611 = vmatmul.mubr.msk.bf16.gmra.mrb[88].mxu0 %vm257_vm2, %v5811_v32  ;;  %5679 = vmatmul.mubr.msk.bf16.gmra.mrb[88].mxu1 %vm257_vm2, %v5812_v33 }
  0xbb   :  { %5614 = vmatprep.mubr.msk.bf16.mxu0 %vm257_vm2, %v5813_v34  ;;  %5682 = vmatprep.mubr.msk.bf16.mxu1 %vm257_vm2, %v5814_v35 }
  0xc2   :  { %5615 = vmatmul.mubr.msk.bf16.gmra.mrb[92].mxu0 %vm257_vm2, %v5815_v36  ;;  %5683 = vmatmul.mubr.msk.bf16.gmra.mrb[92].mxu1 %vm257_vm2, %v5816_v37 }
  0xc3   :  { %5618 = vmatprep.mubr.msk.bf16.mxu0 %vm257_vm2, %v5817_v38  ;;  %5686 = vmatprep.mubr.msk.bf16.mxu1 %vm257_vm2, %v5818_v39 }
  0xca   :  { %5619 = vmatmul.mubr.msk.bf16.gmra.mrb[96].mxu0 %vm257_vm2, %v5819_v40  ;;  %5687 = vmatmul.mubr.msk.bf16.gmra.mrb[96].mxu1 %vm257_vm2, %v5820_v41 }
  0xcb   :  { %5622 = vmatprep.mubr.msk.bf16.mxu0 %vm257_vm2, %v5821_v42  ;;  %5690 = vmatprep.mubr.msk.bf16.mxu1 %vm257_vm2, %v5822_v43 }
  0xd2   :  { %5623 = vmatmul.mubr.msk.bf16.gmra.mrb[100].mxu0 %vm257_vm2, %v5823_v44  ;;  %5691 = vmatmul.mubr.msk.bf16.gmra.mrb[100].mxu1 %vm257_vm2, %v5824_v45 }
  0xd3   :  { %5626 = vmatprep.mubr.msk.bf16.mxu0 %vm257_vm2, %v5825_v46  ;;  %5694 = vmatprep.mubr.msk.bf16.mxu1 %vm257_vm2, %v5826_v47 }
  0xda   :  { %5627 = vmatmul.mubr.msk.bf16.gmra.mrb[104].mxu0 %vm257_vm2, %v5827_v48  ;;  %5695 = vmatmul.mubr.msk.bf16.gmra.mrb[104].mxu1 %vm257_vm2, %v5828_v49 }
  0xdb   :  { %5630 = vmatprep.mubr.msk.bf16.mxu0 %vm257_vm2, %v5829_v50  ;;  %5698 = vmatprep.mubr.msk.bf16.mxu1 %vm257_vm2, %v5830_v51 }
  0xdd   :  { %v6323_v52 = vpop.f32.mrb[0].mxu0  ;;  %v6325_v53 = vpop.f32.mrb[0].mxu1 }
  0xde   :  { %11460 = vst [vmem:[#allocation3_spill] sm:$0xff] %v6325_v53  ;;  %v6327_v54 = vpop.f32.mrb[1].mxu0  ;;  %v6329_v55 = vpop.f32.mrb[1].mxu1  ;;  %v785_v6 = vmul.f32 %v6323_v52, %v6323_v52  ;;  %v1662_v7 = vmul.f32 %v6325_v53, %v6325_v53 }
  0xdf   :  { %11461 = vst [vmem:[#allocation4_spill] sm:$0xff] %v6329_v55  ;;  %v1660_v58 = vmul.f32 %v6329_v55, %v6329_v55  ;;  %v6339_v59 = vpop.f32.mrb[2].mxu0  ;;  %v6341_v60 = vpop.f32.mrb[2].mxu1  ;;  %v783_v62 = vmul.f32 %v6327_v54, %v6327_v54 }
  0xe0   :  { %11462 = vst [vmem:[#allocation5_spill] sm:$0xff] %v6341_v60  ;;  %v6348_v63 = vpop.f32.mrb[3].mxu0  ;;  %v6350_v0 = vpop.f32.mrb[3].mxu1  ;;  %v786_v12 = vmul.f32 %v6339_v59, %v6339_v59  ;;  %v1663_v19 = vmul.f32 %v6341_v60, %v6341_v60 }
  0xe1   :  { %11463 = vst [vmem:[#allocation6_spill] sm:$0xff] %v6350_v0  ;;  %v714_v2 = vadd.f32 %v6348_v63, %v6327_v54  ;;  %v784_v3 = vmul.f32 %v6348_v63, %v6348_v63  ;;  %v1591_v4 = vadd.f32 %v6350_v0, %v6329_v55  ;;  %v1661_v5 = vmul.f32 %v6350_v0, %v6350_v0 }
  0xe2   :  { %5631 = vmatmul.mubr.msk.bf16.gmra.mrb[108].mxu0 %vm257_vm2, %v5831_v56  ;;  %5699 = vmatmul.mubr.msk.bf16.gmra.mrb[108].mxu1 %vm257_vm2, %v5832_v57 }
  0xe3   :  { %v715_v8 = vadd.f32 %v6323_v52, %v714_v2  ;;  %v847_v9 = vadd.f32 %v784_v3, %v783_v62  ;;  %v1592_v10 = vadd.f32 %v6325_v53, %v1591_v4  ;;  %v1724_v11 = vadd.f32 %v1661_v5, %v1660_v58  ;;  %5634 = vmatprep.mubr.msk.bf16.mxu0 %vm257_vm2, %v5833_v61  ;;  %v5839_v2 = vld [vmem:[%s11100_s0 + $0x2d8] sm:$0xff]  }
  0xe4   :  { %5702 = vmatprep.mubr.msk.bf16.mxu1 %vm257_vm2, %v5834_v1  ;;  %v5840_v3 = vld [vmem:[%s11100_s0 + $0x3d8] sm:$0xff]  }
  0xe5   :  { %v848_v13 = vadd.f32 %v847_v9, %v785_v6  ;;  %v1725_v14 = vadd.f32 %v1724_v11, %v1662_v7  ;;  %v6375_v15 = vpop.f32.mrb[4].mxu0  ;;  %v6377_v16 = vpop.f32.mrb[4].mxu1  ;;  %v716_v17 = vadd.f32 %v6339_v59, %v715_v8  ;;  %v1593_v18 = vadd.f32 %v6341_v60, %v1592_v10  ;;  %v5841_v10 = vld [vmem:[%s11100_s0 + $0x2e0] sm:$0xff]  }
  0xe6   :  { %11464 = vst [vmem:[#allocation7_spill] sm:$0xff] %v6377_v16  ;;  %v6383_v20 = vpop.f32.mrb[5].mxu0  ;;  %v6385_v21 = vpop.f32.mrb[5].mxu1  ;;  %v789_v40 = vmul.f32 %v6375_v15, %v6375_v15  ;;  %v1666_v46 = vmul.f32 %v6377_v16, %v6377_v16  ;;  %v5842_v11 = vld [vmem:[%s11100_s0 + $0x3e0] sm:$0xff]  }
  0xe7   :  { %11465 = vst [vmem:[#allocation8_spill] sm:$0xff] %v6385_v21  ;;  %v717_v24 = vadd.f32 %v716_v17, %v6383_v20  ;;  %v787_v25 = vmul.f32 %v6383_v20, %v6383_v20  ;;  %v849_v26 = vadd.f32 %v848_v13, %v786_v12  ;;  %v1594_v27 = vadd.f32 %v1593_v18, %v6385_v21  ;;  %v6397_v28 = vpop.f32.mrb[6].mxu0  ;;  %v6399_v29 = vpop.f32.mrb[6].mxu1 }
  0xe8   :  { %11466 = vst [vmem:[#allocation9_spill] sm:$0xff] %v6399_v29  ;;  %v1664_v32 = vmul.f32 %v6385_v21, %v6385_v21  ;;  %v1726_v33 = vadd.f32 %v1725_v14, %v1663_v19  ;;  %v6409_v34 = vpop.f32.mrb[7].mxu0  ;;  %v6411_v35 = vpop.f32.mrb[7].mxu1  ;;  %v790_v48 = vmul.f32 %v6397_v28, %v6397_v28  ;;  %v1667_v58 = vmul.f32 %v6399_v29, %v6399_v29 }
  0xe9   :  { %11467 = vst [vmem:[#allocation10_spill] sm:$0xff] %v6411_v35  ;;  %v850_v36 = vadd.f32 %v849_v26, %v787_v25  ;;  %v718_v37 = vadd.f32 %v717_v24, %v6409_v34  ;;  %v788_v38 = vmul.f32 %v6409_v34, %v6409_v34  ;;  %v1595_v39 = vadd.f32 %v1594_v27, %v6411_v35 }
  0xea   :  { %v1727_v41 = vadd.f32 %v1726_v33, %v1664_v32  ;;  %v1665_v42 = vmul.f32 %v6411_v35, %v6411_v35  ;;  %5635 = vmatmul.mubr.msk.bf16.gmra.mrb[112].mxu0 %vm257_vm2, %v5835_v22  ;;  %5703 = vmatmul.mubr.msk.bf16.gmra.mrb[112].mxu1 %vm257_vm2, %v5836_v23 }
  0xeb   :  { %v719_v43 = vadd.f32 %v6375_v15, %v718_v37  ;;  %v851_v44 = vadd.f32 %v850_v36, %v788_v38  ;;  %v1596_v45 = vadd.f32 %v6377_v16, %v1595_v39  ;;  %5638 = vmatprep.mubr.msk.bf16.mxu0 %vm257_vm2, %v5837_v30  ;;  %5706 = vmatprep.mubr.msk.bf16.mxu1 %vm257_vm2, %v5838_v31 }
  0xec   :  { %v1728_v47 = vadd.f32 %v1727_v41, %v1665_v42 }
  0xed   :  { %v852_v49 = vadd.f32 %v851_v44, %v789_v40  ;;  %v6431_v50 = vpop.f32.mrb[8].mxu0  ;;  %v6433_v51 = vpop.f32.mrb[8].mxu1  ;;  %v720_v56 = vadd.f32 %v6397_v28, %v719_v43  ;;  %v1597_v57 = vadd.f32 %v6399_v29, %v1596_v45 }
  0xee   :  { %11468 = vst [vmem:[#allocation11_spill] sm:$0xff] %v6433_v51  ;;  %v1729_v61 = vadd.f32 %v1728_v47, %v1666_v46  ;;  %v6439_v62 = vpop.f32.mrb[9].mxu0  ;;  %v6441_v1 = vpop.f32.mrb[9].mxu1  ;;  %v793_v24 = vmul.f32 %v6431_v50, %v6431_v50  ;;  %v1670_v32 = vmul.f32 %v6433_v51, %v6433_v51  ;;  %v5843_v46 = vld [vmem:[%s11100_s0 + $0x2e8] sm:$0xff]  }
  0xef   :  { %11469 = vst [vmem:[#allocation12_spill] sm:$0xff] %v6441_v1  ;;  %v721_v4 = vadd.f32 %v720_v56, %v6439_v62  ;;  %v791_v5 = vmul.f32 %v6439_v62, %v6439_v62  ;;  %v853_v6 = vadd.f32 %v852_v49, %v790_v48  ;;  %v1598_v7 = vadd.f32 %v1597_v57, %v6441_v1  ;;  %v6453_v8 = vpop.f32.mrb[10].mxu0  ;;  %v6455_v9 = vpop.f32.mrb[10].mxu1  ;;  %v5844_v47 = vld [vmem:[%s11100_s0 + $0x3e8] sm:$0xff]  }
  0xf0   :  { %11470 = vst [vmem:[#allocation13_spill] sm:$0xff] %v6455_v9  ;;  %v1668_v12 = vmul.f32 %v6441_v1, %v6441_v1  ;;  %v1730_v13 = vadd.f32 %v1729_v61, %v1667_v58  ;;  %v6465_v14 = vpop.f32.mrb[11].mxu0  ;;  %v6467_v17 = vpop.f32.mrb[11].mxu1  ;;  %v794_v36 = vmul.f32 %v6453_v8, %v6453_v8  ;;  %v1671_v42 = vmul.f32 %v6455_v9, %v6455_v9 }
  0xf1   :  { %11471 = vst [vmem:[#allocation14_spill] sm:$0xff] %v6467_v17  ;;  %v854_v18 = vadd.f32 %v853_v6, %v791_v5  ;;  %v722_v19 = vadd.f32 %v721_v4, %v6465_v14  ;;  %v792_v22 = vmul.f32 %v6465_v14, %v6465_v14  ;;  %v1599_v23 = vadd.f32 %v1598_v7, %v6467_v17 }
  0xf2   :  { %v1731_v25 = vadd.f32 %v1730_v13, %v1668_v12  ;;  %v1669_v26 = vmul.f32 %v6467_v17, %v6467_v17  ;;  %5639 = vmatmul.mubr.msk.bf16.gmra.mrb[116].mxu0 %vm257_vm2, %v5839_v2  ;;  %5707 = vmatmul.mubr.msk.bf16.gmra.mrb[116].mxu1 %vm257_vm2, %v5840_v3  ;;  %v5845_v2 = vld [vmem:[%s11100_s0 + $0x2f0] sm:$0xff]  }
  0xf3   :  { %v723_v27 = vadd.f32 %v6431_v50, %v722_v19  ;;  %v855_v30 = vadd.f32 %v854_v18, %v792_v22  ;;  %v1600_v31 = vadd.f32 %v6433_v51, %v1599_v23  ;;  %5642 = vmatprep.mubr.msk.bf16.mxu0 %vm257_vm2, %v5841_v10  ;;  %5710 = vmatprep.mubr.msk.bf16.mxu1 %vm257_vm2, %v5842_v11  ;;  %v5846_v3 = vld [vmem:[%s11100_s0 + $0x3f0] sm:$0xff]  }
  0xf4   :  { %v1732_v33 = vadd.f32 %v1731_v25, %v1669_v26 }
  0xf5   :  { %v856_v37 = vadd.f32 %v855_v30, %v793_v24  ;;  %v6487_v38 = vpop.f32.mrb[12].mxu0  ;;  %v6489_v39 = vpop.f32.mrb[12].mxu1  ;;  %v724_v40 = vadd.f32 %v6453_v8, %v723_v27  ;;  %v1601_v41 = vadd.f32 %v6455_v9, %v1600_v31 }
  0xf6   :  { %11472 = vst [vmem:[#allocation15_spill] sm:$0xff] %v6489_v39  ;;  %v1733_v43 = vadd.f32 %v1732_v33, %v1670_v32  ;;  %v6495_v44 = vpop.f32.mrb[13].mxu0  ;;  %v6497_v45 = vpop.f32.mrb[13].mxu1  ;;  %v797_v18 = vmul.f32 %v6487_v38, %v6487_v38  ;;  %v1674_v26 = vmul.f32 %v6489_v39, %v6489_v39 }
  0xf7   :  { %11473 = vst [vmem:[#allocation16_spill] sm:$0xff] %v6497_v45  ;;  %v725_v48 = vadd.f32 %v724_v40, %v6495_v44  ;;  %v795_v49 = vmul.f32 %v6495_v44, %v6495_v44  ;;  %v857_v56 = vadd.f32 %v856_v37, %v794_v36  ;;  %v1602_v57 = vadd.f32 %v1601_v41, %v6497_v45  ;;  %v6509_v58 = vpop.f32.mrb[14].mxu0  ;;  %v6511_v61 = vpop.f32.mrb[14].mxu1 }
  0xf8   :  { %11474 = vst [vmem:[#allocation17_spill] sm:$0xff] %v6511_v61  ;;  %v1672_v4 = vmul.f32 %v6497_v45, %v6497_v45  ;;  %v1734_v5 = vadd.f32 %v1733_v43, %v1671_v42  ;;  %v6521_v6 = vpop.f32.mrb[15].mxu0  ;;  %v6523_v7 = vpop.f32.mrb[15].mxu1  ;;  %v798_v30 = vmul.f32 %v6509_v58, %v6509_v58  ;;  %v1675_v40 = vmul.f32 %v6511_v61, %v6511_v61 }
  0xf9   :  { %11475 = vst [vmem:[#allocation18_spill] sm:$0xff] %v6523_v7  ;;  %v858_v10 = vadd.f32 %v857_v56, %v795_v49  ;;  %v726_v11 = vadd.f32 %v725_v48, %v6521_v6  ;;  %v796_v12 = vmul.f32 %v6521_v6, %v6521_v6  ;;  %v1603_v13 = vadd.f32 %v1602_v57, %v6523_v7 }
  0xfa   :  { %v1735_v19 = vadd.f32 %v1734_v5, %v1672_v4  ;;  %v1673_v22 = vmul.f32 %v6523_v7, %v6523_v7  ;;  %5643 = vmatmul.mubr.msk.bf16.gmra.mrb[120].mxu0 %vm257_vm2, %v5843_v46  ;;  %5711 = vmatmul.mubr.msk.bf16.gmra.mrb[120].mxu1 %vm257_vm2, %v5844_v47  ;;  %v5847_v46 = vld [vmem:[%s11100_s0 + $0x2f8] sm:$0xff]  }
  0xfb   :  { %v727_v23 = vadd.f32 %v6487_v38, %v726_v11  ;;  %v859_v24 = vadd.f32 %v858_v10, %v796_v12  ;;  %v1604_v25 = vadd.f32 %v6489_v39, %v1603_v13  ;;  %5646 = vmatprep.mubr.msk.bf16.mxu0 %vm257_vm2, %v5845_v2  ;;  %5714 = vmatprep.mubr.msk.bf16.mxu1 %vm257_vm2, %v5846_v3  ;;  %v5848_v47 = vld [vmem:[%s11100_s0 + $0x3f8] sm:$0xff]  }
  0xfc   :  { %v1736_v27 = vadd.f32 %v1735_v19, %v1673_v22 }
  0xfd   :  { %v860_v31 = vadd.f32 %v859_v24, %v797_v18  ;;  %v6543_v32 = vpop.f32.mrb[16].mxu0  ;;  %v6545_v33 = vpop.f32.mrb[16].mxu1  ;;  %v728_v36 = vadd.f32 %v6509_v58, %v727_v23  ;;  %v1605_v37 = vadd.f32 %v6511_v61, %v1604_v25 }
  0xfe   :  { %11476 = vst [vmem:[#allocation19_spill] sm:$0xff] %v6545_v33  ;;  %v1737_v41 = vadd.f32 %v1736_v27, %v1674_v26  ;;  %v6551_v42 = vpop.f32.mrb[17].mxu0  ;;  %v6553_v43 = vpop.f32.mrb[17].mxu1  ;;  %v801_v24 = vmul.f32 %v6543_v32, %v6543_v32 }
  0xff   :  { %11477 = vst [vmem:[#allocation20_spill] sm:$0xff] %v6553_v43  ;;  %v729_v48 = vadd.f32 %v728_v36, %v6551_v42  ;;  %v799_v49 = vmul.f32 %v6551_v42, %v6551_v42  ;;  %v861_v56 = vadd.f32 %v860_v31, %v798_v30  ;;  %v1606_v57 = vadd.f32 %v1605_v37, %v6553_v43  ;;  %v6565_v2 = vpop.f32.mrb[18].mxu0  ;;  %v6567_v3 = vpop.f32.mrb[18].mxu1 }
 0x100   :  { %11478 = vst [vmem:[#allocation21_spill] sm:$0xff] %v6567_v3  ;;  %v1676_v4 = vmul.f32 %v6553_v43, %v6553_v43  ;;  %v1738_v5 = vadd.f32 %v1737_v41, %v1675_v40  ;;  %v6571_v10 = vpop.f32.mrb[19].mxu0  ;;  %v6573_v11 = vpop.f32.mrb[19].mxu1  ;;  %v1678_v30 = vmul.f32 %v6545_v33, %v6545_v33  ;;  %v802_v36 = vmul.f32 %v6565_v2, %v6565_v2 }
 0x101   :  { %11479 = vst [vmem:[#allocation22_spill] sm:$0xff] %v6573_v11  ;;  %v862_v12 = vadd.f32 %v861_v56, %v799_v49  ;;  %v730_v13 = vadd.f32 %v729_v48, %v6571_v10  ;;  %v800_v18 = vmul.f32 %v6571_v10, %v6571_v10  ;;  %v1607_v19 = vadd.f32 %v1606_v57, %v6573_v11 }
 0x102   :  { %v1739_v22 = vadd.f32 %v1738_v5, %v1676_v4  ;;  %v1677_v23 = vmul.f32 %v6573_v11, %v6573_v11  ;;  %5647 = vmatmul.mubr.msk.bf16.gmra.mrb[124].mxu0 %vm257_vm2, %v5847_v46  ;;  %5715 = vmatmul.mubr.msk.bf16.gmra.mrb[124].mxu1 %vm257_vm2, %v5848_v47  ;;  %v1679_v48 = vmul.f32 %v6567_v3, %v6567_v3 }
 0x103   :  { %v731_v25 = vadd.f32 %v6543_v32, %v730_v13  ;;  %v863_v26 = vadd.f32 %v862_v12, %v800_v18  ;;  %v1608_v27 = vadd.f32 %v6545_v33, %v1607_v19 }
 0x104   :  { %v1740_v31 = vadd.f32 %v1739_v22, %v1677_v23 }
 0x105   :  { %v864_v37 = vadd.f32 %v863_v26, %v801_v24  ;;  %v6591_v40 = vpop.f32.mrb[20].mxu0  ;;  %v6593_v41 = vpop.f32.mrb[20].mxu1  ;;  %v732_v46 = vadd.f32 %v6565_v2, %v731_v25  ;;  %v1609_v47 = vadd.f32 %v6567_v3, %v1608_v27 }
 0x106   :  { %11480 = vst [vmem:[#allocation23_spill] sm:$0xff] %v6593_v41  ;;  %v1741_v49 = vadd.f32 %v1740_v31, %v1678_v30  ;;  %v6599_v56 = vpop.f32.mrb[21].mxu0  ;;  %v6601_v57 = vpop.f32.mrb[21].mxu1 }
 0x107   :  { %11481 = vst [vmem:[#allocation24_spill] sm:$0xff] %v6601_v57  ;;  %v733_v4 = vadd.f32 %v732_v46, %v6599_v56  ;;  %v803_v5 = vmul.f32 %v6599_v56, %v6599_v56  ;;  %v865_v12 = vadd.f32 %v864_v37, %v802_v36  ;;  %v1610_v13 = vadd.f32 %v1609_v47, %v6601_v57  ;;  %v6607_v18 = vpop.f32.mrb[22].mxu0  ;;  %v6609_v19 = vpop.f32.mrb[22].mxu1 }
 0x108   :  { %11482 = vst [vmem:[#allocation25_spill] sm:$0xff] %v6609_v19  ;;  %v1680_v22 = vmul.f32 %v6601_v57, %v6601_v57  ;;  %v1742_v23 = vadd.f32 %v1741_v49, %v1679_v48  ;;  %v6613_v24 = vpop.f32.mrb[23].mxu0  ;;  %v6615_v25 = vpop.f32.mrb[23].mxu1  ;;  %v805_v46 = vmul.f32 %v6591_v40, %v6591_v40 }
 0x109   :  { %11483 = vst [vmem:[#allocation26_spill] sm:$0xff] %v6615_v25  ;;  %v866_v26 = vadd.f32 %v865_v12, %v803_v5  ;;  %v734_v27 = vadd.f32 %v733_v4, %v6613_v24  ;;  %v804_v30 = vmul.f32 %v6613_v24, %v6613_v24  ;;  %v1611_v31 = vadd.f32 %v1610_v13, %v6615_v25 }
 0x10a   :  { %v1743_v36 = vadd.f32 %v1742_v23, %v1680_v22  ;;  %v1681_v37 = vmul.f32 %v6615_v25, %v6615_v25  ;;  %v1682_v4 = vmul.f32 %v6593_v41, %v6593_v41  ;;  %v806_v12 = vmul.f32 %v6607_v18, %v6607_v18 }
 0x10b   :  { %v735_v47 = vadd.f32 %v6591_v40, %v734_v27  ;;  %v867_v48 = vadd.f32 %v866_v26, %v804_v30  ;;  %v1612_v49 = vadd.f32 %v6593_v41, %v1611_v31  ;;  %v1683_v26 = vmul.f32 %v6609_v19, %v6609_v19 }
 0x10c   :  { %v1744_v5 = vadd.f32 %v1743_v36, %v1681_v37 }
 0x10d   :  { %v868_v13 = vadd.f32 %v867_v48, %v805_v46  ;;  %v6631_v22 = vpop.f32.mrb[24].mxu0  ;;  %v6633_v23 = vpop.f32.mrb[24].mxu1  ;;  %v736_v25 = vadd.f32 %v6607_v18, %v735_v47  ;;  %v1613_v57 = vadd.f32 %v6609_v19, %v1612_v49 }
 0x10e   :  { %11484 = vst [vmem:[#allocation27_spill] sm:$0xff] %v6633_v23  ;;  %v1745_v27 = vadd.f32 %v1744_v5, %v1682_v4  ;;  %v6639_v30 = vpop.f32.mrb[25].mxu0  ;;  %v6641_v31 = vpop.f32.mrb[25].mxu1 }
 0x10f   :  { %11485 = vst [vmem:[#allocation28_spill] sm:$0xff] %v6641_v31  ;;  %v737_v36 = vadd.f32 %v736_v25, %v6639_v30  ;;  %v807_v37 = vmul.f32 %v6639_v30, %v6639_v30  ;;  %v869_v46 = vadd.f32 %v868_v13, %v806_v12  ;;  %v1614_v48 = vadd.f32 %v1613_v57, %v6641_v31  ;;  %v6647_v41 = vpop.f32.mrb[26].mxu0  ;;  %v6649_v47 = vpop.f32.mrb[26].mxu1 }
 0x110   :  { %11486 = vst [vmem:[#allocation29_spill] sm:$0xff] %v6649_v47  ;;  %v1684_v49 = vmul.f32 %v6641_v31, %v6641_v31  ;;  %v1746_v4 = vadd.f32 %v1745_v27, %v1683_v26  ;;  %v6653_v5 = vpop.f32.mrb[27].mxu0  ;;  %v6655_v19 = vpop.f32.mrb[27].mxu1  ;;  %v809_v31 = vmul.f32 %v6631_v22, %v6631_v22 }
 0x111   :  { %11487 = vst [vmem:[#allocation30_spill] sm:$0xff] %v6655_v19  ;;  %v870_v3 = vadd.f32 %v869_v46, %v807_v37  ;;  %v738_v25 = vadd.f32 %v737_v36, %v6653_v5  ;;  %v808_v12 = vmul.f32 %v6653_v5, %v6653_v5  ;;  %v1615_v57 = vadd.f32 %v1614_v48, %v6655_v19 }
 0x112   :  { %v1747_v13 = vadd.f32 %v1746_v4, %v1684_v49  ;;  %v1685_v33 = vmul.f32 %v6655_v19, %v6655_v19  ;;  %v1686_v36 = vmul.f32 %v6633_v23, %v6633_v23  ;;  %v810_v46 = vmul.f32 %v6647_v41, %v6647_v41 }
 0x113   :  { %v739_v26 = vadd.f32 %v6631_v22, %v738_v25  ;;  %v871_v27 = vadd.f32 %v870_v3, %v808_v12  ;;  %v1616_v11 = vadd.f32 %v6633_v23, %v1615_v57  ;;  %v1687_v3 = vmul.f32 %v6649_v47, %v6649_v47 }
 0x114   :  { %v1748_v37 = vadd.f32 %v1747_v13, %v1685_v33 }
 0x115   :  { %v872_v48 = vadd.f32 %v871_v27, %v809_v31  ;;  %v6671_v49 = vpop.f32.mrb[28].mxu0  ;;  %v6673_v4 = vpop.f32.mrb[28].mxu1  ;;  %v740_v19 = vadd.f32 %v6647_v41, %v739_v26  ;;  %v1617_v43 = vadd.f32 %v6649_v47, %v1616_v11 }
 0x116   :  { %11488 = vst [vmem:[#allocation31_spill] sm:$0xff] %v6671_v49  ;;  %11489 = vst [vmem:[#allocation32_spill] sm:$0xff] %v6673_v4  ;;  %v1749_v25 = vadd.f32 %v1748_v37, %v1686_v36  ;;  %v6679_v12 = vpop.f32.mrb[29].mxu0  ;;  %v6681_v57 = vpop.f32.mrb[29].mxu1 }
 0x117   :  { %11490 = vst [vmem:[#allocation33_spill] sm:$0xff] %v6681_v57  ;;  %v741_v33 = vadd.f32 %v740_v19, %v6679_v12  ;;  %v811_v31 = vmul.f32 %v6679_v12, %v6679_v12  ;;  %v873_v13 = vadd.f32 %v872_v48, %v810_v46  ;;  %v1618_v27 = vadd.f32 %v1617_v43, %v6681_v57  ;;  %v6687_v23 = vpop.f32.mrb[30].mxu0  ;;  %v6689_v26 = vpop.f32.mrb[30].mxu1 }
 0x118   :  { %11491 = vst [vmem:[#allocation34_spill] sm:$0xff] %v6687_v23  ;;  %11492 = vst [vmem:[#allocation35_spill] sm:$0xff] %v6689_v26  ;;  %v1688_v11 = vmul.f32 %v6681_v57, %v6681_v57  ;;  %v1750_v36 = vadd.f32 %v1749_v25, %v1687_v3  ;;  %v6693_v37 = vpop.f32.mrb[31].mxu0  ;;  %v6695_v47 = vpop.f32.mrb[31].mxu1  ;;  %v813_v57 = vmul.f32 %v6671_v49, %v6671_v49 }
 0x119   :  { %11493 = vst [vmem:[#allocation36_spill] sm:$0xff] %v6695_v47  ;;  %v874_v61 = vadd.f32 %v873_v13, %v811_v31  ;;  %v742_v19 = vadd.f32 %v741_v33, %v6693_v37  ;;  %v812_v46 = vmul.f32 %v6693_v37, %v6693_v37  ;;  %v1619_v43 = vadd.f32 %v1618_v27, %v6695_v47 }
 0x11a   :  { %v1751_v48 = vadd.f32 %v1750_v36, %v1688_v11  ;;  %v1689_v39 = vmul.f32 %v6695_v47, %v6695_v47  ;;  %v1690_v33 = vmul.f32 %v6673_v4, %v6673_v4  ;;  %v814_v13 = vmul.f32 %v6687_v23, %v6687_v23 }
 0x11b   :  { %v743_v3 = vadd.f32 %v6671_v49, %v742_v19  ;;  %v875_v25 = vadd.f32 %v874_v61, %v812_v46  ;;  %v1620_v7 = vadd.f32 %v6673_v4, %v1619_v43  ;;  %v1691_v61 = vmul.f32 %v6689_v26, %v6689_v26 }
 0x11c   :  { %v1752_v31 = vadd.f32 %v1751_v48, %v1689_v39 }
 0x11d   :  { %v876_v27 = vadd.f32 %v875_v25, %v813_v57  ;;  %v6711_v11 = vpop.f32.mrb[32].mxu0  ;;  %v6713_v36 = vpop.f32.mrb[32].mxu1  ;;  %v744_v47 = vadd.f32 %v6687_v23, %v743_v3  ;;  %v1621_v45 = vadd.f32 %v6689_v26, %v1620_v7 }
 0x11e   :  { %11494 = vst [vmem:[#allocation37_spill] sm:$0xff] %v6711_v11  ;;  %11495 = vst [vmem:[#allocation38_spill] sm:$0xff] %v6713_v36  ;;  %v1753_v19 = vadd.f32 %v1752_v31, %v1690_v33  ;;  %v6719_v46 = vpop.f32.mrb[33].mxu0  ;;  %v6721_v43 = vpop.f32.mrb[33].mxu1 }
 0x11f   :  { %11496 = vst [vmem:[#allocation39_spill] sm:$0xff] %v6719_v46  ;;  %11497 = vst [vmem:[#allocation40_spill] sm:$0xff] %v6721_v43  ;;  %v745_v39 = vadd.f32 %v744_v47, %v6719_v46  ;;  %v815_v57 = vmul.f32 %v6719_v46, %v6719_v46  ;;  %v877_v48 = vadd.f32 %v876_v27, %v814_v13  ;;  %v6727_v4 = vpop.f32.mrb[34].mxu0  ;;  %v6729_v3 = vpop.f32.mrb[34].mxu1 }
 0x120   :  { %v1622_v25 = vadd.f32 %v1621_v45, %v6721_v43  ;;  %11498 = vst [vmem:[#allocation41_spill] sm:$0xff] %v6727_v4  ;;  %11499 = vst [vmem:[#allocation42_spill] sm:$0xff] %v6729_v3  ;;  %v1692_v7 = vmul.f32 %v6721_v43, %v6721_v43  ;;  %v1754_v33 = vadd.f32 %v1753_v19, %v1691_v61  ;;  %v6733_v31 = vpop.f32.mrb[35].mxu0  ;;  %v6735_v26 = vpop.f32.mrb[35].mxu1 }
 0x121   :  { %11500 = vst [vmem:[#allocation43_spill] sm:$0xff] %v6733_v31  ;;  %11501 = vst [vmem:[#allocation44_spill] sm:$0xff] %v6735_v26  ;;  %v878_v9 = vadd.f32 %v877_v48, %v815_v57  ;;  %v746_v47 = vadd.f32 %v745_v39, %v6733_v31  ;;  %v816_v13 = vmul.f32 %v6733_v31, %v6733_v31 }
 0x122   :  { %v1623_v45 = vadd.f32 %v1622_v25, %v6735_v26  ;;  %v1755_v27 = vadd.f32 %v1754_v33, %v1692_v7  ;;  %v1693_v51 = vmul.f32 %v6735_v26, %v6735_v26  ;;  %v817_v43 = vmul.f32 %v6711_v11, %v6711_v11 }
 0x123   :  { %v747_v61 = vadd.f32 %v6711_v11, %v746_v47  ;;  %v879_v19 = vadd.f32 %v878_v9, %v816_v13  ;;  %v1694_v39 = vmul.f32 %v6713_v36, %v6713_v36  ;;  %v818_v48 = vmul.f32 %v6727_v4, %v6727_v4 }
 0x124   :  { %v1624_v17 = vadd.f32 %v6713_v36, %v1623_v45  ;;  %v1756_v57 = vadd.f32 %v1755_v27, %v1693_v51  ;;  %v1695_v9 = vmul.f32 %v6729_v3, %v6729_v3 }
 0x125   :  { %v880_v25 = vadd.f32 %v879_v19, %v817_v43  ;;  %v6751_v7 = vpop.f32.mrb[36].mxu0  ;;  %v6753_v33 = vpop.f32.mrb[36].mxu1  ;;  %v748_v26 = vadd.f32 %v6727_v4, %v747_v61 }
 0x126   :  { %11502 = vst [vmem:[#allocation45_spill] sm:$0xff] %v6751_v7  ;;  %11503 = vst [vmem:[#allocation46_spill] sm:$0xff] %v6753_v33  ;;  %v1625_v1 = vadd.f32 %v6729_v3, %v1624_v17  ;;  %v1757_v47 = vadd.f32 %v1756_v57, %v1694_v39  ;;  %v6759_v13 = vpop.f32.mrb[37].mxu0  ;;  %v6761_v45 = vpop.f32.mrb[37].mxu1 }
 0x127   :  { %11504 = vst [vmem:[#allocation47_spill] sm:$0xff] %v6759_v13  ;;  %11505 = vst [vmem:[#allocation48_spill] sm:$0xff] %v6761_v45  ;;  %v749_v51 = vadd.f32 %v748_v26, %v6759_v13  ;;  %v819_v43 = vmul.f32 %v6759_v13, %v6759_v13  ;;  %v881_v27 = vadd.f32 %v880_v25, %v818_v48  ;;  %v6767_v36 = vpop.f32.mrb[38].mxu0  ;;  %v6769_v61 = vpop.f32.mrb[38].mxu1 }
 0x128   :  { %v1626_v19 = vadd.f32 %v1625_v1, %v6761_v45  ;;  %11506 = vst [vmem:[#allocation49_spill] sm:$0xff] %v6767_v36  ;;  %11507 = vst [vmem:[#allocation50_spill] sm:$0xff] %v6769_v61  ;;  %v1696_v17 = vmul.f32 %v6761_v45, %v6761_v45  ;;  %v1758_v39 = vadd.f32 %v1757_v47, %v1695_v9  ;;  %v6773_v57 = vpop.f32.mrb[39].mxu0  ;;  %v6775_v3 = vpop.f32.mrb[39].mxu1 }
 0x129   :  { %11508 = vst [vmem:[#allocation51_spill] sm:$0xff] %v6773_v57  ;;  %11509 = vst [vmem:[#allocation52_spill] sm:$0xff] %v6775_v3  ;;  %v882_v29 = vadd.f32 %v881_v27, %v819_v43  ;;  %v750_v26 = vadd.f32 %v749_v51, %v6773_v57  ;;  %v820_v48 = vmul.f32 %v6773_v57, %v6773_v57 }
 0x12a   :  { %v1627_v1 = vadd.f32 %v1626_v19, %v6775_v3  ;;  %v1759_v25 = vadd.f32 %v1758_v39, %v1696_v17  ;;  %v1697_v16 = vmul.f32 %v6775_v3, %v6775_v3  ;;  %v821_v45 = vmul.f32 %v6751_v7, %v6751_v7 }
 0x12b   :  { %v751_v9 = vadd.f32 %v6751_v7, %v750_v26  ;;  %v883_v47 = vadd.f32 %v882_v29, %v820_v48  ;;  %v1698_v51 = vmul.f32 %v6753_v33, %v6753_v33  ;;  %v822_v27 = vmul.f32 %v6767_v36, %v6767_v36 }
 0x12c   :  { %v1628_v35 = vadd.f32 %v6753_v33, %v1627_v1  ;;  %v1760_v43 = vadd.f32 %v1759_v25, %v1697_v16  ;;  %v1699_v29 = vmul.f32 %v6769_v61, %v6769_v61 }
 0x12d   :  { %v884_v19 = vadd.f32 %v883_v47, %v821_v45  ;;  %v6791_v17 = vpop.f32.mrb[40].mxu0  ;;  %v6793_v39 = vpop.f32.mrb[40].mxu1  ;;  %v752_v3 = vadd.f32 %v6767_v36, %v751_v9 }
 0x12e   :  { %11510 = vst [vmem:[#allocation53_spill] sm:$0xff] %v6791_v17  ;;  %11511 = vst [vmem:[#allocation54_spill] sm:$0xff] %v6793_v39  ;;  %v1629_v21 = vadd.f32 %v6769_v61, %v1628_v35  ;;  %v1761_v26 = vadd.f32 %v1760_v43, %v1698_v51  ;;  %v6799_v48 = vpop.f32.mrb[41].mxu0  ;;  %v6801_v1 = vpop.f32.mrb[41].mxu1 }
 0x12f   :  { %11512 = vst [vmem:[#allocation55_spill] sm:$0xff] %v6799_v48  ;;  %11513 = vst [vmem:[#allocation56_spill] sm:$0xff] %v6801_v1  ;;  %v753_v16 = vadd.f32 %v752_v3, %v6799_v48  ;;  %v823_v45 = vmul.f32 %v6799_v48, %v6799_v48  ;;  %v885_v25 = vadd.f32 %v884_v19, %v822_v27  ;;  %v6807_v33 = vpop.f32.mrb[42].mxu0  ;;  %v6809_v9 = vpop.f32.mrb[42].mxu1 }
 0x130   :  { %v1630_v47 = vadd.f32 %v1629_v21, %v6801_v1  ;;  %11514 = vst [vmem:[#allocation57_spill] sm:$0xff] %v6807_v33  ;;  %11515 = vst [vmem:[#allocation58_spill] sm:$0xff] %v6809_v9  ;;  %v1700_v35 = vmul.f32 %v6801_v1, %v6801_v1  ;;  %v1762_v51 = vadd.f32 %v1761_v26, %v1699_v29  ;;  %v6813_v43 = vpop.f32.mrb[43].mxu0  ;;  %v6815_v61 = vpop.f32.mrb[43].mxu1 }
 0x131   :  { %11516 = vst [vmem:[#allocation59_spill] sm:$0xff] %v6813_v43  ;;  %11517 = vst [vmem:[#allocation60_spill] sm:$0xff] %v6815_v61  ;;  %v886_v60 = vadd.f32 %v885_v25, %v823_v45  ;;  %v754_v3 = vadd.f32 %v753_v16, %v6813_v43  ;;  %v824_v27 = vmul.f32 %v6813_v43, %v6813_v43 }
 0x132   :  { %v1631_v21 = vadd.f32 %v1630_v47, %v6815_v61  ;;  %v1763_v19 = vadd.f32 %v1762_v51, %v1700_v35  ;;  %v1701_v53 = vmul.f32 %v6815_v61, %v6815_v61  ;;  %v825_v1 = vmul.f32 %v6791_v17, %v6791_v17 }
 0x133   :  { %v755_v29 = vadd.f32 %v6791_v17, %v754_v3  ;;  %v887_v26 = vadd.f32 %v886_v60, %v824_v27  ;;  %v1702_v16 = vmul.f32 %v6793_v39, %v6793_v39  ;;  %v826_v25 = vmul.f32 %v6807_v33, %v6807_v33 }
 0x134   :  { %v1632_v0 = vadd.f32 %v6793_v39, %v1631_v21  ;;  %v1764_v45 = vadd.f32 %v1763_v19, %v1701_v53  ;;  %v1703_v60 = vmul.f32 %v6809_v9, %v6809_v9 }
 0x135   :  { %v888_v47 = vadd.f32 %v887_v26, %v825_v1  ;;  %v6831_v35 = vpop.f32.mrb[44].mxu0  ;;  %v6833_v51 = vpop.f32.mrb[44].mxu1  ;;  %v756_v61 = vadd.f32 %v6807_v33, %v755_v29 }
 0x136   :  { %11518 = vst [vmem:[#allocation61_spill] sm:$0xff] %v6831_v35  ;;  %11519 = vst [vmem:[#allocation62_spill] sm:$0xff] %v6833_v51  ;;  %v1633_v55 = vadd.f32 %v6809_v9, %v1632_v0  ;;  %v1765_v3 = vadd.f32 %v1764_v45, %v1702_v16  ;;  %v6839_v27 = vpop.f32.mrb[45].mxu0  ;;  %v6841_v21 = vpop.f32.mrb[45].mxu1 }
 0x137   :  { %11520 = vst [vmem:[#allocation63_spill] sm:$0xff] %v6839_v27  ;;  %11521 = vst [vmem:[#allocation64_spill] sm:$0xff] %v6841_v21  ;;  %v757_v53 = vadd.f32 %v756_v61, %v6839_v27  ;;  %v827_v1 = vmul.f32 %v6839_v27, %v6839_v27  ;;  %v889_v19 = vadd.f32 %v888_v47, %v826_v25  ;;  %v6847_v39 = vpop.f32.mrb[46].mxu0  ;;  %v6849_v29 = vpop.f32.mrb[46].mxu1 }
 0x138   :  { %v1634_v26 = vadd.f32 %v1633_v55, %v6841_v21  ;;  %11522 = vst [vmem:[#allocation65_spill] sm:$0xff] %v6847_v39  ;;  %11523 = vst [vmem:[#allocation66_spill] sm:$0xff] %v6849_v29  ;;  %v1704_v0 = vmul.f32 %v6841_v21, %v6841_v21  ;;  %v1766_v16 = vadd.f32 %v1765_v3, %v1703_v60  ;;  %v6853_v45 = vpop.f32.mrb[47].mxu0  ;;  %v6855_v9 = vpop.f32.mrb[47].mxu1 }
 0x139   :  { %11524 = vst [vmem:[#allocation67_spill] sm:$0xff] %v6853_v45  ;;  %11525 = vst [vmem:[#allocation68_spill] sm:$0xff] %v6855_v9  ;;  %v890_v33 = vadd.f32 %v889_v19, %v827_v1  ;;  %v758_v61 = vadd.f32 %v757_v53, %v6853_v45  ;;  %v828_v25 = vmul.f32 %v6853_v45, %v6853_v45 }
 0x13a   :  { %v1635_v55 = vadd.f32 %v1634_v26, %v6855_v9  ;;  %v1767_v47 = vadd.f32 %v1766_v16, %v1704_v0  ;;  %v1705_v27 = vmul.f32 %v6855_v9, %v6855_v9  ;;  %v829_v21 = vmul.f32 %v6831_v35, %v6831_v35 }
 0x13b   :  { %v759_v60 = vadd.f32 %v6831_v35, %v758_v61  ;;  %v891_v3 = vadd.f32 %v890_v33, %v828_v25  ;;  %v1706_v53 = vmul.f32 %v6833_v51, %v6833_v51  ;;  %v830_v19 = vmul.f32 %v6847_v39, %v6847_v39 }
 0x13c   :  { %v1636_v17 = vadd.f32 %v6833_v51, %v1635_v55  ;;  %v1768_v1 = vadd.f32 %v1767_v47, %v1705_v27  ;;  %v1707_v33 = vmul.f32 %v6849_v29, %v6849_v29 }
 0x13d   :  { %v892_v26 = vadd.f32 %v891_v3, %v829_v21  ;;  %v6871_v0 = vpop.f32.mrb[48].mxu0  ;;  %v6873_v16 = vpop.f32.mrb[48].mxu1  ;;  %v760_v9 = vadd.f32 %v6847_v39, %v759_v60 }
 0x13e   :  { %11526 = vst [vmem:[#allocation69_spill] sm:$0xff] %v6871_v0  ;;  %11527 = vst [vmem:[#allocation70_spill] sm:$0xff] %v6873_v16  ;;  %v1637_v45 = vadd.f32 %v6849_v29, %v1636_v17  ;;  %v1769_v61 = vadd.f32 %v1768_v1, %v1706_v53  ;;  %v6879_v25 = vpop.f32.mrb[49].mxu0  ;;  %v6881_v55 = vpop.f32.mrb[49].mxu1 }
 0x13f   :  { %11528 = vst [vmem:[#allocation71_spill] sm:$0xff] %v6879_v25  ;;  %11529 = vst [vmem:[#allocation72_spill] sm:$0xff] %v6881_v55  ;;  %v761_v27 = vadd.f32 %v760_v9, %v6879_v25  ;;  %v831_v21 = vmul.f32 %v6879_v25, %v6879_v25  ;;  %v893_v47 = vadd.f32 %v892_v26, %v830_v19  ;;  %v6887_v51 = vpop.f32.mrb[50].mxu0  ;;  %v6889_v60 = vpop.f32.mrb[50].mxu1 }
 0x140   :  { %v1638_v3 = vadd.f32 %v1637_v45, %v6881_v55  ;;  %11530 = vst [vmem:[#allocation73_spill] sm:$0xff] %v6887_v51  ;;  %11531 = vst [vmem:[#allocation74_spill] sm:$0xff] %v6889_v60  ;;  %v1708_v17 = vmul.f32 %v6881_v55, %v6881_v55  ;;  %v1770_v53 = vadd.f32 %v1769_v61, %v1707_v33  ;;  %v6893_v1 = vpop.f32.mrb[51].mxu0  ;;  %v6895_v29 = vpop.f32.mrb[51].mxu1 }
 0x141   :  { %11532 = vst [vmem:[#allocation75_spill] sm:$0xff] %v6893_v1  ;;  %11533 = vst [vmem:[#allocation76_spill] sm:$0xff] %v6895_v29  ;;  %v894_v39 = vadd.f32 %v893_v47, %v831_v21  ;;  %v762_v9 = vadd.f32 %v761_v27, %v6893_v1  ;;  %v832_v19 = vmul.f32 %v6893_v1, %v6893_v1 }
 0x142   :  { %v1639_v45 = vadd.f32 %v1638_v3, %v6895_v29  ;;  %v1771_v26 = vadd.f32 %v1770_v53, %v1708_v17  ;;  %v1709_v25 = vmul.f32 %v6895_v29, %v6895_v29  ;;  %v833_v55 = vmul.f32 %v6871_v0, %v6871_v0 }
 0x143   :  { %v763_v33 = vadd.f32 %v6871_v0, %v762_v9  ;;  %v895_v61 = vadd.f32 %v894_v39, %v832_v19  ;;  %v1710_v27 = vmul.f32 %v6873_v16, %v6873_v16  ;;  %v834_v47 = vmul.f32 %v6887_v51, %v6887_v51 }
 0x144   :  { %v1640_v35 = vadd.f32 %v6873_v16, %v1639_v45  ;;  %v1772_v21 = vadd.f32 %v1771_v26, %v1709_v25  ;;  %v1711_v39 = vmul.f32 %v6889_v60, %v6889_v60 }
 0x145   :  { %v896_v3 = vadd.f32 %v895_v61, %v833_v55  ;;  %v6911_v17 = vpop.f32.mrb[52].mxu0  ;;  %v6913_v53 = vpop.f32.mrb[52].mxu1  ;;  %v764_v29 = vadd.f32 %v6887_v51, %v763_v33 }
 0x146   :  { %11534 = vst [vmem:[#allocation77_spill] sm:$0xff] %v6911_v17  ;;  %11535 = vst [vmem:[#allocation78_spill] sm:$0xff] %v6913_v53  ;;  %v1641_v1 = vadd.f32 %v6889_v60, %v1640_v35  ;;  %v1773_v9 = vadd.f32 %v1772_v21, %v1710_v27  ;;  %v6919_v19 = vpop.f32.mrb[53].mxu0  ;;  %v6921_v45 = vpop.f32.mrb[53].mxu1 }
 0x147   :  { %11536 = vst [vmem:[#allocation79_spill] sm:$0xff] %v6919_v19  ;;  %11537 = vst [vmem:[#allocation80_spill] sm:$0xff] %v6921_v45  ;;  %v765_v25 = vadd.f32 %v764_v29, %v6919_v19  ;;  %v835_v55 = vmul.f32 %v6919_v19, %v6919_v19  ;;  %v897_v26 = vadd.f32 %v896_v3, %v834_v47  ;;  %v6927_v16 = vpop.f32.mrb[54].mxu0  ;;  %v6929_v33 = vpop.f32.mrb[54].mxu1 }
 0x148   :  { %v1642_v61 = vadd.f32 %v1641_v1, %v6921_v45  ;;  %11538 = vst [vmem:[#allocation81_spill] sm:$0xff] %v6927_v16  ;;  %11539 = vst [vmem:[#allocation82_spill] sm:$0xff] %v6929_v33  ;;  %v1712_v35 = vmul.f32 %v6921_v45, %v6921_v45  ;;  %v1774_v27 = vadd.f32 %v1773_v9, %v1711_v39  ;;  %v6933_v21 = vpop.f32.mrb[55].mxu0  ;;  %v6935_v60 = vpop.f32.mrb[55].mxu1 }
 0x149   :  { %11540 = vst [vmem:[#allocation83_spill] sm:$0xff] %v6933_v21  ;;  %11541 = vst [vmem:[#allocation84_spill] sm:$0xff] %v6935_v60  ;;  %v898_v51 = vadd.f32 %v897_v26, %v835_v55  ;;  %v766_v29 = vadd.f32 %v765_v25, %v6933_v21  ;;  %v836_v47 = vmul.f32 %v6933_v21, %v6933_v21 }
 0x14a   :  { %v1643_v1 = vadd.f32 %v1642_v61, %v6935_v60  ;;  %v1775_v3 = vadd.f32 %v1774_v27, %v1712_v35  ;;  %v1713_v19 = vmul.f32 %v6935_v60, %v6935_v60  ;;  %v837_v45 = vmul.f32 %v6911_v17, %v6911_v17 }
 0x14b   :  { %v767_v39 = vadd.f32 %v6911_v17, %v766_v29  ;;  %v899_v9 = vadd.f32 %v898_v51, %v836_v47  ;;  %v1714_v25 = vmul.f32 %v6913_v53, %v6913_v53  ;;  %v838_v26 = vmul.f32 %v6927_v16, %v6927_v16 }
 0x14c   :  { %v1644_v0 = vadd.f32 %v6913_v53, %v1643_v1  ;;  %v1776_v55 = vadd.f32 %v1775_v3, %v1713_v19  ;;  %v1715_v51 = vmul.f32 %v6929_v33, %v6929_v33 }
 0x14d   :  { %v900_v61 = vadd.f32 %v899_v9, %v837_v45  ;;  %v6951_v35 = vpop.f32.mrb[56].mxu0  ;;  %v6953_v27 = vpop.f32.mrb[56].mxu1  ;;  %v768_v60 = vadd.f32 %v6927_v16, %v767_v39 }
 0x14e   :  { %11542 = vst [vmem:[#allocation85_spill] sm:$0xff] %v6951_v35  ;;  %11543 = vst [vmem:[#allocation86_spill] sm:$0xff] %v6953_v27  ;;  %v1645_v21 = vadd.f32 %v6929_v33, %v1644_v0  ;;  %v1777_v29 = vadd.f32 %v1776_v55, %v1714_v25  ;;  %v6959_v47 = vpop.f32.mrb[57].mxu0  ;;  %v6961_v1 = vpop.f32.mrb[57].mxu1 }
 0x14f   :  { %11544 = vst [vmem:[#allocation87_spill] sm:$0xff] %v6959_v47  ;;  %11545 = vst [vmem:[#allocation88_spill] sm:$0xff] %v6961_v1  ;;  %v769_v19 = vadd.f32 %v768_v60, %v6959_v47  ;;  %v839_v45 = vmul.f32 %v6959_v47, %v6959_v47  ;;  %v901_v3 = vadd.f32 %v900_v61, %v838_v26  ;;  %v6967_v53 = vpop.f32.mrb[58].mxu0  ;;  %v6969_v39 = vpop.f32.mrb[58].mxu1 }
 0x150   :  { %v1646_v9 = vadd.f32 %v1645_v21, %v6961_v1  ;;  %11546 = vst [vmem:[#allocation89_spill] sm:$0xff] %v6967_v53  ;;  %11547 = vst [vmem:[#allocation90_spill] sm:$0xff] %v6969_v39  ;;  %v1716_v0 = vmul.f32 %v6961_v1, %v6961_v1  ;;  %v1778_v25 = vadd.f32 %v1777_v29, %v1715_v51  ;;  %v6973_v55 = vpop.f32.mrb[59].mxu0  ;;  %v6975_v33 = vpop.f32.mrb[59].mxu1 }
 0x151   :  { %11548 = vst [vmem:[#allocation91_spill] sm:$0xff] %v6973_v55  ;;  %11549 = vst [vmem:[#allocation92_spill] sm:$0xff] %v6975_v33  ;;  %v902_v16 = vadd.f32 %v901_v3, %v839_v45  ;;  %v770_v60 = vadd.f32 %v769_v19, %v6973_v55  ;;  %v840_v26 = vmul.f32 %v6973_v55, %v6973_v55 }
 0x152   :  { %v1647_v21 = vadd.f32 %v1646_v9, %v6975_v33  ;;  %v1779_v61 = vadd.f32 %v1778_v25, %v1716_v0  ;;  %v1717_v47 = vmul.f32 %v6975_v33, %v6975_v33  ;;  %v841_v1 = vmul.f32 %v6951_v35, %v6951_v35 }
 0x153   :  { %v771_v51 = vadd.f32 %v6951_v35, %v770_v60  ;;  %v903_v29 = vadd.f32 %v902_v16, %v840_v26  ;;  %v1718_v19 = vmul.f32 %v6953_v27, %v6953_v27  ;;  %v842_v3 = vmul.f32 %v6967_v53, %v6967_v53 }
 0x154   :  { %v1648_v17 = vadd.f32 %v6953_v27, %v1647_v21  ;;  %v1780_v45 = vadd.f32 %v1779_v61, %v1717_v47  ;;  %v1719_v16 = vmul.f32 %v6969_v39, %v6969_v39 }
 0x155   :  { %v904_v9 = vadd.f32 %v903_v29, %v841_v1  ;;  %v6991_v0 = vpop.f32.mrb[60].mxu0  ;;  %v6993_v25 = vpop.f32.mrb[60].mxu1  ;;  %v772_v33 = vadd.f32 %v6967_v53, %v771_v51 }
 0x156   :  { %11550 = vst [vmem:[#allocation93_spill] sm:$0xff] %v6991_v0  ;;  %11551 = vst [vmem:[#allocation94_spill] sm:$0xff] %v6993_v25  ;;  %v1649_v55 = vadd.f32 %v6969_v39, %v1648_v17  ;;  %v1781_v60 = vadd.f32 %v1780_v45, %v1718_v19  ;;  %v6999_v26 = vpop.f32.mrb[61].mxu0  ;;  %v7001_v21 = vpop.f32.mrb[61].mxu1 }
 0x157   :  { %11552 = vst [vmem:[#allocation95_spill] sm:$0xff] %v6999_v26  ;;  %11553 = vst [vmem:[#allocation96_spill] sm:$0xff] %v7001_v21  ;;  %v773_v47 = vadd.f32 %v772_v33, %v6999_v26  ;;  %v843_v1 = vmul.f32 %v6999_v26, %v6999_v26  ;;  %v905_v61 = vadd.f32 %v904_v9, %v842_v3  ;;  %v7007_v27 = vpop.f32.mrb[62].mxu0  ;;  %v7009_v51 = vpop.f32.mrb[62].mxu1 }
 0x158   :  { %v1650_v29 = vadd.f32 %v1649_v55, %v7001_v21  ;;  %11554 = vst [vmem:[#allocation97_spill] sm:$0xff] %v7007_v27  ;;  %11555 = vst [vmem:[#allocation98_spill] sm:$0xff] %v7009_v51  ;;  %v1720_v17 = vmul.f32 %v7001_v21, %v7001_v21  ;;  %v1782_v19 = vadd.f32 %v1781_v60, %v1719_v16  ;;  %v7013_v45 = vpop.f32.mrb[63].mxu0  ;;  %v7015_v39 = vpop.f32.mrb[63].mxu1 }
 0x159   :  { %11556 = vst [vmem:[#allocation99_spill] sm:$0xff] %v7013_v45  ;;  %11557 = vst [vmem:[#allocation100_spill] sm:$0xff] %v7015_v39  ;;  %v906_v53 = vadd.f32 %v905_v61, %v843_v1  ;;  %v774_v33 = vadd.f32 %v773_v47, %v7013_v45  ;;  %v844_v3 = vmul.f32 %v7013_v45, %v7013_v45 }
 0x15a   :  { %v1651_v55 = vadd.f32 %v1650_v29, %v7015_v39  ;;  %v1783_v9 = vadd.f32 %v1782_v19, %v1720_v17  ;;  %v1721_v26 = vmul.f32 %v7015_v39, %v7015_v39  ;;  %v845_v21 = vmul.f32 %v6991_v0, %v6991_v0 }
 0x15b   :  { %v775_v16 = vadd.f32 %v6991_v0, %v774_v33  ;;  %v907_v60 = vadd.f32 %v906_v53, %v844_v3  ;;  %v1722_v47 = vmul.f32 %v6993_v25, %v6993_v25  ;;  %v846_v61 = vmul.f32 %v7007_v27, %v7007_v27 }
 0x15c   :  { %v1652_v35 = vadd.f32 %v6993_v25, %v1651_v55  ;;  %v1784_v1 = vadd.f32 %v1783_v9, %v1721_v26  ;;  %v1723_v53 = vmul.f32 %v7009_v51, %v7009_v51 }
 0x15d   :  { %v776_v29 = vadd.f32 %v7007_v27, %v775_v16  ;;  %v908_v17 = vadd.f32 %v907_v60, %v845_v21  ;;  %v7033_v39 = vpop.f32.mrb[64].mxu0  ;;  %v7035_v45 = vpop.f32.mrb[64].mxu1 }
 0x15e   :  { %v1653_v19 = vadd.f32 %v7009_v51, %v1652_v35  ;;  %11558 = vst [vmem:[#allocation101_spill] sm:$0xff] %v7033_v39  ;;  %11559 = vst [vmem:[#allocation102_spill] sm:$0xff] %v7035_v45  ;;  %v1785_v33 = vadd.f32 %v1784_v1, %v1722_v47  ;;  %v7039_v3 = vpop.f32.mrb[65].mxu0  ;;  %v7041_v55 = vpop.f32.mrb[65].mxu1  ;;  %v2541_v21 = vmul.f32 %v7033_v39, %v7033_v39 }
 0x15f   :  { %11560 = vst [vmem:[#allocation103_spill] sm:$0xff] %v7039_v3  ;;  %11561 = vst [vmem:[#allocation104_spill] sm:$0xff] %v7041_v55  ;;  %v777_v26 = vrot.slane %v776_v29, 4  ;;  %v909_v9 = vadd.f32 %v908_v17, %v846_v61  ;;  %v7045_v16 = vpop.f32.mrb[66].mxu0  ;;  %v7047_v35 = vpop.f32.mrb[66].mxu1  ;;  %v3420_v27 = vmul.f32 %v7035_v45, %v7035_v45  ;;  %v2539_v47 = vmul.f32 %v7039_v3, %v7039_v3 }
 0x160   :  { %v1654_v25 = vrot.slane %v1653_v19, 4  ;;  %11562 = vst [vmem:[#allocation105_spill] sm:$0xff] %v7045_v16  ;;  %11563 = vst [vmem:[#allocation106_spill] sm:$0xff] %v7047_v35  ;;  %v1786_v60 = vadd.f32 %v1785_v33, %v1723_v53  ;;  %v3418_v1 = vmul.f32 %v7041_v55, %v7041_v55  ;;  %v7055_v51 = vpop.f32.mrb[67].mxu0  ;;  %v7057_v61 = vpop.f32.mrb[67].mxu1 }
 0x161   :  { %11564 = vst [vmem:[#allocation107_spill] sm:$0xff] %v7055_v51  ;;  %11565 = vst [vmem:[#allocation108_spill] sm:$0xff] %v7057_v61  ;;  %v778_v17 = vadd.f32 %v777_v26, %v776_v29  ;;  %v910_v0 = vrot.slane %v909_v9, 4  ;;  %v2470_v48 = vadd.f32 %v7055_v51, %v7039_v3  ;;  %v2540_v33 = vmul.f32 %v7055_v51, %v7055_v51 }
 0x162   :  { %v1655_v43 = vadd.f32 %v1654_v25, %v1653_v19  ;;  %v1787_v53 = vrot.slane %v1786_v60, 4  ;;  %v3349_v36 = vadd.f32 %v7057_v61, %v7041_v55  ;;  %v3419_v7 = vmul.f32 %v7057_v61, %v7057_v61 }
 0x163   :  { %v779_v57 = vrot.slane %v778_v17, 2  ;;  %v911_v13 = vadd.f32 %v910_v0, %v909_v9  ;;  %v2471_v29 = vadd.f32 %v7033_v39, %v2470_v48  ;;  %v2603_v25 = vadd.f32 %v2540_v33, %v2539_v47 }
 0x164   :  { %v1656_v4 = vrot.slane %v1655_v43, 2  ;;  %v1788_v26 = vadd.f32 %v1787_v53, %v1786_v60  ;;  %v3350_v19 = vadd.f32 %v7035_v45, %v3349_v36  ;;  %v3482_v3 = vadd.f32 %v3419_v7, %v3418_v1 }
 0x165   :  { %v780_v11 = vadd.f32 %v779_v57, %v778_v17  ;;  %v912_v31 = vrot.slane %v911_v13, 2  ;;  %v7069_v51 = vpop.f32.mrb[68].mxu0  ;;  %v7071_v23 = vpop.f32.mrb[68].mxu1  ;;  %v2472_v55 = vadd.f32 %v7045_v16, %v2471_v29  ;;  %v2542_v0 = vmul.f32 %v7045_v16, %v7045_v16 }
 0x166   :  { %v1657_v46 = vadd.f32 %v1656_v4, %v1655_v43  ;;  %11566 = vst [vmem:[#allocation109_spill] sm:$0xff] %v7069_v51  ;;  %11567 = vst [vmem:[#allocation110_spill] sm:$0xff] %v7071_v23  ;;  %v1789_v61 = vrot.slane %v1788_v26, 2  ;;  %v2604_v9 = vadd.f32 %v2603_v25, %v2541_v21  ;;  %v3483_v48 = vadd.f32 %v3482_v3, %v3420_v27  ;;  %v7076_v60 = vpop.f32.mrb[69].mxu0  ;;  %v7078_v47 = vpop.f32.mrb[69].mxu1 }
 0x167   :  { %11568 = vst [vmem:[#allocation111_spill] sm:$0xff] %v7076_v60  ;;  %11569 = vst [vmem:[#allocation112_spill] sm:$0xff] %v7078_v47  ;;  %v781_v36 = vrot.slane %v780_v11, 1  ;;  %v913_v7 = vadd.f32 %v912_v31, %v911_v13  ;;  %v3421_v4 = vmul.f32 %v7047_v35, %v7047_v35  ;;  %v7082_v43 = vpop.f32.mrb[70].mxu0  ;;  %v7084_v1 = vpop.f32.mrb[70].mxu1  ;;  %v2473_v53 = vadd.f32 %v2472_v55, %v7076_v60 }
 0x168   :  { %v1658_v57 = vrot.slane %v1657_v46, 1  ;;  %11570 = vst [vmem:[#allocation113_spill] sm:$0xff] %v7082_v43  ;;  %11571 = vst [vmem:[#allocation114_spill] sm:$0xff] %v7084_v1  ;;  %v1790_v17 = vadd.f32 %v1789_v61, %v1788_v26  ;;  %v2543_v27 = vmul.f32 %v7076_v60, %v7076_v60  ;;  %v2605_v3 = vadd.f32 %v2604_v9, %v2542_v0  ;;  %v7089_v21 = vpop.f32.mrb[71].mxu0  ;;  %v7091_v33 = vpop.f32.mrb[71].mxu1 }
 0x169   :  { %11572 = vst [vmem:[#allocation115_spill] sm:$0xff] %v7089_v21  ;;  %11573 = vst [vmem:[#allocation116_spill] sm:$0xff] %v7091_v33  ;;  %v782_v31 = vadd.f32 %v781_v36, %v780_v11  ;;  %v914_v13 = vrot.slane %v913_v7, 1  ;;  %v3351_v25 = vadd.f32 %v7047_v35, %v3350_v19  ;;  %v3422_v61 = vmul.f32 %v7078_v47, %v7078_v47 }
 0x16a   :  { %v1659_v29 = vadd.f32 %v1658_v57, %v1657_v46  ;;  %v1791_v45 = vrot.slane %v1790_v17, 1  ;;  %v2606_v16 = vadd.f32 %v2605_v3, %v2543_v27  ;;  %v3484_v26 = vadd.f32 %v3483_v48, %v3421_v4 }
 0x16b   :  { %v915_v55 = vadd.f32 %v914_v13, %v913_v7  ;;  %v3352_v0 = vadd.f32 %v3351_v25, %v7078_v47  ;;  %v2474_v49 = vadd.f32 %v2473_v53, %v7089_v21  ;;  %v2544_v11 = vmul.f32 %v7089_v21, %v7089_v21  ;;  %v11716_v21 = vld [vmem:[#allocation77_spill] sm:$0xff] }
 0x16c   :  { %v7096_v39 = vadd.f32 %v1659_v29, %v782_v31  ;;  %v1792_v9 = vadd.f32 %v1791_v45, %v1790_v17  ;;  %v3485_v60 = vadd.f32 %v3484_v26, %v3422_v61  ;;  %v3423_v19 = vmul.f32 %v7091_v33, %v7091_v33 }
 0x16d   :  { %v3353_v46 = vadd.f32 %v3352_v0, %v7091_v33  ;;  %v7105_v36 = vpop.f32.mrb[72].mxu0  ;;  %v7107_v48 = vpop.f32.mrb[72].mxu1  ;;  %v2545_v45 = vmul.f32 %v7069_v51, %v7069_v51  ;;  %v2475_v57 = vadd.f32 %v7069_v51, %v2474_v49  ;;  %v3424_v53 = vmul.f32 %v7071_v23, %v7071_v23  ;;  %v11714_v51 = vld [vmem:[#allocation83_spill] sm:$0xff] }
 0x16e   :  { %11574 = vst [vmem:[#allocation117_spill] sm:$0xff] %v7105_v36  ;;  %11575 = vst [vmem:[#allocation118_spill] sm:$0xff] %v7107_v48  ;;  %v7109_v7 = vadd.f32 %v1792_v9, %v915_v55  ;;  %v7114_v4 = vpop.f32.mrb[73].mxu0  ;;  %v7116_v17 = vpop.f32.mrb[73].mxu1  ;;  %v2607_v27 = vadd.f32 %v2606_v16, %v2544_v11  ;;  %v3486_v31 = vadd.f32 %v3485_v60, %v3423_v19 }
 0x16f   :  { %11576 = vst [vmem:[#allocation119_spill] sm:$0xff] %v7114_v4  ;;  %11577 = vst [vmem:[#allocation120_spill] sm:$0xff] %v7116_v17  ;;  %v3354_v3 = vadd.f32 %v7071_v23, %v3353_v46  ;;  %v7121_v13 = vpop.f32.mrb[74].mxu0  ;;  %v7123_v29 = vpop.f32.mrb[74].mxu1  ;;  %v2546_v25 = vmul.f32 %v7082_v43, %v7082_v43  ;;  %v3425_v49 = vmul.f32 %v7084_v1, %v7084_v1 }
 0x170   :  { %11578 = vst [vmem:[#allocation121_spill] sm:$0xff] %v7121_v13  ;;  %11579 = vst [vmem:[#allocation122_spill] sm:$0xff] %v7123_v29  ;;  %v2476_v61 = vadd.f32 %v7082_v43, %v2475_v57  ;;  %v2547_v26 = vmul.f32 %v7114_v4, %v7114_v4  ;;  %v7132_v55 = vpop.f32.mrb[75].mxu0  ;;  %v7134_v16 = vpop.f32.mrb[75].mxu1  ;;  %v2608_v60 = vadd.f32 %v2607_v27, %v2545_v45  ;;  %v11712_v43 = vld [vmem:[#allocation79_spill] sm:$0xff] }
 0x171   :  { %11580 = vst [vmem:[#allocation123_spill] sm:$0xff] %v7132_v55  ;;  %11581 = vst [vmem:[#allocation124_spill] sm:$0xff] %v7134_v16  ;;  %v3487_v0 = vadd.f32 %v3486_v31, %v3424_v53  ;;  %v3355_v9 = vadd.f32 %v7084_v1, %v3354_v3  ;;  %v3426_v11 = vmul.f32 %v7116_v17, %v7116_v17 }
 0x172   :  { %v2477_v46 = vadd.f32 %v2476_v61, %v7114_v4  ;;  %v2548_v19 = vmul.f32 %v7132_v55, %v7132_v55  ;;  %v2609_v57 = vadd.f32 %v2608_v60, %v2546_v25  ;;  %v3427_v47 = vmul.f32 %v7134_v16, %v7134_v16  ;;  %v11710_v4 = vld [vmem:[#allocation73_spill] sm:$0xff] }
 0x173   :  { %v3356_v23 = vadd.f32 %v3355_v9, %v7116_v17  ;;  %v3488_v33 = vadd.f32 %v3487_v0, %v3425_v49  ;;  %v2549_v61 = vmul.f32 %v7105_v36, %v7105_v36  ;;  %v3428_v0 = vmul.f32 %v7107_v48, %v7107_v48 }
 0x174   :  { %v2478_v45 = vadd.f32 %v2477_v46, %v7132_v55  ;;  %v2610_v53 = vadd.f32 %v2609_v57, %v2547_v26  ;;  %v2550_v46 = vmul.f32 %v7121_v13, %v7121_v13  ;;  %v3429_v57 = vmul.f32 %v7123_v29, %v7123_v29 }
 0x175   :  { %v3489_v27 = vadd.f32 %v3488_v33, %v3426_v11  ;;  %v3357_v3 = vadd.f32 %v3356_v23, %v7134_v16  ;;  %v7147_v31 = vpop.f32.mrb[76].mxu0  ;;  %v7149_v1 = vpop.f32.mrb[76].mxu1 }
 0x176   :  { %11582 = vst [vmem:[#allocation125_spill] sm:$0xff] %v7147_v31  ;;  %11583 = vst [vmem:[#allocation126_spill] sm:$0xff] %v7149_v1  ;;  %v2479_v25 = vadd.f32 %v7105_v36, %v2478_v45  ;;  %v7154_v60 = vpop.f32.mrb[77].mxu0  ;;  %v7156_v49 = vpop.f32.mrb[77].mxu1  ;;  %v2611_v26 = vadd.f32 %v2610_v53, %v2548_v19 }
 0x177   :  { %11584 = vst [vmem:[#allocation127_spill] sm:$0xff] %v7154_v60  ;;  %11585 = vst [vmem:[#allocation128_spill] sm:$0xff] %v7156_v49  ;;  %v3358_v33 = vadd.f32 %v7107_v48, %v3357_v3  ;;  %v3490_v23 = vadd.f32 %v3489_v27, %v3427_v47  ;;  %v7161_v9 = vpop.f32.mrb[78].mxu0  ;;  %v7163_v11 = vpop.f32.mrb[78].mxu1  ;;  %v2551_v16 = vmul.f32 %v7154_v60, %v7154_v60 }
 0x178   :  { %11586 = vst [vmem:[#allocation129_spill] sm:$0xff] %v7161_v9  ;;  %11587 = vst [vmem:[#allocation130_spill] sm:$0xff] %v7163_v11  ;;  %v2480_v45 = vadd.f32 %v7121_v13, %v2479_v25  ;;  %v7172_v17 = vpop.f32.mrb[79].mxu0  ;;  %v7174_v19 = vpop.f32.mrb[79].mxu1  ;;  %v2612_v47 = vadd.f32 %v2611_v26, %v2549_v61  ;;  %v3430_v3 = vmul.f32 %v7156_v49, %v7156_v49 }
 0x179   :  { %11588 = vst [vmem:[#allocation131_spill] sm:$0xff] %v7172_v17  ;;  %11589 = vst [vmem:[#allocation132_spill] sm:$0xff] %v7174_v19  ;;  %v3491_v53 = vadd.f32 %v3490_v23, %v3428_v0  ;;  %v3359_v27 = vadd.f32 %v7123_v29, %v3358_v33  ;;  %v2552_v35 = vmul.f32 %v7172_v17, %v7172_v17 }
 0x17a   :  { %v2481_v48 = vadd.f32 %v2480_v45, %v7154_v60  ;;  %v2613_v25 = vadd.f32 %v2612_v47, %v2550_v46  ;;  %v3431_v55 = vmul.f32 %v7174_v19, %v7174_v19  ;;  %v2553_v45 = vmul.f32 %v7147_v31, %v7147_v31 }
 0x17b   :  { %v3360_v13 = vadd.f32 %v3359_v27, %v7156_v49  ;;  %v3492_v36 = vadd.f32 %v3491_v53, %v3429_v57 }
 0x17c   :  { %v2482_v61 = vadd.f32 %v2481_v48, %v7172_v17  ;;  %v2614_v0 = vadd.f32 %v2613_v25, %v2551_v16  ;;  %v3432_v48 = vmul.f32 %v7149_v1, %v7149_v1  ;;  %v3433_v25 = vmul.f32 %v7163_v11, %v7163_v11 }
 0x17d   :  { %v3493_v26 = vadd.f32 %v3492_v36, %v3430_v3  ;;  %v3361_v33 = vadd.f32 %v3360_v13, %v7174_v19  ;;  %v7187_v23 = vpop.f32.mrb[80].mxu0  ;;  %v7189_v29 = vpop.f32.mrb[80].mxu1  ;;  %v2554_v3 = vmul.f32 %v7161_v9, %v7161_v9 }
 0x17e   :  { %11590 = vst [vmem:[#allocation133_spill] sm:$0xff] %v7187_v23  ;;  %11591 = vst [vmem:[#allocation134_spill] sm:$0xff] %v7189_v29  ;;  %v2483_v46 = vadd.f32 %v7147_v31, %v2482_v61  ;;  %v7194_v47 = vpop.f32.mrb[81].mxu0  ;;  %v7196_v57 = vpop.f32.mrb[81].mxu1  ;;  %v2615_v16 = vadd.f32 %v2614_v0, %v2552_v35 }
 0x17f   :  { %11592 = vst [vmem:[#allocation135_spill] sm:$0xff] %v7194_v47  ;;  %11593 = vst [vmem:[#allocation136_spill] sm:$0xff] %v7196_v57  ;;  %v3362_v36 = vadd.f32 %v7149_v1, %v3361_v33  ;;  %v3494_v13 = vadd.f32 %v3493_v26, %v3431_v55  ;;  %v7201_v53 = vpop.f32.mrb[82].mxu0  ;;  %v7203_v27 = vpop.f32.mrb[82].mxu1  ;;  %v2555_v19 = vmul.f32 %v7194_v47, %v7194_v47 }
 0x180   :  { %11594 = vst [vmem:[#allocation137_spill] sm:$0xff] %v7201_v53  ;;  %11595 = vst [vmem:[#allocation138_spill] sm:$0xff] %v7203_v27  ;;  %v2484_v61 = vadd.f32 %v7161_v9, %v2483_v46  ;;  %v7212_v49 = vpop.f32.mrb[83].mxu0  ;;  %v7214_v35 = vpop.f32.mrb[83].mxu1  ;;  %v2616_v55 = vadd.f32 %v2615_v16, %v2553_v45  ;;  %v3434_v33 = vmul.f32 %v7196_v57, %v7196_v57 }
 0x181   :  { %11596 = vst [vmem:[#allocation139_spill] sm:$0xff] %v7212_v49  ;;  %11597 = vst [vmem:[#allocation140_spill] sm:$0xff] %v7214_v35  ;;  %v3495_v0 = vadd.f32 %v3494_v13, %v3432_v48  ;;  %v3363_v26 = vadd.f32 %v7163_v11, %v3362_v36  ;;  %v2556_v31 = vmul.f32 %v7212_v49, %v7212_v49 }
 0x182   :  { %v2485_v1 = vadd.f32 %v2484_v61, %v7194_v47  ;;  %v2617_v46 = vadd.f32 %v2616_v55, %v2554_v3  ;;  %v3435_v60 = vmul.f32 %v7214_v35, %v7214_v35  ;;  %v2557_v61 = vmul.f32 %v7187_v23, %v7187_v23 }
 0x183   :  { %v3364_v9 = vadd.f32 %v3363_v26, %v7196_v57  ;;  %v3496_v17 = vadd.f32 %v3495_v0, %v3433_v25 }
 0x184   :  { %v2486_v45 = vadd.f32 %v2485_v1, %v7212_v49  ;;  %v2618_v48 = vadd.f32 %v2617_v46, %v2555_v19  ;;  %v3436_v1 = vmul.f32 %v7189_v29, %v7189_v29  ;;  %v3437_v46 = vmul.f32 %v7203_v27, %v7203_v27 }
 0x185   :  { %v3497_v16 = vadd.f32 %v3496_v17, %v3434_v33  ;;  %v3365_v36 = vadd.f32 %v3364_v9, %v7214_v35  ;;  %v7227_v13 = vpop.f32.mrb[84].mxu0  ;;  %v7229_v11 = vpop.f32.mrb[84].mxu1  ;;  %v2558_v33 = vmul.f32 %v7201_v53, %v7201_v53 }
 0x186   :  { %11598 = vst [vmem:[#allocation141_spill] sm:$0xff] %v7227_v13  ;;  %11599 = vst [vmem:[#allocation142_spill] sm:$0xff] %v7229_v11  ;;  %v2487_v3 = vadd.f32 %v7187_v23, %v2486_v45  ;;  %v7234_v55 = vpop.f32.mrb[85].mxu0  ;;  %v7236_v25 = vpop.f32.mrb[85].mxu1  ;;  %v2619_v19 = vadd.f32 %v2618_v48, %v2556_v31 }
 0x187   :  { %11600 = vst [vmem:[#allocation143_spill] sm:$0xff] %v7234_v55  ;;  %11601 = vst [vmem:[#allocation144_spill] sm:$0xff] %v7236_v25  ;;  %v3366_v17 = vadd.f32 %v7189_v29, %v3365_v36  ;;  %v3498_v9 = vadd.f32 %v3497_v16, %v3435_v60  ;;  %v7241_v0 = vpop.f32.mrb[86].mxu0  ;;  %v7243_v26 = vpop.f32.mrb[86].mxu1  ;;  %v2559_v35 = vmul.f32 %v7234_v55, %v7234_v55 }
 0x188   :  { %11602 = vst [vmem:[#allocation145_spill] sm:$0xff] %v7241_v0  ;;  %11603 = vst [vmem:[#allocation146_spill] sm:$0xff] %v7243_v26  ;;  %v2488_v45 = vadd.f32 %v7201_v53, %v2487_v3  ;;  %v7252_v57 = vpop.f32.mrb[87].mxu0  ;;  %v7254_v31 = vpop.f32.mrb[87].mxu1  ;;  %v2620_v60 = vadd.f32 %v2619_v19, %v2557_v61  ;;  %v3438_v36 = vmul.f32 %v7236_v25, %v7236_v25 }
 0x189   :  { %11604 = vst [vmem:[#allocation147_spill] sm:$0xff] %v7252_v57  ;;  %11605 = vst [vmem:[#allocation148_spill] sm:$0xff] %v7254_v31  ;;  %v3499_v48 = vadd.f32 %v3498_v9, %v3436_v1  ;;  %v3367_v16 = vadd.f32 %v7203_v27, %v3366_v17  ;;  %v2560_v23 = vmul.f32 %v7252_v57, %v7252_v57 }
 0x18a   :  { %v2489_v29 = vadd.f32 %v2488_v45, %v7234_v55  ;;  %v2621_v3 = vadd.f32 %v2620_v60, %v2558_v33  ;;  %v3439_v47 = vmul.f32 %v7254_v31, %v7254_v31  ;;  %v2561_v45 = vmul.f32 %v7227_v13, %v7227_v13 }
 0x18b   :  { %v3368_v53 = vadd.f32 %v3367_v16, %v7236_v25  ;;  %v3500_v49 = vadd.f32 %v3499_v48, %v3437_v46 }
 0x18c   :  { %v2490_v61 = vadd.f32 %v2489_v29, %v7252_v57  ;;  %v2622_v1 = vadd.f32 %v2621_v3, %v2559_v35  ;;  %v3440_v29 = vmul.f32 %v7229_v11, %v7229_v11  ;;  %v3441_v3 = vmul.f32 %v7243_v26, %v7243_v26 }
 0x18d   :  { %v3501_v19 = vadd.f32 %v3500_v49, %v3438_v36  ;;  %v3369_v17 = vadd.f32 %v3368_v53, %v7254_v31  ;;  %v7267_v9 = vpop.f32.mrb[88].mxu0  ;;  %v7269_v27 = vpop.f32.mrb[88].mxu1  ;;  %v2562_v36 = vmul.f32 %v7241_v0, %v7241_v0 }
 0x18e   :  { %11606 = vst [vmem:[#allocation149_spill] sm:$0xff] %v7267_v9  ;;  %11607 = vst [vmem:[#allocation150_spill] sm:$0xff] %v7269_v27  ;;  %v2491_v33 = vadd.f32 %v7227_v13, %v2490_v61  ;;  %v7274_v60 = vpop.f32.mrb[89].mxu0  ;;  %v7276_v46 = vpop.f32.mrb[89].mxu1  ;;  %v2623_v35 = vadd.f32 %v2622_v1, %v2560_v23 }
 0x18f   :  { %11608 = vst [vmem:[#allocation151_spill] sm:$0xff] %v7274_v60  ;;  %11609 = vst [vmem:[#allocation152_spill] sm:$0xff] %v7276_v46  ;;  %v3370_v49 = vadd.f32 %v7229_v11, %v3369_v17  ;;  %v3502_v53 = vadd.f32 %v3501_v19, %v3439_v47  ;;  %v7281_v48 = vpop.f32.mrb[90].mxu0  ;;  %v7283_v16 = vpop.f32.mrb[90].mxu1  ;;  %v2563_v31 = vmul.f32 %v7274_v60, %v7274_v60 }
 0x190   :  { %11610 = vst [vmem:[#allocation153_spill] sm:$0xff] %v7281_v48  ;;  %11611 = vst [vmem:[#allocation154_spill] sm:$0xff] %v7283_v16  ;;  %v2492_v61 = vadd.f32 %v7241_v0, %v2491_v33  ;;  %v7292_v25 = vpop.f32.mrb[91].mxu0  ;;  %v7294_v23 = vpop.f32.mrb[91].mxu1  ;;  %v2624_v47 = vadd.f32 %v2623_v35, %v2561_v45  ;;  %v3442_v17 = vmul.f32 %v7276_v46, %v7276_v46 }
 0x191   :  { %11612 = vst [vmem:[#allocation155_spill] sm:$0xff] %v7292_v25  ;;  %11613 = vst [vmem:[#allocation156_spill] sm:$0xff] %v7294_v23  ;;  %v3503_v1 = vadd.f32 %v3502_v53, %v3440_v29  ;;  %v3371_v19 = vadd.f32 %v7243_v26, %v3370_v49  ;;  %v2564_v13 = vmul.f32 %v7292_v25, %v7292_v25 }
 0x192   :  { %v2493_v11 = vadd.f32 %v2492_v61, %v7274_v60  ;;  %v2625_v33 = vadd.f32 %v2624_v47, %v2562_v36  ;;  %v3443_v55 = vmul.f32 %v7294_v23, %v7294_v23  ;;  %v2565_v61 = vmul.f32 %v7267_v9, %v7267_v9 }
 0x193   :  { %v3372_v0 = vadd.f32 %v3371_v19, %v7276_v46  ;;  %v3504_v57 = vadd.f32 %v3503_v1, %v3441_v3 }
 0x194   :  { %v2494_v45 = vadd.f32 %v2493_v11, %v7292_v25  ;;  %v2626_v29 = vadd.f32 %v2625_v33, %v2563_v31  ;;  %v3444_v11 = vmul.f32 %v7269_v27, %v7269_v27  ;;  %v3445_v33 = vmul.f32 %v7283_v16, %v7283_v16 }
 0x195   :  { %v3505_v35 = vadd.f32 %v3504_v57, %v3442_v17  ;;  %v3373_v49 = vadd.f32 %v3372_v0, %v7294_v23  ;;  %v7307_v53 = vpop.f32.mrb[92].mxu0  ;;  %v7309_v26 = vpop.f32.mrb[92].mxu1  ;;  %v2566_v17 = vmul.f32 %v7281_v48, %v7281_v48 }
 0x196   :  { %11614 = vst [vmem:[#allocation157_spill] sm:$0xff] %v7307_v53  ;;  %11615 = vst [vmem:[#allocation158_spill] sm:$0xff] %v7309_v26  ;;  %v2495_v36 = vadd.f32 %v7267_v9, %v2494_v45  ;;  %v7314_v47 = vpop.f32.mrb[93].mxu0  ;;  %v7316_v3 = vpop.f32.mrb[93].mxu1  ;;  %v2627_v31 = vadd.f32 %v2626_v29, %v2564_v13 }
 0x197   :  { %11616 = vst [vmem:[#allocation159_spill] sm:$0xff] %v7314_v47  ;;  %11617 = vst [vmem:[#allocation160_spill] sm:$0xff] %v7316_v3  ;;  %v3374_v57 = vadd.f32 %v7269_v27, %v3373_v49  ;;  %v3506_v0 = vadd.f32 %v3505_v35, %v3443_v55  ;;  %v7321_v1 = vpop.f32.mrb[94].mxu0  ;;  %v7323_v19 = vpop.f32.mrb[94].mxu1  ;;  %v2567_v23 = vmul.f32 %v7314_v47, %v7314_v47 }
 0x198   :  { %11618 = vst [vmem:[#allocation161_spill] sm:$0xff] %v7321_v1  ;;  %11619 = vst [vmem:[#allocation162_spill] sm:$0xff] %v7323_v19  ;;  %v2496_v45 = vadd.f32 %v7281_v48, %v2495_v36  ;;  %v7332_v46 = vpop.f32.mrb[95].mxu0  ;;  %v7334_v13 = vpop.f32.mrb[95].mxu1  ;;  %v2628_v55 = vadd.f32 %v2627_v31, %v2565_v61  ;;  %v3446_v49 = vmul.f32 %v7316_v3, %v7316_v3 }
 0x199   :  { %11620 = vst [vmem:[#allocation163_spill] sm:$0xff] %v7332_v46  ;;  %11621 = vst [vmem:[#allocation164_spill] sm:$0xff] %v7334_v13  ;;  %v3507_v29 = vadd.f32 %v3506_v0, %v3444_v11  ;;  %v3375_v35 = vadd.f32 %v7283_v16, %v3374_v57  ;;  %v2568_v9 = vmul.f32 %v7332_v46, %v7332_v46 }
 0x19a   :  { %v2497_v27 = vadd.f32 %v2496_v45, %v7314_v47  ;;  %v2629_v36 = vadd.f32 %v2628_v55, %v2566_v17  ;;  %v3447_v60 = vmul.f32 %v7334_v13, %v7334_v13  ;;  %v2569_v45 = vmul.f32 %v7307_v53, %v7307_v53 }
 0x19b   :  { %v3376_v48 = vadd.f32 %v3375_v35, %v7316_v3  ;;  %v3508_v25 = vadd.f32 %v3507_v29, %v3445_v33 }
 0x19c   :  { %v2498_v61 = vadd.f32 %v2497_v27, %v7332_v46  ;;  %v2630_v11 = vadd.f32 %v2629_v36, %v2567_v23  ;;  %v3448_v27 = vmul.f32 %v7309_v26, %v7309_v26  ;;  %v3449_v36 = vmul.f32 %v7323_v19, %v7323_v19 }
 0x19d   :  { %v3509_v31 = vadd.f32 %v3508_v25, %v3446_v49  ;;  %v3377_v57 = vadd.f32 %v3376_v48, %v7334_v13  ;;  %v7347_v0 = vpop.f32.mrb[96].mxu0  ;;  %v7349_v16 = vpop.f32.mrb[96].mxu1  ;;  %v2570_v49 = vmul.f32 %v7321_v1, %v7321_v1 }
 0x19e   :  { %11622 = vst [vmem:[#allocation165_spill] sm:$0xff] %v7347_v0  ;;  %11623 = vst [vmem:[#allocation166_spill] sm:$0xff] %v7349_v16  ;;  %v2499_v17 = vadd.f32 %v7307_v53, %v2498_v61  ;;  %v7354_v55 = vpop.f32.mrb[97].mxu0  ;;  %v7356_v33 = vpop.f32.mrb[97].mxu1  ;;  %v2631_v23 = vadd.f32 %v2630_v11, %v2568_v9 }
 0x19f   :  { %11624 = vst [vmem:[#allocation167_spill] sm:$0xff] %v7354_v55  ;;  %11625 = vst [vmem:[#allocation168_spill] sm:$0xff] %v7356_v33  ;;  %v3378_v25 = vadd.f32 %v7309_v26, %v3377_v57  ;;  %v3510_v48 = vadd.f32 %v3509_v31, %v3447_v60  ;;  %v7361_v29 = vpop.f32.mrb[98].mxu0  ;;  %v7363_v35 = vpop.f32.mrb[98].mxu1  ;;  %v2571_v13 = vmul.f32 %v7354_v55, %v7354_v55 }
 0x1a0   :  { %11626 = vst [vmem:[#allocation169_spill] sm:$0xff] %v7361_v29  ;;  %11627 = vst [vmem:[#allocation170_spill] sm:$0xff] %v7363_v35  ;;  %v2500_v61 = vadd.f32 %v7321_v1, %v2499_v17  ;;  %v7372_v3 = vpop.f32.mrb[99].mxu0  ;;  %v7374_v9 = vpop.f32.mrb[99].mxu1  ;;  %v2632_v60 = vadd.f32 %v2631_v23, %v2569_v45  ;;  %v3450_v57 = vmul.f32 %v7356_v33, %v7356_v33 }
 0x1a1   :  { %11628 = vst [vmem:[#allocation171_spill] sm:$0xff] %v7372_v3  ;;  %11629 = vst [vmem:[#allocation172_spill] sm:$0xff] %v7374_v9  ;;  %v3511_v11 = vadd.f32 %v3510_v48, %v3448_v27  ;;  %v3379_v31 = vadd.f32 %v7323_v19, %v3378_v25  ;;  %v2572_v53 = vmul.f32 %v7372_v3, %v7372_v3 }
 0x1a2   :  { %v2501_v26 = vadd.f32 %v2500_v61, %v7354_v55  ;;  %v2633_v17 = vadd.f32 %v2632_v60, %v2570_v49  ;;  %v3451_v47 = vmul.f32 %v7374_v9, %v7374_v9  ;;  %v2573_v61 = vmul.f32 %v7347_v0, %v7347_v0 }
 0x1a3   :  { %v3380_v1 = vadd.f32 %v3379_v31, %v7356_v33  ;;  %v3512_v46 = vadd.f32 %v3511_v11, %v3449_v36 }
 0x1a4   :  { %v2502_v45 = vadd.f32 %v2501_v26, %v7372_v3  ;;  %v2634_v27 = vadd.f32 %v2633_v17, %v2571_v13  ;;  %v3452_v26 = vmul.f32 %v7349_v16, %v7349_v16  ;;  %v3453_v17 = vmul.f32 %v7363_v35, %v7363_v35 }
 0x1a5   :  { %v3513_v23 = vadd.f32 %v3512_v46, %v3450_v57  ;;  %v3381_v25 = vadd.f32 %v3380_v1, %v7374_v9  ;;  %v7387_v48 = vpop.f32.mrb[100].mxu0  ;;  %v7389_v19 = vpop.f32.mrb[100].mxu1  ;;  %v2574_v57 = vmul.f32 %v7361_v29, %v7361_v29 }
 0x1a6   :  { %11630 = vst [vmem:[#allocation173_spill] sm:$0xff] %v7387_v48  ;;  %11631 = vst [vmem:[#allocation174_spill] sm:$0xff] %v7389_v19  ;;  %v2503_v49 = vadd.f32 %v7347_v0, %v2502_v45  ;;  %v7394_v60 = vpop.f32.mrb[101].mxu0  ;;  %v7396_v36 = vpop.f32.mrb[101].mxu1  ;;  %v2635_v13 = vadd.f32 %v2634_v27, %v2572_v53 }
 0x1a7   :  { %11632 = vst [vmem:[#allocation175_spill] sm:$0xff] %v7394_v60  ;;  %11633 = vst [vmem:[#allocation176_spill] sm:$0xff] %v7396_v36  ;;  %v3382_v46 = vadd.f32 %v7349_v16, %v3381_v25  ;;  %v3514_v1 = vadd.f32 %v3513_v23, %v3451_v47  ;;  %v7401_v11 = vpop.f32.mrb[102].mxu0  ;;  %v7403_v31 = vpop.f32.mrb[102].mxu1  ;;  %v2575_v9 = vmul.f32 %v7394_v60, %v7394_v60 }
 0x1a8   :  { %11634 = vst [vmem:[#allocation177_spill] sm:$0xff] %v7401_v11  ;;  %11635 = vst [vmem:[#allocation178_spill] sm:$0xff] %v7403_v31  ;;  %v2504_v45 = vadd.f32 %v7361_v29, %v2503_v49  ;;  %v7412_v33 = vpop.f32.mrb[103].mxu0  ;;  %v7414_v53 = vpop.f32.mrb[103].mxu1  ;;  %v2636_v47 = vadd.f32 %v2635_v13, %v2573_v61  ;;  %v3454_v25 = vmul.f32 %v7396_v36, %v7396_v36 }
 0x1a9   :  { %11636 = vst [vmem:[#allocation179_spill] sm:$0xff] %v7412_v33  ;;  %11637 = vst [vmem:[#allocation180_spill] sm:$0xff] %v7414_v53  ;;  %v3515_v27 = vadd.f32 %v3514_v1, %v3452_v26  ;;  %v3383_v23 = vadd.f32 %v7363_v35, %v3382_v46  ;;  %v2576_v0 = vmul.f32 %v7412_v33, %v7412_v33 }
 0x1aa   :  { %v2505_v16 = vadd.f32 %v2504_v45, %v7394_v60  ;;  %v2637_v49 = vadd.f32 %v2636_v47, %v2574_v57  ;;  %v3455_v55 = vmul.f32 %v7414_v53, %v7414_v53  ;;  %v2577_v45 = vmul.f32 %v7387_v48, %v7387_v48 }
 0x1ab   :  { %v3384_v29 = vadd.f32 %v3383_v23, %v7396_v36  ;;  %v3516_v3 = vadd.f32 %v3515_v27, %v3453_v17 }
 0x1ac   :  { %v2506_v61 = vadd.f32 %v2505_v16, %v7412_v33  ;;  %v2638_v26 = vadd.f32 %v2637_v49, %v2575_v9  ;;  %v3456_v16 = vmul.f32 %v7389_v19, %v7389_v19  ;;  %v3457_v49 = vmul.f32 %v7403_v31, %v7403_v31 }
 0x1ad   :  { %v3517_v13 = vadd.f32 %v3516_v3, %v3454_v25  ;;  %v3385_v46 = vadd.f32 %v3384_v29, %v7414_v53  ;;  %v7427_v1 = vpop.f32.mrb[104].mxu0  ;;  %v7429_v35 = vpop.f32.mrb[104].mxu1  ;;  %v2578_v25 = vmul.f32 %v7401_v11, %v7401_v11 }
 0x1ae   :  { %11638 = vst [vmem:[#allocation181_spill] sm:$0xff] %v7427_v1  ;;  %11639 = vst [vmem:[#allocation182_spill] sm:$0xff] %v7429_v35  ;;  %v2507_v57 = vadd.f32 %v7387_v48, %v2506_v61  ;;  %v7434_v47 = vpop.f32.mrb[105].mxu0  ;;  %v7436_v17 = vpop.f32.mrb[105].mxu1  ;;  %v2639_v9 = vadd.f32 %v2638_v26, %v2576_v0 }
 0x1af   :  { %11640 = vst [vmem:[#allocation183_spill] sm:$0xff] %v7434_v47  ;;  %11641 = vst [vmem:[#allocation184_spill] sm:$0xff] %v7436_v17  ;;  %v3386_v3 = vadd.f32 %v7389_v19, %v3385_v46  ;;  %v3518_v29 = vadd.f32 %v3517_v13, %v3455_v55  ;;  %v7441_v27 = vpop.f32.mrb[106].mxu0  ;;  %v7443_v23 = vpop.f32.mrb[106].mxu1  ;;  %v2579_v53 = vmul.f32 %v7434_v47, %v7434_v47 }
 0x1b0   :  { %11642 = vst [vmem:[#allocation185_spill] sm:$0xff] %v7441_v27  ;;  %11643 = vst [vmem:[#allocation186_spill] sm:$0xff] %v7443_v23  ;;  %v2508_v61 = vadd.f32 %v7401_v11, %v2507_v57  ;;  %v7452_v36 = vpop.f32.mrb[107].mxu0  ;;  %v7454_v0 = vpop.f32.mrb[107].mxu1  ;;  %v2640_v55 = vadd.f32 %v2639_v9, %v2577_v45  ;;  %v3458_v46 = vmul.f32 %v7436_v17, %v7436_v17 }
 0x1b1   :  { %11644 = vst [vmem:[#allocation187_spill] sm:$0xff] %v7452_v36  ;;  %11645 = vst [vmem:[#allocation188_spill] sm:$0xff] %v7454_v0  ;;  %v3519_v26 = vadd.f32 %v3518_v29, %v3456_v16  ;;  %v3387_v13 = vadd.f32 %v7403_v31, %v3386_v3  ;;  %v2580_v48 = vmul.f32 %v7452_v36, %v7452_v36 }
 0x1b2   :  { %v2509_v19 = vadd.f32 %v2508_v61, %v7434_v47  ;;  %v2641_v57 = vadd.f32 %v2640_v55, %v2578_v25  ;;  %v3459_v60 = vmul.f32 %v7454_v0, %v7454_v0  ;;  %v2581_v61 = vmul.f32 %v7427_v1, %v7427_v1 }
 0x1b3   :  { %v3388_v11 = vadd.f32 %v3387_v13, %v7436_v17  ;;  %v3520_v33 = vadd.f32 %v3519_v26, %v3457_v49 }
 0x1b4   :  { %v2510_v45 = vadd.f32 %v2509_v19, %v7452_v36  ;;  %v2642_v16 = vadd.f32 %v2641_v57, %v2579_v53  ;;  %v3460_v19 = vmul.f32 %v7429_v35, %v7429_v35  ;;  %v3461_v57 = vmul.f32 %v7443_v23, %v7443_v23 }
 0x1b5   :  { %v3521_v9 = vadd.f32 %v3520_v33, %v3458_v46  ;;  %v3389_v3 = vadd.f32 %v3388_v11, %v7454_v0  ;;  %v7467_v29 = vpop.f32.mrb[108].mxu0  ;;  %v7469_v31 = vpop.f32.mrb[108].mxu1  ;;  %v2582_v46 = vmul.f32 %v7441_v27, %v7441_v27 }
 0x1b6   :  { %11646 = vst [vmem:[#allocation189_spill] sm:$0xff] %v7467_v29  ;;  %11647 = vst [vmem:[#allocation190_spill] sm:$0xff] %v7469_v31  ;;  %v2511_v25 = vadd.f32 %v7427_v1, %v2510_v45  ;;  %v7474_v55 = vpop.f32.mrb[109].mxu0  ;;  %v7476_v49 = vpop.f32.mrb[109].mxu1  ;;  %v2643_v53 = vadd.f32 %v2642_v16, %v2580_v48 }
 0x1b7   :  { %11648 = vst [vmem:[#allocation191_spill] sm:$0xff] %v7474_v55  ;;  %11649 = vst [vmem:[#allocation192_spill] sm:$0xff] %v7476_v49  ;;  %v3390_v33 = vadd.f32 %v7429_v35, %v3389_v3  ;;  %v3522_v11 = vadd.f32 %v3521_v9, %v3459_v60  ;;  %v7481_v26 = vpop.f32.mrb[110].mxu0  ;;  %v7483_v13 = vpop.f32.mrb[110].mxu1  ;;  %v2583_v0 = vmul.f32 %v7474_v55, %v7474_v55 }
 0x1b8   :  { %11650 = vst [vmem:[#allocation193_spill] sm:$0xff] %v7481_v26  ;;  %11651 = vst [vmem:[#allocation194_spill] sm:$0xff] %v7483_v13  ;;  %v2512_v45 = vadd.f32 %v7441_v27, %v2511_v25  ;;  %v7492_v17 = vpop.f32.mrb[111].mxu0  ;;  %v7494_v48 = vpop.f32.mrb[111].mxu1  ;;  %v2644_v60 = vadd.f32 %v2643_v53, %v2581_v61  ;;  %v3462_v3 = vmul.f32 %v7476_v49, %v7476_v49 }
 0x1b9   :  { %11652 = vst [vmem:[#allocation195_spill] sm:$0xff] %v7492_v17  ;;  %11653 = vst [vmem:[#allocation196_spill] sm:$0xff] %v7494_v48  ;;  %v3523_v16 = vadd.f32 %v3522_v11, %v3460_v19  ;;  %v3391_v9 = vadd.f32 %v7443_v23, %v3390_v33  ;;  %v2584_v1 = vmul.f32 %v7492_v17, %v7492_v17 }
 0x1ba   :  { %v2513_v35 = vadd.f32 %v2512_v45, %v7474_v55  ;;  %v2645_v25 = vadd.f32 %v2644_v60, %v2582_v46  ;;  %v3463_v47 = vmul.f32 %v7494_v48, %v7494_v48  ;;  %v2585_v45 = vmul.f32 %v7467_v29, %v7467_v29 }
 0x1bb   :  { %v3392_v27 = vadd.f32 %v3391_v9, %v7476_v49  ;;  %v3524_v36 = vadd.f32 %v3523_v16, %v3461_v57 }
 0x1bc   :  { %v2514_v61 = vadd.f32 %v2513_v35, %v7492_v17  ;;  %v2646_v19 = vadd.f32 %v2645_v25, %v2583_v0  ;;  %v3464_v35 = vmul.f32 %v7469_v31, %v7469_v31  ;;  %v3465_v25 = vmul.f32 %v7483_v13, %v7483_v13 }
 0x1bd   :  { %v3525_v53 = vadd.f32 %v3524_v36, %v3462_v3  ;;  %v3393_v33 = vadd.f32 %v3392_v27, %v7494_v48  ;;  %v7507_v11 = vpop.f32.mrb[112].mxu0  ;;  %v7509_v23 = vpop.f32.mrb[112].mxu1  ;;  %v2586_v3 = vmul.f32 %v7481_v26, %v7481_v26 }
 0x1be   :  { %11654 = vst [vmem:[#allocation197_spill] sm:$0xff] %v7507_v11  ;;  %11655 = vst [vmem:[#allocation198_spill] sm:$0xff] %v7509_v23  ;;  %v2515_v46 = vadd.f32 %v7467_v29, %v2514_v61  ;;  %v7514_v60 = vpop.f32.mrb[113].mxu0  ;;  %v7516_v57 = vpop.f32.mrb[113].mxu1  ;;  %v2647_v0 = vadd.f32 %v2646_v19, %v2584_v1 }
 0x1bf   :  { %11656 = vst [vmem:[#allocation199_spill] sm:$0xff] %v7514_v60  ;;  %11657 = vst [vmem:[#allocation200_spill] sm:$0xff] %v7516_v57  ;;  %v3394_v36 = vadd.f32 %v7469_v31, %v3393_v33  ;;  %v3526_v27 = vadd.f32 %v3525_v53, %v3463_v47  ;;  %v7521_v16 = vpop.f32.mrb[114].mxu0  ;;  %v7523_v9 = vpop.f32.mrb[114].mxu1  ;;  %v2587_v48 = vmul.f32 %v7514_v60, %v7514_v60 }
 0x1c0   :  { %11658 = vst [vmem:[#allocation201_spill] sm:$0xff] %v7521_v16  ;;  %11659 = vst [vmem:[#allocation202_spill] sm:$0xff] %v7523_v9  ;;  %v2516_v61 = vadd.f32 %v7481_v26, %v2515_v46  ;;  %v7532_v49 = vpop.f32.mrb[115].mxu0  ;;  %v7534_v1 = vpop.f32.mrb[115].mxu1  ;;  %v2648_v47 = vadd.f32 %v2647_v0, %v2585_v45  ;;  %v3466_v33 = vmul.f32 %v7516_v57, %v7516_v57 }
 0x1c1   :  { %11660 = vst [vmem:[#allocation203_spill] sm:$0xff] %v7532_v49  ;;  %11661 = vst [vmem:[#allocation204_spill] sm:$0xff] %v7534_v1  ;;  %v3527_v19 = vadd.f32 %v3526_v27, %v3464_v35  ;;  %v3395_v53 = vadd.f32 %v7483_v13, %v3394_v36  ;;  %v2588_v29 = vmul.f32 %v7532_v49, %v7532_v49 }
 0x1c2   :  { %v2517_v31 = vadd.f32 %v2516_v61, %v7514_v60  ;;  %v2649_v46 = vadd.f32 %v2648_v47, %v2586_v3  ;;  %v3467_v55 = vmul.f32 %v7534_v1, %v7534_v1  ;;  %v2589_v61 = vmul.f32 %v7507_v11, %v7507_v11 }
 0x1c3   :  { %v3396_v26 = vadd.f32 %v3395_v53, %v7516_v57  ;;  %v3528_v17 = vadd.f32 %v3527_v19, %v3465_v25 }
 0x1c4   :  { %v2518_v45 = vadd.f32 %v2517_v31, %v7532_v49  ;;  %v2650_v35 = vadd.f32 %v2649_v46, %v2587_v48  ;;  %v3468_v31 = vmul.f32 %v7509_v23, %v7509_v23  ;;  %v3469_v46 = vmul.f32 %v7523_v9, %v7523_v9 }
 0x1c5   :  { %v3529_v0 = vadd.f32 %v3528_v17, %v3466_v33  ;;  %v3397_v36 = vadd.f32 %v3396_v26, %v7534_v1  ;;  %v7547_v27 = vpop.f32.mrb[116].mxu0  ;;  %v7549_v13 = vpop.f32.mrb[116].mxu1  ;;  %v2590_v33 = vmul.f32 %v7521_v16, %v7521_v16 }
 0x1c6   :  { %11662 = vst [vmem:[#allocation205_spill] sm:$0xff] %v7547_v27  ;;  %11663 = vst [vmem:[#allocation206_spill] sm:$0xff] %v7549_v13  ;;  %v2519_v3 = vadd.f32 %v7507_v11, %v2518_v45  ;;  %v7554_v47 = vpop.f32.mrb[117].mxu0  ;;  %v7556_v25 = vpop.f32.mrb[117].mxu1  ;;  %v2651_v48 = vadd.f32 %v2650_v35, %v2588_v29 }
 0x1c7   :  { %11664 = vst [vmem:[#allocation207_spill] sm:$0xff] %v7554_v47  ;;  %11665 = vst [vmem:[#allocation208_spill] sm:$0xff] %v7556_v25  ;;  %v3398_v17 = vadd.f32 %v7509_v23, %v3397_v36  ;;  %v3530_v26 = vadd.f32 %v3529_v0, %v3467_v55  ;;  %v7561_v19 = vpop.f32.mrb[118].mxu0  ;;  %v7563_v53 = vpop.f32.mrb[118].mxu1  ;;  %v2591_v1 = vmul.f32 %v7554_v47, %v7554_v47 }
 0x1c8   :  { %11666 = vst [vmem:[#allocation209_spill] sm:$0xff] %v7561_v19  ;;  %11667 = vst [vmem:[#allocation210_spill] sm:$0xff] %v7563_v53  ;;  %v2520_v45 = vadd.f32 %v7521_v16, %v2519_v3  ;;  %v7572_v57 = vpop.f32.mrb[119].mxu0  ;;  %v7574_v29 = vpop.f32.mrb[119].mxu1  ;;  %v2652_v55 = vadd.f32 %v2651_v48, %v2589_v61  ;;  %v3470_v36 = vmul.f32 %v7556_v25, %v7556_v25 }
 0x1c9   :  { %11668 = vst [vmem:[#allocation211_spill] sm:$0xff] %v7572_v57  ;;  %11669 = vst [vmem:[#allocation212_spill] sm:$0xff] %v7574_v29  ;;  %v3531_v35 = vadd.f32 %v3530_v26, %v3468_v31  ;;  %v3399_v0 = vadd.f32 %v7523_v9, %v3398_v17  ;;  %v2592_v11 = vmul.f32 %v7572_v57, %v7572_v57 }
 0x1ca   :  { %v2521_v23 = vadd.f32 %v2520_v45, %v7554_v47  ;;  %v2653_v3 = vadd.f32 %v2652_v55, %v2590_v33  ;;  %v3471_v60 = vmul.f32 %v7574_v29, %v7574_v29  ;;  %v2593_v45 = vmul.f32 %v7547_v27, %v7547_v27 }
 0x1cb   :  { %v3400_v16 = vadd.f32 %v3399_v0, %v7556_v25  ;;  %v3532_v49 = vadd.f32 %v3531_v35, %v3469_v46 }
 0x1cc   :  { %v2522_v61 = vadd.f32 %v2521_v23, %v7572_v57  ;;  %v2654_v31 = vadd.f32 %v2653_v3, %v2591_v1  ;;  %v3472_v23 = vmul.f32 %v7549_v13, %v7549_v13  ;;  %v3473_v3 = vmul.f32 %v7563_v53, %v7563_v53 }
 0x1cd   :  { %v3533_v48 = vadd.f32 %v3532_v49, %v3470_v36  ;;  %v3401_v17 = vadd.f32 %v3400_v16, %v7574_v29  ;;  %v7587_v26 = vpop.f32.mrb[120].mxu0  ;;  %v7589_v9 = vpop.f32.mrb[120].mxu1  ;;  %v2594_v36 = vmul.f32 %v7561_v19, %v7561_v19 }
 0x1ce   :  { %11670 = vst [vmem:[#allocation213_spill] sm:$0xff] %v7587_v26  ;;  %11671 = vst [vmem:[#allocation214_spill] sm:$0xff] %v7589_v9  ;;  %v2523_v33 = vadd.f32 %v7547_v27, %v2522_v61  ;;  %v7594_v55 = vpop.f32.mrb[121].mxu0  ;;  %v7596_v46 = vpop.f32.mrb[121].mxu1  ;;  %v2655_v1 = vadd.f32 %v2654_v31, %v2592_v11 }
 0x1cf   :  { %11672 = vst [vmem:[#allocation215_spill] sm:$0xff] %v7594_v55  ;;  %11673 = vst [vmem:[#allocation216_spill] sm:$0xff] %v7596_v46  ;;  %v3402_v49 = vadd.f32 %v7549_v13, %v3401_v17  ;;  %v3534_v16 = vadd.f32 %v3533_v48, %v3471_v60  ;;  %v7601_v35 = vpop.f32.mrb[122].mxu0  ;;  %v7603_v0 = vpop.f32.mrb[122].mxu1  ;;  %v2595_v29 = vmul.f32 %v7594_v55, %v7594_v55 }
 0x1d0   :  { %11674 = vst [vmem:[#allocation217_spill] sm:$0xff] %v7601_v35  ;;  %11675 = vst [vmem:[#allocation218_spill] sm:$0xff] %v7603_v0  ;;  %v2524_v61 = vadd.f32 %v7561_v19, %v2523_v33  ;;  %v7612_v25 = vpop.f32.mrb[123].mxu0  ;;  %v7614_v11 = vpop.f32.mrb[123].mxu1  ;;  %v2656_v60 = vadd.f32 %v2655_v1, %v2593_v45  ;;  %v3474_v17 = vmul.f32 %v7596_v46, %v7596_v46 }
 0x1d1   :  { %11676 = vst [vmem:[#allocation219_spill] sm:$0xff] %v7612_v25  ;;  %11677 = vst [vmem:[#allocation220_spill] sm:$0xff] %v7614_v11  ;;  %v3535_v31 = vadd.f32 %v3534_v16, %v3472_v23  ;;  %v3403_v48 = vadd.f32 %v7563_v53, %v3402_v49  ;;  %v2596_v27 = vmul.f32 %v7612_v25, %v7612_v25 }
 0x1d2   :  { %v2525_v13 = vadd.f32 %v2524_v61, %v7594_v55  ;;  %v2657_v33 = vadd.f32 %v2656_v60, %v2594_v36  ;;  %v3475_v47 = vmul.f32 %v7614_v11, %v7614_v11  ;;  %v2597_v61 = vmul.f32 %v7587_v26, %v7587_v26 }
 0x1d3   :  { %v3404_v19 = vadd.f32 %v3403_v48, %v7596_v46  ;;  %v3536_v57 = vadd.f32 %v3535_v31, %v3473_v3 }
 0x1d4   :  { %v2526_v45 = vadd.f32 %v2525_v13, %v7612_v25  ;;  %v2658_v23 = vadd.f32 %v2657_v33, %v2595_v29  ;;  %v3476_v13 = vmul.f32 %v7589_v9, %v7589_v9  ;;  %v3477_v33 = vmul.f32 %v7603_v0, %v7603_v0 }
 0x1d5   :  { %v3537_v1 = vadd.f32 %v3536_v57, %v3474_v17  ;;  %v3405_v49 = vadd.f32 %v3404_v19, %v7614_v11  ;;  %v7627_v16 = vpop.f32.mrb[124].mxu0  ;;  %v7629_v53 = vpop.f32.mrb[124].mxu1  ;;  %v2598_v17 = vmul.f32 %v7601_v35, %v7601_v35 }
 0x1d6   :  { %11678 = vst [vmem:[#allocation221_spill] sm:$0xff] %v7627_v16  ;;  %11679 = vst [vmem:[#allocation222_spill] sm:$0xff] %v7629_v53  ;;  %v2527_v36 = vadd.f32 %v7587_v26, %v2526_v45  ;;  %v7634_v60 = vpop.f32.mrb[125].mxu0  ;;  %v7636_v3 = vpop.f32.mrb[125].mxu1  ;;  %v2659_v29 = vadd.f32 %v2658_v23, %v2596_v27 }
 0x1d7   :  { %11680 = vst [vmem:[#allocation223_spill] sm:$0xff] %v7634_v60  ;;  %11681 = vst [vmem:[#allocation224_spill] sm:$0xff] %v7636_v3  ;;  %v3406_v57 = vadd.f32 %v7589_v9, %v3405_v49  ;;  %v3538_v19 = vadd.f32 %v3537_v1, %v3475_v47  ;;  %v7641_v31 = vpop.f32.mrb[126].mxu0  ;;  %v7643_v48 = vpop.f32.mrb[126].mxu1  ;;  %v2599_v11 = vmul.f32 %v7634_v60, %v7634_v60 }
 0x1d8   :  { %11682 = vst [vmem:[#allocation225_spill] sm:$0xff] %v7641_v31  ;;  %11683 = vst [vmem:[#allocation226_spill] sm:$0xff] %v7643_v48  ;;  %v2528_v45 = vadd.f32 %v7601_v35, %v2527_v36  ;;  %v7652_v46 = vpop.f32.mrb[127].mxu0  ;;  %v7654_v27 = vpop.f32.mrb[127].mxu1  ;;  %v2660_v47 = vadd.f32 %v2659_v29, %v2597_v61  ;;  %v3478_v49 = vmul.f32 %v7636_v3, %v7636_v3 }
 0x1d9   :  { %11684 = vst [vmem:[#allocation227_spill] sm:$0xff] %v7652_v46  ;;  %11685 = vst [vmem:[#allocation228_spill] sm:$0xff] %v7654_v27  ;;  %v3539_v23 = vadd.f32 %v3538_v19, %v3476_v13  ;;  %v3407_v1 = vadd.f32 %v7603_v0, %v3406_v57  ;;  %v2600_v26 = vmul.f32 %v7652_v46, %v7652_v46 }
 0x1da   :  { %v2529_v9 = vadd.f32 %v2528_v45, %v7634_v60  ;;  %v2661_v36 = vadd.f32 %v2660_v47, %v2598_v17  ;;  %v3479_v55 = vmul.f32 %v7654_v27, %v7654_v27  ;;  %v2601_v19 = vmul.f32 %v7627_v16, %v7627_v16 }
 0x1db   :  { %v3408_v35 = vadd.f32 %v3407_v1, %v7636_v3  ;;  %v3540_v25 = vadd.f32 %v3539_v23, %v3477_v33  ;;  %v3480_v17 = vmul.f32 %v7629_v53, %v7629_v53  ;;  %v2602_v1 = vmul.f32 %v7641_v31, %v7641_v31 }
 0x1dc   :  { %v2530_v61 = vadd.f32 %v2529_v9, %v7652_v46  ;;  %v2662_v13 = vadd.f32 %v2661_v36, %v2599_v11 }
 0x1dd   :  { %v3541_v29 = vadd.f32 %v3540_v25, %v3478_v49  ;;  %v3409_v57 = vadd.f32 %v3408_v35, %v7654_v27  ;;  %v3481_v25 = vmul.f32 %v7643_v48, %v7643_v48 }
 0x1de   :  { %v2531_v45 = vadd.f32 %v7627_v16, %v2530_v61  ;;  %v2663_v47 = vadd.f32 %v2662_v13, %v2600_v26 }
 0x1df   :  { %v3410_v33 = vadd.f32 %v7629_v53, %v3409_v57  ;;  %v3542_v23 = vadd.f32 %v3541_v29, %v3479_v55 }
 0x1e0   :  { %v2532_v9 = vadd.f32 %v7641_v31, %v2531_v45  ;;  %v2664_v35 = vadd.f32 %v2663_v47, %v2601_v19 }
 0x1e1   :  { %v3411_v11 = vadd.f32 %v7643_v48, %v3410_v33  ;;  %v3543_v49 = vadd.f32 %v3542_v23, %v3480_v17  ;;  %v11708_v48 = vld [vmem:[#allocation69_spill] sm:$0xff] }
 0x1e2   :  { %v2533_v36 = vrot.slane %v2532_v9, 4  ;;  %v2665_v61 = vadd.f32 %v2664_v35, %v2602_v1 }
 0x1e3   :  { %v3412_v27 = vrot.slane %v3411_v11, 4  ;;  %v3544_v3 = vadd.f32 %v3543_v49, %v3481_v25 }
 0x1e4   :  { %v2534_v26 = vadd.f32 %v2533_v36, %v2532_v9  ;;  %v2666_v13 = vrot.slane %v2665_v61, 4 }
 0x1e5   :  { %v3413_v57 = vadd.f32 %v3412_v27, %v3411_v11  ;;  %v3545_v55 = vrot.slane %v3544_v3, 4 }
 0x1e6   :  { %v2535_v29 = vrot.slane %v2534_v26, 2  ;;  %v2667_v53 = vadd.f32 %v2666_v13, %v2665_v61 }
 0x1e7   :  { %v3414_v0 = vrot.slane %v3413_v57, 2  ;;  %v3546_v16 = vadd.f32 %v3545_v55, %v3544_v3 }
 0x1e8   :  { %v2536_v45 = vadd.f32 %v2535_v29, %v2534_v26  ;;  %v2668_v31 = vrot.slane %v2667_v53, 2 }
 0x1e9   :  { %v3415_v46 = vadd.f32 %v3414_v0, %v3413_v57  ;;  %v3547_v60 = vrot.slane %v3546_v16, 2 }
 0x1ea   :  { %v2537_v19 = vrot.slane %v2536_v45, 1  ;;  %v2669_v47 = vadd.f32 %v2668_v31, %v2667_v53  ;;  %v3629_v53 = vlaneseq }
 0x1eb   :  { %v3416_v33 = vrot.slane %v3415_v46, 1  ;;  %v3548_v17 = vadd.f32 %v3547_v60, %v3546_v16 }
 0x1ec   :  { %v2538_v23 = vadd.f32 %v2537_v19, %v2536_v45  ;;  %v2670_v1 = vrot.slane %v2669_v47, 1  ;;  %v7681_v16 = vshrl.u32 %v3629_v53, 7  ;;  %v11705_v45 = vld [vmem:[#allocation71_spill] sm:$0xff] }
 0x1ed   :  { %v3549_v35 = vrot.slane %v3548_v17, 1  ;;  %v3417_v25 = vadd.f32 %v3416_v33, %v3415_v46 }
 0x1ee   :  { %v2672_v9 = vadd.f32 %v2538_v23, %v7096_v39  ;;  %v2671_v27 = vadd.f32 %v2670_v1, %v2669_v47  ;;  %v3557_v39 = vld [vmem:[%s11101_s2] sm:$0x1]  ;;  %v11325_v46 = vsub.s32 0, %v7681_v16 }
 0x1ef   :  { %v3550_v36 = vadd.f32 %v3549_v35, %v3548_v17  ;;  %v11687_v1 = vld [vmem:[#allocation31_spill] sm:$0xff]  ;;  %v11688_v35 = vld [vmem:[#allocation34_spill] sm:$0xff] }
 0x1f0   :  { %v3551_v11 = vadd.f32 %v3417_v25, %v2672_v9  ;;  %v2673_v49 = vadd.f32 %v2671_v27, %v7109_v7  ;;  %v7690_v7 = vld [vmem:[%s11102_s3] sm:$0x1]  ;;  %v11691_v27 = vld [vmem:[#allocation37_spill] sm:$0xff] }
 0x1f1   :  { %v11689_v9 = vld [vmem:[#allocation39_spill] sm:$0xff] }
 0x1f2   :  { %v3553_v3 = vmul.f32 0.00048828125, %v3551_v11  ;;  %v3552_v61 = vadd.f32 %v3550_v36, %v2673_v49  ;;  %v11690_v25 = vld [vmem:[#allocation43_spill] sm:$0xff]  ;;  %v11692_v11 = vld [vmem:[#allocation41_spill] sm:$0xff] }
 0x1f3   :  { %v11693_v36 = vld [vmem:[#allocation47_spill] sm:$0xff] }
 0x1f4   :  { %v3555_v26 = vmul.f32 %v3553_v3, %v3553_v3  ;;  %v3554_v0 = vmul.f32 0.00048828125, %v3552_v61  ;;  %v11694_v61 = vld [vmem:[#allocation51_spill] sm:$0xff] }
 0x1f6   :  { %v3556_v13 = vsub.f32 %v3554_v0, %v3555_v26  ;;  %v11695_v0 = vld [vmem:[#allocation45_spill] sm:$0xff] }
 0x1f8   :  { %v3558_v57 = vadd.f32 1e-05, %v3556_v13 }
 0x1fa   :  { %5849 = vrsqrt.f32 %v3558_v57  ;;  %v11696_v57 = vld [vmem:[#allocation49_spill] sm:$0xff] }
 0x204   :  { %v5850_v60 = vpop.eup %5849 }
 0x205   :  { %v3560_v31 = vmul.f32 %v5850_v60, %v3557_v39  ;;  %v11697_v39 = vld [vmem:[#allocation55_spill] sm:$0xff] }
 0x207   :  { %v7692_v55 = vmul.f32 %v3560_v31, %v3553_v3  ;;  %v7696_v29 = vrot.slane %v3560_v31, %v11325_v46  ;;  %v11698_v31 = vld [vmem:[#allocation59_spill] sm:$0xff] }
 0x208   :  { %v11706_v46 = vld [vmem:[#allocation75_spill] sm:$0xff] }
 0x209   :  { %11686 = vst [vmem:[#allocation229_spill] sm:$0xff] %v7696_v29  ;;  %v7702_v19 = vmul.f32 %v7696_v29, %v6327_v54  ;;  %v7706_v47 = vmul.f32 %v7696_v29, %v6348_v63  ;;  %v7710_v33 = vmul.f32 %v6323_v52, %v7696_v29  ;;  %v7714_v17 = vmul.f32 %v6339_v59, %v7696_v29 }
 0x20a   :  { %v7718_v23 = vmul.f32 %v7696_v29, %v6383_v20  ;;  %v7722_v54 = vmul.f32 %v7696_v29, %v6409_v34  ;;  %v7726_v63 = vmul.f32 %v6375_v15, %v7696_v29  ;;  %v7730_v52 = vmul.f32 %v6397_v28, %v7696_v29 }
 0x20b   :  { %v7734_v59 = vmul.f32 %v7696_v29, %v6439_v62  ;;  %v7738_v20 = vmul.f32 %v7696_v29, %v6465_v14  ;;  %v7742_v34 = vmul.f32 %v6431_v50, %v7696_v29  ;;  %v7746_v15 = vmul.f32 %v6453_v8, %v7696_v29 }
 0x20c   :  { %v7750_v28 = vmul.f32 %v7696_v29, %v6495_v44  ;;  %v7754_v62 = vmul.f32 %v7696_v29, %v6521_v6  ;;  %v7758_v14 = vmul.f32 %v6487_v38, %v7696_v29  ;;  %v7762_v50 = vmul.f32 %v6509_v58, %v7696_v29 }
 0x20d   :  { %v7766_v8 = vmul.f32 %v7696_v29, %v6551_v42  ;;  %v7770_v44 = vmul.f32 %v7696_v29, %v6571_v10  ;;  %v7774_v6 = vmul.f32 %v6543_v32, %v7696_v29  ;;  %v7778_v38 = vmul.f32 %v6565_v2, %v7696_v29 }
 0x20e   :  { %v7782_v58 = vmul.f32 %v7696_v29, %v6599_v56  ;;  %v7786_v42 = vmul.f32 %v7696_v29, %v6613_v24  ;;  %v7790_v10 = vmul.f32 %v6591_v40, %v7696_v29  ;;  %v7794_v32 = vmul.f32 %v6607_v18, %v7696_v29 }
 0x20f   :  { %v7798_v2 = vmul.f32 %v7696_v29, %v6639_v30  ;;  %v7802_v56 = vmul.f32 %v7696_v29, %v6653_v5  ;;  %v7806_v24 = vmul.f32 %v6631_v22, %v7696_v29  ;;  %v7810_v40 = vmul.f32 %v6647_v41, %v7696_v29 }
 0x210   :  { %v7814_v18 = vmul.f32 %v7696_v29, %v6679_v12  ;;  %v7818_v30 = vmul.f32 %v7696_v29, %v6693_v37  ;;  %v7822_v5 = vmul.f32 %v11687_v1, %v7696_v29  ;;  %v7826_v22 = vmul.f32 %v11688_v35, %v7696_v29  ;;  %v11699_v35 = vld [vmem:[#allocation53_spill] sm:$0xff] }
 0x211   :  { %v7830_v41 = vmul.f32 %v7696_v29, %v11689_v9  ;;  %v7834_v12 = vmul.f32 %v7696_v29, %v11690_v25  ;;  %v7838_v37 = vmul.f32 %v11691_v27, %v7696_v29  ;;  %v7842_v49 = vmul.f32 %v11692_v11, %v7696_v29  ;;  %v11700_v25 = vld [vmem:[#allocation57_spill] sm:$0xff]  ;;  %v11701_v11 = vld [vmem:[#allocation63_spill] sm:$0xff] }
 0x212   :  { %v7846_v3 = vmul.f32 %v7696_v29, %v11693_v36  ;;  %v7850_v26 = vmul.f32 %v7696_v29, %v11694_v61  ;;  %v7854_v13 = vmul.f32 %v11695_v0, %v7696_v29  ;;  %v7858_v53 = vmul.f32 %v11696_v57, %v7696_v29  ;;  %v11702_v61 = vld [vmem:[#allocation67_spill] sm:$0xff]  ;;  %v11703_v57 = vld [vmem:[#allocation61_spill] sm:$0xff] }
 0x213   :  { %v7862_v60 = vmul.f32 %v7696_v29, %v11697_v39  ;;  %v7866_v1 = vmul.f32 %v7696_v29, %v11698_v31  ;;  %v7870_v9 = vmul.f32 %v11699_v35, %v7696_v29  ;;  %v7874_v27 = vmul.f32 %v11700_v25, %v7696_v29  ;;  %v11704_v31 = vld [vmem:[#allocation65_spill] sm:$0xff] }
 0x214   :  { %v7878_v36 = vmul.f32 %v7696_v29, %v11701_v11  ;;  %v7882_v0 = vmul.f32 %v7696_v29, %v11702_v61  ;;  %v7886_v39 = vmul.f32 %v11703_v57, %v7696_v29  ;;  %v7890_v35 = vmul.f32 %v11704_v31, %v7696_v29 }
 0x215   :  { %v7894_v25 = vmul.f32 %v7696_v29, %v11705_v45  ;;  %v7898_v11 = vmul.f32 %v7696_v29, %v11706_v46  ;;  %v7902_v61 = vmul.f32 %v11708_v48, %v7696_v29  ;;  %v7906_v57 = vmul.f32 %v11710_v4, %v7696_v29 }
 0x216   :  { %v7910_v31 = vmul.f32 %v7696_v29, %v11712_v43  ;;  %v7914_v45 = vmul.f32 %v7696_v29, %v11714_v51  ;;  %v7918_v46 = vmul.f32 %v11716_v21, %v7696_v29 }
 0x217   :  { %11707 = vst [vmem:[#allocation31_spill] sm:$0xff] %v7898_v11  ;;  %11709 = vst [vmem:[#allocation34_spill] sm:$0xff] %v7902_v61  ;;  %v11718_v11 = vld [vmem:[#allocation81_spill] sm:$0xff]  ;;  %v11720_v61 = vld [vmem:[#allocation87_spill] sm:$0xff] }
 0x218   :  { %11711 = vst [vmem:[#allocation39_spill] sm:$0xff] %v7906_v57  ;;  %11713 = vst [vmem:[#allocation43_spill] sm:$0xff] %v7910_v31  ;;  %v7922_v48 = vmul.f32 %v11718_v11, %v7696_v29  ;;  %v7926_v4 = vmul.f32 %v7696_v29, %v11720_v61  ;;  %v11722_v57 = vld [vmem:[#allocation91_spill] sm:$0xff]  ;;  %v11724_v31 = vld [vmem:[#allocation85_spill] sm:$0xff] }
 0x219   :  { %11715 = vst [vmem:[#allocation37_spill] sm:$0xff] %v7914_v45  ;;  %11717 = vst [vmem:[#allocation41_spill] sm:$0xff] %v7918_v46  ;;  %v7930_v43 = vmul.f32 %v7696_v29, %v11722_v57  ;;  %v7934_v51 = vmul.f32 %v11724_v31, %v7696_v29  ;;  %v11726_v45 = vld [vmem:[#allocation89_spill] sm:$0xff]  ;;  %v11728_v46 = vld [vmem:[#allocation95_spill] sm:$0xff] }
 0x21a   :  { %11719 = vst [vmem:[#allocation47_spill] sm:$0xff] %v7922_v48  ;;  %11721 = vst [vmem:[#allocation51_spill] sm:$0xff] %v7926_v4  ;;  %v7938_v21 = vmul.f32 %v11726_v45, %v7696_v29  ;;  %v7942_v11 = vmul.f32 %v7696_v29, %v11728_v46  ;;  %v11730_v48 = vld [vmem:[#allocation99_spill] sm:$0xff]  ;;  %v11732_v4 = vld [vmem:[#allocation93_spill] sm:$0xff]  ;;  %v11737_v45 = vsub.f32 %v7690_v7, %v7692_v55 }
 0x21b   :  { %11723 = vst [vmem:[#allocation45_spill] sm:$0xff] %v7930_v43  ;;  %11725 = vst [vmem:[#allocation49_spill] sm:$0xff] %v7934_v51  ;;  %v7946_v61 = vmul.f32 %v7696_v29, %v11730_v48  ;;  %v7950_v57 = vmul.f32 %v11732_v4, %v7696_v29  ;;  %v11734_v43 = vld [vmem:[#allocation97_spill] sm:$0xff]  ;;  %v11736_v51 = vsub.s32 0, %v7681_v16  ;;  %v11739_v46 = vld [vmem:[#allocation4_spill] sm:$0xff] }
 0x21c   :  { %11727 = vst [vmem:[#allocation55_spill] sm:$0xff] %v7938_v21  ;;  %11729 = vst [vmem:[#allocation59_spill] sm:$0xff] %v7942_v11  ;;  %v7954_v31 = vmul.f32 %v11734_v43, %v7696_v29  ;;  %v7965_v11 = vmul.f32 %v7696_v29, %v11739_v46  ;;  %v11741_v48 = vld [vmem:[#allocation6_spill] sm:$0xff]  ;;  %v11743_v4 = vld [vmem:[#allocation3_spill] sm:$0xff] }
 0x21d   :  { %11731 = vst [vmem:[#allocation53_spill] sm:$0xff] %v7946_v61  ;;  %11733 = vst [vmem:[#allocation57_spill] sm:$0xff] %v7950_v57  ;;  %v7961_v21 = vrot.slane %v11737_v45, %v11736_v51  ;;  %v7969_v61 = vmul.f32 %v7696_v29, %v11741_v48  ;;  %v7973_v57 = vmul.f32 %v11743_v4, %v7696_v29  ;;  %v11745_v43 = vld [vmem:[#allocation5_spill] sm:$0xff]  ;;  %v11749_v55 = vld [vmem:[#allocation10_spill] sm:$0xff] }
 0x21e   :  { %11735 = vst [vmem:[#allocation63_spill] sm:$0xff] %v7954_v31  ;;  %11740 = vst [vmem:[#allocation61_spill] sm:$0xff] %v7965_v11  ;;  %v7977_v16 = vmul.f32 %v11745_v43, %v7696_v29  ;;  %v11747_v31 = vld [vmem:[#allocation8_spill] sm:$0xff]  ;;  %v7985_v51 = vmul.f32 %v7696_v29, %v11749_v55  ;;  %v11800_v43 = vld [vmem:[#allocation31_spill] sm:$0xff] }
 0x21f   :  { %11738 = vst [vmem:[#allocation67_spill] sm:$0xff] %v7961_v21  ;;  %11742 = vst [vmem:[#allocation65_spill] sm:$0xff] %v7969_v61  ;;  %v7981_v7 = vmul.f32 %v7696_v29, %v11747_v31  ;;  %v7989_v45 = vadd.f32 %v7961_v21, %v7702_v19  ;;  %v7993_v46 = vadd.f32 %v7961_v21, %v7706_v47  ;;  %v11802_v55 = vld [vmem:[#allocation34_spill] sm:$0xff] }
 0x220   :  { %11744 = vst [vmem:[#allocation71_spill] sm:$0xff] %v7973_v57  ;;  %11746 = vst [vmem:[#allocation75_spill] sm:$0xff] %v7977_v16  ;;  %v7997_v48 = vadd.f32 %v7961_v21, %v7710_v33  ;;  %v8001_v31 = vadd.f32 %v7961_v21, %v7714_v17  ;;  %v8005_v4 = vadd.f32 %v7961_v21, %v7718_v23  ;;  %v11808_v16 = vld [vmem:[#allocation37_spill] sm:$0xff] }
 0x221   :  { %11748 = vst [vmem:[#allocation69_spill] sm:$0xff] %v7981_v7  ;;  %11750 = vst [vmem:[#allocation73_spill] sm:$0xff] %v7985_v51  ;;  %v8009_v19 = vadd.f32 %v7961_v21, %v7722_v54  ;;  %v8013_v47 = vadd.f32 %v7961_v21, %v7726_v63  ;;  %v8017_v33 = vadd.f32 %v7961_v21, %v7730_v52  ;;  %v11804_v51 = vld [vmem:[#allocation39_spill] sm:$0xff]  ;;  %v11810_v57 = vld [vmem:[#allocation41_spill] sm:$0xff] }
 0x222   :  { %11751 = vst [vmem:[#allocation79_spill] sm:$0xff] %v7989_v45  ;;  %11752 = vst [vmem:[#allocation83_spill] sm:$0xff] %v7993_v46  ;;  %v8021_v17 = vadd.f32 %v7961_v21, %v7734_v59  ;;  %v8025_v23 = vadd.f32 %v7961_v21, %v7738_v20  ;;  %v8029_v54 = vadd.f32 %v7961_v21, %v7742_v34  ;;  %v11806_v7 = vld [vmem:[#allocation43_spill] sm:$0xff]  ;;  %v11816_v29 = vld [vmem:[#allocation45_spill] sm:$0xff] }
 0x223   :  { %11753 = vst [vmem:[#allocation77_spill] sm:$0xff] %v7997_v48  ;;  %11754 = vst [vmem:[#allocation81_spill] sm:$0xff] %v8001_v31  ;;  %v8033_v63 = vadd.f32 %v7961_v21, %v7746_v15  ;;  %v8037_v52 = vadd.f32 %v7961_v21, %v7750_v28  ;;  %v8041_v59 = vadd.f32 %v7961_v21, %v7754_v62  ;;  %v11812_v61 = vld [vmem:[#allocation47_spill] sm:$0xff]  ;;  %v11897_v31 = vld [vmem:[#allocation90_spill] sm:$0xff] }
 0x224   :  { %11755 = vst [vmem:[#allocation87_spill] sm:$0xff] %v8005_v4  ;;  %11756 = vst [vmem:[#allocation91_spill] sm:$0xff] %v8009_v19  ;;  %v8045_v20 = vadd.f32 %v7961_v21, %v7758_v14  ;;  %v8049_v34 = vadd.f32 %v7961_v21, %v7762_v50  ;;  %v8053_v15 = vadd.f32 %v7961_v21, %v7766_v8  ;;  %v11814_v11 = vld [vmem:[#allocation51_spill] sm:$0xff]  ;;  %v11893_v19 = vld [vmem:[#allocation92_spill] sm:$0xff] }
 0x225   :  { %11757 = vst [vmem:[#allocation85_spill] sm:$0xff] %v8013_v47  ;;  %11758 = vst [vmem:[#allocation89_spill] sm:$0xff] %v8017_v33  ;;  %v8057_v28 = vadd.f32 %v7961_v21, %v7770_v44  ;;  %v8061_v62 = vadd.f32 %v7961_v21, %v7774_v6  ;;  %v8065_v14 = vadd.f32 %v7961_v21, %v7778_v38  ;;  %v11891_v33 = vld [vmem:[#allocation82_spill] sm:$0xff]  ;;  %v11892_v47 = vld [vmem:[#allocation88_spill] sm:$0xff] }
 0x226   :  { %11759 = vst [vmem:[#allocation95_spill] sm:$0xff] %v8021_v17  ;;  %11760 = vst [vmem:[#allocation99_spill] sm:$0xff] %v8025_v23  ;;  %v8069_v50 = vadd.f32 %v7961_v21, %v7782_v58  ;;  %v8073_v8 = vadd.f32 %v7961_v21, %v7786_v42  ;;  %v8077_v44 = vadd.f32 %v7961_v21, %v7790_v10  ;;  %v11889_v23 = vld [vmem:[#allocation84_spill] sm:$0xff]  ;;  %v11890_v17 = vld [vmem:[#allocation78_spill] sm:$0xff] }
 0x227   :  { %11761 = vst [vmem:[#allocation93_spill] sm:$0xff] %v8029_v54  ;;  %11762 = vst [vmem:[#allocation97_spill] sm:$0xff] %v8033_v63  ;;  %v8081_v6 = vadd.f32 %v7961_v21, %v7794_v32  ;;  %v8085_v38 = vadd.f32 %v7961_v21, %v7798_v2  ;;  %v8089_v58 = vadd.f32 %v7961_v21, %v7802_v56  ;;  %v11887_v63 = vld [vmem:[#allocation74_spill] sm:$0xff]  ;;  %v11888_v54 = vld [vmem:[#allocation80_spill] sm:$0xff] }
 0x228   :  { %11763 = vst [vmem:[#allocation4_spill] sm:$0xff] %v8037_v52  ;;  %11764 = vst [vmem:[#allocation6_spill] sm:$0xff] %v8041_v59  ;;  %v8093_v42 = vadd.f32 %v7961_v21, %v7806_v24  ;;  %v8097_v10 = vadd.f32 %v7961_v21, %v7810_v40  ;;  %v8101_v32 = vadd.f32 %v7961_v21, %v7814_v18  ;;  %v11885_v59 = vld [vmem:[#allocation76_spill] sm:$0xff]  ;;  %v11886_v52 = vld [vmem:[#allocation70_spill] sm:$0xff] }
 0x229   :  { %11765 = vst [vmem:[#allocation3_spill] sm:$0xff] %v8045_v20  ;;  %11766 = vst [vmem:[#allocation5_spill] sm:$0xff] %v8049_v34  ;;  %v8105_v2 = vadd.f32 %v7961_v21, %v7818_v30  ;;  %v8109_v56 = vadd.f32 %v7961_v21, %v7822_v5  ;;  %v8113_v24 = vadd.f32 %v7961_v21, %v7826_v22  ;;  %v11883_v34 = vld [vmem:[#allocation66_spill] sm:$0xff]  ;;  %v11884_v20 = vld [vmem:[#allocation72_spill] sm:$0xff] }
 0x22a   :  { %11767 = vst [vmem:[#allocation8_spill] sm:$0xff] %v8053_v15  ;;  %11768 = vst [vmem:[#allocation10_spill] sm:$0xff] %v8057_v28  ;;  %v8117_v40 = vadd.f32 %v7961_v21, %v7830_v41  ;;  %v8121_v18 = vadd.f32 %v7961_v21, %v7834_v12  ;;  %v8125_v30 = vadd.f32 %v7961_v21, %v7838_v37  ;;  %v11881_v28 = vld [vmem:[#allocation68_spill] sm:$0xff]  ;;  %v11882_v15 = vld [vmem:[#allocation62_spill] sm:$0xff] }
 0x22b   :  { %11769 = vst [vmem:[#allocation230_spill] sm:$0xff] %v8061_v62  ;;  %11770 = vst [vmem:[#allocation231_spill] sm:$0xff] %v8065_v14  ;;  %v8129_v5 = vadd.f32 %v7961_v21, %v7842_v49  ;;  %v8133_v22 = vadd.f32 %v7961_v21, %v7846_v3  ;;  %v8137_v41 = vadd.f32 %v7961_v21, %v7850_v26  ;;  %v11879_v14 = vld [vmem:[#allocation58_spill] sm:$0xff]  ;;  %v11880_v62 = vld [vmem:[#allocation64_spill] sm:$0xff] }
 0x22c   :  { %11771 = vst [vmem:[#allocation232_spill] sm:$0xff] %v8069_v50  ;;  %11772 = vst [vmem:[#allocation233_spill] sm:$0xff] %v8073_v8  ;;  %v8141_v12 = vadd.f32 %v7961_v21, %v7854_v13  ;;  %v8145_v37 = vadd.f32 %v7961_v21, %v7858_v53  ;;  %v8149_v49 = vadd.f32 %v7961_v21, %v7862_v60  ;;  %v11877_v8 = vld [vmem:[#allocation60_spill] sm:$0xff]  ;;  %v11878_v50 = vld [vmem:[#allocation54_spill] sm:$0xff] }
 0x22d   :  { %11773 = vst [vmem:[#allocation234_spill] sm:$0xff] %v8077_v44  ;;  %11774 = vst [vmem:[#allocation235_spill] sm:$0xff] %v8081_v6  ;;  %v8153_v3 = vadd.f32 %v7961_v21, %v7866_v1  ;;  %v8157_v26 = vadd.f32 %v7961_v21, %v7870_v9  ;;  %v8161_v13 = vadd.f32 %v7961_v21, %v7874_v27  ;;  %v11875_v6 = vld [vmem:[#allocation50_spill] sm:$0xff]  ;;  %v11876_v44 = vld [vmem:[#allocation56_spill] sm:$0xff] }
 0x22e   :  { %11775 = vst [vmem:[#allocation236_spill] sm:$0xff] %v8085_v38  ;;  %11776 = vst [vmem:[#allocation237_spill] sm:$0xff] %v8089_v58  ;;  %v8165_v53 = vadd.f32 %v7961_v21, %v7878_v36  ;;  %v8169_v60 = vadd.f32 %v7961_v21, %v7882_v0  ;;  %v8173_v1 = vadd.f32 %v7961_v21, %v7886_v39  ;;  %v11873_v58 = vld [vmem:[#allocation52_spill] sm:$0xff]  ;;  %v11874_v38 = vld [vmem:[#allocation46_spill] sm:$0xff] }
 0x22f   :  { %11777 = vst [vmem:[#allocation238_spill] sm:$0xff] %v8093_v42  ;;  %11778 = vst [vmem:[#allocation239_spill] sm:$0xff] %v8097_v10  ;;  %v8177_v9 = vadd.f32 %v7961_v21, %v7890_v35  ;;  %v8181_v27 = vadd.f32 %v7961_v21, %v7894_v25  ;;  %v8185_v36 = vadd.f32 %v7961_v21, %v11800_v43  ;;  %v11871_v10 = vld [vmem:[#allocation42_spill] sm:$0xff]  ;;  %v11872_v42 = vld [vmem:[#allocation48_spill] sm:$0xff] }
 0x230   :  { %11779 = vst [vmem:[#allocation240_spill] sm:$0xff] %v8101_v32  ;;  %11780 = vst [vmem:[#allocation241_spill] sm:$0xff] %v8105_v2  ;;  %v8189_v0 = vadd.f32 %v7961_v21, %v11802_v55  ;;  %v8193_v39 = vadd.f32 %v7961_v21, %v11804_v51  ;;  %v8197_v35 = vadd.f32 %v7961_v21, %v11806_v7  ;;  %v11869_v2 = vld [vmem:[#allocation44_spill] sm:$0xff]  ;;  %v11870_v32 = vld [vmem:[#allocation38_spill] sm:$0xff] }
 0x231   :  { %11781 = vst [vmem:[#allocation242_spill] sm:$0xff] %v8109_v56  ;;  %11782 = vst [vmem:[#allocation243_spill] sm:$0xff] %v8113_v24  ;;  %v8201_v25 = vadd.f32 %v7961_v21, %v11808_v16  ;;  %v8205_v43 = vadd.f32 %v7961_v21, %v11810_v57  ;;  %v8209_v55 = vadd.f32 %v7961_v21, %v11812_v61  ;;  %v11867_v24 = vld [vmem:[#allocation35_spill] sm:$0xff]  ;;  %v11868_v56 = vld [vmem:[#allocation40_spill] sm:$0xff] }
 0x232   :  { %11783 = vst [vmem:[#allocation244_spill] sm:$0xff] %v8117_v40  ;;  %11784 = vst [vmem:[#allocation245_spill] sm:$0xff] %v8121_v18  ;;  %v8213_v51 = vadd.f32 %v7961_v21, %v11814_v11  ;;  %v8217_v7 = vadd.f32 %v7961_v21, %v11816_v29  ;;  %v11865_v18 = vld [vmem:[#allocation36_spill] sm:$0xff]  ;;  %v11895_v4 = vld [vmem:[#allocation86_spill] sm:$0xff] }
 0x233   :  { %11785 = vst [vmem:[#allocation246_spill] sm:$0xff] %v8125_v30  ;;  %11786 = vst [vmem:[#allocation247_spill] sm:$0xff] %v8129_v5  ;;  %v11863_v5 = vld [vmem:[#allocation29_spill] sm:$0xff]  ;;  %v11866_v40 = vld [vmem:[#allocation32_spill] sm:$0xff] }
 0x234   :  { %11787 = vst [vmem:[#allocation248_spill] sm:$0xff] %v8133_v22  ;;  %11788 = vst [vmem:[#allocation249_spill] sm:$0xff] %v8137_v41  ;;  %v11861_v41 = vld [vmem:[#allocation30_spill] sm:$0xff]  ;;  %v11862_v22 = vld [vmem:[#allocation27_spill] sm:$0xff] }
 0x235   :  { %11789 = vst [vmem:[#allocation250_spill] sm:$0xff] %v8141_v12  ;;  %11790 = vst [vmem:[#allocation251_spill] sm:$0xff] %v8145_v37  ;;  %v11859_v37 = vld [vmem:[#allocation25_spill] sm:$0xff]  ;;  %v11860_v12 = vld [vmem:[#allocation28_spill] sm:$0xff] }
 0x236   :  { %11791 = vst [vmem:[#allocation252_spill] sm:$0xff] %v8149_v49  ;;  %11792 = vst [vmem:[#allocation253_spill] sm:$0xff] %v8153_v3  ;;  %v11857_v3 = vld [vmem:[#allocation26_spill] sm:$0xff]  ;;  %v11858_v49 = vld [vmem:[#allocation23_spill] sm:$0xff] }
 0x237   :  { %11793 = vst [vmem:[#allocation254_spill] sm:$0xff] %v8157_v26  ;;  %11794 = vst [vmem:[#allocation255_spill] sm:$0xff] %v8161_v13  ;;  %v11841_v26 = vld [vmem:[#allocation229_spill] sm:$0xff]  ;;  %v11899_v48 = vld [vmem:[#allocation96_spill] sm:$0xff] }
 0x238   :  { %11795 = vst [vmem:[#allocation256_spill] sm:$0xff] %v8165_v53  ;;  %11796 = vst [vmem:[#allocation257_spill] sm:$0xff] %v8169_v60  ;;  %v11855_v60 = vld [vmem:[#allocation21_spill] sm:$0xff]  ;;  %v11856_v53 = vld [vmem:[#allocation24_spill] sm:$0xff] }
 0x239   :  { %11797 = vst [vmem:[#allocation258_spill] sm:$0xff] %v8173_v1  ;;  %11798 = vst [vmem:[#allocation259_spill] sm:$0xff] %v8177_v9  ;;  %v11853_v9 = vld [vmem:[#allocation22_spill] sm:$0xff]  ;;  %v11854_v1 = vld [vmem:[#allocation19_spill] sm:$0xff] }
 0x23a   :  { %11799 = vst [vmem:[#allocation260_spill] sm:$0xff] %v8181_v27  ;;  %11801 = vst [vmem:[#allocation31_spill] sm:$0xff] %v8185_v36  ;;  %v11851_v36 = vld [vmem:[#allocation17_spill] sm:$0xff]  ;;  %v11852_v27 = vld [vmem:[#allocation20_spill] sm:$0xff] }
 0x23b   :  { %11803 = vst [vmem:[#allocation34_spill] sm:$0xff] %v8189_v0  ;;  %11805 = vst [vmem:[#allocation39_spill] sm:$0xff] %v8193_v39  ;;  %v11849_v39 = vld [vmem:[#allocation18_spill] sm:$0xff]  ;;  %v11850_v0 = vld [vmem:[#allocation15_spill] sm:$0xff] }
 0x23c   :  { %11807 = vst [vmem:[#allocation43_spill] sm:$0xff] %v8197_v35  ;;  %11809 = vst [vmem:[#allocation37_spill] sm:$0xff] %v8201_v25  ;;  %v11818_v35 = vld [vmem:[#allocation49_spill] sm:$0xff]  ;;  %v11820_v25 = vld [vmem:[#allocation55_spill] sm:$0xff] }
 0x23d   :  { %11811 = vst [vmem:[#allocation41_spill] sm:$0xff] %v8205_v43  ;;  %11813 = vst [vmem:[#allocation47_spill] sm:$0xff] %v8209_v55  ;;  %v8221_v16 = vadd.f32 %v7961_v21, %v11818_v35  ;;  %v8225_v57 = vadd.f32 %v7961_v21, %v11820_v25  ;;  %v11822_v43 = vld [vmem:[#allocation59_spill] sm:$0xff]  ;;  %v11824_v55 = vld [vmem:[#allocation53_spill] sm:$0xff] }
 0x23e   :  { %11815 = vst [vmem:[#allocation51_spill] sm:$0xff] %v8213_v51  ;;  %11817 = vst [vmem:[#allocation45_spill] sm:$0xff] %v8217_v7  ;;  %v8229_v61 = vadd.f32 %v7961_v21, %v11822_v43  ;;  %v8233_v11 = vadd.f32 %v7961_v21, %v11824_v55  ;;  %v11826_v51 = vld [vmem:[#allocation57_spill] sm:$0xff]  ;;  %v11828_v7 = vld [vmem:[#allocation63_spill] sm:$0xff] }
 0x23f   :  { %11819 = vst [vmem:[#allocation49_spill] sm:$0xff] %v8221_v16  ;;  %11821 = vst [vmem:[#allocation55_spill] sm:$0xff] %v8225_v57  ;;  %v8237_v29 = vadd.f32 %v7961_v21, %v11826_v51  ;;  %v8241_v35 = vadd.f32 %v7961_v21, %v11828_v7  ;;  %v11844_v51 = vld [vmem:[#allocation12_spill] sm:$0xff]  ;;  %v11845_v7 = vld [vmem:[#allocation14_spill] sm:$0xff] }
 0x240   :  { %11823 = vst [vmem:[#allocation59_spill] sm:$0xff] %v8229_v61  ;;  %11825 = vst [vmem:[#allocation53_spill] sm:$0xff] %v8233_v11  ;;  %v11842_v61 = vld [vmem:[#allocation7_spill] sm:$0xff]  ;;  %v11843_v11 = vld [vmem:[#allocation9_spill] sm:$0xff]  ;;  %v8321_v16 = vmul.f32 %v11841_v26, %v11845_v7  ;;  %v8341_v7 = vmul.f32 %v11850_v0, %v11841_v26  ;;  %v8361_v0 = vmul.f32 %v11855_v60, %v11841_v26 }
 0x241   :  { %11827 = vst [vmem:[#allocation57_spill] sm:$0xff] %v8237_v29  ;;  %11829 = vst [vmem:[#allocation63_spill] sm:$0xff] %v8241_v35  ;;  %v8309_v13 = vmul.f32 %v11842_v61, %v11841_v26  ;;  %v8313_v55 = vmul.f32 %v11843_v11, %v11841_v26  ;;  %v8317_v29 = vmul.f32 %v11841_v26, %v11844_v51  ;;  %v11846_v57 = vld [vmem:[#allocation11_spill] sm:$0xff]  ;;  %v11847_v43 = vld [vmem:[#allocation13_spill] sm:$0xff] }
 0x242   :  { %v8325_v25 = vmul.f32 %v11846_v57, %v11841_v26  ;;  %v8329_v61 = vmul.f32 %v11847_v43, %v11841_v26  ;;  %v11848_v35 = vld [vmem:[#allocation16_spill] sm:$0xff]  ;;  %v8337_v51 = vmul.f32 %v11841_v26, %v11849_v39  ;;  %v8345_v57 = vmul.f32 %v11851_v36, %v11841_v26  ;;  %v11864_v30 = vld [vmem:[#allocation33_spill] sm:$0xff]  ;;  %v11903_v45 = vld [vmem:[#allocation94_spill] sm:$0xff] }
 0x243   :  { %v8333_v11 = vmul.f32 %v11841_v26, %v11848_v35  ;;  %v8349_v43 = vmul.f32 %v11841_v26, %v11852_v27  ;;  %v8353_v35 = vmul.f32 %v11841_v26, %v11853_v9  ;;  %v8357_v39 = vmul.f32 %v11854_v1, %v11841_v26  ;;  %v11901_v46 = vld [vmem:[#allocation100_spill] sm:$0xff] }
 0x244   :  { %v8365_v36 = vmul.f32 %v11841_v26, %v11856_v53  ;;  %v8369_v27 = vmul.f32 %v11841_v26, %v11857_v3  ;;  %v8373_v9 = vmul.f32 %v11858_v49, %v11841_v26  ;;  %v8377_v1 = vmul.f32 %v11859_v37, %v11841_v26 }
 0x245   :  { %v8381_v60 = vmul.f32 %v11841_v26, %v11860_v12  ;;  %v8385_v53 = vmul.f32 %v11841_v26, %v11861_v41  ;;  %v8389_v3 = vmul.f32 %v11862_v22, %v11841_v26  ;;  %v8393_v49 = vmul.f32 %v11863_v5, %v11841_v26 }
 0x246   :  { %v8397_v37 = vmul.f32 %v11841_v26, %v11864_v30  ;;  %v8401_v12 = vmul.f32 %v11841_v26, %v11865_v18  ;;  %v8405_v41 = vmul.f32 %v11866_v40, %v11841_v26  ;;  %v8409_v22 = vmul.f32 %v11867_v24, %v11841_v26 }
 0x247   :  { %v8413_v5 = vmul.f32 %v11841_v26, %v11868_v56  ;;  %v8417_v30 = vmul.f32 %v11841_v26, %v11869_v2  ;;  %v8421_v18 = vmul.f32 %v11870_v32, %v11841_v26  ;;  %v8425_v40 = vmul.f32 %v11871_v10, %v11841_v26 }
 0x248   :  { %v8429_v24 = vmul.f32 %v11841_v26, %v11872_v42  ;;  %v8433_v56 = vmul.f32 %v11841_v26, %v11873_v58  ;;  %v8437_v2 = vmul.f32 %v11874_v38, %v11841_v26  ;;  %v8441_v32 = vmul.f32 %v11875_v6, %v11841_v26 }
 0x249   :  { %v8445_v10 = vmul.f32 %v11841_v26, %v11876_v44  ;;  %v8449_v42 = vmul.f32 %v11841_v26, %v11877_v8  ;;  %v8453_v58 = vmul.f32 %v11878_v50, %v11841_v26  ;;  %v8457_v38 = vmul.f32 %v11879_v14, %v11841_v26 }
 0x24a   :  { %v8461_v6 = vmul.f32 %v11841_v26, %v11880_v62  ;;  %v8465_v44 = vmul.f32 %v11841_v26, %v11881_v28  ;;  %v8469_v8 = vmul.f32 %v11882_v15, %v11841_v26  ;;  %v8473_v50 = vmul.f32 %v11883_v34, %v11841_v26 }
 0x24b   :  { %v8477_v14 = vmul.f32 %v11841_v26, %v11884_v20  ;;  %v8481_v62 = vmul.f32 %v11841_v26, %v11885_v59  ;;  %v8485_v28 = vmul.f32 %v11886_v52, %v11841_v26  ;;  %v8489_v15 = vmul.f32 %v11887_v63, %v11841_v26 }
 0x24c   :  { %v8493_v34 = vmul.f32 %v11841_v26, %v11888_v54  ;;  %v8497_v20 = vmul.f32 %v11841_v26, %v11889_v23  ;;  %v8501_v59 = vmul.f32 %v11890_v17, %v11841_v26  ;;  %v8505_v52 = vmul.f32 %v11891_v33, %v11841_v26 }
 0x24d   :  { %v8509_v63 = vmul.f32 %v11841_v26, %v11892_v47  ;;  %v8513_v54 = vmul.f32 %v11841_v26, %v11893_v19  ;;  %v8517_v23 = vmul.f32 %v11895_v4, %v11841_v26  ;;  %v8521_v17 = vmul.f32 %v11897_v31, %v11841_v26 }
 0x24e   :  { %v8525_v33 = vmul.f32 %v11841_v26, %v11899_v48  ;;  %v8529_v47 = vmul.f32 %v11841_v26, %v11901_v46  ;;  %v8533_v19 = vmul.f32 %v11903_v45, %v11841_v26 }
 0x24f   :  { %11894 = vst [vmem:[#allocation7_spill] sm:$0xff] %v8513_v54  ;;  %11896 = vst [vmem:[#allocation9_spill] sm:$0xff] %v8517_v23  ;;  %v11905_v54 = vld [vmem:[#allocation98_spill] sm:$0xff]  ;;  %v11906_v23 = vld [vmem:[#allocation61_spill] sm:$0xff] }
 0x250   :  { %11898 = vst [vmem:[#allocation12_spill] sm:$0xff] %v8521_v17  ;;  %11900 = vst [vmem:[#allocation14_spill] sm:$0xff] %v8525_v33  ;;  %v8537_v4 = vmul.f32 %v11905_v54, %v11841_v26  ;;  %v8541_v31 = vadd.f32 %v11906_v23, %v7961_v21  ;;  %v11907_v17 = vld [vmem:[#allocation65_spill] sm:$0xff]  ;;  %v11908_v33 = vld [vmem:[#allocation71_spill] sm:$0xff] }
 0x251   :  { %11902 = vst [vmem:[#allocation11_spill] sm:$0xff] %v8529_v47  ;;  %11904 = vst [vmem:[#allocation13_spill] sm:$0xff] %v8533_v19  ;;  %v8545_v48 = vadd.f32 %v11907_v17, %v7961_v21  ;;  %v8549_v46 = vadd.f32 %v11908_v33, %v7961_v21  ;;  %v11909_v47 = vld [vmem:[#allocation75_spill] sm:$0xff]  ;;  %v11910_v19 = vld [vmem:[#allocation69_spill] sm:$0xff]  ;;  %v8565_v17 = vadd.f32 %v8309_v13, %v7961_v21 }
 0x252   :  { %v8553_v45 = vadd.f32 %v11909_v47, %v7961_v21  ;;  %v8557_v54 = vadd.f32 %v11910_v19, %v7961_v21  ;;  %v11911_v26 = vld [vmem:[#allocation73_spill] sm:$0xff]  ;;  %v8569_v33 = vadd.f32 %v8313_v55, %v7961_v21  ;;  %v8573_v47 = vadd.f32 %v8317_v29, %v7961_v21 }
 0x253   :  { %v8561_v23 = vadd.f32 %v11911_v26, %v7961_v21  ;;  %v8577_v19 = vadd.f32 %v8321_v16, %v7961_v21  ;;  %v8581_v26 = vadd.f32 %v8325_v25, %v7961_v21  ;;  %v8585_v13 = vadd.f32 %v8329_v61, %v7961_v21 }
 0x254   :  { %v8589_v55 = vadd.f32 %v8333_v11, %v7961_v21  ;;  %v8593_v29 = vadd.f32 %v8337_v51, %v7961_v21  ;;  %v8597_v16 = vadd.f32 %v8341_v7, %v7961_v21  ;;  %v8601_v25 = vadd.f32 %v8345_v57, %v7961_v21 }
 0x255   :  { %v8605_v61 = vadd.f32 %v8349_v43, %v7961_v21  ;;  %v8609_v11 = vadd.f32 %v8353_v35, %v7961_v21  ;;  %v8613_v51 = vadd.f32 %v8357_v39, %v7961_v21  ;;  %v8617_v7 = vadd.f32 %v8361_v0, %v7961_v21 }
 0x256   :  { %v8621_v57 = vadd.f32 %v8365_v36, %v7961_v21  ;;  %v8625_v43 = vadd.f32 %v8369_v27, %v7961_v21  ;;  %v8629_v35 = vadd.f32 %v8373_v9, %v7961_v21  ;;  %v8633_v39 = vadd.f32 %v8377_v1, %v7961_v21 }
 0x257   :  { %v8637_v0 = vadd.f32 %v8381_v60, %v7961_v21  ;;  %v8641_v36 = vadd.f32 %v8385_v53, %v7961_v21  ;;  %v8645_v27 = vadd.f32 %v8389_v3, %v7961_v21  ;;  %v8649_v9 = vadd.f32 %v8393_v49, %v7961_v21 }
 0x258   :  { %v8653_v1 = vadd.f32 %v8397_v37, %v7961_v21  ;;  %v8657_v60 = vadd.f32 %v8401_v12, %v7961_v21  ;;  %v8661_v53 = vadd.f32 %v8405_v41, %v7961_v21  ;;  %v8665_v3 = vadd.f32 %v8409_v22, %v7961_v21 }
 0x259   :  { %v8669_v49 = vadd.f32 %v8413_v5, %v7961_v21  ;;  %v8673_v37 = vadd.f32 %v8417_v30, %v7961_v21  ;;  %v8677_v12 = vadd.f32 %v8421_v18, %v7961_v21  ;;  %v8681_v41 = vadd.f32 %v8425_v40, %v7961_v21 }
 0x25a   :  { %v8685_v22 = vadd.f32 %v8429_v24, %v7961_v21  ;;  %v8689_v5 = vadd.f32 %v8433_v56, %v7961_v21  ;;  %v8693_v30 = vadd.f32 %v8437_v2, %v7961_v21  ;;  %v8697_v18 = vadd.f32 %v8441_v32, %v7961_v21 }
 0x25b   :  { %v8701_v40 = vadd.f32 %v8445_v10, %v7961_v21  ;;  %v8705_v24 = vadd.f32 %v8449_v42, %v7961_v21  ;;  %v8709_v56 = vadd.f32 %v8453_v58, %v7961_v21  ;;  %v8713_v2 = vadd.f32 %v8457_v38, %v7961_v21 }
 0x25c   :  { %v8717_v32 = vadd.f32 %v8461_v6, %v7961_v21  ;;  %v8721_v10 = vadd.f32 %v8465_v44, %v7961_v21  ;;  %v8725_v42 = vadd.f32 %v8469_v8, %v7961_v21  ;;  %v8729_v58 = vadd.f32 %v8473_v50, %v7961_v21 }
 0x25d   :  { %11912 = vst [vmem:[#allocation16_spill] sm:$0xff] %v8705_v24  ;;  %11913 = vst [vmem:[#allocation18_spill] sm:$0xff] %v8709_v56  ;;  %v8733_v38 = vadd.f32 %v8477_v14, %v7961_v21  ;;  %v8737_v6 = vadd.f32 %v8481_v62, %v7961_v21  ;;  %v8741_v44 = vadd.f32 %v8485_v28, %v7961_v21 }
 0x25e   :  { %11914 = vst [vmem:[#allocation15_spill] sm:$0xff] %v8713_v2  ;;  %11915 = vst [vmem:[#allocation17_spill] sm:$0xff] %v8717_v32  ;;  %v8745_v8 = vadd.f32 %v8489_v15, %v7961_v21  ;;  %v8749_v50 = vadd.f32 %v8493_v34, %v7961_v21  ;;  %v8753_v14 = vadd.f32 %v8497_v20, %v7961_v21  ;;  %v11951_v2 = vld [vmem:[#allocation79_spill] sm:$0xff] }
 0x25f   :  { %11916 = vst [vmem:[#allocation20_spill] sm:$0xff] %v8721_v10  ;;  %11917 = vst [vmem:[#allocation22_spill] sm:$0xff] %v8729_v58  ;;  %v8757_v62 = vadd.f32 %v8501_v59, %v7961_v21  ;;  %v8761_v28 = vadd.f32 %v8505_v52, %v7961_v21  ;;  %v8765_v15 = vadd.f32 %v8509_v63, %v7961_v21 }
 0x260   :  { %11918 = vst [vmem:[#allocation19_spill] sm:$0xff] %v8733_v38  ;;  %11919 = vst [vmem:[#allocation21_spill] sm:$0xff] %v8737_v6 }
 0x261   :  { %11920 = vst [vmem:[#allocation24_spill] sm:$0xff] %v8741_v44  ;;  %11921 = vst [vmem:[#allocation26_spill] sm:$0xff] %v8745_v8  ;;  %v11927_v8 = vld [vmem:[#allocation7_spill] sm:$0xff] }
 0x262   :  { %11922 = vst [vmem:[#allocation23_spill] sm:$0xff] %v8749_v50  ;;  %11923 = vst [vmem:[#allocation25_spill] sm:$0xff] %v8753_v14  ;;  %v8769_v34 = vadd.f32 %v11927_v8, %v7961_v21  ;;  %v11928_v50 = vld [vmem:[#allocation9_spill] sm:$0xff]  ;;  %v11930_v14 = vld [vmem:[#allocation12_spill] sm:$0xff] }
 0x263   :  { %11924 = vst [vmem:[#allocation28_spill] sm:$0xff] %v8757_v62  ;;  %11925 = vst [vmem:[#allocation30_spill] sm:$0xff] %v8761_v28  ;;  %v8773_v20 = vadd.f32 %v11928_v50, %v7961_v21  ;;  %v8777_v59 = vadd.f32 %v11930_v14, %v7961_v21  ;;  %v11932_v62 = vld [vmem:[#allocation14_spill] sm:$0xff]  ;;  %v11934_v28 = vld [vmem:[#allocation11_spill] sm:$0xff]  ;;  %v8793_v50 = vadd.f32 %v8537_v4, %v7961_v21 }
 0x264   :  { %11926 = vst [vmem:[#allocation27_spill] sm:$0xff] %v8765_v15  ;;  %v8781_v52 = vadd.f32 %v11932_v62, %v7961_v21  ;;  %v8785_v63 = vadd.f32 %v11934_v28, %v7961_v21  ;;  %v11936_v15 = vld [vmem:[#allocation13_spill] sm:$0xff]  ;;  %v11952_v28 = vmax.f32 %v11951_v2, 0.0  ;;  %v11962_v62 = vmax.f32 %v8553_v45, 0.0 }
 0x265   :  { %11929 = vst [vmem:[#allocation29_spill] sm:$0xff] %v8773_v20  ;;  %11931 = vst [vmem:[#allocation33_spill] sm:$0xff] %v8777_v59  ;;  %v8789_v8 = vadd.f32 %v11936_v15, %v7961_v21  ;;  %v11946_v38 = vmov %v8777_v59  ;;  %v11954_v15 = vmax.f32 %v8545_v48, 0.0  ;;  %v11958_v20 = vmax.f32 %v8549_v46, 0.0  ;;  %v11959_v4 = vld [vmem:[#allocation77_spill] sm:$0xff] }
 0x266   :  { %11933 = vst [vmem:[#allocation36_spill] sm:$0xff] %v8781_v52  ;;  %11935 = vst [vmem:[#allocation32_spill] sm:$0xff] %v8785_v63  ;;  %v11947_v6 = vmov %v8781_v52  ;;  %v11950_v52 = vmax.f32 %v8541_v31, 0.0  ;;  %v11955_v63 = vld [vmem:[#allocation83_spill] sm:$0xff]  ;;  %v11960_v14 = vmax.f32 %v11959_v4, 0.0  ;;  %v11963_v59 = vld [vmem:[#allocation81_spill] sm:$0xff] }
 0x267   :  { %11937 = vst [vmem:[#allocation35_spill] sm:$0xff] %v8789_v8  ;;  %11938 = vst [vmem:[#allocation40_spill] sm:$0xff] %v8793_v50  ;;  %v11949_v21 = vmov %v8789_v8  ;;  %v11956_v8 = vmax.f32 %v11955_v63, 0.0  ;;  %v11964_v31 = vmax.f32 %v11963_v59, 0.0  ;;  %v11966_v2 = vmax.f32 %v8557_v54, 0.0 }
 0x268   :  { %v8863_v32 = vmax.f32 %v11952_v28, %v11950_v52  ;;  %v8875_v44 = vmax.f32 %v11960_v14, %v11958_v20  ;;  %v11967_v52 = vld [vmem:[#allocation87_spill] sm:$0xff]  ;;  %v11970_v63 = vmax.f32 %v8561_v23, 0.0  ;;  %v11974_v20 = vmax.f32 %v8565_v17, 0.0  ;;  %v11975_v14 = vld [vmem:[#allocation85_spill] sm:$0xff] }
 0x269   :  { %v11940_v24 = vld [vmem:[#allocation23_spill] sm:$0xff]  ;;  %v11941_v56 = vld [vmem:[#allocation25_spill] sm:$0xff]  ;;  %v8869_v58 = vmax.f32 %v11956_v8, %v11954_v15  ;;  %v8881_v50 = vmax.f32 %v11964_v31, %v11962_v62  ;;  %v11968_v48 = vmax.f32 %v11967_v52, 0.0  ;;  %v11976_v45 = vmax.f32 %v11975_v14, 0.0 }
 0x26a   :  { %11953 = vst [vmem:[#allocation44_spill] sm:$0xff] %v8863_v32  ;;  %11961 = vst [vmem:[#allocation42_spill] sm:$0xff] %v8875_v44  ;;  %v11971_v8 = vld [vmem:[#allocation91_spill] sm:$0xff]  ;;  %v11978_v59 = vmax.f32 %v8569_v33, 0.0  ;;  %v11979_v62 = vld [vmem:[#allocation89_spill] sm:$0xff] }
 0x26b   :  { %v11944_v10 = vld [vmem:[#allocation27_spill] sm:$0xff]  ;;  %11957 = vst [vmem:[#allocation38_spill] sm:$0xff] %v8869_v58  ;;  %11965 = vst [vmem:[#allocation48_spill] sm:$0xff] %v8881_v50  ;;  %v8887_v28 = vmax.f32 %v11968_v48, %v11966_v2  ;;  %v11972_v46 = vmax.f32 %v11971_v8, 0.0  ;;  %v8899_v4 = vmax.f32 %v11976_v45, %v11974_v20  ;;  %v11980_v54 = vmax.f32 %v11979_v62, 0.0  ;;  %v11991_v14 = vld [vmem:[#allocation93_spill] sm:$0xff] }
 0x26c   :  { %v11982_v2 = vmax.f32 %v8573_v47, 0.0  ;;  %v11983_v52 = vld [vmem:[#allocation95_spill] sm:$0xff]  ;;  %v11990_v20 = vmax.f32 %v8581_v26, 0.0  ;;  %v11992_v33 = vmax.f32 %v11991_v14, 0.0  ;;  %v11995_v62 = vld [vmem:[#allocation97_spill] sm:$0xff] }
 0x26d   :  { %11969 = vst [vmem:[#allocation52_spill] sm:$0xff] %v8887_v28  ;;  %v8893_v15 = vmax.f32 %v11972_v46, %v11970_v63  ;;  %11977 = vst [vmem:[#allocation50_spill] sm:$0xff] %v8899_v4  ;;  %v8905_v31 = vmax.f32 %v11980_v54, %v11978_v59  ;;  %v11984_v23 = vmax.f32 %v11983_v52, 0.0  ;;  %v11986_v63 = vmax.f32 %v8577_v19, 0.0  ;;  %v11987_v8 = vld [vmem:[#allocation99_spill] sm:$0xff]  ;;  %v11999_v52 = vld [vmem:[#allocation4_spill] sm:$0xff] }
 0x26e   :  { %v11988_v17 = vmax.f32 %v11987_v8, 0.0  ;;  %v8923_v45 = vmax.f32 %v11992_v33, %v11990_v20  ;;  %v11994_v59 = vmax.f32 %v8585_v13, 0.0  ;;  %v11996_v47 = vmax.f32 %v11995_v62, 0.0  ;;  %v12003_v8 = vld [vmem:[#allocation6_spill] sm:$0xff]  ;;  %v12007_v14 = vld [vmem:[#allocation3_spill] sm:$0xff]  ;;  %v12011_v62 = vld [vmem:[#allocation5_spill] sm:$0xff] }
 0x26f   :  { %11973 = vst [vmem:[#allocation46_spill] sm:$0xff] %v8893_v15  ;;  %11981 = vst [vmem:[#allocation56_spill] sm:$0xff] %v8905_v31  ;;  %v8911_v48 = vmax.f32 %v11984_v23, %v11982_v2  ;;  %v11998_v2 = vmax.f32 %v8589_v55, 0.0  ;;  %v12000_v19 = vmax.f32 %v11999_v52, 0.0  ;;  %v12004_v26 = vmax.f32 %v12003_v8, 0.0  ;;  %v12015_v52 = vld [vmem:[#allocation8_spill] sm:$0xff] }
 0x270   :  { %v8917_v46 = vmax.f32 %v11988_v17, %v11986_v63  ;;  %11993 = vst [vmem:[#allocation58_spill] sm:$0xff] %v8923_v45  ;;  %v8929_v54 = vmax.f32 %v11996_v47, %v11994_v59  ;;  %v12002_v63 = vmax.f32 %v8593_v29, 0.0  ;;  %v12006_v20 = vmax.f32 %v8597_v16, 0.0  ;;  %v12019_v8 = vld [vmem:[#allocation10_spill] sm:$0xff]  ;;  %v12269_v45 = vld [vmem:[#allocation193_spill] sm:$0xff]  ;;  %v12274_v15 = vld [vmem:[#allocation207_spill] sm:$0xff] }
 0x271   :  { %11985 = vst [vmem:[#allocation60_spill] sm:$0xff] %v8911_v48  ;;  %v8935_v23 = vmax.f32 %v12000_v19, %v11998_v2  ;;  %v12008_v13 = vmax.f32 %v12007_v14, 0.0  ;;  %v12010_v59 = vmax.f32 %v8601_v25, 0.0  ;;  %v12012_v55 = vmax.f32 %v12011_v62, 0.0  ;;  %v12023_v14 = vld [vmem:[#allocation230_spill] sm:$0xff]  ;;  %v12027_v62 = vld [vmem:[#allocation231_spill] sm:$0xff] }
 0x272   :  { %11989 = vst [vmem:[#allocation54_spill] sm:$0xff] %v8917_v46  ;;  %11997 = vst [vmem:[#allocation64_spill] sm:$0xff] %v8929_v54  ;;  %v8941_v17 = vmax.f32 %v12004_v26, %v12002_v63  ;;  %v12014_v2 = vmax.f32 %v8605_v61, 0.0  ;;  %v12016_v29 = vmax.f32 %v12015_v52, 0.0  ;;  %v12018_v63 = vmax.f32 %v8609_v11, 0.0  ;;  %v12031_v52 = vld [vmem:[#allocation232_spill] sm:$0xff] }
 0x273   :  { %12001 = vst [vmem:[#allocation68_spill] sm:$0xff] %v8935_v23  ;;  %v8947_v33 = vmax.f32 %v12008_v13, %v12006_v20  ;;  %v8953_v47 = vmax.f32 %v12012_v55, %v12010_v59  ;;  %v12020_v16 = vmax.f32 %v12019_v8, 0.0  ;;  %v12022_v20 = vmax.f32 %v8613_v51, 0.0  ;;  %v12035_v8 = vld [vmem:[#allocation233_spill] sm:$0xff]  ;;  %v12267_v23 = vld [vmem:[#allocation195_spill] sm:$0xff] }
 0x274   :  { %12005 = vst [vmem:[#allocation62_spill] sm:$0xff] %v8941_v17  ;;  %v8959_v19 = vmax.f32 %v12016_v29, %v12014_v2  ;;  %v12024_v25 = vmax.f32 %v12023_v14, 0.0  ;;  %v12026_v59 = vmax.f32 %v8617_v7, 0.0  ;;  %v12028_v61 = vmax.f32 %v12027_v62, 0.0  ;;  %v12039_v14 = vld [vmem:[#allocation234_spill] sm:$0xff]  ;;  %v12043_v62 = vld [vmem:[#allocation235_spill] sm:$0xff] }
 0x275   :  { %12009 = vst [vmem:[#allocation66_spill] sm:$0xff] %v8947_v33  ;;  %12013 = vst [vmem:[#allocation72_spill] sm:$0xff] %v8953_v47  ;;  %v8965_v26 = vmax.f32 %v12020_v16, %v12018_v63  ;;  %v12030_v2 = vmax.f32 %v8621_v57, 0.0  ;;  %v12032_v11 = vmax.f32 %v12031_v52, 0.0  ;;  %v12034_v63 = vmax.f32 %v8625_v43, 0.0  ;;  %v12047_v52 = vld [vmem:[#allocation236_spill] sm:$0xff] }
 0x276   :  { %12017 = vst [vmem:[#allocation76_spill] sm:$0xff] %v8959_v19  ;;  %v8971_v13 = vmax.f32 %v12024_v25, %v12022_v20  ;;  %v8977_v55 = vmax.f32 %v12028_v61, %v12026_v59  ;;  %v12036_v51 = vmax.f32 %v12035_v8, 0.0  ;;  %v12038_v20 = vmax.f32 %v8629_v35, 0.0  ;;  %v12051_v8 = vld [vmem:[#allocation237_spill] sm:$0xff]  ;;  %v12263_v19 = vld [vmem:[#allocation187_spill] sm:$0xff] }
 0x277   :  { %12021 = vst [vmem:[#allocation70_spill] sm:$0xff] %v8965_v26  ;;  %v8983_v29 = vmax.f32 %v12032_v11, %v12030_v2  ;;  %v12040_v7 = vmax.f32 %v12039_v14, 0.0  ;;  %v12042_v59 = vmax.f32 %v8633_v39, 0.0  ;;  %v12044_v57 = vmax.f32 %v12043_v62, 0.0  ;;  %v12055_v14 = vld [vmem:[#allocation238_spill] sm:$0xff]  ;;  %v12059_v62 = vld [vmem:[#allocation239_spill] sm:$0xff] }
 0x278   :  { %12025 = vst [vmem:[#allocation74_spill] sm:$0xff] %v8971_v13  ;;  %12029 = vst [vmem:[#allocation80_spill] sm:$0xff] %v8977_v55  ;;  %v8989_v16 = vmax.f32 %v12036_v51, %v12034_v63  ;;  %v12046_v2 = vmax.f32 %v8637_v0, 0.0  ;;  %v12048_v43 = vmax.f32 %v12047_v52, 0.0  ;;  %v12050_v63 = vmax.f32 %v8641_v36, 0.0  ;;  %v12063_v52 = vld [vmem:[#allocation240_spill] sm:$0xff] }
 0x279   :  { %12033 = vst [vmem:[#allocation84_spill] sm:$0xff] %v8983_v29  ;;  %v8995_v25 = vmax.f32 %v12040_v7, %v12038_v20  ;;  %v9001_v61 = vmax.f32 %v12044_v57, %v12042_v59  ;;  %v12052_v35 = vmax.f32 %v12051_v8, 0.0  ;;  %v12054_v20 = vmax.f32 %v8645_v27, 0.0  ;;  %v12067_v8 = vld [vmem:[#allocation241_spill] sm:$0xff]  ;;  %v12259_v29 = vld [vmem:[#allocation179_spill] sm:$0xff] }
 0x27a   :  { %12037 = vst [vmem:[#allocation78_spill] sm:$0xff] %v8989_v16  ;;  %v9007_v11 = vmax.f32 %v12048_v43, %v12046_v2  ;;  %v12056_v39 = vmax.f32 %v12055_v14, 0.0  ;;  %v12058_v59 = vmax.f32 %v8649_v9, 0.0  ;;  %v12060_v0 = vmax.f32 %v12059_v62, 0.0  ;;  %v12071_v14 = vld [vmem:[#allocation242_spill] sm:$0xff]  ;;  %v12075_v62 = vld [vmem:[#allocation243_spill] sm:$0xff] }
 0x27b   :  { %12041 = vst [vmem:[#allocation82_spill] sm:$0xff] %v8995_v25  ;;  %12045 = vst [vmem:[#allocation88_spill] sm:$0xff] %v9001_v61  ;;  %v9013_v51 = vmax.f32 %v12052_v35, %v12050_v63  ;;  %v12062_v2 = vmax.f32 %v8653_v1, 0.0  ;;  %v12064_v36 = vmax.f32 %v12063_v52, 0.0  ;;  %v12066_v63 = vmax.f32 %v8657_v60, 0.0  ;;  %v12079_v52 = vld [vmem:[#allocation244_spill] sm:$0xff] }
 0x27c   :  { %12049 = vst [vmem:[#allocation92_spill] sm:$0xff] %v9007_v11  ;;  %v9019_v7 = vmax.f32 %v12056_v39, %v12054_v20  ;;  %v9025_v57 = vmax.f32 %v12060_v0, %v12058_v59  ;;  %v12068_v27 = vmax.f32 %v12067_v8, 0.0  ;;  %v12070_v20 = vmax.f32 %v8661_v53, 0.0  ;;  %v12083_v8 = vld [vmem:[#allocation245_spill] sm:$0xff]  ;;  %v12255_v11 = vld [vmem:[#allocation171_spill] sm:$0xff] }
 0x27d   :  { %12053 = vst [vmem:[#allocation86_spill] sm:$0xff] %v9013_v51  ;;  %v9031_v43 = vmax.f32 %v12064_v36, %v12062_v2  ;;  %v12072_v9 = vmax.f32 %v12071_v14, 0.0  ;;  %v12074_v59 = vmax.f32 %v8665_v3, 0.0  ;;  %v12076_v1 = vmax.f32 %v12075_v62, 0.0  ;;  %v12087_v14 = vld [vmem:[#allocation246_spill] sm:$0xff]  ;;  %v12091_v62 = vld [vmem:[#allocation247_spill] sm:$0xff] }
 0x27e   :  { %12057 = vst [vmem:[#allocation90_spill] sm:$0xff] %v9019_v7  ;;  %12061 = vst [vmem:[#allocation96_spill] sm:$0xff] %v9025_v57  ;;  %v9037_v35 = vmax.f32 %v12068_v27, %v12066_v63  ;;  %v12078_v2 = vmax.f32 %v8669_v49, 0.0  ;;  %v12080_v60 = vmax.f32 %v12079_v52, 0.0  ;;  %v12082_v63 = vmax.f32 %v8673_v37, 0.0  ;;  %v12095_v52 = vld [vmem:[#allocation248_spill] sm:$0xff] }
 0x27f   :  { %12065 = vst [vmem:[#allocation100_spill] sm:$0xff] %v9031_v43  ;;  %v9043_v39 = vmax.f32 %v12072_v9, %v12070_v20  ;;  %v9049_v0 = vmax.f32 %v12076_v1, %v12074_v59  ;;  %v12084_v53 = vmax.f32 %v12083_v8, 0.0  ;;  %v12086_v20 = vmax.f32 %v8677_v12, 0.0  ;;  %v12099_v8 = vld [vmem:[#allocation249_spill] sm:$0xff]  ;;  %v12251_v43 = vld [vmem:[#allocation163_spill] sm:$0xff] }
 0x280   :  { %12069 = vst [vmem:[#allocation94_spill] sm:$0xff] %v9037_v35  ;;  %v9055_v36 = vmax.f32 %v12080_v60, %v12078_v2  ;;  %v12088_v3 = vmax.f32 %v12087_v14, 0.0  ;;  %v12090_v59 = vmax.f32 %v8681_v41, 0.0  ;;  %v12092_v49 = vmax.f32 %v12091_v62, 0.0  ;;  %v12103_v14 = vld [vmem:[#allocation250_spill] sm:$0xff]  ;;  %v12107_v62 = vld [vmem:[#allocation251_spill] sm:$0xff] }
 0x281   :  { %12073 = vst [vmem:[#allocation98_spill] sm:$0xff] %v9043_v39  ;;  %12077 = vst [vmem:[#allocation61_spill] sm:$0xff] %v9049_v0  ;;  %v9061_v27 = vmax.f32 %v12084_v53, %v12082_v63  ;;  %v12094_v2 = vmax.f32 %v8685_v22, 0.0  ;;  %v12096_v37 = vmax.f32 %v12095_v52, 0.0  ;;  %v12098_v63 = vmax.f32 %v8689_v5, 0.0  ;;  %v12111_v52 = vld [vmem:[#allocation252_spill] sm:$0xff] }
 0x282   :  { %12081 = vst [vmem:[#allocation65_spill] sm:$0xff] %v9055_v36  ;;  %v9067_v9 = vmax.f32 %v12088_v3, %v12086_v20  ;;  %v9073_v1 = vmax.f32 %v12092_v49, %v12090_v59  ;;  %v12100_v12 = vmax.f32 %v12099_v8, 0.0  ;;  %v12102_v20 = vmax.f32 %v8693_v30, 0.0  ;;  %v12247_v36 = vld [vmem:[#allocation155_spill] sm:$0xff]  ;;  %v12248_v0 = vld [vmem:[#allocation149_spill] sm:$0xff] }
 0x283   :  { %12085 = vst [vmem:[#allocation71_spill] sm:$0xff] %v9061_v27  ;;  %v9079_v60 = vmax.f32 %v12096_v37, %v12094_v2  ;;  %v12104_v41 = vmax.f32 %v12103_v14, 0.0  ;;  %v12106_v59 = vmax.f32 %v8697_v18, 0.0  ;;  %v12108_v22 = vmax.f32 %v12107_v62, 0.0  ;;  %v12246_v27 = vld [vmem:[#allocation151_spill] sm:$0xff]  ;;  %v12249_v39 = vld [vmem:[#allocation153_spill] sm:$0xff] }
 0x284   :  { %12089 = vst [vmem:[#allocation75_spill] sm:$0xff] %v9067_v9  ;;  %12093 = vst [vmem:[#allocation69_spill] sm:$0xff] %v9073_v1  ;;  %v9085_v53 = vmax.f32 %v12100_v12, %v12098_v63  ;;  %v12110_v2 = vmax.f32 %v8701_v40, 0.0  ;;  %v12112_v5 = vmax.f32 %v12111_v52, 0.0  ;;  %v12114_v63 = vld [vmem:[#allocation16_spill] sm:$0xff]  ;;  %v12116_v12 = vld [vmem:[#allocation253_spill] sm:$0xff] }
 0x285   :  { %12097 = vst [vmem:[#allocation73_spill] sm:$0xff] %v9079_v60  ;;  %v9091_v3 = vmax.f32 %v12104_v41, %v12102_v20  ;;  %v9097_v49 = vmax.f32 %v12108_v22, %v12106_v59  ;;  %v12115_v8 = vmax.f32 %v12114_v63, 0.0  ;;  %v12117_v30 = vmax.f32 %v12116_v12, 0.0  ;;  %v12119_v20 = vld [vmem:[#allocation18_spill] sm:$0xff]  ;;  %v12124_v59 = vld [vmem:[#allocation15_spill] sm:$0xff]  ;;  %v12244_v1 = vld [vmem:[#allocation141_spill] sm:$0xff] }
 0x286   :  { %12101 = vst [vmem:[#allocation7_spill] sm:$0xff] %v9085_v53  ;;  %v9103_v37 = vmax.f32 %v12112_v5, %v12110_v2  ;;  %v12120_v14 = vmax.f32 %v12119_v20, 0.0  ;;  %v12121_v41 = vld [vmem:[#allocation254_spill] sm:$0xff]  ;;  %v12125_v62 = vmax.f32 %v12124_v59, 0.0  ;;  %v12126_v22 = vld [vmem:[#allocation255_spill] sm:$0xff]  ;;  %v12129_v2 = vld [vmem:[#allocation17_spill] sm:$0xff] }
 0x287   :  { %12105 = vst [vmem:[#allocation9_spill] sm:$0xff] %v9091_v3  ;;  %12109 = vst [vmem:[#allocation12_spill] sm:$0xff] %v9097_v49  ;;  %v9109_v53 = vmax.f32 %v12117_v30, %v12115_v8  ;;  %v12122_v18 = vmax.f32 %v12121_v41, 0.0  ;;  %v12127_v40 = vmax.f32 %v12126_v22, 0.0  ;;  %v12130_v52 = vmax.f32 %v12129_v2, 0.0  ;;  %v12131_v5 = vld [vmem:[#allocation256_spill] sm:$0xff] }
 0x288   :  { %12113 = vst [vmem:[#allocation14_spill] sm:$0xff] %v9103_v37  ;;  %v12132_v63 = vmax.f32 %v12131_v5, 0.0  ;;  %v12134_v8 = vld [vmem:[#allocation20_spill] sm:$0xff]  ;;  %v12136_v30 = vld [vmem:[#allocation257_spill] sm:$0xff]  ;;  %v12140_v41 = vld [vmem:[#allocation258_spill] sm:$0xff] }
 0x289   :  { %12118 = vst [vmem:[#allocation11_spill] sm:$0xff] %v9109_v53  ;;  %v9115_v3 = vmax.f32 %v12122_v18, %v12120_v14  ;;  %v9121_v49 = vmax.f32 %v12127_v40, %v12125_v62  ;;  %v12135_v12 = vmax.f32 %v12134_v8, 0.0  ;;  %v12137_v20 = vmax.f32 %v12136_v30, 0.0  ;;  %v12143_v62 = vld [vmem:[#allocation22_spill] sm:$0xff]  ;;  %v12145_v40 = vld [vmem:[#allocation259_spill] sm:$0xff]  ;;  %v12245_v9 = vld [vmem:[#allocation145_spill] sm:$0xff] }
 0x28a   :  { %v9127_v37 = vmax.f32 %v12132_v63, %v12130_v52  ;;  %v12139_v14 = vmax.f32 %v8725_v42, 0.0  ;;  %v12141_v18 = vmax.f32 %v12140_v41, 0.0  ;;  %v12144_v22 = vmax.f32 %v12143_v62, 0.0  ;;  %v12148_v52 = vld [vmem:[#allocation19_spill] sm:$0xff]  ;;  %v12150_v63 = vld [vmem:[#allocation260_spill] sm:$0xff]  ;;  %v12252_v57 = vld [vmem:[#allocation157_spill] sm:$0xff] }
 0x28b   :  { %12123 = vst [vmem:[#allocation13_spill] sm:$0xff] %v9115_v3  ;;  %12128 = vst [vmem:[#allocation23_spill] sm:$0xff] %v9121_v49  ;;  %v9133_v53 = vmax.f32 %v12137_v20, %v12135_v12  ;;  %v12146_v2 = vmax.f32 %v12145_v40, 0.0  ;;  %v12149_v5 = vmax.f32 %v12148_v52, 0.0  ;;  %v12151_v8 = vmax.f32 %v12150_v63, 0.0  ;;  %v12153_v12 = vld [vmem:[#allocation21_spill] sm:$0xff] }
 0x28c   :  { %12133 = vst [vmem:[#allocation25_spill] sm:$0xff] %v9127_v37  ;;  %v9139_v59 = vmax.f32 %v12141_v18, %v12139_v14  ;;  %v12154_v30 = vmax.f32 %v12153_v12, 0.0  ;;  %v12155_v20 = vld [vmem:[#allocation31_spill] sm:$0xff]  ;;  %v12158_v14 = vld [vmem:[#allocation24_spill] sm:$0xff]  ;;  %v12160_v18 = vld [vmem:[#allocation34_spill] sm:$0xff] }
 0x28d   :  { %12138 = vst [vmem:[#allocation27_spill] sm:$0xff] %v9133_v53  ;;  %v9145_v49 = vmax.f32 %v12146_v2, %v12144_v22  ;;  %v9151_v37 = vmax.f32 %v12151_v8, %v12149_v5  ;;  %v12156_v42 = vmax.f32 %v12155_v20, 0.0  ;;  %v12159_v41 = vmax.f32 %v12158_v14, 0.0  ;;  %v12163_v22 = vld [vmem:[#allocation26_spill] sm:$0xff]  ;;  %v12165_v2 = vld [vmem:[#allocation39_spill] sm:$0xff]  ;;  %v12173_v20 = vld [vmem:[#allocation37_spill] sm:$0xff] }
 0x28e   :  { %12142 = vst [vmem:[#allocation33_spill] sm:$0xff] %v9139_v59  ;;  %v12161_v62 = vmax.f32 %v12160_v18, 0.0  ;;  %v12164_v40 = vmax.f32 %v12163_v22, 0.0  ;;  %v12166_v52 = vmax.f32 %v12165_v2, 0.0  ;;  %v12168_v5 = vmax.f32 %v11940_v24, 0.0  ;;  %v12169_v63 = vld [vmem:[#allocation43_spill] sm:$0xff] }
 0x28f   :  { %12147 = vst [vmem:[#allocation36_spill] sm:$0xff] %v9145_v49  ;;  %12152 = vst [vmem:[#allocation35_spill] sm:$0xff] %v9151_v37  ;;  %v9157_v53 = vmax.f32 %v12156_v42, %v12154_v30  ;;  %v12170_v8 = vmax.f32 %v12169_v63, 0.0  ;;  %v12172_v30 = vmax.f32 %v11941_v56, 0.0  ;;  %v12174_v42 = vmax.f32 %v12173_v20, 0.0  ;;  %v12187_v63 = vld [vmem:[#allocation51_spill] sm:$0xff] }
 0x290   :  { %v9163_v59 = vmax.f32 %v12161_v62, %v12159_v41  ;;  %v9169_v49 = vmax.f32 %v12166_v52, %v12164_v40  ;;  %v12176_v41 = vld [vmem:[#allocation28_spill] sm:$0xff]  ;;  %v12178_v62 = vld [vmem:[#allocation41_spill] sm:$0xff]  ;;  %v12181_v40 = vld [vmem:[#allocation30_spill] sm:$0xff]  ;;  %v12188_v56 = vmax.f32 %v12187_v63, 0.0 }
 0x291   :  { %12157 = vst [vmem:[#allocation79_spill] sm:$0xff] %v9157_v53  ;;  %v9175_v12 = vmax.f32 %v12170_v8, %v12168_v5  ;;  %v9181_v14 = vmax.f32 %v12174_v42, %v12172_v30  ;;  %v12177_v18 = vmax.f32 %v12176_v41, 0.0  ;;  %v12179_v22 = vmax.f32 %v12178_v62, 0.0  ;;  %v12183_v52 = vld [vmem:[#allocation47_spill] sm:$0xff]  ;;  %v12191_v20 = vld [vmem:[#allocation45_spill] sm:$0xff] }
 0x292   :  { %12162 = vst [vmem:[#allocation83_spill] sm:$0xff] %v9163_v59  ;;  %12167 = vst [vmem:[#allocation77_spill] sm:$0xff] %v9169_v49  ;;  %v12182_v2 = vmax.f32 %v12181_v40, 0.0  ;;  %v12184_v24 = vmax.f32 %v12183_v52, 0.0  ;;  %v12186_v5 = vmax.f32 %v11944_v10, 0.0  ;;  %v12190_v30 = vmax.f32 %v8769_v34, 0.0 }
 0x293   :  { %12171 = vst [vmem:[#allocation81_spill] sm:$0xff] %v9175_v12  ;;  %12175 = vst [vmem:[#allocation87_spill] sm:$0xff] %v9181_v14  ;;  %v9187_v59 = vmax.f32 %v12179_v22, %v12177_v18  ;;  %v12192_v42 = vmax.f32 %v12191_v20, 0.0  ;;  %v12194_v18 = vld [vmem:[#allocation29_spill] sm:$0xff]  ;;  %v12200_v52 = vld [vmem:[#allocation55_spill] sm:$0xff] }
 0x294   :  { %v9193_v49 = vmax.f32 %v12184_v24, %v12182_v2  ;;  %v9199_v8 = vmax.f32 %v12188_v56, %v12186_v5  ;;  %v12195_v62 = vmax.f32 %v12194_v18, 0.0  ;;  %v12196_v22 = vld [vmem:[#allocation49_spill] sm:$0xff]  ;;  %v12199_v2 = vmax.f32 %v11946_v38, 0.0  ;;  %v12204_v63 = vld [vmem:[#allocation59_spill] sm:$0xff] }
 0x295   :  { %12180 = vst [vmem:[#allocation91_spill] sm:$0xff] %v9187_v59  ;;  %v9205_v41 = vmax.f32 %v12192_v42, %v12190_v30  ;;  %v12197_v40 = vmax.f32 %v12196_v22, 0.0  ;;  %v12201_v10 = vmax.f32 %v12200_v52, 0.0  ;;  %v12203_v5 = vmax.f32 %v11947_v6, 0.0  ;;  %v12207_v30 = vld [vmem:[#allocation32_spill] sm:$0xff]  ;;  %v12209_v42 = vld [vmem:[#allocation53_spill] sm:$0xff] }
 0x296   :  { %12185 = vst [vmem:[#allocation85_spill] sm:$0xff] %v9193_v49  ;;  %12189 = vst [vmem:[#allocation89_spill] sm:$0xff] %v9199_v8  ;;  %v12205_v34 = vmax.f32 %v12204_v63, 0.0  ;;  %v12208_v20 = vmax.f32 %v12207_v30, 0.0  ;;  %v12210_v18 = vmax.f32 %v12209_v42, 0.0  ;;  %v12213_v22 = vld [vmem:[#allocation57_spill] sm:$0xff] }
 0x297   :  { %12193 = vst [vmem:[#allocation95_spill] sm:$0xff] %v9205_v41  ;;  %v9211_v59 = vmax.f32 %v12197_v40, %v12195_v62  ;;  %v9217_v24 = vmax.f32 %v12201_v10, %v12199_v2  ;;  %v12212_v62 = vmax.f32 %v11949_v21, 0.0  ;;  %v12214_v38 = vmax.f32 %v12213_v22, 0.0  ;;  %v12216_v2 = vld [vmem:[#allocation40_spill] sm:$0xff]  ;;  %v12218_v10 = vld [vmem:[#allocation63_spill] sm:$0xff]  ;;  %v12222_v63 = vld [vmem:[#allocation229_spill] sm:$0xff] }
 0x298   :  { %v9223_v56 = vmax.f32 %v12205_v34, %v12203_v5  ;;  %v9229_v41 = vmax.f32 %v12210_v18, %v12208_v20  ;;  %v12217_v52 = vmax.f32 %v12216_v2, 0.0  ;;  %v12219_v6 = vmax.f32 %v12218_v10, 0.0  ;;  %v12221_v5 = vld [vmem:[#allocation103_spill] sm:$0xff]  ;;  %v12224_v21 = vld [vmem:[#allocation101_spill] sm:$0xff] }
 0x299   :  { %12198 = vst [vmem:[#allocation99_spill] sm:$0xff] %v9211_v59  ;;  %12202 = vst [vmem:[#allocation93_spill] sm:$0xff] %v9217_v24  ;;  %v9235_v40 = vmax.f32 %v12214_v38, %v12212_v62  ;;  %v9245_v34 = vmul.f32 %v12222_v63, %v12221_v5  ;;  %v12223_v30 = vld [vmem:[#allocation107_spill] sm:$0xff]  ;;  %v9253_v42 = vmul.f32 %v12224_v21, %v12222_v63  ;;  %v12225_v18 = vld [vmem:[#allocation105_spill] sm:$0xff] }
 0x29a   :  { %12206 = vst [vmem:[#allocation97_spill] sm:$0xff] %v9223_v56  ;;  %12211 = vst [vmem:[#allocation4_spill] sm:$0xff] %v9229_v41  ;;  %v9241_v24 = vmax.f32 %v12219_v6, %v12217_v52  ;;  %v9249_v20 = vmul.f32 %v12222_v63, %v12223_v30  ;;  %v9257_v62 = vmul.f32 %v12225_v18, %v12222_v63  ;;  %v12226_v22 = vld [vmem:[#allocation111_spill] sm:$0xff]  ;;  %v12228_v10 = vld [vmem:[#allocation109_spill] sm:$0xff] }
 0x29b   :  { %12215 = vst [vmem:[#allocation6_spill] sm:$0xff] %v9235_v40  ;;  %v9261_v38 = vmul.f32 %v12222_v63, %v12226_v22  ;;  %v12227_v2 = vld [vmem:[#allocation115_spill] sm:$0xff]  ;;  %v9269_v6 = vmul.f32 %v12228_v10, %v12222_v63  ;;  %v12229_v5 = vld [vmem:[#allocation113_spill] sm:$0xff] }
 0x29c   :  { %12220 = vst [vmem:[#allocation3_spill] sm:$0xff] %v9241_v24  ;;  %v9265_v52 = vmul.f32 %v12222_v63, %v12227_v2  ;;  %v9273_v30 = vmul.f32 %v12229_v5, %v12222_v63  ;;  %v12230_v21 = vld [vmem:[#allocation119_spill] sm:$0xff]  ;;  %v12232_v40 = vld [vmem:[#allocation117_spill] sm:$0xff] }
 0x29d   :  { %v9277_v18 = vmul.f32 %v12222_v63, %v12230_v21  ;;  %v12231_v24 = vld [vmem:[#allocation123_spill] sm:$0xff]  ;;  %v9285_v2 = vmul.f32 %v12232_v40, %v12222_v63  ;;  %v12233_v41 = vld [vmem:[#allocation121_spill] sm:$0xff] }
 0x29e   :  { %v9281_v22 = vmul.f32 %v12222_v63, %v12231_v24  ;;  %v9289_v10 = vmul.f32 %v12233_v41, %v12222_v63  ;;  %v12234_v56 = vld [vmem:[#allocation127_spill] sm:$0xff]  ;;  %v12236_v8 = vld [vmem:[#allocation125_spill] sm:$0xff] }
 0x29f   :  { %v9293_v5 = vmul.f32 %v12222_v63, %v12234_v56  ;;  %v12235_v59 = vld [vmem:[#allocation131_spill] sm:$0xff]  ;;  %v9301_v24 = vmul.f32 %v12236_v8, %v12222_v63  ;;  %v12237_v49 = vld [vmem:[#allocation129_spill] sm:$0xff] }
 0x2a0   :  { %v9297_v21 = vmul.f32 %v12222_v63, %v12235_v59  ;;  %v9305_v40 = vmul.f32 %v12237_v49, %v12222_v63  ;;  %v12238_v14 = vld [vmem:[#allocation135_spill] sm:$0xff]  ;;  %v12240_v53 = vld [vmem:[#allocation133_spill] sm:$0xff] }
 0x2a1   :  { %v9309_v41 = vmul.f32 %v12222_v63, %v12238_v14  ;;  %v12239_v12 = vld [vmem:[#allocation139_spill] sm:$0xff]  ;;  %v9317_v59 = vmul.f32 %v12240_v53, %v12222_v63  ;;  %v12241_v37 = vld [vmem:[#allocation137_spill] sm:$0xff]  ;;  %v9337_v53 = vmul.f32 %v12245_v9, %v12222_v63 }
 0x2a2   :  { %v9313_v56 = vmul.f32 %v12222_v63, %v12239_v12  ;;  %v9321_v8 = vmul.f32 %v12241_v37, %v12222_v63  ;;  %v12242_v3 = vld [vmem:[#allocation143_spill] sm:$0xff]  ;;  %v9333_v12 = vmul.f32 %v12244_v1, %v12222_v63  ;;  %v9341_v37 = vmul.f32 %v12222_v63, %v12246_v27  ;;  %v12253_v7 = vld [vmem:[#allocation161_spill] sm:$0xff] }
 0x2a3   :  { %v9325_v49 = vmul.f32 %v12222_v63, %v12242_v3  ;;  %v12243_v60 = vld [vmem:[#allocation147_spill] sm:$0xff]  ;;  %v9345_v3 = vmul.f32 %v12222_v63, %v12247_v36  ;;  %v9353_v1 = vmul.f32 %v12249_v39, %v12222_v63  ;;  %v9361_v27 = vmul.f32 %v12222_v63, %v12251_v43  ;;  %v12256_v61 = vld [vmem:[#allocation165_spill] sm:$0xff] }
 0x2a4   :  { %v9329_v14 = vmul.f32 %v12222_v63, %v12243_v60  ;;  %v9349_v60 = vmul.f32 %v12248_v0, %v12222_v63  ;;  %v12250_v35 = vld [vmem:[#allocation159_spill] sm:$0xff]  ;;  %v9365_v36 = vmul.f32 %v12252_v57, %v12222_v63  ;;  %v9369_v0 = vmul.f32 %v12253_v7, %v12222_v63  ;;  %v12257_v25 = vld [vmem:[#allocation169_spill] sm:$0xff] }
 0x2a5   :  { %v9357_v9 = vmul.f32 %v12222_v63, %v12250_v35  ;;  %v12254_v51 = vld [vmem:[#allocation167_spill] sm:$0xff]  ;;  %v9377_v35 = vmul.f32 %v12222_v63, %v12255_v11  ;;  %v9381_v43 = vmul.f32 %v12256_v61, %v12222_v63  ;;  %v9385_v57 = vmul.f32 %v12257_v25, %v12222_v63  ;;  %v12260_v55 = vld [vmem:[#allocation173_spill] sm:$0xff] }
 0x2a6   :  { %v9373_v39 = vmul.f32 %v12222_v63, %v12254_v51  ;;  %v12258_v16 = vld [vmem:[#allocation175_spill] sm:$0xff]  ;;  %v9393_v51 = vmul.f32 %v12222_v63, %v12259_v29  ;;  %v9397_v11 = vmul.f32 %v12260_v55, %v12222_v63  ;;  %v12261_v13 = vld [vmem:[#allocation177_spill] sm:$0xff] }
 0x2a7   :  { %v9389_v7 = vmul.f32 %v12222_v63, %v12258_v16  ;;  %v9401_v61 = vmul.f32 %v12261_v13, %v12222_v63  ;;  %v12262_v26 = vld [vmem:[#allocation183_spill] sm:$0xff]  ;;  %v9409_v16 = vmul.f32 %v12222_v63, %v12263_v19  ;;  %v12264_v47 = vld [vmem:[#allocation181_spill] sm:$0xff] }
 0x2a8   :  { %v9405_v25 = vmul.f32 %v12222_v63, %v12262_v26  ;;  %v9413_v29 = vmul.f32 %v12264_v47, %v12222_v63  ;;  %v12265_v33 = vld [vmem:[#allocation185_spill] sm:$0xff]  ;;  %v12266_v17 = vld [vmem:[#allocation191_spill] sm:$0xff]  ;;  %v9425_v26 = vmul.f32 %v12222_v63, %v12267_v23  ;;  %v9433_v47 = vmul.f32 %v12269_v45, %v12222_v63 }
 0x2a9   :  { %v9417_v55 = vmul.f32 %v12265_v33, %v12222_v63  ;;  %v9421_v13 = vmul.f32 %v12222_v63, %v12266_v17  ;;  %v12268_v54 = vld [vmem:[#allocation189_spill] sm:$0xff]  ;;  %v12270_v46 = vld [vmem:[#allocation199_spill] sm:$0xff]  ;;  %v9453_v45 = vmul.f32 %v12222_v63, %v12274_v15 }
 0x2aa   :  { %v9429_v19 = vmul.f32 %v12268_v54, %v12222_v63  ;;  %v9437_v33 = vmul.f32 %v12222_v63, %v12270_v46  ;;  %v12271_v48 = vld [vmem:[#allocation203_spill] sm:$0xff]  ;;  %v12272_v31 = vld [vmem:[#allocation197_spill] sm:$0xff] }
 0x2ab   :  { %v9441_v17 = vmul.f32 %v12222_v63, %v12271_v48  ;;  %v9445_v23 = vmul.f32 %v12272_v31, %v12222_v63  ;;  %v12273_v4 = vld [vmem:[#allocation201_spill] sm:$0xff]  ;;  %12275 = vst [vmem:[#allocation5_spill] sm:$0xff] %v9453_v45  ;;  %v12276_v28 = vld [vmem:[#allocation211_spill] sm:$0xff] }
 0x2ac   :  { %v9449_v54 = vmul.f32 %v12273_v4, %v12222_v63  ;;  %v9457_v46 = vmul.f32 %v12222_v63, %v12276_v28  ;;  %v12278_v50 = vld [vmem:[#allocation205_spill] sm:$0xff]  ;;  %v12282_v58 = vld [vmem:[#allocation215_spill] sm:$0xff] }
 0x2ad   :  { %v9461_v48 = vmul.f32 %v12278_v50, %v12222_v63  ;;  %v12280_v44 = vld [vmem:[#allocation209_spill] sm:$0xff]  ;;  %v9469_v4 = vmul.f32 %v12222_v63, %v12282_v58  ;;  %v12284_v32 = vld [vmem:[#allocation219_spill] sm:$0xff] }
 0x2ae   :  { %12277 = vst [vmem:[#allocation8_spill] sm:$0xff] %v9457_v46  ;;  %v9465_v31 = vmul.f32 %v12280_v44, %v12222_v63  ;;  %v9473_v15 = vmul.f32 %v12222_v63, %v12284_v32  ;;  %v12286_v45 = vld [vmem:[#allocation213_spill] sm:$0xff] }
 0x2af   :  { %12279 = vst [vmem:[#allocation10_spill] sm:$0xff] %v9461_v48  ;;  %12283 = vst [vmem:[#allocation231_spill] sm:$0xff] %v9469_v4  ;;  %v9477_v28 = vmul.f32 %v12286_v45, %v12222_v63  ;;  %v12288_v46 = vld [vmem:[#allocation217_spill] sm:$0xff]  ;;  %v12289_v48 = vld [vmem:[#allocation223_spill] sm:$0xff] }
 0x2b0   :  { %12281 = vst [vmem:[#allocation230_spill] sm:$0xff] %v9465_v31  ;;  %12285 = vst [vmem:[#allocation232_spill] sm:$0xff] %v9473_v15  ;;  %v9481_v50 = vmul.f32 %v12288_v46, %v12222_v63  ;;  %v9485_v44 = vmul.f32 %v12222_v63, %v12289_v48  ;;  %v12290_v31 = vld [vmem:[#allocation227_spill] sm:$0xff]  ;;  %v12291_v4 = vld [vmem:[#allocation221_spill] sm:$0xff] }
 0x2b1   :  { %12287 = vst [vmem:[#allocation233_spill] sm:$0xff] %v9477_v28  ;;  %v9489_v58 = vmul.f32 %v12222_v63, %v12290_v31  ;;  %v9493_v32 = vmul.f32 %v12291_v4, %v12222_v63  ;;  %v12292_v15 = vld [vmem:[#allocation225_spill] sm:$0xff]  ;;  %v12293_v28 = vld [vmem:[#allocation67_spill] sm:$0xff] }
 0x2b2   :  { %v9497_v45 = vmul.f32 %v12292_v15, %v12222_v63  ;;  %v9501_v46 = vadd.f32 %v9245_v34, %v12293_v28  ;;  %v9505_v48 = vadd.f32 %v9249_v20, %v12293_v28  ;;  %v9509_v31 = vadd.f32 %v9253_v42, %v12293_v28  ;;  %v12304_v63 = vld [vmem:[#allocation5_spill] sm:$0xff] }
 0x2b3   :  { %v9513_v4 = vadd.f32 %v9257_v62, %v12293_v28  ;;  %v9517_v15 = vadd.f32 %v9261_v38, %v12293_v28  ;;  %v9521_v34 = vadd.f32 %v9265_v52, %v12293_v28  ;;  %v9525_v20 = vadd.f32 %v9269_v6, %v12293_v28 }
 0x2b4   :  { %v9529_v42 = vadd.f32 %v9273_v30, %v12293_v28  ;;  %v9533_v62 = vadd.f32 %v9277_v18, %v12293_v28  ;;  %v9537_v38 = vadd.f32 %v9281_v22, %v12293_v28  ;;  %v9541_v52 = vadd.f32 %v9285_v2, %v12293_v28 }
 0x2b5   :  { %v9545_v6 = vadd.f32 %v9289_v10, %v12293_v28  ;;  %v9549_v30 = vadd.f32 %v9293_v5, %v12293_v28  ;;  %v9553_v18 = vadd.f32 %v9297_v21, %v12293_v28  ;;  %v9557_v22 = vadd.f32 %v9301_v24, %v12293_v28 }
 0x2b6   :  { %v9561_v2 = vadd.f32 %v9305_v40, %v12293_v28  ;;  %v9565_v10 = vadd.f32 %v9309_v41, %v12293_v28  ;;  %v9569_v5 = vadd.f32 %v9313_v56, %v12293_v28  ;;  %v9573_v21 = vadd.f32 %v9317_v59, %v12293_v28 }
 0x2b7   :  { %v9577_v24 = vadd.f32 %v9321_v8, %v12293_v28  ;;  %v9581_v40 = vadd.f32 %v9325_v49, %v12293_v28  ;;  %v9585_v41 = vadd.f32 %v9329_v14, %v12293_v28  ;;  %v9589_v56 = vadd.f32 %v9333_v12, %v12293_v28 }
 0x2b8   :  { %v9593_v59 = vadd.f32 %v9337_v53, %v12293_v28  ;;  %v9597_v8 = vadd.f32 %v9341_v37, %v12293_v28  ;;  %v9601_v49 = vadd.f32 %v9345_v3, %v12293_v28  ;;  %v9605_v14 = vadd.f32 %v9349_v60, %v12293_v28 }
 0x2b9   :  { %v9609_v12 = vadd.f32 %v9353_v1, %v12293_v28  ;;  %v9613_v53 = vadd.f32 %v9357_v9, %v12293_v28  ;;  %v9617_v37 = vadd.f32 %v9361_v27, %v12293_v28  ;;  %v9621_v3 = vadd.f32 %v9365_v36, %v12293_v28 }
 0x2ba   :  { %v9625_v60 = vadd.f32 %v9369_v0, %v12293_v28  ;;  %v9629_v1 = vadd.f32 %v9373_v39, %v12293_v28  ;;  %v9633_v9 = vadd.f32 %v9377_v35, %v12293_v28  ;;  %v9637_v27 = vadd.f32 %v9381_v43, %v12293_v28 }
 0x2bb   :  { %v9641_v36 = vadd.f32 %v9385_v57, %v12293_v28  ;;  %v9645_v0 = vadd.f32 %v9389_v7, %v12293_v28  ;;  %v9649_v39 = vadd.f32 %v9393_v51, %v12293_v28  ;;  %v9653_v35 = vadd.f32 %v9397_v11, %v12293_v28 }
 0x2bc   :  { %v9657_v43 = vadd.f32 %v9401_v61, %v12293_v28  ;;  %v9661_v57 = vadd.f32 %v9405_v25, %v12293_v28  ;;  %v9665_v7 = vadd.f32 %v9409_v16, %v12293_v28  ;;  %v9669_v51 = vadd.f32 %v9413_v29, %v12293_v28 }
 0x2bd   :  { %12294 = vst [vmem:[#allocation234_spill] sm:$0xff] %v9649_v39  ;;  %12295 = vst [vmem:[#allocation235_spill] sm:$0xff] %v9653_v35  ;;  %v9673_v11 = vadd.f32 %v9417_v55, %v12293_v28  ;;  %v9677_v61 = vadd.f32 %v9421_v13, %v12293_v28  ;;  %v9681_v25 = vadd.f32 %v9425_v26, %v12293_v28 }
 0x2be   :  { %12296 = vst [vmem:[#allocation236_spill] sm:$0xff] %v9657_v43  ;;  %12297 = vst [vmem:[#allocation237_spill] sm:$0xff] %v9661_v57  ;;  %v9685_v16 = vadd.f32 %v9429_v19, %v12293_v28  ;;  %v9689_v29 = vadd.f32 %v9433_v47, %v12293_v28  ;;  %v9693_v55 = vadd.f32 %v9437_v33, %v12293_v28 }
 0x2bf   :  { %12298 = vst [vmem:[#allocation238_spill] sm:$0xff] %v9665_v7  ;;  %v9697_v13 = vadd.f32 %v9441_v17, %v12293_v28  ;;  %v9701_v26 = vadd.f32 %v9445_v23, %v12293_v28  ;;  %v9705_v19 = vadd.f32 %v9449_v54, %v12293_v28  ;;  %v9709_v47 = vadd.f32 %v12304_v63, %v12293_v28 }
 0x2c0   :  { %12299 = vst [vmem:[#allocation239_spill] sm:$0xff] %v9689_v29  ;;  %12300 = vst [vmem:[#allocation240_spill] sm:$0xff] %v9693_v55  ;;  %v12306_v29 = vld [vmem:[#allocation8_spill] sm:$0xff]  ;;  %v12307_v55 = vld [vmem:[#allocation10_spill] sm:$0xff] }
 0x2c1   :  { %12301 = vst [vmem:[#allocation241_spill] sm:$0xff] %v9697_v13  ;;  %12302 = vst [vmem:[#allocation242_spill] sm:$0xff] %v9701_v26  ;;  %v9713_v33 = vadd.f32 %v12306_v29, %v12293_v28  ;;  %v9717_v17 = vadd.f32 %v12307_v55, %v12293_v28  ;;  %v12309_v13 = vld [vmem:[#allocation230_spill] sm:$0xff]  ;;  %v12310_v26 = vld [vmem:[#allocation231_spill] sm:$0xff]  ;;  %v9737_v55 = vadd.f32 %v9481_v50, %v12293_v28  ;;  %v12339_v50 = vmax.f32 %v9513_v4, 0.0 }
 0x2c2   :  { %12303 = vst [vmem:[#allocation243_spill] sm:$0xff] %v9705_v19  ;;  %12305 = vst [vmem:[#allocation244_spill] sm:$0xff] %v9709_v47  ;;  %v9721_v23 = vadd.f32 %v12309_v13, %v12293_v28  ;;  %v9725_v54 = vadd.f32 %v12310_v26, %v12293_v28  ;;  %v12311_v19 = vld [vmem:[#allocation232_spill] sm:$0xff]  ;;  %v12313_v47 = vld [vmem:[#allocation233_spill] sm:$0xff]  ;;  %v9741_v13 = vadd.f32 %v9485_v44, %v12293_v28  ;;  %v12351_v4 = vmax.f32 %v9529_v42, 0.0 }
 0x2c3   :  { %12308 = vst [vmem:[#allocation245_spill] sm:$0xff] %v9717_v17  ;;  %v9729_v63 = vadd.f32 %v12311_v19, %v12293_v28  ;;  %v9733_v29 = vadd.f32 %v12313_v47, %v12293_v28  ;;  %12315 = vst [vmem:[#allocation248_spill] sm:$0xff] %v9737_v55  ;;  %v9745_v26 = vadd.f32 %v9489_v58, %v12293_v28  ;;  %v12326_v39 = vmov %v9737_v55  ;;  %v12331_v17 = vld [vmem:[#allocation44_spill] sm:$0xff] }
 0x2c4   :  { %12316 = vst [vmem:[#allocation249_spill] sm:$0xff] %v9741_v13  ;;  %v9749_v19 = vadd.f32 %v9493_v32, %v12293_v28  ;;  %v9753_v47 = vadd.f32 %v9497_v45, %v12293_v28  ;;  %v12327_v35 = vmov %v9741_v13  ;;  %v12330_v13 = vmax.f32 %v9501_v46, 0.0  ;;  %v12334_v32 = vld [vmem:[#allocation38_spill] sm:$0xff]  ;;  %v12340_v55 = vld [vmem:[#allocation48_spill] sm:$0xff] }
 0x2c5   :  { %12312 = vst [vmem:[#allocation246_spill] sm:$0xff] %v9729_v63  ;;  %12314 = vst [vmem:[#allocation247_spill] sm:$0xff] %v9733_v29  ;;  %v12325_v28 = vmov %v9733_v29  ;;  %v12328_v43 = vmov %v9745_v26  ;;  %v12336_v45 = vmax.f32 %v9509_v31, 0.0  ;;  %v9837_v57 = vmax.f32 %v12340_v55, %v12339_v50  ;;  %v12343_v44 = vld [vmem:[#allocation52_spill] sm:$0xff] }
 0x2c6   :  { %12317 = vst [vmem:[#allocation250_spill] sm:$0xff] %v9745_v26  ;;  %12318 = vst [vmem:[#allocation251_spill] sm:$0xff] %v9749_v19  ;;  %v9822_v58 = vmax.f32 %v12331_v17, %v12330_v13  ;;  %v12333_v26 = vmax.f32 %v9505_v48, 0.0  ;;  %v12337_v19 = vld [vmem:[#allocation42_spill] sm:$0xff]  ;;  %v12342_v46 = vmax.f32 %v9517_v15, 0.0  ;;  %v12345_v48 = vmax.f32 %v9521_v34, 0.0 }
 0x2c7   :  { %v9832_v29 = vmax.f32 %v12337_v19, %v12336_v45  ;;  %12341 = vst [vmem:[#allocation18_spill] sm:$0xff] %v9837_v57  ;;  %v12346_v13 = vld [vmem:[#allocation46_spill] sm:$0xff]  ;;  %v12348_v31 = vmax.f32 %v9525_v20, 0.0  ;;  %v12352_v45 = vld [vmem:[#allocation56_spill] sm:$0xff]  ;;  %v12354_v15 = vmax.f32 %v9533_v62, 0.0  ;;  %v12357_v34 = vmax.f32 %v9537_v38, 0.0 }
 0x2c8   :  { %12332 = vst [vmem:[#allocation252_spill] sm:$0xff] %v9822_v58  ;;  %v9827_v63 = vmax.f32 %v12334_v32, %v12333_v26  ;;  %v9842_v17 = vmax.f32 %v12343_v44, %v12342_v46  ;;  %v9847_v26 = vmax.f32 %v12346_v13, %v12345_v48  ;;  %v12349_v32 = vld [vmem:[#allocation50_spill] sm:$0xff]  ;;  %v9857_v55 = vmax.f32 %v12352_v45, %v12351_v4  ;;  %v12355_v50 = vld [vmem:[#allocation60_spill] sm:$0xff] }
 0x2c9   :  { %v12324_v7 = vld [vmem:[#allocation244_spill] sm:$0xff]  ;;  %12338 = vst [vmem:[#allocation253_spill] sm:$0xff] %v9832_v29  ;;  %v9852_v19 = vmax.f32 %v12349_v32, %v12348_v31  ;;  %v9862_v44 = vmax.f32 %v12355_v50, %v12354_v15  ;;  %v12358_v46 = vld [vmem:[#allocation54_spill] sm:$0xff]  ;;  %v12360_v20 = vmax.f32 %v9541_v52, 0.0  ;;  %v12363_v42 = vmax.f32 %v9545_v6, 0.0 }
 0x2ca   :  { %12335 = vst [vmem:[#allocation16_spill] sm:$0xff] %v9827_v63  ;;  %12344 = vst [vmem:[#allocation254_spill] sm:$0xff] %v9842_v17  ;;  %v9867_v48 = vmax.f32 %v12358_v46, %v12357_v34  ;;  %v12361_v13 = vld [vmem:[#allocation58_spill] sm:$0xff]  ;;  %v12364_v32 = vld [vmem:[#allocation64_spill] sm:$0xff]  ;;  %v12366_v62 = vmax.f32 %v9549_v30, 0.0  ;;  %v12369_v38 = vmax.f32 %v9553_v18, 0.0 }
 0x2cb   :  { %12347 = vst [vmem:[#allocation15_spill] sm:$0xff] %v9847_v26  ;;  %12350 = vst [vmem:[#allocation255_spill] sm:$0xff] %v9852_v19  ;;  %v9872_v31 = vmax.f32 %v12361_v13, %v12360_v20  ;;  %v9877_v4 = vmax.f32 %v12364_v32, %v12363_v42  ;;  %v12367_v45 = vld [vmem:[#allocation68_spill] sm:$0xff]  ;;  %v12370_v50 = vld [vmem:[#allocation62_spill] sm:$0xff]  ;;  %v12372_v52 = vmax.f32 %v9557_v22, 0.0  ;;  %v12375_v6 = vmax.f32 %v9561_v2, 0.0 }
 0x2cc   :  { %12353 = vst [vmem:[#allocation17_spill] sm:$0xff] %v9857_v55  ;;  %12356 = vst [vmem:[#allocation256_spill] sm:$0xff] %v9862_v44  ;;  %v9882_v15 = vmax.f32 %v12367_v45, %v12366_v62  ;;  %v9887_v34 = vmax.f32 %v12370_v50, %v12369_v38  ;;  %v12373_v46 = vld [vmem:[#allocation66_spill] sm:$0xff]  ;;  %v12376_v13 = vld [vmem:[#allocation72_spill] sm:$0xff]  ;;  %v12378_v30 = vmax.f32 %v9565_v10, 0.0  ;;  %v12381_v18 = vmax.f32 %v9569_v5, 0.0 }
 0x2cd   :  { %12359 = vst [vmem:[#allocation20_spill] sm:$0xff] %v9867_v48  ;;  %12362 = vst [vmem:[#allocation257_spill] sm:$0xff] %v9872_v31  ;;  %v9892_v20 = vmax.f32 %v12373_v46, %v12372_v52  ;;  %v9897_v42 = vmax.f32 %v12376_v13, %v12375_v6  ;;  %v12379_v32 = vld [vmem:[#allocation76_spill] sm:$0xff]  ;;  %v12382_v45 = vld [vmem:[#allocation70_spill] sm:$0xff]  ;;  %v12384_v22 = vmax.f32 %v9573_v21, 0.0  ;;  %v12387_v2 = vmax.f32 %v9577_v24, 0.0 }
 0x2ce   :  { %12365 = vst [vmem:[#allocation258_spill] sm:$0xff] %v9877_v4  ;;  %12368 = vst [vmem:[#allocation22_spill] sm:$0xff] %v9882_v15  ;;  %v9902_v62 = vmax.f32 %v12379_v32, %v12378_v30  ;;  %v9907_v38 = vmax.f32 %v12382_v45, %v12381_v18  ;;  %v12385_v50 = vld [vmem:[#allocation74_spill] sm:$0xff]  ;;  %v12388_v46 = vld [vmem:[#allocation80_spill] sm:$0xff]  ;;  %v12390_v10 = vmax.f32 %v9581_v40, 0.0  ;;  %v12393_v5 = vmax.f32 %v9585_v41, 0.0 }
 0x2cf   :  { %12371 = vst [vmem:[#allocation259_spill] sm:$0xff] %v9887_v34  ;;  %12374 = vst [vmem:[#allocation19_spill] sm:$0xff] %v9892_v20  ;;  %v9912_v52 = vmax.f32 %v12385_v50, %v12384_v22  ;;  %v9917_v6 = vmax.f32 %v12388_v46, %v12387_v2  ;;  %v12391_v13 = vld [vmem:[#allocation84_spill] sm:$0xff]  ;;  %v12394_v32 = vld [vmem:[#allocation78_spill] sm:$0xff]  ;;  %v12396_v21 = vmax.f32 %v9589_v56, 0.0  ;;  %v12399_v24 = vmax.f32 %v9593_v59, 0.0 }
 0x2d0   :  { %12377 = vst [vmem:[#allocation260_spill] sm:$0xff] %v9897_v42  ;;  %12380 = vst [vmem:[#allocation21_spill] sm:$0xff] %v9902_v62  ;;  %v9922_v30 = vmax.f32 %v12391_v13, %v12390_v10  ;;  %v9927_v18 = vmax.f32 %v12394_v32, %v12393_v5  ;;  %v12397_v45 = vld [vmem:[#allocation82_spill] sm:$0xff]  ;;  %v12400_v50 = vld [vmem:[#allocation88_spill] sm:$0xff]  ;;  %v12402_v40 = vmax.f32 %v9597_v8, 0.0  ;;  %v12405_v41 = vmax.f32 %v9601_v49, 0.0 }
 0x2d1   :  { %12383 = vst [vmem:[#allocation31_spill] sm:$0xff] %v9907_v38  ;;  %12386 = vst [vmem:[#allocation24_spill] sm:$0xff] %v9912_v52  ;;  %v9932_v22 = vmax.f32 %v12397_v45, %v12396_v21  ;;  %v9937_v2 = vmax.f32 %v12400_v50, %v12399_v24  ;;  %v12403_v46 = vld [vmem:[#allocation92_spill] sm:$0xff]  ;;  %v12406_v13 = vld [vmem:[#allocation86_spill] sm:$0xff]  ;;  %v12408_v56 = vmax.f32 %v9605_v14, 0.0  ;;  %v12411_v59 = vmax.f32 %v9609_v12, 0.0 }
 0x2d2   :  { %12389 = vst [vmem:[#allocation34_spill] sm:$0xff] %v9917_v6  ;;  %12392 = vst [vmem:[#allocation26_spill] sm:$0xff] %v9922_v30  ;;  %v9942_v10 = vmax.f32 %v12403_v46, %v12402_v40  ;;  %v9947_v5 = vmax.f32 %v12406_v13, %v12405_v41  ;;  %v12409_v32 = vld [vmem:[#allocation90_spill] sm:$0xff]  ;;  %v12412_v45 = vld [vmem:[#allocation96_spill] sm:$0xff]  ;;  %v12414_v8 = vmax.f32 %v9613_v53, 0.0  ;;  %v12417_v49 = vmax.f32 %v9617_v37, 0.0 }
 0x2d3   :  { %12395 = vst [vmem:[#allocation39_spill] sm:$0xff] %v9927_v18  ;;  %12398 = vst [vmem:[#allocation43_spill] sm:$0xff] %v9932_v22  ;;  %v9952_v21 = vmax.f32 %v12409_v32, %v12408_v56  ;;  %v9957_v24 = vmax.f32 %v12412_v45, %v12411_v59  ;;  %v12415_v50 = vld [vmem:[#allocation100_spill] sm:$0xff]  ;;  %v12418_v46 = vld [vmem:[#allocation94_spill] sm:$0xff]  ;;  %v12420_v14 = vmax.f32 %v9621_v3, 0.0  ;;  %v12423_v12 = vmax.f32 %v9625_v60, 0.0 }
 0x2d4   :  { %12401 = vst [vmem:[#allocation37_spill] sm:$0xff] %v9937_v2  ;;  %12404 = vst [vmem:[#allocation28_spill] sm:$0xff] %v9942_v10  ;;  %v9962_v40 = vmax.f32 %v12415_v50, %v12414_v8  ;;  %v9967_v41 = vmax.f32 %v12418_v46, %v12417_v49  ;;  %v12421_v13 = vld [vmem:[#allocation98_spill] sm:$0xff]  ;;  %v12424_v32 = vld [vmem:[#allocation61_spill] sm:$0xff]  ;;  %v12426_v53 = vmax.f32 %v9629_v1, 0.0  ;;  %v12429_v37 = vmax.f32 %v9633_v9, 0.0 }
 0x2d5   :  { %12407 = vst [vmem:[#allocation41_spill] sm:$0xff] %v9947_v5  ;;  %12410 = vst [vmem:[#allocation30_spill] sm:$0xff] %v9952_v21  ;;  %v9972_v56 = vmax.f32 %v12421_v13, %v12420_v14  ;;  %v9977_v59 = vmax.f32 %v12424_v32, %v12423_v12  ;;  %v12427_v45 = vld [vmem:[#allocation65_spill] sm:$0xff]  ;;  %v12430_v50 = vld [vmem:[#allocation71_spill] sm:$0xff]  ;;  %v12432_v3 = vmax.f32 %v9637_v27, 0.0  ;;  %v12435_v60 = vmax.f32 %v9641_v36, 0.0 }
 0x2d6   :  { %12413 = vst [vmem:[#allocation47_spill] sm:$0xff] %v9957_v24  ;;  %12416 = vst [vmem:[#allocation51_spill] sm:$0xff] %v9962_v40  ;;  %v9982_v8 = vmax.f32 %v12427_v45, %v12426_v53  ;;  %v9987_v49 = vmax.f32 %v12430_v50, %v12429_v37  ;;  %v12433_v46 = vld [vmem:[#allocation75_spill] sm:$0xff]  ;;  %v12436_v13 = vld [vmem:[#allocation69_spill] sm:$0xff]  ;;  %v12438_v1 = vmax.f32 %v9645_v0, 0.0 }
 0x2d7   :  { %12419 = vst [vmem:[#allocation45_spill] sm:$0xff] %v9967_v41  ;;  %12422 = vst [vmem:[#allocation29_spill] sm:$0xff] %v9972_v56  ;;  %v9992_v14 = vmax.f32 %v12433_v46, %v12432_v3  ;;  %v9997_v12 = vmax.f32 %v12436_v13, %v12435_v60  ;;  %v12439_v32 = vld [vmem:[#allocation73_spill] sm:$0xff]  ;;  %v12441_v45 = vld [vmem:[#allocation234_spill] sm:$0xff] }
 0x2d8   :  { %12425 = vst [vmem:[#allocation49_spill] sm:$0xff] %v9977_v59  ;;  %12428 = vst [vmem:[#allocation55_spill] sm:$0xff] %v9982_v8  ;;  %v10002_v53 = vmax.f32 %v12439_v32, %v12438_v1  ;;  %v12442_v9 = vmax.f32 %v12441_v45, 0.0  ;;  %v12443_v8 = vld [vmem:[#allocation7_spill] sm:$0xff]  ;;  %v12449_v46 = vld [vmem:[#allocation236_spill] sm:$0xff] }
 0x2d9   :  { %12431 = vst [vmem:[#allocation59_spill] sm:$0xff] %v9987_v49  ;;  %12434 = vst [vmem:[#allocation32_spill] sm:$0xff] %v9992_v14  ;;  %v12445_v50 = vld [vmem:[#allocation235_spill] sm:$0xff]  ;;  %v12447_v49 = vld [vmem:[#allocation9_spill] sm:$0xff]  ;;  %v12450_v36 = vmax.f32 %v12449_v46, 0.0 }
 0x2da   :  { %12437 = vst [vmem:[#allocation53_spill] sm:$0xff] %v9997_v12  ;;  %12440 = vst [vmem:[#allocation57_spill] sm:$0xff] %v10002_v53  ;;  %v10007_v37 = vmax.f32 %v12443_v8, %v12442_v9  ;;  %v12446_v27 = vmax.f32 %v12445_v50, 0.0  ;;  %v12451_v14 = vld [vmem:[#allocation12_spill] sm:$0xff]  ;;  %v12453_v13 = vld [vmem:[#allocation237_spill] sm:$0xff]  ;;  %v12461_v9 = vmax.f32 %v9669_v51, 0.0 }
 0x2db   :  { %v10017_v60 = vmax.f32 %v12451_v14, %v12450_v36  ;;  %v12454_v0 = vmax.f32 %v12453_v13, 0.0  ;;  %v12455_v12 = vld [vmem:[#allocation14_spill] sm:$0xff]  ;;  %v12459_v53 = vld [vmem:[#allocation11_spill] sm:$0xff]  ;;  %v12462_v50 = vld [vmem:[#allocation13_spill] sm:$0xff]  ;;  %v12467_v36 = vmax.f32 %v9677_v61, 0.0  ;;  %v12473_v51 = vmax.f32 %v9685_v16, 0.0 }
 0x2dc   :  { %12444 = vst [vmem:[#allocation40_spill] sm:$0xff] %v10007_v37  ;;  %v10012_v3 = vmax.f32 %v12447_v49, %v12446_v27  ;;  %v12457_v32 = vld [vmem:[#allocation238_spill] sm:$0xff]  ;;  %v10032_v49 = vmax.f32 %v12462_v50, %v12461_v9  ;;  %v12464_v27 = vmax.f32 %v9673_v11, 0.0  ;;  %v12465_v46 = vld [vmem:[#allocation23_spill] sm:$0xff]  ;;  %v12468_v13 = vld [vmem:[#allocation25_spill] sm:$0xff] }
 0x2dd   :  { %12452 = vst [vmem:[#allocation103_spill] sm:$0xff] %v10017_v60  ;;  %v10022_v1 = vmax.f32 %v12455_v12, %v12454_v0  ;;  %v12458_v45 = vmax.f32 %v12457_v32, 0.0  ;;  %v10042_v12 = vmax.f32 %v12468_v13, %v12467_v36  ;;  %v12470_v0 = vmax.f32 %v9681_v25, 0.0  ;;  %v12471_v32 = vld [vmem:[#allocation27_spill] sm:$0xff]  ;;  %v12484_v13 = vld [vmem:[#allocation241_spill] sm:$0xff]  ;;  %v12559_v60 = vld [vmem:[#allocation146_spill] sm:$0xff] }
 0x2de   :  { %12448 = vst [vmem:[#allocation63_spill] sm:$0xff] %v10012_v3  ;;  %12463 = vst [vmem:[#allocation105_spill] sm:$0xff] %v10032_v49  ;;  %v10037_v14 = vmax.f32 %v12465_v46, %v12464_v27  ;;  %v12476_v50 = vld [vmem:[#allocation239_spill] sm:$0xff]  ;;  %v12478_v49 = vld [vmem:[#allocation36_spill] sm:$0xff]  ;;  %v12485_v25 = vmax.f32 %v12484_v13, 0.0 }
 0x2df   :  { %12456 = vst [vmem:[#allocation107_spill] sm:$0xff] %v10022_v1  ;;  %v10027_v8 = vmax.f32 %v12459_v53, %v12458_v45  ;;  %12469 = vst [vmem:[#allocation115_spill] sm:$0xff] %v10042_v12  ;;  %v10047_v53 = vmax.f32 %v12471_v32, %v12470_v0  ;;  %v12474_v45 = vld [vmem:[#allocation33_spill] sm:$0xff]  ;;  %v12477_v11 = vmax.f32 %v12476_v50, 0.0  ;;  %v12480_v46 = vld [vmem:[#allocation240_spill] sm:$0xff] }
 0x2e0   :  { %12466 = vst [vmem:[#allocation111_spill] sm:$0xff] %v10037_v14  ;;  %v10052_v9 = vmax.f32 %v12474_v45, %v12473_v51  ;;  %v12481_v61 = vmax.f32 %v12480_v46, 0.0  ;;  %v12482_v14 = vld [vmem:[#allocation35_spill] sm:$0xff]  ;;  %v12488_v32 = vld [vmem:[#allocation242_spill] sm:$0xff]  ;;  %v12497_v46 = vld [vmem:[#allocation81_spill] sm:$0xff] }
 0x2e1   :  { %12460 = vst [vmem:[#allocation101_spill] sm:$0xff] %v10027_v8  ;;  %12472 = vst [vmem:[#allocation109_spill] sm:$0xff] %v10047_v53  ;;  %v10057_v27 = vmax.f32 %v12478_v49, %v12477_v11  ;;  %v12486_v12 = vld [vmem:[#allocation79_spill] sm:$0xff]  ;;  %v12489_v16 = vmax.f32 %v12488_v32, 0.0  ;;  %v12496_v11 = vmax.f32 %v12324_v7, 0.0  ;;  %v12509_v7 = vmax.f32 %v9725_v54, 0.0 }
 0x2e2   :  { %12475 = vst [vmem:[#allocation113_spill] sm:$0xff] %v10052_v9  ;;  %v10062_v36 = vmax.f32 %v12482_v14, %v12481_v61  ;;  %v10067_v0 = vmax.f32 %v12486_v12, %v12485_v25  ;;  %v12490_v53 = vld [vmem:[#allocation83_spill] sm:$0xff]  ;;  %v12494_v9 = vld [vmem:[#allocation77_spill] sm:$0xff]  ;;  %v12499_v61 = vmax.f32 %v9713_v33, 0.0  ;;  %v12522_v54 = vmax.f32 %v12327_v35, 0.0  ;;  %v12557_v8 = vld [vmem:[#allocation148_spill] sm:$0xff] }
 0x2e3   :  { %12479 = vst [vmem:[#allocation119_spill] sm:$0xff] %v10057_v27  ;;  %v10072_v51 = vmax.f32 %v12490_v53, %v12489_v16  ;;  %v12492_v45 = vld [vmem:[#allocation243_spill] sm:$0xff]  ;;  %v10082_v14 = vmax.f32 %v12497_v46, %v12496_v11  ;;  %v12502_v25 = vld [vmem:[#allocation245_spill] sm:$0xff]  ;;  %v12506_v16 = vmax.f32 %v9721_v23, 0.0  ;;  %v12512_v46 = vld [vmem:[#allocation246_spill] sm:$0xff]  ;;  %v12519_v23 = vmax.f32 %v12326_v39, 0.0 }
 0x2e4   :  { %12483 = vst [vmem:[#allocation123_spill] sm:$0xff] %v10062_v36  ;;  %12487 = vst [vmem:[#allocation117_spill] sm:$0xff] %v10067_v0  ;;  %v12493_v50 = vmax.f32 %v12492_v45, 0.0  ;;  %v12500_v13 = vld [vmem:[#allocation87_spill] sm:$0xff]  ;;  %v12503_v32 = vmax.f32 %v12502_v25, 0.0  ;;  %v12507_v45 = vld [vmem:[#allocation85_spill] sm:$0xff] }
 0x2e5   :  { %12491 = vst [vmem:[#allocation121_spill] sm:$0xff] %v10072_v51  ;;  %12498 = vst [vmem:[#allocation131_spill] sm:$0xff] %v10082_v14  ;;  %v10087_v12 = vmax.f32 %v12500_v13, %v12499_v61  ;;  %v12504_v0 = vld [vmem:[#allocation91_spill] sm:$0xff]  ;;  %v12513_v33 = vmax.f32 %v12512_v46, 0.0  ;;  %v12516_v13 = vmax.f32 %v12325_v28, 0.0  ;;  %v12526_v46 = vld [vmem:[#allocation4_spill] sm:$0xff] }
 0x2e6   :  { %v10077_v49 = vmax.f32 %v12494_v9, %v12493_v50  ;;  %v10092_v53 = vmax.f32 %v12504_v0, %v12503_v32  ;;  %v10097_v9 = vmax.f32 %v12507_v45, %v12506_v16  ;;  %v12510_v50 = vld [vmem:[#allocation89_spill] sm:$0xff]  ;;  %v12514_v14 = vld [vmem:[#allocation95_spill] sm:$0xff]  ;;  %v12532_v39 = vmax.f32 %v9753_v47, 0.0  ;;  %v12540_v47 = vld [vmem:[#allocation112_spill] sm:$0xff] }
 0x2e7   :  { %12501 = vst [vmem:[#allocation125_spill] sm:$0xff] %v10087_v12  ;;  %v10102_v11 = vmax.f32 %v12510_v50, %v12509_v7  ;;  %v10107_v61 = vmax.f32 %v12514_v14, %v12513_v33  ;;  %v12517_v25 = vld [vmem:[#allocation99_spill] sm:$0xff]  ;;  %v12520_v32 = vld [vmem:[#allocation93_spill] sm:$0xff]  ;;  %v12525_v50 = vmax.f32 %v12328_v43, 0.0  ;;  %v12552_v12 = vld [vmem:[#allocation136_spill] sm:$0xff] }
 0x2e8   :  { %12495 = vst [vmem:[#allocation127_spill] sm:$0xff] %v10077_v49  ;;  %12505 = vst [vmem:[#allocation129_spill] sm:$0xff] %v10092_v53  ;;  %v10112_v0 = vmax.f32 %v12517_v25, %v12516_v13  ;;  %v10117_v16 = vmax.f32 %v12520_v32, %v12519_v23  ;;  %v12523_v45 = vld [vmem:[#allocation97_spill] sm:$0xff]  ;;  %v12528_v33 = vld [vmem:[#allocation251_spill] sm:$0xff] }
 0x2e9   :  { %12508 = vst [vmem:[#allocation135_spill] sm:$0xff] %v10097_v9  ;;  %12511 = vst [vmem:[#allocation139_spill] sm:$0xff] %v10102_v11  ;;  %v10122_v7 = vmax.f32 %v12523_v45, %v12522_v54  ;;  %v10127_v14 = vmax.f32 %v12526_v46, %v12525_v50  ;;  %v12529_v28 = vmax.f32 %v12528_v33, 0.0  ;;  %v12533_v25 = vld [vmem:[#allocation3_spill] sm:$0xff]  ;;  %v12535_v32 = vld [vmem:[#allocation104_spill] sm:$0xff] }
 0x2ea   :  { %12515 = vst [vmem:[#allocation133_spill] sm:$0xff] %v10107_v61  ;;  %12518 = vst [vmem:[#allocation137_spill] sm:$0xff] %v10112_v0  ;;  %v12530_v61 = vld [vmem:[#allocation6_spill] sm:$0xff]  ;;  %v10137_v23 = vmax.f32 %v12533_v25, %v12532_v39  ;;  %v12536_v35 = vld [vmem:[#allocation229_spill] sm:$0xff] }
 0x2eb   :  { %12521 = vst [vmem:[#allocation143_spill] sm:$0xff] %v10117_v16  ;;  %12524 = vst [vmem:[#allocation147_spill] sm:$0xff] %v10122_v7  ;;  %v10132_v13 = vmax.f32 %v12530_v61, %v12529_v28  ;;  %v10141_v16 = vmul.f32 %v12536_v35, %v12535_v32  ;;  %v12537_v54 = vld [vmem:[#allocation108_spill] sm:$0xff]  ;;  %v12538_v45 = vld [vmem:[#allocation102_spill] sm:$0xff]  ;;  %v10157_v33 = vmul.f32 %v12536_v35, %v12540_v47 }
 0x2ec   :  { %12527 = vst [vmem:[#allocation141_spill] sm:$0xff] %v10127_v14  ;;  %12534 = vst [vmem:[#allocation151_spill] sm:$0xff] %v10137_v23  ;;  %v10145_v43 = vmul.f32 %v12536_v35, %v12537_v54  ;;  %v10149_v50 = vmul.f32 %v12538_v45, %v12536_v35  ;;  %v12539_v61 = vld [vmem:[#allocation106_spill] sm:$0xff]  ;;  %v12541_v28 = vld [vmem:[#allocation116_spill] sm:$0xff] }
 0x2ed   :  { %12531 = vst [vmem:[#allocation145_spill] sm:$0xff] %v10132_v13  ;;  %v10153_v46 = vmul.f32 %v12539_v61, %v12536_v35  ;;  %v10161_v39 = vmul.f32 %v12536_v35, %v12541_v28  ;;  %v12542_v25 = vld [vmem:[#allocation110_spill] sm:$0xff]  ;;  %v12544_v23 = vld [vmem:[#allocation120_spill] sm:$0xff] }
 0x2ee   :  { %v10165_v32 = vmul.f32 %v12542_v25, %v12536_v35  ;;  %v12543_v54 = vld [vmem:[#allocation114_spill] sm:$0xff]  ;;  %v10173_v61 = vmul.f32 %v12536_v35, %v12544_v23  ;;  %v12545_v13 = vld [vmem:[#allocation124_spill] sm:$0xff] }
 0x2ef   :  { %v10169_v45 = vmul.f32 %v12543_v54, %v12536_v35  ;;  %v10177_v47 = vmul.f32 %v12536_v35, %v12545_v13  ;;  %v12546_v14 = vld [vmem:[#allocation118_spill] sm:$0xff]  ;;  %v12548_v0 = vld [vmem:[#allocation128_spill] sm:$0xff] }
 0x2f0   :  { %v10181_v28 = vmul.f32 %v12546_v14, %v12536_v35  ;;  %v12547_v7 = vld [vmem:[#allocation122_spill] sm:$0xff]  ;;  %v10189_v54 = vmul.f32 %v12536_v35, %v12548_v0  ;;  %v12549_v11 = vld [vmem:[#allocation132_spill] sm:$0xff] }
 0x2f1   :  { %v10185_v25 = vmul.f32 %v12547_v7, %v12536_v35  ;;  %v10193_v23 = vmul.f32 %v12536_v35, %v12549_v11  ;;  %v12550_v9 = vld [vmem:[#allocation126_spill] sm:$0xff]  ;;  %v10205_v7 = vmul.f32 %v12536_v35, %v12552_v12  ;;  %v12553_v49 = vld [vmem:[#allocation140_spill] sm:$0xff]  ;;  %v10225_v12 = vmul.f32 %v12536_v35, %v12557_v8 }
 0x2f2   :  { %v10197_v13 = vmul.f32 %v12550_v9, %v12536_v35  ;;  %v12551_v53 = vld [vmem:[#allocation130_spill] sm:$0xff]  ;;  %v10209_v0 = vmul.f32 %v12536_v35, %v12553_v49  ;;  %v12556_v27 = vld [vmem:[#allocation144_spill] sm:$0xff] }
 0x2f3   :  { %v10201_v14 = vmul.f32 %v12551_v53, %v12536_v35  ;;  %v12554_v51 = vld [vmem:[#allocation134_spill] sm:$0xff]  ;;  %v10221_v53 = vmul.f32 %v12536_v35, %v12556_v27  ;;  %v12560_v3 = vld [vmem:[#allocation152_spill] sm:$0xff] }
 0x2f4   :  { %v10213_v11 = vmul.f32 %v12554_v51, %v12536_v35  ;;  %v12555_v36 = vld [vmem:[#allocation138_spill] sm:$0xff]  ;;  %v10233_v51 = vmul.f32 %v12559_v60, %v12536_v35  ;;  %v12561_v37 = vld [vmem:[#allocation156_spill] sm:$0xff] }
 0x2f5   :  { %v10217_v9 = vmul.f32 %v12555_v36, %v12536_v35  ;;  %v12558_v1 = vld [vmem:[#allocation142_spill] sm:$0xff]  ;;  %v10237_v36 = vmul.f32 %v12536_v35, %v12560_v3  ;;  %v10241_v27 = vmul.f32 %v12536_v35, %v12561_v37  ;;  %v12564_v41 = vld [vmem:[#allocation160_spill] sm:$0xff] }
 0x2f6   :  { %v10229_v49 = vmul.f32 %v12558_v1, %v12536_v35  ;;  %v12562_v59 = vld [vmem:[#allocation150_spill] sm:$0xff]  ;;  %v10253_v60 = vmul.f32 %v12536_v35, %v12564_v41  ;;  %v12565_v40 = vld [vmem:[#allocation164_spill] sm:$0xff] }
 0x2f7   :  { %v10245_v8 = vmul.f32 %v12562_v59, %v12536_v35  ;;  %v12563_v56 = vld [vmem:[#allocation154_spill] sm:$0xff]  ;;  %v10257_v3 = vmul.f32 %v12536_v35, %v12565_v40  ;;  %v12568_v5 = vld [vmem:[#allocation168_spill] sm:$0xff] }
 0x2f8   :  { %v10249_v1 = vmul.f32 %v12563_v56, %v12536_v35  ;;  %v12566_v24 = vld [vmem:[#allocation158_spill] sm:$0xff]  ;;  %v10269_v56 = vmul.f32 %v12536_v35, %v12568_v5  ;;  %v12569_v10 = vld [vmem:[#allocation172_spill] sm:$0xff] }
 0x2f9   :  { %v10261_v37 = vmul.f32 %v12566_v24, %v12536_v35  ;;  %v12567_v21 = vld [vmem:[#allocation162_spill] sm:$0xff]  ;;  %v10273_v41 = vmul.f32 %v12536_v35, %v12569_v10  ;;  %v12572_v18 = vld [vmem:[#allocation176_spill] sm:$0xff] }
 0x2fa   :  { %v10265_v59 = vmul.f32 %v12567_v21, %v12536_v35  ;;  %v12570_v2 = vld [vmem:[#allocation166_spill] sm:$0xff]  ;;  %v10285_v21 = vmul.f32 %v12536_v35, %v12572_v18  ;;  %v12573_v30 = vld [vmem:[#allocation180_spill] sm:$0xff] }
 0x2fb   :  { %v10277_v40 = vmul.f32 %v12570_v2, %v12536_v35  ;;  %v12571_v22 = vld [vmem:[#allocation170_spill] sm:$0xff]  ;;  %v10289_v5 = vmul.f32 %v12536_v35, %v12573_v30  ;;  %v12576_v38 = vld [vmem:[#allocation184_spill] sm:$0xff] }
 0x2fc   :  { %v10281_v24 = vmul.f32 %v12571_v22, %v12536_v35  ;;  %v12574_v6 = vld [vmem:[#allocation174_spill] sm:$0xff]  ;;  %v10301_v22 = vmul.f32 %v12536_v35, %v12576_v38  ;;  %v12577_v62 = vld [vmem:[#allocation188_spill] sm:$0xff] }
 0x2fd   :  { %v10293_v10 = vmul.f32 %v12574_v6, %v12536_v35  ;;  %v12575_v52 = vld [vmem:[#allocation178_spill] sm:$0xff]  ;;  %v10305_v18 = vmul.f32 %v12536_v35, %v12577_v62  ;;  %v12580_v34 = vld [vmem:[#allocation192_spill] sm:$0xff] }
 0x2fe   :  { %v10297_v2 = vmul.f32 %v12575_v52, %v12536_v35  ;;  %v12578_v42 = vld [vmem:[#allocation182_spill] sm:$0xff]  ;;  %v10317_v52 = vmul.f32 %v12536_v35, %v12580_v34  ;;  %v12581_v15 = vld [vmem:[#allocation196_spill] sm:$0xff] }
 0x2ff   :  { %v10309_v30 = vmul.f32 %v12578_v42, %v12536_v35  ;;  %v12579_v20 = vld [vmem:[#allocation186_spill] sm:$0xff]  ;;  %v10321_v38 = vmul.f32 %v12536_v35, %v12581_v15  ;;  %v12584_v48 = vld [vmem:[#allocation200_spill] sm:$0xff] }
 0x300   :  { %v10313_v6 = vmul.f32 %v12579_v20, %v12536_v35  ;;  %v12582_v4 = vld [vmem:[#allocation190_spill] sm:$0xff]  ;;  %v10333_v20 = vmul.f32 %v12536_v35, %v12584_v48  ;;  %v12585_v44 = vld [vmem:[#allocation204_spill] sm:$0xff] }
 0x301   :  { %v10325_v62 = vmul.f32 %v12582_v4, %v12536_v35  ;;  %v12583_v31 = vld [vmem:[#allocation194_spill] sm:$0xff]  ;;  %v10337_v34 = vmul.f32 %v12536_v35, %v12585_v44  ;;  %v12588_v26 = vld [vmem:[#allocation208_spill] sm:$0xff] }
 0x302   :  { %v10329_v42 = vmul.f32 %v12583_v31, %v12536_v35  ;;  %v12586_v55 = vld [vmem:[#allocation198_spill] sm:$0xff]  ;;  %v10349_v31 = vmul.f32 %v12536_v35, %v12588_v26  ;;  %v12590_v17 = vld [vmem:[#allocation212_spill] sm:$0xff] }
 0x303   :  { %v10341_v15 = vmul.f32 %v12586_v55, %v12536_v35  ;;  %v12587_v19 = vld [vmem:[#allocation202_spill] sm:$0xff]  ;;  %v10353_v48 = vmul.f32 %v12536_v35, %v12590_v17  ;;  %v12596_v63 = vld [vmem:[#allocation216_spill] sm:$0xff] }
 0x304   :  { %v10345_v4 = vmul.f32 %v12587_v19, %v12536_v35  ;;  %12589 = vst [vmem:[#allocation155_spill] sm:$0xff] %v10349_v31  ;;  %v12592_v57 = vld [vmem:[#allocation206_spill] sm:$0xff]  ;;  %v10365_v19 = vmul.f32 %v12536_v35, %v12596_v63  ;;  %v12598_v58 = vld [vmem:[#allocation220_spill] sm:$0xff] }
 0x305   :  { %12591 = vst [vmem:[#allocation149_spill] sm:$0xff] %v10353_v48  ;;  %v10357_v44 = vmul.f32 %v12592_v57, %v12536_v35  ;;  %v12594_v29 = vld [vmem:[#allocation210_spill] sm:$0xff]  ;;  %v10369_v26 = vmul.f32 %v12536_v35, %v12598_v58 }
 0x306   :  { %v10361_v55 = vmul.f32 %v12594_v29, %v12536_v35  ;;  %12597 = vst [vmem:[#allocation163_spill] sm:$0xff] %v10365_v19  ;;  %v12600_v31 = vld [vmem:[#allocation214_spill] sm:$0xff] }
 0x307   :  { %12593 = vst [vmem:[#allocation153_spill] sm:$0xff] %v10357_v44  ;;  %12599 = vst [vmem:[#allocation157_spill] sm:$0xff] %v10369_v26  ;;  %v10373_v17 = vmul.f32 %v12600_v31, %v12536_v35  ;;  %v12602_v48 = vld [vmem:[#allocation218_spill] sm:$0xff]  ;;  %v12603_v44 = vld [vmem:[#allocation224_spill] sm:$0xff] }
 0x308   :  { %12595 = vst [vmem:[#allocation159_spill] sm:$0xff] %v10361_v55  ;;  %v10377_v57 = vmul.f32 %v12602_v48, %v12536_v35  ;;  %v10381_v29 = vmul.f32 %v12536_v35, %v12603_v44  ;;  %v12604_v55 = vld [vmem:[#allocation228_spill] sm:$0xff]  ;;  %v12605_v19 = vld [vmem:[#allocation222_spill] sm:$0xff] }
 0x309   :  { %12601 = vst [vmem:[#allocation161_spill] sm:$0xff] %v10373_v17  ;;  %v10385_v63 = vmul.f32 %v12536_v35, %v12604_v55  ;;  %v10389_v58 = vmul.f32 %v12605_v19, %v12536_v35  ;;  %v12606_v26 = vld [vmem:[#allocation226_spill] sm:$0xff]  ;;  %v12607_v17 = vld [vmem:[#allocation67_spill] sm:$0xff] }
 0x30a   :  { %v10393_v31 = vmul.f32 %v12606_v26, %v12536_v35  ;;  %v10397_v48 = vadd.f32 %v10141_v16, %v12607_v17  ;;  %v10401_v44 = vadd.f32 %v10145_v43, %v12607_v17  ;;  %v10405_v55 = vadd.f32 %v10149_v50, %v12607_v17 }
 0x30b   :  { %v10409_v19 = vadd.f32 %v10153_v46, %v12607_v17  ;;  %v10413_v35 = vadd.f32 %v10157_v33, %v12607_v17  ;;  %v10417_v16 = vadd.f32 %v10161_v39, %v12607_v17  ;;  %v10421_v43 = vadd.f32 %v10165_v32, %v12607_v17  ;;  %v12618_v26 = vld [vmem:[#allocation155_spill] sm:$0xff] }
 0x30c   :  { %v10425_v50 = vadd.f32 %v10169_v45, %v12607_v17  ;;  %v10429_v46 = vadd.f32 %v10173_v61, %v12607_v17  ;;  %v10433_v33 = vadd.f32 %v10177_v47, %v12607_v17  ;;  %v10437_v39 = vadd.f32 %v10181_v28, %v12607_v17 }
 0x30d   :  { %v10441_v32 = vadd.f32 %v10185_v25, %v12607_v17  ;;  %v10445_v45 = vadd.f32 %v10189_v54, %v12607_v17  ;;  %v10449_v61 = vadd.f32 %v10193_v23, %v12607_v17  ;;  %v10453_v47 = vadd.f32 %v10197_v13, %v12607_v17 }
 0x30e   :  { %v10457_v28 = vadd.f32 %v10201_v14, %v12607_v17  ;;  %v10461_v25 = vadd.f32 %v10205_v7, %v12607_v17  ;;  %v10465_v54 = vadd.f32 %v10209_v0, %v12607_v17  ;;  %v10469_v23 = vadd.f32 %v10213_v11, %v12607_v17 }
 0x30f   :  { %v10473_v13 = vadd.f32 %v10217_v9, %v12607_v17  ;;  %v10477_v14 = vadd.f32 %v10221_v53, %v12607_v17  ;;  %v10481_v7 = vadd.f32 %v10225_v12, %v12607_v17  ;;  %v10485_v0 = vadd.f32 %v10229_v49, %v12607_v17 }
 0x310   :  { %v10489_v11 = vadd.f32 %v10233_v51, %v12607_v17  ;;  %v10493_v9 = vadd.f32 %v10237_v36, %v12607_v17  ;;  %v10497_v53 = vadd.f32 %v10241_v27, %v12607_v17  ;;  %v10501_v12 = vadd.f32 %v10245_v8, %v12607_v17 }
 0x311   :  { %v10505_v49 = vadd.f32 %v10249_v1, %v12607_v17  ;;  %v10509_v51 = vadd.f32 %v10253_v60, %v12607_v17  ;;  %v10513_v36 = vadd.f32 %v10257_v3, %v12607_v17  ;;  %v10517_v27 = vadd.f32 %v10261_v37, %v12607_v17 }
 0x312   :  { %v10521_v8 = vadd.f32 %v10265_v59, %v12607_v17  ;;  %v10525_v1 = vadd.f32 %v10269_v56, %v12607_v17  ;;  %v10529_v60 = vadd.f32 %v10273_v41, %v12607_v17  ;;  %v10533_v3 = vadd.f32 %v10277_v40, %v12607_v17 }
 0x313   :  { %v10537_v37 = vadd.f32 %v10281_v24, %v12607_v17  ;;  %v10541_v59 = vadd.f32 %v10285_v21, %v12607_v17  ;;  %v10545_v56 = vadd.f32 %v10289_v5, %v12607_v17  ;;  %v10549_v41 = vadd.f32 %v10293_v10, %v12607_v17 }
 0x314   :  { %v10553_v40 = vadd.f32 %v10297_v2, %v12607_v17  ;;  %v10557_v24 = vadd.f32 %v10301_v22, %v12607_v17  ;;  %v10561_v21 = vadd.f32 %v10305_v18, %v12607_v17  ;;  %v10565_v5 = vadd.f32 %v10309_v30, %v12607_v17 }
 0x315   :  { %12608 = vst [vmem:[#allocation167_spill] sm:$0xff] %v10545_v56  ;;  %12609 = vst [vmem:[#allocation171_spill] sm:$0xff] %v10549_v41  ;;  %v10569_v10 = vadd.f32 %v10313_v6, %v12607_v17  ;;  %v10573_v2 = vadd.f32 %v10317_v52, %v12607_v17  ;;  %v10577_v22 = vadd.f32 %v10321_v38, %v12607_v17  ;;  %v12652_v41 = vld [vmem:[#allocation18_spill] sm:$0xff] }
 0x316   :  { %12610 = vst [vmem:[#allocation165_spill] sm:$0xff] %v10553_v40  ;;  %12611 = vst [vmem:[#allocation169_spill] sm:$0xff] %v10557_v24  ;;  %v10581_v18 = vadd.f32 %v10325_v62, %v12607_v17  ;;  %v10585_v30 = vadd.f32 %v10329_v42, %v12607_v17  ;;  %v10589_v6 = vadd.f32 %v10333_v20, %v12607_v17  ;;  %v12654_v24 = vld [vmem:[#allocation254_spill] sm:$0xff] }
 0x317   :  { %12612 = vst [vmem:[#allocation175_spill] sm:$0xff] %v10561_v21  ;;  %v10593_v52 = vadd.f32 %v10337_v34, %v12607_v17  ;;  %v10597_v38 = vadd.f32 %v10341_v15, %v12607_v17  ;;  %v10601_v62 = vadd.f32 %v10345_v4, %v12607_v17  ;;  %v10605_v42 = vadd.f32 %v12618_v26, %v12607_v17 }
 0x318   :  { %12613 = vst [vmem:[#allocation179_spill] sm:$0xff] %v10585_v30  ;;  %12614 = vst [vmem:[#allocation173_spill] sm:$0xff] %v10589_v6  ;;  %v12620_v30 = vld [vmem:[#allocation149_spill] sm:$0xff] }
 0x319   :  { %12615 = vst [vmem:[#allocation177_spill] sm:$0xff] %v10593_v52  ;;  %12616 = vst [vmem:[#allocation183_spill] sm:$0xff] %v10597_v38  ;;  %v10609_v20 = vadd.f32 %v12620_v30, %v12607_v17  ;;  %v12621_v6 = vld [vmem:[#allocation153_spill] sm:$0xff]  ;;  %v12623_v52 = vld [vmem:[#allocation159_spill] sm:$0xff] }
 0x31a   :  { %12617 = vst [vmem:[#allocation187_spill] sm:$0xff] %v10601_v62  ;;  %12619 = vst [vmem:[#allocation181_spill] sm:$0xff] %v10605_v42  ;;  %v10613_v34 = vadd.f32 %v12621_v6, %v12607_v17  ;;  %v10617_v15 = vadd.f32 %v12623_v52, %v12607_v17  ;;  %v12624_v38 = vld [vmem:[#allocation163_spill] sm:$0xff]  ;;  %v12626_v62 = vld [vmem:[#allocation157_spill] sm:$0xff]  ;;  %v10633_v6 = vadd.f32 %v10377_v57, %v12607_v17 }
 0x31b   :  { %v10621_v4 = vadd.f32 %v12624_v38, %v12607_v17  ;;  %v10625_v26 = vadd.f32 %v12626_v62, %v12607_v17  ;;  %v12627_v42 = vld [vmem:[#allocation161_spill] sm:$0xff]  ;;  %v10637_v52 = vadd.f32 %v10381_v29, %v12607_v17  ;;  %v10641_v38 = vadd.f32 %v10385_v63, %v12607_v17 }
 0x31c   :  { %12622 = vst [vmem:[#allocation185_spill] sm:$0xff] %v10613_v34  ;;  %v10629_v30 = vadd.f32 %v12627_v42, %v12607_v17  ;;  %12629 = vst [vmem:[#allocation189_spill] sm:$0xff] %v10633_v6  ;;  %v10645_v62 = vadd.f32 %v10389_v58, %v12607_v17  ;;  %v10649_v42 = vadd.f32 %v10393_v31, %v12607_v17  ;;  %v12641_v56 = vmov %v10633_v6  ;;  %v12646_v34 = vld [vmem:[#allocation252_spill] sm:$0xff] }
 0x31d   :  { %12625 = vst [vmem:[#allocation191_spill] sm:$0xff] %v10621_v4  ;;  %12630 = vst [vmem:[#allocation193_spill] sm:$0xff] %v10637_v52  ;;  %v12643_v40 = vmov %v10641_v38  ;;  %v12645_v52 = vmax.f32 %v10397_v48, 0.0  ;;  %v12648_v4 = vld [vmem:[#allocation16_spill] sm:$0xff]  ;;  %v12651_v31 = vmax.f32 %v10409_v19, 0.0  ;;  %v12653_v6 = vmax.f32 %v10413_v35, 0.0 }
 0x31e   :  { %12628 = vst [vmem:[#allocation195_spill] sm:$0xff] %v10629_v30  ;;  %12631 = vst [vmem:[#allocation199_spill] sm:$0xff] %v10641_v38  ;;  %v12647_v38 = vmax.f32 %v10401_v44, 0.0  ;;  %v12650_v30 = vld [vmem:[#allocation253_spill] sm:$0xff]  ;;  %v12655_v48 = vmax.f32 %v10417_v16, 0.0  ;;  %v12657_v44 = vmax.f32 %v10421_v43, 0.0 }
 0x31f   :  { %12632 = vst [vmem:[#allocation203_spill] sm:$0xff] %v10645_v62  ;;  %12633 = vst [vmem:[#allocation197_spill] sm:$0xff] %v10649_v42  ;;  %v4728_v63 = vmax.f32 %v12646_v34, %v12645_v52  ;;  %v12649_v62 = vmax.f32 %v10405_v55, 0.0  ;;  %v4731_v57 = vmax.f32 %v12652_v41, %v12651_v31  ;;  %v4732_v29 = vmax.f32 %v12654_v24, %v12653_v6  ;;  %v12656_v42 = vld [vmem:[#allocation15_spill] sm:$0xff]  ;;  %v12664_v31 = vld [vmem:[#allocation20_spill] sm:$0xff] }
 0x320   :  { %v4729_v58 = vmax.f32 %v12648_v4, %v12647_v38  ;;  %v4733_v34 = vmax.f32 %v12656_v42, %v12655_v48  ;;  %v12658_v52 = vld [vmem:[#allocation255_spill] sm:$0xff]  ;;  %v12659_v55 = vmax.f32 %v10425_v50, 0.0  ;;  %v12660_v38 = vld [vmem:[#allocation17_spill] sm:$0xff]  ;;  %v12661_v19 = vmax.f32 %v10429_v46, 0.0  ;;  %v12668_v6 = vld [vmem:[#allocation258_spill] sm:$0xff] }
 0x321   :  { %v12639_v21 = vld [vmem:[#allocation181_spill] sm:$0xff]  ;;  %v4730_v17 = vmax.f32 %v12650_v30, %v12649_v62  ;;  %v4734_v4 = vmax.f32 %v12658_v52, %v12657_v44  ;;  %v12662_v62 = vld [vmem:[#allocation256_spill] sm:$0xff]  ;;  %v12663_v35 = vmax.f32 %v10433_v33, 0.0  ;;  %4792 = vst [vmem:[%s11103_s4] sm:$0xff] %v4728_v63  ;;  %v12665_v16 = vmax.f32 %v10437_v39, 0.0  ;;  %v12670_v48 = vld [vmem:[#allocation22_spill] sm:$0xff] }
 0x322   :  { %v4735_v30 = vmax.f32 %v12660_v38, %v12659_v55  ;;  %v4736_v41 = vmax.f32 %v12662_v62, %v12661_v19  ;;  %4793 = vst [vmem:[%s11103_s4 + $0x8] sm:$0xff] %v4729_v58  ;;  %v12666_v43 = vld [vmem:[#allocation257_spill] sm:$0xff]  ;;  %v12667_v46 = vmax.f32 %v10441_v32, 0.0  ;;  %v12669_v33 = vmax.f32 %v10445_v45, 0.0  ;;  %v12672_v55 = vld [vmem:[#allocation259_spill] sm:$0xff]  ;;  %4795 = vst [vmem:[%s11103_s4 + $0x18] sm:$0xff] %v4731_v57 }
 0x323   :  { %v4737_v24 = vmax.f32 %v12664_v31, %v12663_v35  ;;  %v4738_v50 = vmax.f32 %v12666_v43, %v12665_v16  ;;  %v12671_v52 = vmax.f32 %v10449_v61, 0.0  ;;  %4794 = vst [vmem:[%s11103_s4 + $0x10] sm:$0xff] %v4730_v17  ;;  %4796 = vst [vmem:[%s11103_s4 + $0x20] sm:$0xff] %v4732_v29  ;;  %v12673_v39 = vmax.f32 %v10453_v47, 0.0  ;;  %v12674_v32 = vld [vmem:[#allocation19_spill] sm:$0xff]  ;;  %v12676_v58 = vld [vmem:[#allocation260_spill] sm:$0xff] }
 0x324   :  { %v4739_v42 = vmax.f32 %v12668_v6, %v12667_v46  ;;  %v4740_v44 = vmax.f32 %v12670_v48, %v12669_v33  ;;  %4797 = vst [vmem:[%s11103_s4 + $0x28] sm:$0xff] %v4733_v34  ;;  %v12675_v61 = vmax.f32 %v10457_v28, 0.0  ;;  %v12677_v38 = vmax.f32 %v10461_v25, 0.0  ;;  %v12678_v19 = vld [vmem:[#allocation21_spill] sm:$0xff]  ;;  %v12680_v35 = vld [vmem:[#allocation31_spill] sm:$0xff]  ;;  %4798 = vst [vmem:[%s11103_s4 + $0x30] sm:$0xff] %v4734_v4 }
 0x325   :  { %v4741_v63 = vmax.f32 %v12672_v55, %v12671_v52  ;;  %v4742_v45 = vmax.f32 %v12674_v32, %v12673_v39  ;;  %v12679_v62 = vmax.f32 %v10465_v54, 0.0  ;;  %4799 = vst [vmem:[%s11103_s4 + $0x38] sm:$0xff] %v4735_v30  ;;  %4800 = vst [vmem:[%s11103_s4 + $0x40] sm:$0xff] %v4736_v41  ;;  %v12681_v47 = vmax.f32 %v10469_v23, 0.0  ;;  %v12682_v28 = vld [vmem:[#allocation24_spill] sm:$0xff]  ;;  %v12684_v34 = vld [vmem:[#allocation34_spill] sm:$0xff] }
 0x326   :  { %v4743_v17 = vmax.f32 %v12676_v58, %v12675_v61  ;;  %v4744_v57 = vmax.f32 %v12678_v19, %v12677_v38  ;;  %4801 = vst [vmem:[%s11103_s4 + $0x48] sm:$0xff] %v4737_v24  ;;  %v12683_v54 = vmax.f32 %v10473_v13, 0.0  ;;  %v12685_v31 = vmax.f32 %v10477_v14, 0.0  ;;  %v12686_v16 = vld [vmem:[#allocation26_spill] sm:$0xff]  ;;  %v12688_v46 = vld [vmem:[#allocation39_spill] sm:$0xff]  ;;  %4802 = vst [vmem:[%s11103_s4 + $0x50] sm:$0xff] %v4738_v50 }
 0x327   :  { %v4745_v29 = vmax.f32 %v12680_v35, %v12679_v62  ;;  %v4746_v25 = vmax.f32 %v12682_v28, %v12681_v47  ;;  %v12687_v43 = vmax.f32 %v10481_v7, 0.0  ;;  %4803 = vst [vmem:[%s11103_s4 + $0x58] sm:$0xff] %v4739_v42  ;;  %4804 = vst [vmem:[%s11103_s4 + $0x60] sm:$0xff] %v4740_v44  ;;  %v12689_v23 = vmax.f32 %v10485_v0, 0.0  ;;  %v12690_v13 = vld [vmem:[#allocation43_spill] sm:$0xff]  ;;  %v12692_v24 = vld [vmem:[#allocation37_spill] sm:$0xff] }
 0x328   :  { %v4747_v4 = vmax.f32 %v12684_v34, %v12683_v54  ;;  %v4748_v30 = vmax.f32 %v12686_v16, %v12685_v31  ;;  %4805 = vst [vmem:[%s11103_s4 + $0x68] sm:$0xff] %v4741_v63  ;;  %v12691_v7 = vmax.f32 %v10489_v11, 0.0  ;;  %v12693_v6 = vmax.f32 %v10493_v9, 0.0  ;;  %v12694_v33 = vld [vmem:[#allocation28_spill] sm:$0xff]  ;;  %v12696_v52 = vld [vmem:[#allocation41_spill] sm:$0xff]  ;;  %4806 = vst [vmem:[%s11103_s4 + $0x70] sm:$0xff] %v4742_v45 }
 0x329   :  { %v4749_v41 = vmax.f32 %v12688_v46, %v12687_v43  ;;  %v4750_v14 = vmax.f32 %v12690_v13, %v12689_v23  ;;  %v12695_v48 = vmax.f32 %v10497_v53, 0.0  ;;  %4807 = vst [vmem:[%s11103_s4 + $0x78] sm:$0xff] %v4743_v17  ;;  %4808 = vst [vmem:[%s11103_s4 + $0x80] sm:$0xff] %v4744_v57  ;;  %v12697_v0 = vmax.f32 %v10501_v12, 0.0  ;;  %v12698_v11 = vld [vmem:[#allocation30_spill] sm:$0xff]  ;;  %v12700_v55 = vld [vmem:[#allocation47_spill] sm:$0xff] }
 0x32a   :  { %v4751_v50 = vmax.f32 %v12692_v24, %v12691_v7  ;;  %v4752_v42 = vmax.f32 %v12694_v33, %v12693_v6  ;;  %4809 = vst [vmem:[%s11103_s4 + $0x88] sm:$0xff] %v4745_v29  ;;  %v12699_v53 = vmax.f32 %v10505_v49, 0.0  ;;  %v12701_v39 = vmax.f32 %v10509_v51, 0.0  ;;  %v12702_v32 = vld [vmem:[#allocation51_spill] sm:$0xff]  ;;  %v12704_v58 = vld [vmem:[#allocation45_spill] sm:$0xff]  ;;  %4810 = vst [vmem:[%s11103_s4 + $0x90] sm:$0xff] %v4746_v25 }
 0x32b   :  { %v4753_v44 = vmax.f32 %v12696_v52, %v12695_v48  ;;  %v4754_v9 = vmax.f32 %v12698_v11, %v12697_v0  ;;  %v12703_v61 = vmax.f32 %v10513_v36, 0.0  ;;  %4811 = vst [vmem:[%s11103_s4 + $0x98] sm:$0xff] %v4747_v4  ;;  %4812 = vst [vmem:[%s11103_s4 + $0xa0] sm:$0xff] %v4748_v30  ;;  %v12705_v12 = vmax.f32 %v10517_v27, 0.0  ;;  %v12706_v49 = vld [vmem:[#allocation29_spill] sm:$0xff]  ;;  %v12710_v62 = vld [vmem:[#allocation55_spill] sm:$0xff] }
 0x32c   :  { %v4755_v63 = vmax.f32 %v12700_v55, %v12699_v53  ;;  %v4756_v45 = vmax.f32 %v12702_v32, %v12701_v39  ;;  %4813 = vst [vmem:[%s11103_s4 + $0xa8] sm:$0xff] %v4749_v41  ;;  %v12707_v36 = vmax.f32 %v10521_v8, 0.0  ;;  %v12708_v38 = vld [vmem:[#allocation49_spill] sm:$0xff]  ;;  %v12709_v57 = vmax.f32 %v10525_v1, 0.0  ;;  %v12712_v47 = vld [vmem:[#allocation59_spill] sm:$0xff]  ;;  %4814 = vst [vmem:[%s11103_s4 + $0xb0] sm:$0xff] %v4750_v14 }
 0x32d   :  { %v4757_v17 = vmax.f32 %v12704_v58, %v12703_v61  ;;  %v4758_v51 = vmax.f32 %v12706_v49, %v12705_v12  ;;  %v12711_v29 = vmax.f32 %v10529_v60, 0.0  ;;  %4815 = vst [vmem:[%s11103_s4 + $0xb8] sm:$0xff] %v4751_v50  ;;  %4816 = vst [vmem:[%s11103_s4 + $0xc0] sm:$0xff] %v4752_v42  ;;  %v12713_v27 = vmax.f32 %v10533_v3, 0.0  ;;  %v12714_v8 = vld [vmem:[#allocation32_spill] sm:$0xff]  ;;  %v12716_v25 = vld [vmem:[#allocation53_spill] sm:$0xff] }
 0x32e   :  { %v4759_v19 = vmax.f32 %v12708_v38, %v12707_v36  ;;  %v4760_v35 = vmax.f32 %v12710_v62, %v12709_v57  ;;  %4817 = vst [vmem:[%s11103_s4 + $0xc8] sm:$0xff] %v4753_v44  ;;  %v12715_v60 = vmax.f32 %v10537_v37, 0.0  ;;  %v12717_v34 = vmax.f32 %v10541_v59, 0.0  ;;  %v12718_v4 = vld [vmem:[#allocation57_spill] sm:$0xff]  ;;  %v12719_v16 = vld [vmem:[#allocation167_spill] sm:$0xff]  ;;  %v12721_v43 = vld [vmem:[#allocation40_spill] sm:$0xff] }
 0x32f   :  { %v4761_v28 = vmax.f32 %v12712_v47, %v12711_v29  ;;  %v4762_v1 = vmax.f32 %v12714_v8, %v12713_v27  ;;  %v12720_v30 = vmax.f32 %v12719_v16, 0.0  ;;  %4818 = vst [vmem:[%s11103_s4 + $0xd0] sm:$0xff] %v4754_v9  ;;  %4819 = vst [vmem:[%s11103_s4 + $0xd8] sm:$0xff] %v4755_v63  ;;  %v12722_v3 = vld [vmem:[#allocation171_spill] sm:$0xff]  ;;  %v12725_v23 = vld [vmem:[#allocation165_spill] sm:$0xff]  ;;  %v12734_v0 = vmax.f32 %v10565_v5, 0.0 }
 0x330   :  { %v4763_v54 = vmax.f32 %v12716_v25, %v12715_v60  ;;  %v4764_v31 = vmax.f32 %v12718_v4, %v12717_v34  ;;  %4820 = vst [vmem:[%s11103_s4 + $0xe0] sm:$0xff] %v4756_v45  ;;  %4821 = vst [vmem:[%s11103_s4 + $0xe8] sm:$0xff] %v4757_v17  ;;  %v12723_v37 = vmax.f32 %v12722_v3, 0.0  ;;  %v12724_v59 = vld [vmem:[#allocation63_spill] sm:$0xff]  ;;  %v12726_v13 = vmax.f32 %v12725_v23, 0.0  ;;  %v12728_v24 = vld [vmem:[#allocation169_spill] sm:$0xff] }
 0x331   :  { %v4765_v46 = vmax.f32 %v12721_v43, %v12720_v30  ;;  %v12727_v14 = vld [vmem:[#allocation103_spill] sm:$0xff]  ;;  %v12729_v50 = vmax.f32 %v12728_v24, 0.0  ;;  %v12733_v52 = vld [vmem:[#allocation101_spill] sm:$0xff]  ;;  %4822 = vst [vmem:[%s11103_s4 + $0xf0] sm:$0xff] %v4758_v51  ;;  %4823 = vst [vmem:[%s11103_s4 + $0xf8] sm:$0xff] %v4759_v19  ;;  %v12736_v53 = vmax.f32 %v10569_v10, 0.0 }
 0x332   :  { %v4766_v41 = vmax.f32 %v12724_v59, %v12723_v37  ;;  %v4767_v7 = vmax.f32 %v12727_v14, %v12726_v13  ;;  %v12730_v6 = vld [vmem:[#allocation107_spill] sm:$0xff]  ;;  %4824 = vst [vmem:[%s11103_s4 + $0x100] sm:$0xff] %v4760_v35  ;;  %4825 = vst [vmem:[%s11103_s4 + $0x108] sm:$0xff] %v4761_v28  ;;  %v12735_v11 = vld [vmem:[#allocation105_spill] sm:$0xff]  ;;  %v12738_v39 = vmax.f32 %v10573_v2, 0.0  ;;  %v12740_v61 = vmax.f32 %v10577_v22, 0.0 }
 0x333   :  { %v4768_v33 = vmax.f32 %v12730_v6, %v12729_v50  ;;  %v12731_v42 = vld [vmem:[#allocation175_spill] sm:$0xff]  ;;  %v4770_v9 = vmax.f32 %v12735_v11, %v12734_v0  ;;  %v12741_v58 = vld [vmem:[#allocation109_spill] sm:$0xff]  ;;  %4826 = vst [vmem:[%s11103_s4 + $0x110] sm:$0xff] %v4762_v1  ;;  %4827 = vst [vmem:[%s11103_s4 + $0x118] sm:$0xff] %v4763_v54  ;;  %v12742_v5 = vmax.f32 %v10581_v18, 0.0  ;;  %v12759_v34 = vmax.f32 %v12639_v21, 0.0 }
 0x334   :  { %v12732_v48 = vmax.f32 %v12731_v42, 0.0  ;;  %v12737_v55 = vld [vmem:[#allocation111_spill] sm:$0xff]  ;;  %v4773_v17 = vmax.f32 %v12741_v58, %v12740_v61  ;;  %4828 = vst [vmem:[%s11103_s4 + $0x120] sm:$0xff] %v4764_v31  ;;  %4829 = vst [vmem:[%s11103_s4 + $0x128] sm:$0xff] %v4765_v46  ;;  %v12743_v10 = vld [vmem:[#allocation113_spill] sm:$0xff]  ;;  %v12761_v16 = vmax.f32 %v10609_v20, 0.0 }
 0x335   :  { %v4771_v63 = vmax.f32 %v12737_v55, %v12736_v53  ;;  %v12739_v32 = vld [vmem:[#allocation115_spill] sm:$0xff]  ;;  %v4774_v2 = vmax.f32 %v12743_v10, %v12742_v5  ;;  %v12747_v36 = vld [vmem:[#allocation173_spill] sm:$0xff]  ;;  %4830 = vst [vmem:[%s11103_s4 + $0x130] sm:$0xff] %v4766_v41  ;;  %4831 = vst [vmem:[%s11103_s4 + $0x138] sm:$0xff] %v4767_v7  ;;  %v12766_v37 = vmax.f32 %v10617_v15, 0.0  ;;  %v12771_v24 = vmax.f32 %v10625_v26, 0.0 }
 0x336   :  { %v4769_v44 = vmax.f32 %v12733_v52, %v12732_v48  ;;  %v4772_v45 = vmax.f32 %v12739_v32, %v12738_v39  ;;  %v12744_v22 = vld [vmem:[#allocation179_spill] sm:$0xff]  ;;  %v12748_v38 = vmax.f32 %v12747_v36, 0.0  ;;  %v12750_v62 = vld [vmem:[#allocation177_spill] sm:$0xff]  ;;  %4832 = vst [vmem:[%s11103_s4 + $0x140] sm:$0xff] %v4768_v33  ;;  %4834 = vst [vmem:[%s11103_s4 + $0x150] sm:$0xff] %v4770_v9  ;;  %v12776_v48 = vmax.f32 %v12641_v56, 0.0 }
 0x337   :  { %v12745_v12 = vmax.f32 %v12744_v22, 0.0  ;;  %v12746_v49 = vld [vmem:[#allocation119_spill] sm:$0xff]  ;;  %v12751_v35 = vmax.f32 %v12750_v62, 0.0  ;;  %v12752_v29 = vld [vmem:[#allocation117_spill] sm:$0xff]  ;;  %4835 = vst [vmem:[%s11103_s4 + $0x158] sm:$0xff] %v4771_v63  ;;  %4837 = vst [vmem:[%s11103_s4 + $0x168] sm:$0xff] %v4773_v17 }
 0x338   :  { %v12749_v19 = vld [vmem:[#allocation123_spill] sm:$0xff]  ;;  %4833 = vst [vmem:[%s11103_s4 + $0x148] sm:$0xff] %v4769_v44  ;;  %v12755_v27 = vld [vmem:[#allocation121_spill] sm:$0xff]  ;;  %4836 = vst [vmem:[%s11103_s4 + $0x160] sm:$0xff] %v4772_v45  ;;  %v12781_v55 = vmax.f32 %v12643_v40, 0.0 }
 0x339   :  { %v4775_v51 = vmax.f32 %v12746_v49, %v12745_v12  ;;  %v4776_v57 = vmax.f32 %v12749_v19, %v12748_v38  ;;  %v4777_v47 = vmax.f32 %v12752_v29, %v12751_v35  ;;  %v12753_v18 = vld [vmem:[#allocation183_spill] sm:$0xff]  ;;  %v12762_v30 = vld [vmem:[#allocation125_spill] sm:$0xff]  ;;  %4838 = vst [vmem:[%s11103_s4 + $0x170] sm:$0xff] %v4774_v2 }
 0x33a   :  { %v12754_v28 = vmax.f32 %v12753_v18, 0.0  ;;  %v12756_v1 = vld [vmem:[#allocation187_spill] sm:$0xff]  ;;  %v4781_v43 = vmax.f32 %v12762_v30, %v12761_v16  ;;  %v12763_v21 = vld [vmem:[#allocation185_spill] sm:$0xff] }
 0x33b   :  { %v12757_v60 = vmax.f32 %v12756_v1, 0.0  ;;  %v12758_v25 = vld [vmem:[#allocation127_spill] sm:$0xff]  ;;  %v12764_v20 = vmax.f32 %v12763_v21, 0.0  ;;  %v12765_v46 = vld [vmem:[#allocation129_spill] sm:$0xff]  ;;  %4839 = vst [vmem:[%s11103_s4 + $0x178] sm:$0xff] %v4775_v51  ;;  %4840 = vst [vmem:[%s11103_s4 + $0x180] sm:$0xff] %v4776_v57 }
 0x33c   :  { %v4778_v8 = vmax.f32 %v12755_v27, %v12754_v28  ;;  %v12760_v4 = vld [vmem:[#allocation131_spill] sm:$0xff]  ;;  %v12772_v50 = vld [vmem:[#allocation133_spill] sm:$0xff]  ;;  %4841 = vst [vmem:[%s11103_s4 + $0x188] sm:$0xff] %v4777_v47  ;;  %4845 = vst [vmem:[%s11103_s4 + $0x1a8] sm:$0xff] %v4781_v43 }
 0x33d   :  { %v4779_v54 = vmax.f32 %v12758_v25, %v12757_v60  ;;  %v4780_v31 = vmax.f32 %v12760_v4, %v12759_v34  ;;  %v4782_v3 = vmax.f32 %v12765_v46, %v12764_v20  ;;  %v12767_v59 = vld [vmem:[#allocation135_spill] sm:$0xff]  ;;  %v4785_v6 = vmax.f32 %v12772_v50, %v12771_v24  ;;  %v12775_v33 = vld [vmem:[#allocation137_spill] sm:$0xff] }
 0x33e   :  { %v4783_v41 = vmax.f32 %v12767_v59, %v12766_v37  ;;  %v12768_v23 = vld [vmem:[#allocation191_spill] sm:$0xff]  ;;  %v12778_v0 = vld [vmem:[#allocation193_spill] sm:$0xff]  ;;  %4842 = vst [vmem:[%s11103_s4 + $0x190] sm:$0xff] %v4778_v8 }
 0x33f   :  { %v12769_v13 = vmax.f32 %v12768_v23, 0.0  ;;  %v12770_v14 = vld [vmem:[#allocation139_spill] sm:$0xff]  ;;  %v12779_v11 = vmax.f32 %v12778_v0, 0.0  ;;  %v12782_v63 = vld [vmem:[#allocation141_spill] sm:$0xff]  ;;  %4843 = vst [vmem:[%s11103_s4 + $0x198] sm:$0xff] %v4779_v54  ;;  %4844 = vst [vmem:[%s11103_s4 + $0x1a0] sm:$0xff] %v4780_v31 }
 0x340   :  { %v12773_v15 = vld [vmem:[#allocation195_spill] sm:$0xff]  ;;  %v4789_v39 = vmax.f32 %v12782_v63, %v12781_v55  ;;  %v12785_v32 = vld [vmem:[#allocation145_spill] sm:$0xff]  ;;  %4846 = vst [vmem:[%s11103_s4 + $0x1b0] sm:$0xff] %v4782_v3  ;;  %4847 = vst [vmem:[%s11103_s4 + $0x1b8] sm:$0xff] %v4783_v41 }
 0x341   :  { %v4784_v7 = vmax.f32 %v12770_v14, %v12769_v13  ;;  %v12774_v26 = vmax.f32 %v12773_v15, 0.0  ;;  %v12777_v52 = vld [vmem:[#allocation143_spill] sm:$0xff]  ;;  %v12786_v61 = vld [vmem:[#allocation197_spill] sm:$0xff]  ;;  %4849 = vst [vmem:[%s11103_s4 + $0x1c8] sm:$0xff] %v4785_v6 }
 0x342   :  { %v4787_v44 = vmax.f32 %v12777_v52, %v12776_v48  ;;  %v12780_v9 = vld [vmem:[#allocation147_spill] sm:$0xff]  ;;  %v12787_v58 = vmax.f32 %v12786_v61, 0.0  ;;  %4853 = vst [vmem:[%s11103_s4 + $0x1e8] sm:$0xff] %v4789_v39 }
 0x343   :  { %v4786_v42 = vmax.f32 %v12775_v33, %v12774_v26  ;;  %v4788_v53 = vmax.f32 %v12780_v9, %v12779_v11  ;;  %v12783_v56 = vld [vmem:[#allocation203_spill] sm:$0xff]  ;;  %4848 = vst [vmem:[%s11103_s4 + $0x1c0] sm:$0xff] %v4784_v7 }
 0x344   :  { %v12784_v40 = vmax.f32 %v12783_v56, 0.0  ;;  %v12788_v17 = vld [vmem:[#allocation151_spill] sm:$0xff]  ;;  %4851 = vst [vmem:[%s11103_s4 + $0x1d8] sm:$0xff] %v4787_v44 }
 0x345   :  { %v4791_v5 = vmax.f32 %v12788_v17, %v12787_v58  ;;  %4850 = vst [vmem:[%s11103_s4 + $0x1d0] sm:$0xff] %v4786_v42  ;;  %4852 = vst [vmem:[%s11103_s4 + $0x1e0] sm:$0xff] %v4788_v53 }
 0x346   :  { %v4790_v45 = vmax.f32 %v12785_v32, %v12784_v40 }
 0x347   :  { %4855 = vst [vmem:[%s11103_s4 + $0x1f8] sm:$0xff] %v4791_v5 }
 0x348   :  { %4854 = vst [vmem:[%s11103_s4 + $0x1f0] sm:$0xff] %v4790_v45 }

// kernel: nirvana_forward.4
= control target key start
LH: loop header
LB: loop body
LE: loop exit
PB: predicated region body
PF: predicated region fallthrough
CT: control target
= control target key end

     0   :  { %vm200_vm0 = vcmask 261120   ;;  %s1757_s1 = inlined_call_operand.vmem [shape: bf16[288,128], index: 1, kind: input, shape index: {}]   ;;  %s1758_s0 = inlined_call_operand.vmem [shape: bf16[4,32,288], index: 0, kind: input, shape index: {}]   ;;  %s1759_s2 = inlined_call_operand.vmem [shape: f32[1,128], index: 2, kind: input, shape index: {}]   ;;  %s1760_s3 = inlined_call_operand.vmem [shape: f32[1,128], index: 3, kind: input, shape index: {}]   ;;  %s1761_s4 = inlined_call_operand.vmem [shape: f32[32,128], index: 4, kind: output, shape index: {}]  }
   0x1   :  { %v1396_v0 = vld [vmem:[%s1757_s1 + $0x40] sm:$0xff]   ;;  %v1413_v3 = vld [vmem:[%s1757_s1 + $0x48] sm:$0xff]   ;;  %v1432_v6 = vld [vmem:[%s1757_s1 + $0x50] sm:$0xff]  }
   0x2   :  { %v1401_v1 = vld [vmem:[%s1757_s1 + $0x80] sm:$0xff]   ;;  %1092 = vmatprep.subr.bf16.mxu0 %v1396_v0  ;;  %v1420_v4 = vld [vmem:[%s1757_s1 + $0x88] sm:$0xff]   ;;  %v1442_v8 = vld [vmem:[%s1757_s1 + $0x10] sm:$0xff]  }
   0x3   :  { %v1407_v2 = vld [vmem:[%s1757_s1] sm:$0xff]   ;;  %1220 = vmatprep.subr.bf16.mxu1 %v1401_v1  ;;  %v1426_v5 = vld [vmem:[%s1757_s1 + $0x8] sm:$0xff]   ;;  %v1453_v10 = vld [vmem:[%s1757_s1 + $0x58] sm:$0xff]  }
   0x4   :  { %1093 = vmatpush3.bf16.msra.mxu0 %v1407_v2  ;;  %1221 = vmatpush3.bf16.msra.mxu1 %v1401_v1  ;;  %v1259_v7 = vld [vmem:[%s1758_s0 + $0x8] ss:$12 sps:$4 sm:$0xff]   ;;  %v1261_v9 = vld [vmem:[%s1758_s0 + $0x20] ss:$12 sps:$4 sm:$0xff]   ;;  %v1461_v11 = vld [vmem:[%s1757_s1 + $0x18] sm:$0xff]  }
   0x5   :  { %1094 = vmatprep.subr.bf16.mxu0 %v1413_v3  ;;  %1222 = vmatprep.subr.bf16.mxu1 %v1420_v4  ;;  %v1468_v12 = vld [vmem:[%s1757_s1 + $0x60] sm:$0xff]   ;;  %v1482_v14 = vld [vmem:[%s1757_s1 + $0x68] sm:$0xff]   ;;  %v1494_v16 = vld [vmem:[%s1757_s1 + $0x70] sm:$0xff]  }
   0x6   :  { %1224 = vmatprep.mubr.msk.bf16.mxu1 %vm200_vm0, %v1259_v7  ;;  %v1475_v13 = vld [vmem:[%s1757_s1 + $0x20] sm:$0xff]   ;;  %v1487_v15 = vld [vmem:[%s1757_s1 + $0x28] sm:$0xff]   ;;  %v1509_v19 = vld [vmem:[%s1757_s1 + $0x30] sm:$0xff]  }
   0x7   :  { %v1274_v17 = vld [vmem:[%s1758_s0 + $0x4] ss:$12 sps:$4 sm:$0xff]   ;;  %v1279_v18 = vld [vmem:[%s1758_s0 + $0x34] ss:$12 sps:$4 sm:$0xff]   ;;  %v1516_v20 = vld [vmem:[%s1757_s1 + $0x78] sm:$0xff]  }
   0x8   :  { %1095 = vmatpush3.bf16.msra.mxu0 %v1426_v5  ;;  %1223 = vmatpush3.bf16.msra.mxu1 %v1420_v4  ;;  %v1523_v21 = vld [vmem:[%s1757_s1 + $0x38] sm:$0xff]   ;;  %v1272_v22 = vld [vmem:[%s1758_s0] ss:$12 sps:$4 sm:$0xff]   ;;  %v1284_v28 = vld [vmem:[%s1758_s0 + $0x48] ss:$12 sps:$4 sm:$0xff]  }
   0x9   :  { %1096 = vmatprep.subr.bf16.mxu0 %v1432_v6  ;;  %1124 = vmatprep.subr.bf16.mxu1 %v1396_v0  ;;  %v1275_v23 = vld [vmem:[%s1758_s0 + $0x1c] ss:$12 sps:$4 sm:$0xff]   ;;  %v1280_v25 = vld [vmem:[%s1758_s0 + $0x18] ss:$12 sps:$4 sm:$0xff]   ;;  %v1287_v32 = vld [vmem:[%s1758_s0 + $0x80] ss:$12 sps:$4 sm:$0xff]  }
   0xa   :  { %239 = vmatprep.mubr.bf16.mxu0 %v1274_v17  ;;  %v1277_v24 = vld [vmem:[%s1758_s0 + $0x30] ss:$12 sps:$4 sm:$0xff]   ;;  %v1281_v26 = vld [vmem:[%s1758_s0 + $0x4c] ss:$12 sps:$4 sm:$0xff]   ;;  %v1286_v30 = vld [vmem:[%s1758_s0 + $0x68] ss:$12 sps:$4 sm:$0xff]  }
   0xb   :  { %1225 = vmatmul.mubr.msk.bf16.vlgmr.msra.gmra.mrb[0].mxu1 %vm200_vm0, %v1261_v9  ;;  %v1283_v27 = vld [vmem:[%s1758_s0 + $0x38] ss:$12 sps:$4 sm:$0xff]   ;;  %v1285_v29 = vld [vmem:[%s1758_s0 + $0x50] ss:$12 sps:$4 sm:$0xff]   ;;  %v1296_v33 = vld [vmem:[%s1758_s0 + $0x94] ss:$12 sps:$4 sm:$0xff]  }
   0xc   :  { %1097 = vmatpush3.bf16.msra.mxu0 %v1442_v8  ;;  %1125 = vmatpush3.bf16.msra.mxu1 %v1407_v2  ;;  %v1290_v31 = vld [vmem:[%s1758_s0 + $0x64] ss:$12 sps:$4 sm:$0xff]   ;;  %v1288_v34 = vld [vmem:[%s1758_s0 + $0x60] ss:$12 sps:$4 sm:$0xff]   ;;  %v1291_v35 = vld [vmem:[%s1758_s0 + $0x7c] ss:$12 sps:$4 sm:$0xff]  }
   0xd   :  { %1098 = vmatprep.subr.bf16.mxu0 %v1453_v10  ;;  %1126 = vmatprep.subr.bf16.mxu1 %v1413_v3  ;;  %v1293_v36 = vld [vmem:[%s1758_s0 + $0x78] ss:$12 sps:$4 sm:$0xff]   ;;  %v1294_v38 = vld [vmem:[%s1758_s0 + $0x90] ss:$12 sps:$4 sm:$0xff]   ;;  %v1301_v41 = vld [vmem:[%s1758_s0 + $0xa8] ss:$12 sps:$4 sm:$0xff]  }
   0xe   :  { %408 = vmatprep.mubr.bf16.mxu1 %v1279_v18  ;;  %v1297_v37 = vld [vmem:[%s1758_s0 + $0x98] ss:$12 sps:$4 sm:$0xff]   ;;  %v1298_v39 = vld [vmem:[%s1758_s0 + $0xb0] ss:$12 sps:$4 sm:$0xff]  }
   0xf   :  { %v1299_v40 = vld [vmem:[%s1758_s0 + $0xac] ss:$12 sps:$4 sm:$0xff]  }
  0x10   :  { %1099 = vmatpush3.bf16.msra.mxu0 %v1461_v11  ;;  %1127 = vmatpush3.bf16.msra.mxu1 %v1426_v5 }
  0x11   :  { %1100 = vmatprep.subr.bf16.mxu0 %v1468_v12  ;;  %1128 = vmatprep.subr.bf16.mxu1 %v1432_v6 }
  0x14   :  { %1101 = vmatpush3.bf16.msra.mxu0 %v1475_v13  ;;  %1129 = vmatpush3.bf16.msra.mxu1 %v1442_v8 }
  0x15   :  { %1102 = vmatprep.subr.bf16.mxu0 %v1482_v14  ;;  %1130 = vmatprep.subr.bf16.mxu1 %v1453_v10 }
  0x18   :  { %1103 = vmatpush3.bf16.msra.mxu0 %v1487_v15  ;;  %1131 = vmatpush3.bf16.msra.mxu1 %v1461_v11 }
  0x19   :  { %1104 = vmatprep.subr.bf16.mxu0 %v1494_v16  ;;  %1132 = vmatprep.subr.bf16.mxu1 %v1468_v12 }
  0x1c   :  { %1105 = vmatpush3.bf16.msra.mxu0 %v1509_v19  ;;  %1133 = vmatpush3.bf16.msra.mxu1 %v1475_v13 }
  0x1d   :  { %1106 = vmatprep.subr.bf16.mxu0 %v1516_v20  ;;  %1134 = vmatprep.subr.bf16.mxu1 %v1482_v14 }
  0x20   :  { %1107 = vmatpush3.bf16.msra.mxu0 %v1523_v21  ;;  %1135 = vmatpush3.bf16.msra.mxu1 %v1487_v15 }
  0x21   :  { %1136 = vmatprep.subr.bf16.mxu1 %v1494_v16  ;;  %1228 = vmatprep.subr.bf16.mxu0 %v1401_v1 }
  0x23   :  { %240 = vmatmul.mubr.bf16.vlgmr.msra.gmra.mrb[0].mxu0 %v1272_v22 }
  0x24   :  { %1137 = vmatpush3.bf16.msra.mxu1 %v1509_v19  ;;  %1229 = vmatpush3.bf16.msra.mxu0 %v1401_v1 }
  0x25   :  { %1138 = vmatprep.subr.bf16.mxu1 %v1516_v20  ;;  %247 = vmatprep.mubr.bf16.mxu0 %v1275_v23 }
  0x26   :  { %1230 = vmatprep.subr.bf16.mxu0 %v1420_v4 }
  0x28   :  { %1139 = vmatpush3.bf16.msra.mxu1 %v1523_v21  ;;  %1231 = vmatpush3.bf16.msra.mxu0 %v1420_v4 }
  0x29   :  { %1156 = vmatprep.subr.bf16.mxu1 %v1396_v0  ;;  %1236 = vmatprep.subr.bf16.mxu0 %v1401_v1 }
  0x2b   :  { %248 = vmatmul.mubr.bf16.gmra.mrb[4].mxu0 %v1280_v25  ;;  %409 = vmatmul.mubr.bf16.vlgmr.msra.gmra.mrb[4].mxu1 %v1277_v24 }
  0x2c   :  { %1157 = vmatpush3.bf16.msra.mxu1 %v1407_v2  ;;  %416 = vmatprep.mubr.bf16.mxu1 %v1281_v26 }
  0x2d   :  { %1158 = vmatprep.subr.bf16.mxu1 %v1413_v3  ;;  %1232 = vmatprep.mubr.msk.bf16.mxu0 %vm200_vm0, %v1283_v27 }
  0x30   :  { %1159 = vmatpush3.bf16.msra.mxu1 %v1426_v5 }
  0x31   :  { %1160 = vmatprep.subr.bf16.mxu1 %v1432_v6 }
  0x33   :  { %417 = vmatmul.mubr.bf16.gmra.mrb[8].mxu1 %v1284_v28  ;;  %1233 = vmatmul.mubr.msk.bf16.vlgmr.msra.gmra.mrb[8].mxu0 %vm200_vm0, %v1285_v29 }
  0x34   :  { %1237 = vmatpush3.bf16.msra.mxu0 %v1401_v1  ;;  %1161 = vmatpush3.bf16.msra.mxu1 %v1442_v8 }
  0x35   :  { %1238 = vmatprep.subr.bf16.mxu0 %v1420_v4  ;;  %1162 = vmatprep.subr.bf16.mxu1 %v1453_v10 }
  0x36   :  { %1240 = vmatprep.mubr.msk.bf16.mxu0 %vm200_vm0, %v1286_v30  ;;  %580 = vmatprep.mubr.bf16.mxu1 %v1290_v31 }
  0x38   :  { %1239 = vmatpush3.bf16.msra.mxu0 %v1420_v4  ;;  %1163 = vmatpush3.bf16.msra.mxu1 %v1461_v11 }
  0x39   :  { %1188 = vmatprep.subr.bf16.mxu0 %v1396_v0  ;;  %1164 = vmatprep.subr.bf16.mxu1 %v1468_v12 }
  0x3b   :  { %1241 = vmatmul.mubr.msk.bf16.vlgmr.msra.gmra.mrb[12].mxu0 %vm200_vm0, %v1287_v32 }
  0x3c   :  { %1189 = vmatpush3.bf16.msra.mxu0 %v1407_v2  ;;  %1165 = vmatpush3.bf16.msra.mxu1 %v1475_v13 }
  0x3d   :  { %1190 = vmatprep.subr.bf16.mxu0 %v1413_v3  ;;  %1166 = vmatprep.subr.bf16.mxu1 %v1482_v14 }
  0x3e   :  { %752 = vmatprep.mubr.bf16.mxu0 %v1296_v33 }
  0x40   :  { %1191 = vmatpush3.bf16.msra.mxu0 %v1426_v5  ;;  %1167 = vmatpush3.bf16.msra.mxu1 %v1487_v15 }
  0x41   :  { %1192 = vmatprep.subr.bf16.mxu0 %v1432_v6  ;;  %1168 = vmatprep.subr.bf16.mxu1 %v1494_v16 }
  0x44   :  { %1193 = vmatpush3.bf16.msra.mxu0 %v1442_v8  ;;  %1169 = vmatpush3.bf16.msra.mxu1 %v1509_v19 }
  0x45   :  { %1194 = vmatprep.subr.bf16.mxu0 %v1453_v10  ;;  %1170 = vmatprep.subr.bf16.mxu1 %v1516_v20 }
  0x48   :  { %1195 = vmatpush3.bf16.msra.mxu0 %v1461_v11  ;;  %1171 = vmatpush3.bf16.msra.mxu1 %v1523_v21 }
  0x49   :  { %1196 = vmatprep.subr.bf16.mxu0 %v1468_v12  ;;  %1244 = vmatprep.subr.bf16.mxu1 %v1401_v1 }
  0x4b   :  { %581 = vmatmul.mubr.bf16.vlgmr.msra.gmra.mrb[12].mxu1 %v1288_v34 }
  0x4c   :  { %1197 = vmatpush3.bf16.msra.mxu0 %v1475_v13  ;;  %1245 = vmatpush3.bf16.msra.mxu1 %v1401_v1 }
  0x4d   :  { %1198 = vmatprep.subr.bf16.mxu0 %v1482_v14  ;;  %588 = vmatprep.mubr.bf16.mxu1 %v1291_v35 }
  0x4e   :  { %1246 = vmatprep.subr.bf16.mxu1 %v1420_v4 }
  0x50   :  { %1199 = vmatpush3.bf16.msra.mxu0 %v1487_v15  ;;  %1247 = vmatpush3.bf16.msra.mxu1 %v1420_v4 }
  0x51   :  { %1200 = vmatprep.subr.bf16.mxu0 %v1494_v16 }
  0x53   :  { %589 = vmatmul.mubr.bf16.gmra.mrb[16].mxu1 %v1293_v36 }
  0x54   :  { %1201 = vmatpush3.bf16.msra.mxu0 %v1509_v19  ;;  %1248 = vmatprep.mubr.msk.bf16.mxu1 %vm200_vm0, %v1297_v37 }
  0x55   :  { %1202 = vmatprep.subr.bf16.mxu0 %v1516_v20 }
  0x58   :  { %1203 = vmatpush3.bf16.msra.mxu0 %v1523_v21 }
  0x5b   :  { %753 = vmatmul.mubr.bf16.vlgmr.msra.gmra.mrb[16].mxu0 %v1294_v38  ;;  %1249 = vmatmul.mubr.msk.bf16.vlgmr.msra.gmra.mrb[20].mxu1 %vm200_vm0, %v1298_v39 }
  0x5c   :  { %760 = vmatprep.mubr.bf16.mxu0 %v1299_v40 }
  0x63   :  { %761 = vmatmul.mubr.bf16.gmra.mrb[20].mxu0 %v1301_v41 }
  0xde   :  { %v1226_v42 = vpop.f32.mrb[0].mxu1 }
  0xdf   :  { %v290_v43 = vpop.f32.mrb[1].mxu1 }
  0xe0   :  { %v1227_v44 = vpop.f32.mrb[2].mxu1 }
  0xe1   :  { %v293_v45 = vpop.f32.mrb[3].mxu1 }
  0xf6   :  { %v1108_v46 = vpop.f32.mrb[0].mxu0 }
  0xf7   :  { %v1109_v47 = vpop.f32.mrb[1].mxu0 }
  0xf8   :  { %v1110_v48 = vadd.f32 %v1109_v47, %v1108_v46  ;;  %v1111_v49 = vpop.f32.mrb[2].mxu0 }
  0xf9   :  { %v1112_v50 = vpop.f32.mrb[3].mxu0 }
  0xfa   :  { %v1643_v51 = vadd.f32 %v1110_v48, %v290_v43  ;;  %v1113_v52 = vadd.f32 %v1112_v50, %v1111_v49 }
  0xfc   :  { %v1645_v53 = vadd.f32 %v1113_v52, %v293_v45  ;;  %v318_v54 = vmul.f32 %v1643_v51, %v1643_v51 }
  0xfe   :  { %v309_v55 = vadd.f32 %v1645_v53, %v1643_v51  ;;  %v319_v56 = vmul.f32 %v1645_v53, %v1645_v53  ;;  %v1114_v57 = vpop.f32.mrb[4].mxu0  ;;  %v1140_v58 = vpop.f32.mrb[4].mxu1 }
  0xff   :  { %v1115_v59 = vpop.f32.mrb[5].mxu0  ;;  %v1141_v60 = vpop.f32.mrb[5].mxu1 }
 0x100   :  { %v322_v61 = vadd.f32 %v319_v56, %v318_v54  ;;  %v1116_v62 = vadd.f32 %v1115_v59, %v1114_v57  ;;  %v1117_v63 = vpop.f32.mrb[6].mxu0  ;;  %v1142_v0 = vadd.f32 %v1141_v60, %v1140_v58  ;;  %v1143_v1 = vpop.f32.mrb[6].mxu1 }
 0x101   :  { %v1118_v2 = vpop.f32.mrb[7].mxu0  ;;  %v1144_v3 = vpop.f32.mrb[7].mxu1 }
 0x102   :  { %v1653_v4 = vadd.f32 %v1226_v42, %v1116_v62  ;;  %v1119_v5 = vadd.f32 %v1118_v2, %v1117_v63  ;;  %v1145_v6 = vadd.f32 %v1144_v3, %v1143_v1 }
 0x104   :  { %v310_v7 = vadd.f32 %v309_v55, %v1653_v4  ;;  %v320_v8 = vmul.f32 %v1653_v4, %v1653_v4  ;;  %v1658_v9 = vadd.f32 %v1227_v44, %v1119_v5 }
 0x106   :  { %v323_v10 = vadd.f32 %v322_v61, %v320_v8  ;;  %v311_v11 = vadd.f32 %v310_v7, %v1658_v9  ;;  %v321_v12 = vmul.f32 %v1658_v9, %v1658_v9  ;;  %v1146_v13 = vpop.f32.mrb[8].mxu1  ;;  %v1234_v14 = vpop.f32.mrb[8].mxu0 }
 0x107   :  { %v1147_v15 = vpop.f32.mrb[9].mxu1  ;;  %v459_v16 = vpop.f32.mrb[9].mxu0 }
 0x108   :  { %v312_v17 = vrot.slane %v311_v11, 4  ;;  %v324_v18 = vadd.f32 %v323_v10, %v321_v12  ;;  %v1148_v19 = vadd.f32 %v1147_v15, %v1146_v13  ;;  %v1663_v20 = vadd.f32 %v1142_v0, %v459_v16  ;;  %v1149_v21 = vpop.f32.mrb[10].mxu1  ;;  %v1235_v22 = vpop.f32.mrb[10].mxu0 }
 0x109   :  { %v1150_v23 = vpop.f32.mrb[11].mxu1  ;;  %v462_v24 = vpop.f32.mrb[11].mxu0 }
 0x10a   :  { %v1665_v25 = vadd.f32 %v1234_v14, %v1148_v19  ;;  %v325_v26 = vrot.slane %v324_v18, 4  ;;  %v1151_v27 = vadd.f32 %v1150_v23, %v1149_v21  ;;  %v1667_v28 = vadd.f32 %v1145_v6, %v462_v24 }
 0x10b   :  { %v313_v29 = vadd.f32 %v312_v17, %v311_v11  ;;  %v488_v30 = vmul.f32 %v1663_v20, %v1663_v20 }
 0x10c   :  { %v1671_v31 = vadd.f32 %v1235_v22, %v1151_v27  ;;  %v479_v32 = vadd.f32 %v1667_v28, %v1663_v20  ;;  %v489_v33 = vmul.f32 %v1667_v28, %v1667_v28  ;;  %v326_v35 = vadd.f32 %v325_v26, %v324_v18 }
 0x10d   :  { %v490_v36 = vmul.f32 %v1665_v25, %v1665_v25  ;;  %v314_v41 = vrot.slane %v313_v29, 2 }
 0x10e   :  { %v1242_v34 = vpop.f32.mrb[12].mxu0  ;;  %v480_v37 = vadd.f32 %v479_v32, %v1665_v25  ;;  %v492_v38 = vadd.f32 %v489_v33, %v488_v30  ;;  %v491_v42 = vmul.f32 %v1671_v31, %v1671_v31  ;;  %v327_v46 = vrot.slane %v326_v35, 2 }
 0x10f   :  { %v631_v39 = vpop.f32.mrb[13].mxu0  ;;  %v315_v49 = vadd.f32 %v314_v41, %v313_v29 }
 0x110   :  { %v1243_v40 = vpop.f32.mrb[14].mxu0  ;;  %v481_v43 = vadd.f32 %v480_v37, %v1671_v31  ;;  %v493_v44 = vadd.f32 %v492_v38, %v490_v36  ;;  %v328_v54 = vadd.f32 %v327_v46, %v326_v35 }
 0x111   :  { %v634_v45 = vpop.f32.mrb[15].mxu0  ;;  %v316_v57 = vrot.slane %v315_v49, 1 }
 0x112   :  { %v482_v47 = vrot.slane %v481_v43, 4  ;;  %v494_v48 = vadd.f32 %v493_v44, %v491_v42  ;;  %v329_v60 = vrot.slane %v328_v54, 1 }
 0x113   :  { %v317_v63 = vadd.f32 %v316_v57, %v315_v49 }
 0x114   :  { %v483_v50 = vadd.f32 %v482_v47, %v481_v43  ;;  %v495_v52 = vrot.slane %v494_v48, 4  ;;  %v330_v3 = vadd.f32 %v329_v60, %v328_v54 }
 0x116   :  { %v484_v55 = vrot.slane %v483_v50, 2  ;;  %v496_v56 = vadd.f32 %v495_v52, %v494_v48 }
 0x118   :  { %v485_v58 = vadd.f32 %v484_v55, %v483_v50  ;;  %v497_v59 = vrot.slane %v496_v56, 2 }
 0x11a   :  { %v486_v61 = vrot.slane %v485_v58, 1  ;;  %v498_v62 = vadd.f32 %v497_v59, %v496_v56 }
 0x11c   :  { %v487_v0 = vadd.f32 %v486_v61, %v485_v58  ;;  %v499_v1 = vrot.slane %v498_v62, 1 }
 0x11e   :  { %v1172_v2 = vpop.f32.mrb[12].mxu1  ;;  %v500_v5 = vadd.f32 %v499_v1, %v498_v62  ;;  %v501_v7 = vadd.f32 %v487_v0, %v317_v63 }
 0x11f   :  { %v1173_v6 = vpop.f32.mrb[13].mxu1 }
 0x120   :  { %v1174_v8 = vadd.f32 %v1173_v6, %v1172_v2  ;;  %v1175_v10 = vpop.f32.mrb[14].mxu1  ;;  %v502_v12 = vadd.f32 %v500_v5, %v330_v3 }
 0x121   :  { %v1176_v11 = vpop.f32.mrb[15].mxu1 }
 0x122   :  { %v1683_v13 = vadd.f32 %v1174_v8, %v631_v39  ;;  %v1177_v14 = vadd.f32 %v1176_v11, %v1175_v10 }
 0x124   :  { %v1685_v15 = vadd.f32 %v1177_v14, %v634_v45  ;;  %v660_v16 = vmul.f32 %v1683_v13, %v1683_v13 }
 0x126   :  { %v651_v17 = vadd.f32 %v1685_v15, %v1683_v13  ;;  %v661_v18 = vmul.f32 %v1685_v15, %v1685_v15  ;;  %v1178_v19 = vpop.f32.mrb[16].mxu1 }
 0x127   :  { %v1179_v21 = vpop.f32.mrb[17].mxu1 }
 0x128   :  { %v664_v22 = vadd.f32 %v661_v18, %v660_v16  ;;  %v1180_v23 = vadd.f32 %v1179_v21, %v1178_v19  ;;  %v1181_v24 = vpop.f32.mrb[18].mxu1 }
 0x129   :  { %v1182_v26 = vpop.f32.mrb[19].mxu1 }
 0x12a   :  { %v1693_v27 = vadd.f32 %v1242_v34, %v1180_v23  ;;  %v1183_v29 = vadd.f32 %v1182_v26, %v1181_v24 }
 0x12c   :  { %v652_v30 = vadd.f32 %v651_v17, %v1693_v27  ;;  %v662_v32 = vmul.f32 %v1693_v27, %v1693_v27  ;;  %v1698_v33 = vadd.f32 %v1243_v40, %v1183_v29 }
 0x12e   :  { %v665_v35 = vadd.f32 %v664_v22, %v662_v32  ;;  %v653_v36 = vadd.f32 %v652_v30, %v1698_v33  ;;  %v663_v37 = vmul.f32 %v1698_v33, %v1698_v33  ;;  %v1204_v38 = vpop.f32.mrb[16].mxu0  ;;  %v1250_v39 = vpop.f32.mrb[20].mxu1 }
 0x12f   :  { %v1205_v41 = vpop.f32.mrb[17].mxu0  ;;  %v803_v42 = vpop.f32.mrb[21].mxu1 }
 0x130   :  { %v654_v34 = vrot.slane %v653_v36, 4  ;;  %v666_v43 = vadd.f32 %v665_v35, %v663_v37  ;;  %v1206_v44 = vadd.f32 %v1205_v41, %v1204_v38  ;;  %v1207_v45 = vpop.f32.mrb[18].mxu0  ;;  %v1251_v46 = vpop.f32.mrb[22].mxu1 }
 0x131   :  { %v1208_v47 = vpop.f32.mrb[19].mxu0  ;;  %v806_v48 = vpop.f32.mrb[23].mxu1 }
 0x132   :  { %v655_v49 = vadd.f32 %v654_v34, %v653_v36  ;;  %v667_v40 = vrot.slane %v666_v43, 4  ;;  %v1209_v50 = vadd.f32 %v1208_v47, %v1207_v45  ;;  %v1703_v52 = vadd.f32 %v1206_v44, %v803_v42 }
 0x134   :  { %v656_v54 = vrot.slane %v655_v49, 2  ;;  %v668_v55 = vadd.f32 %v667_v40, %v666_v43  ;;  %v1705_v56 = vadd.f32 %v1209_v50, %v806_v48  ;;  %v832_v57 = vmul.f32 %v1703_v52, %v1703_v52 }
 0x135   :  { %v863_v40 = vlaneseq }
 0x136   :  { %v657_v58 = vadd.f32 %v656_v54, %v655_v49  ;;  %v669_v59 = vrot.slane %v668_v55, 2  ;;  %v823_v60 = vadd.f32 %v1705_v56, %v1703_v52  ;;  %v833_v61 = vmul.f32 %v1705_v56, %v1705_v56  ;;  %v1210_v62 = vpop.f32.mrb[20].mxu0  ;;  %v851_v54 = vld [vmem:[%s1759_s2] sm:$0x1] }
 0x137   :  { %v1211_v63 = vpop.f32.mrb[21].mxu0  ;;  %v864_v50 = vshrl.u32 %v863_v40, 7 }
 0x138   :  { %v658_v0 = vrot.slane %v657_v58, 1  ;;  %v670_v1 = vadd.f32 %v669_v59, %v668_v55  ;;  %v836_v2 = vadd.f32 %v833_v61, %v832_v57  ;;  %v1212_v3 = vadd.f32 %v1211_v63, %v1210_v62  ;;  %v1213_v5 = vpop.f32.mrb[22].mxu0  ;;  %v855_v59 = vld [vmem:[%s1760_s3] sm:$0x1] }
 0x139   :  { %v1214_v6 = vpop.f32.mrb[23].mxu0  ;;  %v865_v55 = vsub.s32 0, %v864_v50 }
 0x13a   :  { %v659_v8 = vadd.f32 %v658_v0, %v657_v58  ;;  %v671_v10 = vrot.slane %v670_v1, 1  ;;  %v1713_v11 = vadd.f32 %v1250_v39, %v1212_v3  ;;  %v1215_v14 = vadd.f32 %v1214_v6, %v1213_v5 }
 0x13c   :  { %v672_v16 = vadd.f32 %v671_v10, %v670_v1  ;;  %v673_v17 = vadd.f32 %v659_v8, %v501_v7  ;;  %v824_v18 = vadd.f32 %v823_v60, %v1713_v11  ;;  %v834_v19 = vmul.f32 %v1713_v11, %v1713_v11 }
 0x13d   :  { %v1718_v21 = vadd.f32 %v1251_v46, %v1215_v14 }
 0x13e   :  { %v674_v22 = vadd.f32 %v672_v16, %v502_v12  ;;  %v837_v23 = vadd.f32 %v836_v2, %v834_v19 }
 0x13f   :  { %v825_v24 = vadd.f32 %v824_v18, %v1718_v21  ;;  %v835_v26 = vmul.f32 %v1718_v21, %v1718_v21 }
 0x141   :  { %v826_v29 = vrot.slane %v825_v24, 4  ;;  %v838_v30 = vadd.f32 %v837_v23, %v835_v26 }
 0x143   :  { %v827_v32 = vadd.f32 %v826_v29, %v825_v24  ;;  %v839_v35 = vrot.slane %v838_v30, 4 }
 0x145   :  { %v828_v36 = vrot.slane %v827_v32, 2  ;;  %v840_v7 = vadd.f32 %v839_v35, %v838_v30 }
 0x147   :  { %v829_v37 = vadd.f32 %v828_v36, %v827_v32  ;;  %v841_v38 = vrot.slane %v840_v7, 2 }
 0x149   :  { %v830_v39 = vrot.slane %v829_v37, 1  ;;  %v842_v41 = vadd.f32 %v841_v38, %v840_v7 }
 0x14b   :  { %v831_v42 = vadd.f32 %v830_v39, %v829_v37  ;;  %v843_v34 = vrot.slane %v842_v41, 1 }
 0x14d   :  { %v844_v43 = vadd.f32 %v843_v34, %v842_v41  ;;  %v845_v12 = vadd.f32 %v831_v42, %v673_v17 }
 0x14f   :  { %v846_v44 = vadd.f32 %v844_v43, %v674_v22  ;;  %v847_v45 = vmul.f32 0.0078125, %v845_v12 }
 0x151   :  { %v848_v46 = vmul.f32 0.0078125, %v846_v44  ;;  %v849_v47 = vmul.f32 %v847_v45, %v847_v45 }
 0x153   :  { %v850_v48 = vsub.f32 %v848_v46, %v849_v47 }
 0x155   :  { %v852_v49 = vadd.f32 1e-05, %v850_v48 }
 0x157   :  { %1302 = vrsqrt.f32 %v852_v49 }
 0x161   :  { %v1303_v57 = vpop.eup %1302 }
 0x162   :  { %v854_v58 = vmul.f32 %v1303_v57, %v851_v54 }
 0x164   :  { %v856_v60 = vmul.f32 %v854_v58, %v847_v45  ;;  %v866_v61 = vrot.slane %v854_v58, %v865_v55 }
 0x166   :  { %v857_v62 = vsub.f32 %v855_v59, %v856_v60  ;;  %v868_v63 = vmul.f32 %v866_v61, %v1643_v51  ;;  %v869_v0 = vmul.f32 %v866_v61, %v1645_v53  ;;  %v870_v1 = vmul.f32 %v866_v61, %v1653_v4 }
 0x167   :  { %v871_v2 = vmul.f32 %v866_v61, %v1658_v9  ;;  %v906_v3 = vmul.f32 %v866_v61, %v1663_v20  ;;  %v907_v5 = vmul.f32 %v866_v61, %v1667_v28  ;;  %v908_v6 = vmul.f32 %v866_v61, %v1665_v25 }
 0x168   :  { %v876_v8 = vrot.slane %v857_v62, %v865_v55  ;;  %v909_v10 = vmul.f32 %v866_v61, %v1671_v31  ;;  %v942_v14 = vmul.f32 %v866_v61, %v1683_v13  ;;  %v943_v16 = vmul.f32 %v866_v61, %v1685_v15 }
 0x169   :  { %v944_v51 = vmul.f32 %v866_v61, %v1693_v27  ;;  %v945_v53 = vmul.f32 %v866_v61, %v1698_v33  ;;  %v978_v4 = vmul.f32 %v866_v61, %v1703_v52  ;;  %v979_v9 = vmul.f32 %v866_v61, %v1705_v56 }
 0x16a   :  { %v878_v20 = vadd.f32 %v876_v8, %v868_v63  ;;  %v879_v17 = vadd.f32 %v876_v8, %v869_v0  ;;  %v880_v28 = vadd.f32 %v876_v8, %v870_v1  ;;  %v881_v18 = vadd.f32 %v876_v8, %v871_v2 }
 0x16b   :  { %v910_v25 = vadd.f32 %v906_v3, %v876_v8  ;;  %v911_v19 = vadd.f32 %v907_v5, %v876_v8  ;;  %v912_v22 = vadd.f32 %v908_v6, %v876_v8  ;;  %v913_v31 = vadd.f32 %v909_v10, %v876_v8 }
 0x16c   :  { %v882_v23 = vsub.f32 0.0, %v878_v20  ;;  %v883_v13 = vsub.f32 0.0, %v879_v17  ;;  %v884_v24 = vsub.f32 0.0, %v880_v28  ;;  %v885_v15 = vsub.f32 0.0, %v881_v18 }
 0x16d   :  { %v914_v26 = vsub.f32 0.0, %v910_v25  ;;  %v915_v27 = vsub.f32 0.0, %v911_v19  ;;  %v916_v29 = vsub.f32 0.0, %v912_v22  ;;  %v946_v32 = vadd.f32 %v942_v14, %v876_v8 }
 0x16e   :  { %v886_v33 = vmul.f32 1.442695, %v882_v23  ;;  %v888_v30 = vmul.f32 1.442695, %v883_v13  ;;  %v890_v52 = vmul.f32 1.442695, %v884_v24  ;;  %v947_v7 = vadd.f32 %v943_v16, %v876_v8 }
 0x16f   :  { %v892_v56 = vmul.f32 1.442695, %v885_v15  ;;  %v917_v35 = vsub.f32 0.0, %v913_v31  ;;  %v918_v36 = vmul.f32 1.442695, %v914_v26  ;;  %v948_v39 = vadd.f32 %v944_v51, %v876_v8 }
 0x170   :  { %1304 = vpow2.f32 %v886_v33  ;;  %v920_v37 = vmul.f32 1.442695, %v915_v27  ;;  %v922_v38 = vmul.f32 1.442695, %v916_v29  ;;  %v949_v41 = vadd.f32 %v945_v53, %v876_v8 }
 0x171   :  { %1306 = vpow2.f32 %v888_v30  ;;  %v950_v42 = vsub.f32 0.0, %v946_v32  ;;  %v951_v34 = vsub.f32 0.0, %v947_v7  ;;  %v952_v43 = vsub.f32 0.0, %v948_v39 }
 0x172   :  { %1308 = vpow2.f32 %v890_v52  ;;  %v980_v12 = vmul.f32 %v866_v61, %v1713_v11  ;;  %v981_v44 = vmul.f32 %v866_v61, %v1718_v21  ;;  %v924_v45 = vmul.f32 1.442695, %v917_v35 }
 0x173   :  { %1310 = vpow2.f32 %v892_v56  ;;  %v953_v46 = vsub.f32 0.0, %v949_v41  ;;  %v954_v47 = vmul.f32 1.442695, %v950_v42  ;;  %v982_v48 = vadd.f32 %v978_v4, %v876_v8 }
 0x174   :  { %1312 = vpow2.f32 %v918_v36  ;;  %v983_v49 = vadd.f32 %v979_v9, %v876_v8  ;;  %v956_v40 = vmul.f32 1.442695, %v951_v34  ;;  %v984_v50 = vadd.f32 %v980_v12, %v876_v8 }
 0x175   :  { %1314 = vpow2.f32 %v920_v37  ;;  %v985_v54 = vadd.f32 %v981_v44, %v876_v8  ;;  %v958_v55 = vmul.f32 1.442695, %v952_v43  ;;  %v986_v57 = vsub.f32 0.0, %v982_v48 }
 0x176   :  { %1316 = vpow2.f32 %v922_v38  ;;  %v960_v58 = vmul.f32 1.442695, %v953_v46  ;;  %v987_v16 = vsub.f32 0.0, %v983_v49  ;;  %v988_v4 = vsub.f32 0.0, %v984_v50 }
 0x177   :  { %1318 = vpow2.f32 %v924_v45  ;;  %v990_v11 = vmul.f32 1.442695, %v986_v57  ;;  %v989_v17 = vsub.f32 0.0, %v985_v54 }
 0x178   :  { %1320 = vpow2.f32 %v954_v47  ;;  %v992_v22 = vmul.f32 1.442695, %v987_v16  ;;  %v994_v13 = vmul.f32 1.442695, %v988_v4 }
 0x179   :  { %1322 = vpow2.f32 %v956_v40  ;;  %v996_v15 = vmul.f32 1.442695, %v989_v17 }
 0x17a   :  { %v1305_v21 = vpop.eup %1304  ;;  %1324 = vpow2.f32 %v958_v55 }
 0x17b   :  { %v1307_v59 = vpop.eup %1306  ;;  %v894_v60 = vadd.f32 1.0, %v1305_v21  ;;  %1326 = vpow2.f32 %v960_v58 }
 0x17c   :  { %v1309_v61 = vpop.eup %1308  ;;  %v895_v62 = vadd.f32 1.0, %v1307_v59  ;;  %1328 = vpow2.f32 %v990_v11 }
 0x17d   :  { %v1311_v63 = vpop.eup %1310  ;;  %v896_v0 = vadd.f32 1.0, %v1309_v61  ;;  %1330 = vrcp.f32 %v894_v60 }
 0x17e   :  { %v1313_v1 = vpop.eup %1312  ;;  %v897_v2 = vadd.f32 1.0, %v1311_v63  ;;  %1332 = vrcp.f32 %v895_v62 }
 0x17f   :  { %v1315_v3 = vpop.eup %1314  ;;  %1334 = vrcp.f32 %v896_v0  ;;  %v926_v5 = vadd.f32 1.0, %v1313_v1 }
 0x180   :  { %v1317_v6 = vpop.eup %1316  ;;  %1336 = vrcp.f32 %v897_v2  ;;  %v927_v8 = vadd.f32 1.0, %v1315_v3 }
 0x181   :  { %v1319_v10 = vpop.eup %1318  ;;  %v928_v14 = vadd.f32 1.0, %v1317_v6  ;;  %1338 = vrcp.f32 %v926_v5 }
 0x182   :  { %v1321_v51 = vpop.eup %1320  ;;  %v929_v53 = vadd.f32 1.0, %v1319_v10  ;;  %1340 = vrcp.f32 %v927_v8 }
 0x183   :  { %v1323_v9 = vpop.eup %1322  ;;  %1342 = vrcp.f32 %v928_v14  ;;  %v962_v20 = vadd.f32 1.0, %v1321_v51 }
 0x184   :  { %v1325_v28 = vpop.eup %1324  ;;  %1344 = vrcp.f32 %v929_v53  ;;  %v963_v18 = vadd.f32 1.0, %v1323_v9 }
 0x185   :  { %v1327_v25 = vpop.eup %1326  ;;  %v964_v19 = vadd.f32 1.0, %v1325_v28  ;;  %1346 = vrcp.f32 %v962_v20 }
 0x186   :  { %v1329_v31 = vpop.eup %1328  ;;  %v965_v23 = vadd.f32 1.0, %v1327_v25  ;;  %1348 = vrcp.f32 %v963_v18 }
 0x187   :  { %v1331_v24 = vpop.eup %1330  ;;  %1350 = vrcp.f32 %v964_v19  ;;  %v998_v27 = vadd.f32 1.0, %v1329_v31 }
 0x188   :  { %v1333_v26 = vpop.eup %1332  ;;  %1352 = vrcp.f32 %v965_v23 }
 0x189   :  { %v1335_v29 = vpop.eup %1334  ;;  %1354 = vpow2.f32 %v992_v22 }
 0x18a   :  { %v1337_v33 = vpop.eup %1336  ;;  %1356 = vpow2.f32 %v994_v13 }
 0x18b   :  { %v1339_v30 = vpop.eup %1338  ;;  %1358 = vpow2.f32 %v996_v15 }
 0x18c   :  { %v1341_v52 = vpop.eup %1340  ;;  %v934_v32 = vmax.f32 %v1331_v24, %v1339_v30  ;;  %1360 = vrcp.f32 %v998_v27 }
 0x18d   :  { %v1343_v56 = vpop.eup %1342  ;;  %v935_v35 = vmax.f32 %v1333_v26, %v1341_v52 }
 0x18e   :  { %v1345_v36 = vpop.eup %1344  ;;  %v936_v7 = vmax.f32 %v1335_v29, %v1343_v56 }
 0x18f   :  { %v1347_v37 = vpop.eup %1346  ;;  %v937_v38 = vmax.f32 %v1337_v33, %v1345_v36 }
 0x190   :  { %v1349_v39 = vpop.eup %1348  ;;  %v970_v41 = vmax.f32 %v934_v32, %v1347_v37 }
 0x191   :  { %v1351_v42 = vpop.eup %1350  ;;  %v971_v34 = vmax.f32 %v935_v35, %v1349_v39 }
 0x192   :  { %v1353_v43 = vpop.eup %1352  ;;  %v972_v12 = vmax.f32 %v936_v7, %v1351_v42 }
 0x193   :  { %v1355_v44 = vpop.eup %1354  ;;  %v973_v45 = vmax.f32 %v937_v38, %v1353_v43 }
 0x194   :  { %v1357_v46 = vpop.eup %1356  ;;  %v999_v47 = vadd.f32 1.0, %v1355_v44 }
 0x195   :  { %v1359_v48 = vpop.eup %1358  ;;  %v1000_v49 = vadd.f32 1.0, %v1357_v46 }
 0x196   :  { %v1361_v40 = vpop.eup %1360  ;;  %v1001_v50 = vadd.f32 1.0, %v1359_v48  ;;  %1362 = vrcp.f32 %v999_v47 }
 0x197   :  { %1364 = vrcp.f32 %v1000_v49  ;;  %v1006_v54 = vmax.f32 %v970_v41, %v1361_v40 }
 0x198   :  { %1366 = vrcp.f32 %v1001_v50 }
 0x199   :  { %1010 = vst [vmem:[%s1761_s4] sm:$0xff] %v1006_v54 }
 0x1a0   :  { %v1363_v55 = vpop.eup %1362 }
 0x1a1   :  { %v1365_v57 = vpop.eup %1364  ;;  %v1007_v58 = vmax.f32 %v971_v34, %v1363_v55 }
 0x1a2   :  { %v1367_v11 = vpop.eup %1366  ;;  %v1008_v21 = vmax.f32 %v972_v12, %v1365_v57 }
 0x1a3   :  { %v1009_v59 = vmax.f32 %v973_v45, %v1367_v11  ;;  %1011 = vst [vmem:[%s1761_s4 + $0x8] sm:$0xff] %v1007_v58 }
 0x1a4   :  { %1012 = vst [vmem:[%s1761_s4 + $0x10] sm:$0xff] %v1008_v21 }
 0x1a5   :  { %1013 = vst [vmem:[%s1761_s4 + $0x18] sm:$0xff] %v1009_v59 }

// kernel: nirvana_forward.5
= control target key start
LH: loop header
LB: loop body
LE: loop exit
PB: predicated region body
PF: predicated region fallthrough
CT: control target
= control target key end

     0   :  { %v1367_v39 = vmov 0.0   ;;  %vm1368_vm0 = vmmov 0   ;;  %vm326_vm1 = vcmask 523264   ;;  %s1812_s1 = inlined_call_operand.vmem [shape: bf16[576,128], index: 1, kind: input, shape index: {}]   ;;  %s1813_s0 = inlined_call_operand.vmem [shape: bf16[4,8,576], index: 0, kind: input, shape index: {}]   ;;  %s1814_s2 = inlined_call_operand.vmem [shape: f32[1,128], index: 2, kind: input, shape index: {}]   ;;  %s1815_s3 = inlined_call_operand.vmem [shape: f32[1,128], index: 3, kind: input, shape index: {}]   ;;  %s1816_s4 = inlined_call_operand.vmem [shape: f32[8,128], index: 4, kind: output, shape index: {}]  }
   0x1   :  { %v1397_v0 = vld [vmem:[%s1812_s1 + $0x40] sm:$0xff]   ;;  %v1420_v4 = vld [vmem:[%s1812_s1 + $0x48] sm:$0xff]   ;;  %v1444_v8 = vld [vmem:[%s1812_s1 + $0x50] sm:$0xff]  }
   0x2   :  { %v1402_v1 = vld [vmem:[%s1812_s1 + $0xc0] sm:$0xff]   ;;  %1063 = vmatprep.subr.bf16.mxu0 %v1397_v0  ;;  %v1426_v5 = vld [vmem:[%s1812_s1 + $0xc8] sm:$0xff]   ;;  %v1450_v9 = vld [vmem:[%s1812_s1 + $0xd0] sm:$0xff]  }
   0x3   :  { %v1408_v2 = vld [vmem:[%s1812_s1] sm:$0xff]   ;;  %1085 = vmatprep.subr.bf16.mxu1 %v1402_v1  ;;  %v1432_v6 = vld [vmem:[%s1812_s1 + $0x8] sm:$0xff]   ;;  %v1456_v10 = vld [vmem:[%s1812_s1 + $0x10] sm:$0xff]  }
   0x4   :  { %v1414_v3 = vld [vmem:[%s1812_s1 + $0x80] sm:$0xff]   ;;  %1064 = vmatpush3.bf16.msra.mxu0 %v1408_v2  ;;  %v1438_v7 = vld [vmem:[%s1812_s1 + $0x88] sm:$0xff]   ;;  %v1462_v11 = vld [vmem:[%s1812_s1 + $0x90] sm:$0xff]  }
   0x5   :  { %1086 = vmatpush3.bf16.msra.mxu1 %v1414_v3  ;;  %1065 = vmatprep.subr.bf16.mxu0 %v1420_v4  ;;  %v1468_v12 = vld [vmem:[%s1812_s1 + $0x58] sm:$0xff]   ;;  %v1492_v16 = vld [vmem:[%s1812_s1 + $0x60] sm:$0xff]   ;;  %v1516_v20 = vld [vmem:[%s1812_s1 + $0x68] sm:$0xff]  }
   0x6   :  { %1087 = vmatprep.subr.bf16.mxu1 %v1426_v5  ;;  %v1474_v13 = vld [vmem:[%s1812_s1 + $0xd8] sm:$0xff]   ;;  %v1498_v17 = vld [vmem:[%s1812_s1 + $0xe0] sm:$0xff]   ;;  %v1522_v21 = vld [vmem:[%s1812_s1 + $0xe8] sm:$0xff]  }
   0x7   :  { %v1480_v14 = vld [vmem:[%s1812_s1 + $0x18] sm:$0xff]   ;;  %v1504_v18 = vld [vmem:[%s1812_s1 + $0x20] sm:$0xff]   ;;  %v1528_v22 = vld [vmem:[%s1812_s1 + $0x28] sm:$0xff]  }
   0x8   :  { %1066 = vmatpush3.bf16.msra.mxu0 %v1432_v6  ;;  %v1486_v15 = vld [vmem:[%s1812_s1 + $0x98] sm:$0xff]   ;;  %v1510_v19 = vld [vmem:[%s1812_s1 + $0xa0] sm:$0xff]   ;;  %v1534_v23 = vld [vmem:[%s1812_s1 + $0xa8] sm:$0xff]  }
   0x9   :  { %1088 = vmatpush3.bf16.msra.mxu1 %v1438_v7  ;;  %1067 = vmatprep.subr.bf16.mxu0 %v1444_v8  ;;  %v1540_v24 = vld [vmem:[%s1812_s1 + $0x70] sm:$0xff]   ;;  %v1564_v28 = vld [vmem:[%s1812_s1 + $0x78] sm:$0xff]   ;;  %v90_v32 = vld [vmem:[%s1813_s0] sm:$0xff] }
   0xa   :  { %1089 = vmatprep.subr.bf16.mxu1 %v1450_v9  ;;  %v1546_v25 = vld [vmem:[%s1812_s1 + $0xf0] sm:$0xff]   ;;  %v1570_v29 = vld [vmem:[%s1812_s1 + $0xf8] sm:$0xff]   ;;  %v91_v33 = vld [vmem:[%s1813_s0 + $0x8] sm:$0xff]  ;;  %v994_v34 = vcombine.low %v90_v32, %v90_v32  ;;  %v995_v35 = vcombine.high %v90_v32, %v90_v32 }
   0xb   :  { %v1552_v26 = vld [vmem:[%s1812_s1 + $0x30] sm:$0xff]   ;;  %v1576_v30 = vld [vmem:[%s1812_s1 + $0x38] sm:$0xff]   ;;  %v996_v36 = vcombine.low %v91_v33, %v91_v33  ;;  %v997_v37 = vcombine.high %v91_v33, %v91_v33  ;;  %v1595_v38 = vld [vmem:[%s1812_s1 + $0x100] sm:$0xff]  }
   0xc   :  { %1068 = vmatpush3.bf16.msra.mxu0 %v1456_v10  ;;  %v1558_v27 = vld [vmem:[%s1812_s1 + $0xb0] sm:$0xff]   ;;  %v1582_v31 = vld [vmem:[%s1812_s1 + $0xb8] sm:$0xff]   ;;  %362 = vmatprep.mubr.bf16.mxu0 %v995_v35  ;;  %v1604_v40 = vld [vmem:[%s1812_s1 + $0x108] sm:$0xff]  }
   0xd   :  { %1090 = vmatpush3.bf16.msra.mxu1 %v1462_v11  ;;  %1069 = vmatprep.subr.bf16.mxu0 %v1468_v12  ;;  %v1036_v41 = vld [vmem:[%s1813_s0 + $0x14] sm:$0xff]  ;;  %v1349_v45 = vld [vmem:[%s1813_s0 + $0x10] ss:$0 sps:$4 sm:$0xff]   ;;  %v1037_v46 = vld [vmem:[%s1813_s0 + $0x1c] sm:$0xff] }
   0xe   :  { %1091 = vmatprep.subr.bf16.mxu1 %v1474_v13  ;;  %402 = vmatprep.mubr.bf16.mxu1 %v997_v37  ;;  %v1040_v42 = vcombine.high %v1036_v41, %v1036_v41  ;;  %v1618_v43 = vld [vmem:[%s1812_s1 + $0x110] sm:$0xff]   ;;  %v1627_v44 = vld [vmem:[%s1812_s1 + $0x118] sm:$0xff]   ;;  %v1042_v47 = vcombine.high %v1037_v46, %v1037_v46  ;;  %v1039_v48 = vcombine.low %v1036_v41, %v1036_v41  ;;  %v1354_v50 = vld [vmem:[%s1813_s0 + $0x24] ss:$0 sps:$4 sm:$0xff]  }
   0xf   :  { %v1041_v49 = vcombine.low %v1037_v46, %v1037_v46  ;;  %v1045_v51 = vld [vmem:[%s1813_s0 + $0x28] sm:$0xff]  ;;  %v1046_v52 = vld [vmem:[%s1813_s0 + $0x30] sm:$0xff]  ;;  %v1054_v57 = vld [vmem:[%s1813_s0 + $0x3c] sm:$0xff] }
  0x10   :  { %1070 = vmatpush3.bf16.msra.mxu0 %v1480_v14  ;;  %v1049_v53 = vcombine.high %v1045_v51, %v1045_v51  ;;  %v1051_v54 = vcombine.high %v1046_v52, %v1046_v52  ;;  %v1048_v55 = vcombine.low %v1045_v51, %v1045_v51  ;;  %v1050_v56 = vcombine.low %v1046_v52, %v1046_v52  ;;  %v1359_v59 = vld [vmem:[%s1813_s0 + $0x38] ss:$0 sps:$4 sm:$0xff]   ;;  %v1055_v60 = vld [vmem:[%s1813_s0 + $0x44] sm:$0xff] }
  0x11   :  { %1092 = vmatpush3.bf16.msra.mxu1 %v1486_v15  ;;  %1071 = vmatprep.subr.bf16.mxu0 %v1492_v16  ;;  %v1058_v58 = vcombine.high %v1054_v57, %v1054_v57  ;;  %v1060_v61 = vcombine.high %v1055_v60, %v1055_v60  ;;  %v1057_v62 = vcombine.low %v1054_v57, %v1054_v57 }
  0x12   :  { %1093 = vmatprep.subr.bf16.mxu1 %v1498_v17  ;;  %v1059_v63 = vcombine.low %v1055_v60, %v1055_v60 }
  0x14   :  { %1072 = vmatpush3.bf16.msra.mxu0 %v1504_v18 }
  0x15   :  { %1094 = vmatpush3.bf16.msra.mxu1 %v1510_v19  ;;  %1073 = vmatprep.subr.bf16.mxu0 %v1516_v20 }
  0x16   :  { %1095 = vmatprep.subr.bf16.mxu1 %v1522_v21 }
  0x18   :  { %1074 = vmatpush3.bf16.msra.mxu0 %v1528_v22 }
  0x19   :  { %1096 = vmatpush3.bf16.msra.mxu1 %v1534_v23  ;;  %1075 = vmatprep.subr.bf16.mxu0 %v1540_v24 }
  0x1a   :  { %1097 = vmatprep.subr.bf16.mxu1 %v1546_v25 }
  0x1c   :  { %1076 = vmatpush3.bf16.msra.mxu0 %v1552_v26 }
  0x1d   :  { %1098 = vmatpush3.bf16.msra.mxu1 %v1558_v27  ;;  %1077 = vmatprep.subr.bf16.mxu0 %v1564_v28 }
  0x1e   :  { %1099 = vmatprep.subr.bf16.mxu1 %v1570_v29 }
  0x20   :  { %1078 = vmatpush3.bf16.msra.mxu0 %v1576_v30 }
  0x21   :  { %1100 = vmatpush3.bf16.msra.mxu1 %v1582_v31  ;;  %1259 = vmatprep.subr.bf16.mxu0 %v1367_v39 }
  0x22   :  { %1112 = vmatprep.subr.bf16.mxu1 %v1397_v0 }
  0x23   :  { %363 = vmatmul.mubr.bf16.vlgmr.msra.gmra.mrb[0].mxu0 %v994_v34 }
  0x24   :  { %403 = vmatmul.mubr.bf16.vlgmr.msra.gmra.mrb[0].mxu1 %v996_v36  ;;  %1260 = vmatpush3.bf16.msra.mxu0 %v1595_v38 }
  0x25   :  { %1113 = vmatpush3.bf16.msra.mxu1 %v1408_v2  ;;  %1261 = vmatprep.subr.bf16.mxu0 %v1367_v39 }
  0x26   :  { %1114 = vmatprep.subr.bf16.mxu1 %v1420_v4  ;;  %1267 = vmatprep.mubr.msk.bf16.mxu0 %vm1368_vm0, %v1367_v39 }
  0x27   :  { %520 = vmatprep.mubr.bf16.mxu1 %v1040_v42 }
  0x28   :  { %1262 = vmatpush3.bf16.msra.mxu0 %v1604_v40 }
  0x29   :  { %1115 = vmatpush3.bf16.msra.mxu1 %v1432_v6  ;;  %1263 = vmatprep.subr.bf16.mxu0 %v1367_v39 }
  0x2a   :  { %1116 = vmatprep.subr.bf16.mxu1 %v1444_v8 }
  0x2c   :  { %1264 = vmatpush3.bf16.msra.mxu0 %v1618_v43 }
  0x2d   :  { %1117 = vmatpush3.bf16.msra.mxu1 %v1456_v10  ;;  %1265 = vmatprep.subr.bf16.mxu0 %v1367_v39 }
  0x2e   :  { %1118 = vmatprep.subr.bf16.mxu1 %v1468_v12 }
  0x30   :  { %1266 = vmatpush3.bf16.msra.mxu0 %v1627_v44 }
  0x31   :  { %1119 = vmatpush3.bf16.msra.mxu1 %v1480_v14  ;;  %1134 = vmatprep.subr.bf16.mxu0 %v1402_v1 }
  0x32   :  { %1120 = vmatprep.subr.bf16.mxu1 %v1492_v16 }
  0x33   :  { %1268 = vmatmul.mubr.msk.bf16.vlgmr.msra.gmra.mrb[4].mxu0 %vm326_vm1, %v1349_v45 }
  0x34   :  { %1135 = vmatpush3.bf16.msra.mxu0 %v1414_v3  ;;  %560 = vmatprep.mubr.bf16.mxu0 %v1042_v47 }
  0x35   :  { %1121 = vmatpush3.bf16.msra.mxu1 %v1504_v18  ;;  %1136 = vmatprep.subr.bf16.mxu0 %v1426_v5 }
  0x36   :  { %1122 = vmatprep.subr.bf16.mxu1 %v1516_v20 }
  0x38   :  { %1137 = vmatpush3.bf16.msra.mxu0 %v1438_v7 }
  0x39   :  { %1123 = vmatpush3.bf16.msra.mxu1 %v1528_v22  ;;  %1138 = vmatprep.subr.bf16.mxu0 %v1450_v9 }
  0x3a   :  { %1124 = vmatprep.subr.bf16.mxu1 %v1540_v24 }
  0x3c   :  { %1139 = vmatpush3.bf16.msra.mxu0 %v1462_v11 }
  0x3d   :  { %1125 = vmatpush3.bf16.msra.mxu1 %v1552_v26  ;;  %1140 = vmatprep.subr.bf16.mxu0 %v1474_v13 }
  0x3e   :  { %1126 = vmatprep.subr.bf16.mxu1 %v1564_v28 }
  0x40   :  { %1141 = vmatpush3.bf16.msra.mxu0 %v1486_v15 }
  0x41   :  { %1127 = vmatpush3.bf16.msra.mxu1 %v1576_v30  ;;  %1142 = vmatprep.subr.bf16.mxu0 %v1498_v17 }
  0x42   :  { %1271 = vmatprep.subr.bf16.mxu1 %v1367_v39 }
  0x44   :  { %521 = vmatmul.mubr.bf16.vlgmr.msra.gmra.mrb[4].mxu1 %v1039_v48  ;;  %1143 = vmatpush3.bf16.msra.mxu0 %v1510_v19 }
  0x45   :  { %1272 = vmatpush3.bf16.msra.mxu1 %v1595_v38  ;;  %1144 = vmatprep.subr.bf16.mxu0 %v1522_v21 }
  0x46   :  { %1273 = vmatprep.subr.bf16.mxu1 %v1367_v39  ;;  %1279 = vmatprep.mubr.msk.bf16.mxu1 %vm1368_vm0, %v1367_v39 }
  0x48   :  { %1145 = vmatpush3.bf16.msra.mxu0 %v1534_v23 }
  0x49   :  { %1274 = vmatpush3.bf16.msra.mxu1 %v1604_v40  ;;  %1146 = vmatprep.subr.bf16.mxu0 %v1546_v25 }
  0x4a   :  { %1275 = vmatprep.subr.bf16.mxu1 %v1367_v39 }
  0x4c   :  { %1147 = vmatpush3.bf16.msra.mxu0 %v1558_v27 }
  0x4d   :  { %1276 = vmatpush3.bf16.msra.mxu1 %v1618_v43  ;;  %1148 = vmatprep.subr.bf16.mxu0 %v1570_v29 }
  0x4e   :  { %1277 = vmatprep.subr.bf16.mxu1 %v1367_v39 }
  0x50   :  { %1149 = vmatpush3.bf16.msra.mxu0 %v1582_v31 }
  0x51   :  { %1278 = vmatpush3.bf16.msra.mxu1 %v1627_v44  ;;  %1161 = vmatprep.subr.bf16.mxu0 %v1397_v0 }
  0x52   :  { %1183 = vmatprep.subr.bf16.mxu1 %v1402_v1 }
  0x53   :  { %561 = vmatmul.mubr.bf16.vlgmr.msra.gmra.mrb[8].mxu0 %v1041_v49 }
  0x54   :  { %1280 = vmatmul.mubr.msk.bf16.vlgmr.msra.gmra.mrb[8].mxu1 %vm326_vm1, %v1354_v50  ;;  %1162 = vmatpush3.bf16.msra.mxu0 %v1408_v2 }
  0x55   :  { %1184 = vmatpush3.bf16.msra.mxu1 %v1414_v3  ;;  %1163 = vmatprep.subr.bf16.mxu0 %v1420_v4 }
  0x56   :  { %1185 = vmatprep.subr.bf16.mxu1 %v1426_v5  ;;  %681 = vmatprep.mubr.bf16.mxu0 %v1049_v53 }
  0x57   :  { %721 = vmatprep.mubr.bf16.mxu1 %v1051_v54 }
  0x58   :  { %1164 = vmatpush3.bf16.msra.mxu0 %v1432_v6 }
  0x59   :  { %1186 = vmatpush3.bf16.msra.mxu1 %v1438_v7  ;;  %1165 = vmatprep.subr.bf16.mxu0 %v1444_v8 }
  0x5a   :  { %1187 = vmatprep.subr.bf16.mxu1 %v1450_v9 }
  0x5c   :  { %1166 = vmatpush3.bf16.msra.mxu0 %v1456_v10 }
  0x5d   :  { %1188 = vmatpush3.bf16.msra.mxu1 %v1462_v11  ;;  %1167 = vmatprep.subr.bf16.mxu0 %v1468_v12 }
  0x5e   :  { %1189 = vmatprep.subr.bf16.mxu1 %v1474_v13 }
  0x60   :  { %1168 = vmatpush3.bf16.msra.mxu0 %v1480_v14 }
  0x61   :  { %1190 = vmatpush3.bf16.msra.mxu1 %v1486_v15  ;;  %1169 = vmatprep.subr.bf16.mxu0 %v1492_v16 }
  0x62   :  { %1191 = vmatprep.subr.bf16.mxu1 %v1498_v17 }
  0x64   :  { %1170 = vmatpush3.bf16.msra.mxu0 %v1504_v18 }
  0x65   :  { %1192 = vmatpush3.bf16.msra.mxu1 %v1510_v19  ;;  %1171 = vmatprep.subr.bf16.mxu0 %v1516_v20 }
  0x66   :  { %1193 = vmatprep.subr.bf16.mxu1 %v1522_v21 }
  0x68   :  { %1172 = vmatpush3.bf16.msra.mxu0 %v1528_v22 }
  0x69   :  { %1194 = vmatpush3.bf16.msra.mxu1 %v1534_v23  ;;  %1173 = vmatprep.subr.bf16.mxu0 %v1540_v24 }
  0x6a   :  { %1195 = vmatprep.subr.bf16.mxu1 %v1546_v25 }
  0x6c   :  { %1174 = vmatpush3.bf16.msra.mxu0 %v1552_v26 }
  0x6d   :  { %1196 = vmatpush3.bf16.msra.mxu1 %v1558_v27  ;;  %1175 = vmatprep.subr.bf16.mxu0 %v1564_v28 }
  0x6e   :  { %1197 = vmatprep.subr.bf16.mxu1 %v1570_v29 }
  0x70   :  { %1176 = vmatpush3.bf16.msra.mxu0 %v1576_v30 }
  0x71   :  { %1198 = vmatpush3.bf16.msra.mxu1 %v1582_v31  ;;  %1283 = vmatprep.subr.bf16.mxu0 %v1367_v39 }
  0x72   :  { %1210 = vmatprep.subr.bf16.mxu1 %v1397_v0  ;;  %v1364_v0 = vld [vmem:[%s1813_s0 + $0x4c] ss:$0 sps:$4 sm:$0xff]  }
  0x73   :  { %682 = vmatmul.mubr.bf16.vlgmr.msra.gmra.mrb[12].mxu0 %v1048_v55 }
  0x74   :  { %722 = vmatmul.mubr.bf16.vlgmr.msra.gmra.mrb[12].mxu1 %v1050_v56  ;;  %1284 = vmatpush3.bf16.msra.mxu0 %v1595_v38 }
  0x75   :  { %1211 = vmatpush3.bf16.msra.mxu1 %v1408_v2  ;;  %1285 = vmatprep.subr.bf16.mxu0 %v1367_v39 }
  0x76   :  { %1212 = vmatprep.subr.bf16.mxu1 %v1420_v4  ;;  %1291 = vmatprep.mubr.msk.bf16.mxu0 %vm1368_vm0, %v1367_v39 }
  0x77   :  { %842 = vmatprep.mubr.bf16.mxu1 %v1058_v58 }
  0x78   :  { %1286 = vmatpush3.bf16.msra.mxu0 %v1604_v40 }
  0x79   :  { %1213 = vmatpush3.bf16.msra.mxu1 %v1432_v6  ;;  %1287 = vmatprep.subr.bf16.mxu0 %v1367_v39 }
  0x7a   :  { %1214 = vmatprep.subr.bf16.mxu1 %v1444_v8 }
  0x7c   :  { %1288 = vmatpush3.bf16.msra.mxu0 %v1618_v43 }
  0x7d   :  { %1215 = vmatpush3.bf16.msra.mxu1 %v1456_v10  ;;  %1289 = vmatprep.subr.bf16.mxu0 %v1367_v39 }
  0x7e   :  { %1216 = vmatprep.subr.bf16.mxu1 %v1468_v12 }
  0x80   :  { %1290 = vmatpush3.bf16.msra.mxu0 %v1627_v44 }
  0x81   :  { %1217 = vmatpush3.bf16.msra.mxu1 %v1480_v14  ;;  %1232 = vmatprep.subr.bf16.mxu0 %v1402_v1 }
  0x82   :  { %1218 = vmatprep.subr.bf16.mxu1 %v1492_v16 }
  0x83   :  { %1292 = vmatmul.mubr.msk.bf16.vlgmr.msra.gmra.mrb[16].mxu0 %vm326_vm1, %v1359_v59 }
  0x84   :  { %1233 = vmatpush3.bf16.msra.mxu0 %v1414_v3  ;;  %882 = vmatprep.mubr.bf16.mxu0 %v1060_v61 }
  0x85   :  { %1219 = vmatpush3.bf16.msra.mxu1 %v1504_v18  ;;  %1234 = vmatprep.subr.bf16.mxu0 %v1426_v5 }
  0x86   :  { %1220 = vmatprep.subr.bf16.mxu1 %v1516_v20 }
  0x88   :  { %1235 = vmatpush3.bf16.msra.mxu0 %v1438_v7 }
  0x89   :  { %1221 = vmatpush3.bf16.msra.mxu1 %v1528_v22  ;;  %1236 = vmatprep.subr.bf16.mxu0 %v1450_v9 }
  0x8a   :  { %1222 = vmatprep.subr.bf16.mxu1 %v1540_v24 }
  0x8c   :  { %1237 = vmatpush3.bf16.msra.mxu0 %v1462_v11 }
  0x8d   :  { %1223 = vmatpush3.bf16.msra.mxu1 %v1552_v26  ;;  %1238 = vmatprep.subr.bf16.mxu0 %v1474_v13 }
  0x8e   :  { %1224 = vmatprep.subr.bf16.mxu1 %v1564_v28 }
  0x90   :  { %1239 = vmatpush3.bf16.msra.mxu0 %v1486_v15 }
  0x91   :  { %1225 = vmatpush3.bf16.msra.mxu1 %v1576_v30  ;;  %1240 = vmatprep.subr.bf16.mxu0 %v1498_v17 }
  0x92   :  { %1295 = vmatprep.subr.bf16.mxu1 %v1367_v39 }
  0x94   :  { %843 = vmatmul.mubr.bf16.vlgmr.msra.gmra.mrb[16].mxu1 %v1057_v62  ;;  %1241 = vmatpush3.bf16.msra.mxu0 %v1510_v19 }
  0x95   :  { %1296 = vmatpush3.bf16.msra.mxu1 %v1595_v38  ;;  %1242 = vmatprep.subr.bf16.mxu0 %v1522_v21 }
  0x96   :  { %1297 = vmatprep.subr.bf16.mxu1 %v1367_v39  ;;  %1303 = vmatprep.mubr.msk.bf16.mxu1 %vm1368_vm0, %v1367_v39 }
  0x98   :  { %1243 = vmatpush3.bf16.msra.mxu0 %v1534_v23 }
  0x99   :  { %1298 = vmatpush3.bf16.msra.mxu1 %v1604_v40  ;;  %1244 = vmatprep.subr.bf16.mxu0 %v1546_v25 }
  0x9a   :  { %1299 = vmatprep.subr.bf16.mxu1 %v1367_v39 }
  0x9c   :  { %1245 = vmatpush3.bf16.msra.mxu0 %v1558_v27 }
  0x9d   :  { %1300 = vmatpush3.bf16.msra.mxu1 %v1618_v43  ;;  %1246 = vmatprep.subr.bf16.mxu0 %v1570_v29 }
  0x9e   :  { %1301 = vmatprep.subr.bf16.mxu1 %v1367_v39 }
  0xa0   :  { %1247 = vmatpush3.bf16.msra.mxu0 %v1582_v31 }
  0xa1   :  { %1302 = vmatpush3.bf16.msra.mxu1 %v1627_v44 }
  0xa3   :  { %883 = vmatmul.mubr.bf16.vlgmr.msra.gmra.mrb[20].mxu0 %v1059_v63 }
  0xa4   :  { %1304 = vmatmul.mubr.msk.bf16.vlgmr.msra.gmra.mrb[20].mxu1 %vm326_vm1, %v1364_v0 }
  0xf6   :  { %v1079_v1 = vpop.f32.mrb[0].mxu0 }
  0xf7   :  { %v1101_v2 = vpop.f32.mrb[0].mxu1  ;;  %v1080_v3 = vpop.f32.mrb[1].mxu0 }
  0xf8   :  { %v1102_v4 = vpop.f32.mrb[1].mxu1  ;;  %v1081_v5 = vadd.f32 %v1080_v3, %v1079_v1  ;;  %v1082_v7 = vpop.f32.mrb[2].mxu0 }
  0xf9   :  { %v1103_v6 = vadd.f32 %v1102_v4, %v1101_v2  ;;  %v1104_v8 = vpop.f32.mrb[2].mxu1  ;;  %v1083_v9 = vpop.f32.mrb[3].mxu0 }
  0xfa   :  { %v1105_v10 = vpop.f32.mrb[3].mxu1 }
  0xfb   :  { %v405_v11 = vadd.f32 %v1103_v6, %v1081_v5 }
 0x106   :  { %v444_v12 = vpop.f32.mrb[4].mxu0 }
 0x107   :  { %v1782_v13 = vadd.f32 %v444_v12, %v405_v11  ;;  %v1269_v14 = vpop.f32.mrb[5].mxu0 }
 0x108   :  { %v447_v15 = vpop.f32.mrb[6].mxu0 }
 0x109   :  { %v1270_v16 = vpop.f32.mrb[7].mxu0  ;;  %v457_v22 = vmul.f32 %v1782_v13, %v1782_v13  ;;  %v451_v23 = vrot.slane %v1782_v13, 4 }
 0x10b   :  { %v458_v24 = vrot.slane %v457_v22, 4  ;;  %v452_v29 = vadd.f32 %v451_v23, %v1782_v13 }
 0x10d   :  { %v459_v35 = vadd.f32 %v458_v24, %v457_v22  ;;  %v453_v37 = vrot.slane %v452_v29, 2 }
 0x10f   :  { %v460_v39 = vrot.slane %v459_v35, 2  ;;  %v454_v42 = vadd.f32 %v453_v37, %v452_v29 }
 0x111   :  { %v461_v45 = vadd.f32 %v460_v39, %v459_v35  ;;  %v455_v48 = vrot.slane %v454_v42, 1 }
 0x113   :  { %v462_v51 = vrot.slane %v461_v45, 1  ;;  %v456_v54 = vadd.f32 %v455_v48, %v454_v42 }
 0x115   :  { %v463_v57 = vadd.f32 %v462_v51, %v461_v45 }
 0x117   :  { %v1128_v17 = vpop.f32.mrb[4].mxu1 }
 0x118   :  { %v1129_v18 = vpop.f32.mrb[5].mxu1 }
 0x119   :  { %v1130_v19 = vadd.f32 %v1129_v18, %v1128_v17  ;;  %v1131_v20 = vpop.f32.mrb[6].mxu1 }
 0x11a   :  { %v1132_v21 = vpop.f32.mrb[7].mxu1 }
 0x126   :  { %v1150_v25 = vpop.f32.mrb[8].mxu0 }
 0x127   :  { %v602_v26 = vpop.f32.mrb[8].mxu1  ;;  %v1151_v27 = vpop.f32.mrb[9].mxu0 }
 0x128   :  { %v1281_v28 = vpop.f32.mrb[9].mxu1  ;;  %v1152_v30 = vadd.f32 %v1151_v27, %v1150_v25  ;;  %v1153_v31 = vpop.f32.mrb[10].mxu0 }
 0x129   :  { %v605_v32 = vpop.f32.mrb[10].mxu1  ;;  %v1154_v33 = vpop.f32.mrb[11].mxu0 }
 0x12a   :  { %v1282_v34 = vpop.f32.mrb[11].mxu1  ;;  %v563_v36 = vadd.f32 %v1152_v30, %v1130_v19 }
 0x12c   :  { %v1788_v38 = vadd.f32 %v602_v26, %v563_v36 }
 0x12e   :  { %v610_v40 = vrot.slane %v1788_v38, 4  ;;  %v616_v41 = vmul.f32 %v1788_v38, %v1788_v38 }
 0x130   :  { %v611_v43 = vadd.f32 %v610_v40, %v1788_v38  ;;  %v617_v44 = vrot.slane %v616_v41, 4 }
 0x132   :  { %v612_v46 = vrot.slane %v611_v43, 2  ;;  %v618_v47 = vadd.f32 %v617_v44, %v616_v41 }
 0x134   :  { %v613_v49 = vadd.f32 %v612_v46, %v611_v43  ;;  %v619_v50 = vrot.slane %v618_v47, 2 }
 0x136   :  { %v614_v52 = vrot.slane %v613_v49, 1  ;;  %v620_v53 = vadd.f32 %v619_v50, %v618_v47 }
 0x138   :  { %v615_v55 = vadd.f32 %v614_v52, %v613_v49  ;;  %v621_v56 = vrot.slane %v620_v53, 1 }
 0x13a   :  { %v622_v58 = vadd.f32 %v621_v56, %v620_v53  ;;  %v623_v59 = vadd.f32 %v615_v55, %v456_v54 }
 0x13c   :  { %v624_v60 = vadd.f32 %v622_v58, %v463_v57 }
 0x146   :  { %v1177_v61 = vpop.f32.mrb[12].mxu0 }
 0x147   :  { %v1199_v62 = vpop.f32.mrb[12].mxu1  ;;  %v1178_v63 = vpop.f32.mrb[13].mxu0 }
 0x148   :  { %v1200_v0 = vpop.f32.mrb[13].mxu1  ;;  %v1179_v1 = vadd.f32 %v1178_v63, %v1177_v61  ;;  %v1180_v3 = vpop.f32.mrb[14].mxu0 }
 0x149   :  { %v1201_v2 = vadd.f32 %v1200_v0, %v1199_v62  ;;  %v1202_v4 = vpop.f32.mrb[14].mxu1  ;;  %v1181_v5 = vpop.f32.mrb[15].mxu0 }
 0x14a   :  { %v1203_v6 = vpop.f32.mrb[15].mxu1  ;;  %v951_v4 = vld [vmem:[%s1814_s2] sm:$0x1] }
 0x14b   :  { %v724_v7 = vadd.f32 %v1201_v2, %v1179_v1  ;;  %v960_v2 = vlaneseq }
 0x14d   :  { %v961_v3 = vshrl.u32 %v960_v2, 7 }
 0x14f   :  { %v962_v5 = vsub.s32 0, %v961_v3 }
 0x156   :  { %v763_v8 = vpop.f32.mrb[16].mxu0 }
 0x157   :  { %v1794_v9 = vadd.f32 %v763_v8, %v724_v7  ;;  %v1293_v10 = vpop.f32.mrb[17].mxu0  ;;  %v955_v8 = vld [vmem:[%s1815_s3] sm:$0x1] }
 0x158   :  { %v766_v11 = vpop.f32.mrb[18].mxu0 }
 0x159   :  { %v771_v12 = vrot.slane %v1794_v9, 4  ;;  %v777_v14 = vmul.f32 %v1794_v9, %v1794_v9  ;;  %v1294_v15 = vpop.f32.mrb[19].mxu0 }
 0x15b   :  { %v772_v16 = vadd.f32 %v771_v12, %v1794_v9  ;;  %v778_v17 = vrot.slane %v777_v14, 4 }
 0x15d   :  { %v773_v18 = vrot.slane %v772_v16, 2  ;;  %v779_v19 = vadd.f32 %v778_v17, %v777_v14 }
 0x15f   :  { %v774_v20 = vadd.f32 %v773_v18, %v772_v16  ;;  %v780_v21 = vrot.slane %v779_v19, 2 }
 0x161   :  { %v775_v22 = vrot.slane %v774_v20, 1  ;;  %v781_v23 = vadd.f32 %v780_v21, %v779_v19 }
 0x163   :  { %v776_v24 = vadd.f32 %v775_v22, %v774_v20  ;;  %v782_v25 = vrot.slane %v781_v23, 1 }
 0x165   :  { %v783_v26 = vadd.f32 %v782_v25, %v781_v23  ;;  %v784_v27 = vadd.f32 %v776_v24, %v623_v59 }
 0x167   :  { %v1226_v28 = vpop.f32.mrb[16].mxu1  ;;  %v785_v29 = vadd.f32 %v783_v26, %v624_v60 }
 0x168   :  { %v1227_v30 = vpop.f32.mrb[17].mxu1 }
 0x169   :  { %v1228_v31 = vadd.f32 %v1227_v30, %v1226_v28  ;;  %v1229_v32 = vpop.f32.mrb[18].mxu1 }
 0x16a   :  { %v1230_v33 = vpop.f32.mrb[19].mxu1 }
 0x176   :  { %v1248_v34 = vpop.f32.mrb[20].mxu0 }
 0x177   :  { %v924_v35 = vpop.f32.mrb[20].mxu1  ;;  %v1249_v36 = vpop.f32.mrb[21].mxu0 }
 0x178   :  { %v1305_v37 = vpop.f32.mrb[21].mxu1  ;;  %v1250_v39 = vadd.f32 %v1249_v36, %v1248_v34  ;;  %v1251_v40 = vpop.f32.mrb[22].mxu0 }
 0x179   :  { %v927_v41 = vpop.f32.mrb[22].mxu1  ;;  %v1252_v42 = vpop.f32.mrb[23].mxu0 }
 0x17a   :  { %v1306_v43 = vpop.f32.mrb[23].mxu1  ;;  %v885_v44 = vadd.f32 %v1250_v39, %v1228_v31 }
 0x17c   :  { %v925_v45 = vadd.f32 %v924_v35, %v885_v44 }
 0x17e   :  { %v932_v46 = vrot.slane %v925_v45, 4  ;;  %v938_v47 = vmul.f32 %v925_v45, %v925_v45 }
 0x180   :  { %v933_v48 = vadd.f32 %v932_v46, %v925_v45  ;;  %v939_v49 = vrot.slane %v938_v47, 4 }
 0x182   :  { %v934_v50 = vrot.slane %v933_v48, 2  ;;  %v940_v51 = vadd.f32 %v939_v49, %v938_v47 }
 0x184   :  { %v935_v52 = vadd.f32 %v934_v50, %v933_v48  ;;  %v941_v53 = vrot.slane %v940_v51, 2 }
 0x186   :  { %v936_v54 = vrot.slane %v935_v52, 1  ;;  %v942_v55 = vadd.f32 %v941_v53, %v940_v51 }
 0x188   :  { %v937_v56 = vadd.f32 %v936_v54, %v935_v52  ;;  %v943_v57 = vrot.slane %v942_v55, 1 }
 0x18a   :  { %v944_v58 = vadd.f32 %v943_v57, %v942_v55  ;;  %v945_v59 = vadd.f32 %v937_v56, %v784_v27 }
 0x18c   :  { %v946_v60 = vadd.f32 %v944_v58, %v785_v29  ;;  %v947_v61 = vmul.f32 0.125, %v945_v59 }
 0x18e   :  { %v948_v62 = vmul.f32 0.125, %v946_v60  ;;  %v949_v63 = vmul.f32 %v947_v61, %v947_v61 }
 0x190   :  { %v950_v0 = vsub.f32 %v948_v62, %v949_v63 }
 0x192   :  { %v952_v1 = vadd.f32 1e-05, %v950_v0 }
 0x194   :  { %1365 = vrsqrt.f32 %v952_v1 }
 0x19e   :  { %v1366_v6 = vpop.eup %1365 }
 0x19f   :  { %v954_v7 = vmul.f32 %v1366_v6, %v951_v4 }
 0x1a1   :  { %v956_v10 = vmul.f32 %v954_v7, %v947_v61  ;;  %v963_v11 = vrot.slane %v954_v7, %v962_v5 }
 0x1a3   :  { %v957_v12 = vsub.f32 %v955_v8, %v956_v10  ;;  %v965_v14 = vmul.f32 %v963_v11, %v1782_v13  ;;  %v975_v15 = vmul.f32 %v963_v11, %v1788_v38  ;;  %v980_v16 = vmul.f32 %v963_v11, %v1794_v9 }
 0x1a4   :  { %v985_v17 = vmul.f32 %v963_v11, %v925_v45 }
 0x1a5   :  { %v970_v18 = vrot.slane %v957_v12, %v962_v5 }
 0x1a7   :  { %v972_v19 = vadd.f32 %v970_v18, %v965_v14  ;;  %v976_v20 = vadd.f32 %v975_v15, %v970_v18  ;;  %v981_v21 = vadd.f32 %v980_v16, %v970_v18  ;;  %v986_v22 = vadd.f32 %v985_v17, %v970_v18 }
 0x1a9   :  { %v973_v23 = vmax.f32 %v972_v19, 0.0  ;;  %v977_v24 = vmax.f32 %v976_v20, 0.0  ;;  %v982_v26 = vmax.f32 %v981_v21, 0.0  ;;  %v987_v28 = vmax.f32 %v986_v22, 0.0 }
 0x1ab   :  { %v978_v25 = vmax.f32 %v973_v23, %v977_v24 }
 0x1ad   :  { %v983_v27 = vmax.f32 %v978_v25, %v982_v26 }
 0x1af   :  { %v988_v29 = vmax.f32 %v983_v27, %v987_v28 }
 0x1b1   :  { %989 = vst [vmem:[%s1816_s4] sm:$0xff] %v988_v29 }

</bundles_post_ra>
